<compile_context>
chip_gen: v6e
topology: v6e:2x2x1
jax: 0.10.0
libtpu: 0.0.40
codegen_flags: <defaults>
</compile_context>

<pallas_src>
import jax
import jax.numpy as jnp
from jax import lax
from jax.experimental import pallas as pl
from jax.experimental.pallas import tpu as pltpu

LANE = 128
COL0 = 8  # sublane-aligned interior column offset of the conv2 staging buffer


def _make_kernel(Nb, H, W, Cp, strips):
    """Builds the fused kernel for static (Nb, H, W, Cp) and a strip plan."""
    HP = H + 2
    col0 = COL0

    def kernel(x_ref, w1_ref, b1_ref, w2_ref, b2_ref, o_ref, pad_ref):
        # x_ref  : (Nb, H+2, W+2, Cp)  host-zero-padded input (compute dtype)
        # w*_ref : (3, 3*Cp, Cp)       BN-folded weights, dx folded into K
        # b*_ref : (1, 1, Cp)          BN-folded bias (f32)
        # o_ref  : (Nb, H, W, Cp)      output
        # pad_ref: (H+2, Wp2, Cp)      staging buffer for ReLU(conv1), zero halo
        Wp2 = pad_ref.shape[1]

        # Zero only the halo ring of the conv2 staging buffer. Done every grid
        # step (megacore safe); the interior is always overwritten below.
        zrow = jnp.zeros((1, Wp2, Cp), pad_ref.dtype)
        pad_ref[0:1] = zrow
        pad_ref[HP - 1:HP] = zrow
        zcol = jnp.zeros((HP, 1, Cp), pad_ref.dtype)
        pad_ref[:, col0 - 1:col0] = zcol
        pad_ref[:, col0 + W:col0 + W + 1] = zcol

        def conv_strip(read_piece, w_ref, r0, hs):
            # One output strip: 3 MXU matmuls (one per dy) with K = 3*Cp.
            acc = None
            for dy in range(3):
                pieces = [read_piece(r0 + dy, hs, dx) for dx in range(3)]
                slab = jnp.concatenate(pieces, axis=-1)          # (hs, W, 3Cp)
                part = lax.dot_general(
                    slab, w_ref[dy],
                    dimension_numbers=(((2,), (0,)), ((), ())),
                    preferred_element_type=jnp.float32)          # (hs, W, Cp)
                acc = part if acc is None else acc + part
            return acc

        for n in range(Nb):
            # ---- conv1 + BN + ReLU: read host-padded x, write strips straight
            #      into the conv2 staging buffer (aligned stores).
            def read_x(row, hs, dx, n=n):
                return x_ref[n, row:row + hs, dx:dx + W, :]

            for (r0, hs) in strips:
                a = conv_strip(read_x, w1_ref, r0, hs) + b1_ref[...]
                a = jnp.maximum(a, 0.0)
                pad_ref[1 + r0:1 + r0 + hs, col0:col0 + W, :] = (
                    a.astype(pad_ref.dtype))

            # ---- conv2 + BN, + residual, final ReLU, store lane-dense output.
            def read_y(row, hs, dx):
                c = col0 - 1 + dx
                return pad_ref[row:row + hs, c:c + W, :]

            for (r0, hs) in strips:
                a = conv_strip(read_y, w2_ref, r0, hs) + b2_ref[...]
                resid = x_ref[n, 1 + r0:1 + r0 + hs, 1:1 + W, :]
                a = jnp.maximum(a + resid.astype(jnp.float32), 0.0)
                o_ref[n, r0:r0 + hs, :, :] = a.astype(o_ref.dtype)

    return kernel


def resnet_v1_block(x_nchw, w1, gamma1, beta1, mean1, var1,
                    w2, gamma2, beta2, mean2, var2, eps=1e-5,
                    use_bf16_matmul=False):
    """Fused ResNet-v1 basic block. NCHW in/out, HWIO conv weights, eval BN."""
    N, C, H, W = x_nchw.shape
    Cp = ((C + LANE - 1) // LANE) * LANE
    pc = Cp - C
    out_dtype = x_nchw.dtype
    compute_dtype = jnp.bfloat16 if use_bf16_matmul else x_nchw.dtype

    # NCHW -> NHWC; pad the +/-1 conv halo and lane-pad channels on the host
    # so the kernel's conv1 reads are halo-free and every tile is lane-dense.
    x = jnp.transpose(x_nchw, (0, 2, 3, 1))
    x = jnp.pad(x, ((0, 0), (1, 1), (1, 1), (0, pc))).astype(compute_dtype)

    # Fold eval-mode BN into the conv weights (scale, in f32) and a per-channel
    # f32 bias; reshape weights so the 3 dx taps become the matmul K dimension.
    def fold(w, g, b, m, v):
        inv = (g / jnp.sqrt(v + eps)).astype(jnp.float32)
        wf = w.astype(jnp.float32) * inv[None, None, None, :]
        bf = (b - m * inv).astype(jnp.float32)
        wf = jnp.pad(wf, ((0, 0), (0, 0), (0, pc), (0, pc)))
        bf = jnp.pad(bf, ((0, pc),))
        wf = wf.reshape(3, 3 * Cp, Cp).astype(compute_dtype)   # (dy, dx*Cin, Cout)
        return wf, bf.reshape(1, 1, Cp)

    wf1, bf1 = fold(w1, gamma1, beta1, mean1, var1)
    wf2, bf2 = fold(w2, gamma2, beta2, mean2, var2)

    # --- static planning -----------------------------------------------------
    act_bytes = jnp.dtype(compute_dtype).itemsize
    out_bytes = jnp.dtype(out_dtype).itemsize

    # Row strips: keep the f32 accumulator strip around <= 256 KiB.
    row_f32 = W * Cp * 4
    hs = max(1, min(H, (256 * 1024) // max(row_f32, 1)))
    if hs < H and hs >= 8:
        hs = (hs // 8) * 8
    strips = [(r0, min(hs, H - r0)) for r0 in range(0, H, hs)]

    # Images per grid step: amortize per-step overhead under a VMEM budget.
    per_img = ((H + 2) * (W + 2) * Cp * act_bytes
               + H * W * Cp * out_bytes) * 2            # double-buffered blocks
    Nb = 1
    for cand in range(1, N + 1):
        if N % cand == 0 and cand <= 8 and cand * per_img <= (8 << 20):
            Nb = cand

    # Conv2 staging buffer: interior at a sublane-aligned column offset.
    Wp2 = ((COL0 + W + 1 + 7) // 8) * 8

    # Explicit VMEM limit from the estimated working set (NOTE: weights are
    # grid-invariant; pipeline_mode=pl.Buffered(1) would halve their buffers).
    w_bytes = 2 * (3 * 3 * Cp * Cp * act_bytes) * 2
    pad_bytes = (H + 2) * Wp2 * Cp * act_bytes
    est = Nb * per_img + w_bytes + pad_bytes + 2 * Cp * 4 * 2 + (1 << 20)
    vmem_limit = int(min(max(2 * est, 32 << 20), 96 << 20))

    kernel = _make_kernel(Nb, H, W, Cp, strips)

    out_nhwc = pl.pallas_call(
        kernel,
        out_shape=jax.ShapeDtypeStruct((N, H, W, Cp), out_dtype),
        grid_spec=pltpu.PrefetchScalarGridSpec(
            num_scalar_prefetch=0,
            grid=(N // Nb,),
            in_specs=[
                pl.BlockSpec((Nb, H + 2, W + 2, Cp), lambda n: (n, 0, 0, 0)),
                pl.BlockSpec((3, 3 * Cp, Cp), lambda n: (0, 0, 0)),
                pl.BlockSpec((1, 1, Cp), lambda n: (0, 0, 0)),
                pl.BlockSpec((3, 3 * Cp, Cp), lambda n: (0, 0, 0)),
                pl.BlockSpec((1, 1, Cp), lambda n: (0, 0, 0)),
            ],
            out_specs=pl.BlockSpec((Nb, H, W, Cp), lambda n: (n, 0, 0, 0)),
            scratch_shapes=[pltpu.VMEM((H + 2, Wp2, Cp), compute_dtype)],
        ),
        compiler_params=pltpu.CompilerParams(
            dimension_semantics=("parallel",),
            vmem_limit_bytes=vmem_limit),
    )(x, wf1, bf1, wf2, bf2)

    out_nhwc = out_nhwc[..., :C]                       # drop lane padding
    return jnp.transpose(out_nhwc, (0, 3, 1, 2))       # NHWC -> NCHW


def reference_resnet_v1_block(x, w1, g1, be1, m1, v1, w2, g2, be2, m2, v2,
                              eps=1e-5):
    """Pure-JAX reference (NCHW in/out, HWIO weights), eval-mode BN."""
    def conv_bn(h, w, g, be, m, v, act):
        y = lax.conv_general_dilated(
            h, w, window_strides=(1, 1), padding=((1, 1), (1, 1)),
            dimension_numbers=('NCHW', 'HWIO', 'NCHW'))
        scale = g / jnp.sqrt(v + eps)
        y = y * scale[None, :, None, None] + (be - m * scale)[None, :, None, None]
        return jnp.maximum(y, 0.0) if act else y

    y = conv_bn(x, w1, g1, be1, m1, v1, True)
    y = conv_bn(y, w2, g2, be2, m2, v2, False)
    return jnp.maximum(y + x, 0.0)


if __name__ == "__main__":
    N, C, H, W = 2, 4, 16, 16
    key = jax.random.PRNGKey(0)
    keys = jax.random.split(key, 11)

    x = jax.random.normal(keys[0], (N, C, H, W), jnp.float32)

    # Deterministic synthetic parameters (conv weights in HWIO layout).
    w1 = 0.1 * jax.random.normal(keys[1], (3, 3, C, C), jnp.float32)
    w2 = 0.1 * jax.random.normal(keys[2], (3, 3, C, C), jnp.float32)
    gamma1 = 1.0 + 0.1 * jax.random.normal(keys[3], (C,), jnp.float32)
    beta1 = 0.1 * jax.random.normal(keys[4], (C,), jnp.float32)
    mean1 = 0.1 * jax.random.normal(keys[5], (C,), jnp.float32)
    var1 = 0.5 + jnp.abs(jax.random.normal(keys[6], (C,), jnp.float32)) * 0.1
    gamma2 = 1.0 + 0.1 * jax.random.normal(keys[7], (C,), jnp.float32)
    beta2 = 0.1 * jax.random.normal(keys[8], (C,), jnp.float32)
    mean2 = 0.1 * jax.random.normal(keys[9], (C,), jnp.float32)
    var2 = 0.5 + jnp.abs(jax.random.normal(keys[10], (C,), jnp.float32)) * 0.1

    ref = reference_resnet_v1_block(x, w1, gamma1, beta1, mean1, var1,
                                    w2, gamma2, beta2, mean2, var2)
    ref = jax.block_until_ready(ref)

    # Exact-dtype path (matmul operands stay in the caller's dtype).
    out = resnet_v1_block(x, w1, gamma1, beta1, mean1, var1,
                          w2, gamma2, beta2, mean2, var2)
    out = jax.block_until_ready(out)
    assert out.shape == (N, C, H, W)
    assert jnp.allclose(out, ref, atol=1e-4, rtol=1e-4), (
        float(jnp.max(jnp.abs(out - ref))))

    # bf16-MXU path (f32 accumulation) — looser, bf16-level tolerance.
    out_bf16 = resnet_v1_block(x, w1, gamma1, beta1, mean1, var1,
                               w2, gamma2, beta2, mean2, var2,
                               use_bf16_matmul=True)
    out_bf16 = jax.block_until_ready(out_bf16)
    assert out_bf16.shape == (N, C, H, W)
    assert jnp.allclose(out_bf16, ref, atol=1e-1, rtol=1e-1), (
        float(jnp.max(jnp.abs(out_bf16 - ref))))

    print("KERNEL_OK")
</pallas_src>

<mosaic_0001>
module attributes {stable_mosaic.version = 11 : i64} {
  func.func @kernel(%arg0: i32, %arg1: memref<2x18x18x128xf32, #tpu.memory_space<vmem>>, %arg2: memref<3x384x128xf32, #tpu.memory_space<vmem>>, %arg3: memref<1x1x128xf32, #tpu.memory_space<vmem>>, %arg4: memref<3x384x128xf32, #tpu.memory_space<vmem>>, %arg5: memref<1x1x128xf32, #tpu.memory_space<vmem>>, %arg6: memref<2x16x16x128xf32, #tpu.memory_space<vmem>>, %arg7: memref<18x32x128xf32, #tpu.memory_space<vmem>>) attributes {dimension_semantics = [#tpu.dimension_semantics<parallel>], iteration_bounds = array<i64: 1>, scalar_prefetch = 0 : i64, scratch_operands = 1 : i64, tpu.core_type = #tpu.core_type<tc>, window_params = [{transform_indices = @transform_0, window_bounds = array<i64: 2, 18, 18, 128>}, {pipeline_mode = #tpu.pipeline_mode<synchronous>, transform_indices = @transform_1, window_bounds = array<i64: 3, 384, 128>}, {pipeline_mode = #tpu.pipeline_mode<synchronous>, transform_indices = @transform_2, window_bounds = array<i64: 1, 1, 128>}, {pipeline_mode = #tpu.pipeline_mode<synchronous>, transform_indices = @transform_3, window_bounds = array<i64: 3, 384, 128>}, {pipeline_mode = #tpu.pipeline_mode<synchronous>, transform_indices = @transform_4, window_bounds = array<i64: 1, 1, 128>}, {transform_indices = @transform_5, window_bounds = array<i64: 2, 16, 16, 128>}]} {
    %cst = arith.constant 0.000000e+00 : f32
    %0 = vector.broadcast %cst : f32 to vector<1x32x128xf32>
    %c0 = arith.constant 0 : index
    %c0_0 = arith.constant 0 : index
    %c0_1 = arith.constant 0 : index
    %1 = vector.load %arg7[%c0, %c0_0, %c0_1] : memref<18x32x128xf32, #tpu.memory_space<vmem>>, vector<1x32x128xf32>
    tpu.vector_store %arg7[%c0, %c0_0, %c0_1], %0 {strides = array<i32>} : memref<18x32x128xf32, #tpu.memory_space<vmem>>, vector<1x32x128xf32>,
    %c17 = arith.constant 17 : index
    %c0_2 = arith.constant 0 : index
    %c0_3 = arith.constant 0 : index
    %2 = vector.load %arg7[%c17, %c0_2, %c0_3] : memref<18x32x128xf32, #tpu.memory_space<vmem>>, vector<1x32x128xf32>
    tpu.vector_store %arg7[%c17, %c0_2, %c0_3], %0 {strides = array<i32>} : memref<18x32x128xf32, #tpu.memory_space<vmem>>, vector<1x32x128xf32>,
    %cst_4 = arith.constant 0.000000e+00 : f32
    %3 = vector.broadcast %cst_4 : f32 to vector<18x1x128xf32>
    %c0_5 = arith.constant 0 : index
    %c7 = arith.constant 7 : index
    %c0_6 = arith.constant 0 : index
    %4 = vector.load %arg7[%c0_5, %c7, %c0_6] : memref<18x32x128xf32, #tpu.memory_space<vmem>>, vector<18x1x128xf32>
    tpu.vector_store %arg7[%c0_5, %c7, %c0_6], %3 {strides = array<i32>} : memref<18x32x128xf32, #tpu.memory_space<vmem>>, vector<18x1x128xf32>,
    %c0_7 = arith.constant 0 : index
    %c24 = arith.constant 24 : index
    %c0_8 = arith.constant 0 : index
    %5 = vector.load %arg7[%c0_7, %c24, %c0_8] : memref<18x32x128xf32, #tpu.memory_space<vmem>>, vector<18x1x128xf32>
    tpu.vector_store %arg7[%c0_7, %c24, %c0_8], %3 {strides = array<i32>} : memref<18x32x128xf32, #tpu.memory_space<vmem>>, vector<18x1x128xf32>,
    %c0_9 = arith.constant 0 : index
    %c0_10 = arith.constant 0 : index
    %c0_11 = arith.constant 0 : index
    %c0_12 = arith.constant 0 : index
    %6 = vector.load %arg1[%c0_9, %c0_10, %c0_11, %c0_12] : memref<2x18x18x128xf32, #tpu.memory_space<vmem>>, vector<1x16x16x128xf32>
    %7 = vector.shape_cast %6 : vector<1x16x16x128xf32> to vector<16x16x128xf32>
    %c0_13 = arith.constant 0 : index
    %c0_14 = arith.constant 0 : index
    %c1 = arith.constant 1 : index
    %c0_15 = arith.constant 0 : index
    %8 = vector.load %arg1[%c0_13, %c0_14, %c1, %c0_15] : memref<2x18x18x128xf32, #tpu.memory_space<vmem>>, vector<1x16x16x128xf32>
    %9 = vector.shape_cast %8 : vector<1x16x16x128xf32> to vector<16x16x128xf32>
    %c0_16 = arith.constant 0 : index
    %c0_17 = arith.constant 0 : index
    %c2 = arith.constant 2 : index
    %c0_18 = arith.constant 0 : index
    %10 = vector.load %arg1[%c0_16, %c0_17, %c2, %c0_18] : memref<2x18x18x128xf32, #tpu.memory_space<vmem>>, vector<1x16x16x128xf32>
    %11 = vector.shape_cast %10 : vector<1x16x16x128xf32> to vector<16x16x128xf32>
    %12 = tpu.concatenate %7, %9, %11 in 2 : vector<16x16x128xf32>, vector<16x16x128xf32>, vector<16x16x128xf32> -> vector<16x16x384xf32>
    %c0_19 = arith.constant 0 : index
    %c0_20 = arith.constant 0 : index
    %c0_21 = arith.constant 0 : index
    %13 = vector.load %arg2[%c0_19, %c0_20, %c0_21] : memref<3x384x128xf32, #tpu.memory_space<vmem>>, vector<1x384x128xf32>
    %14 = vector.shape_cast %13 : vector<1x384x128xf32> to vector<384x128xf32>
    %cst_22 = arith.constant dense<0.000000e+00> : vector<16x16x128xf32>
    %15 = tpu.matmul %12, %14, %cst_22 {dimension_numbers = #tpu.dot_dimension_numbers<[2], [0], [0, 1], [1], [0, 0, 0, 1, 1, 1], [], []>} : vector<16x16x384xf32>, vector<384x128xf32>, vector<16x16x128xf32> -> vector<16x16x128xf32>
    %c0_23 = arith.constant 0 : index
    %c1_24 = arith.constant 1 : index
    %c0_25 = arith.constant 0 : index
    %c0_26 = arith.constant 0 : index
    %16 = vector.load %arg1[%c0_23, %c1_24, %c0_25, %c0_26] : memref<2x18x18x128xf32, #tpu.memory_space<vmem>>, vector<1x16x16x128xf32>
    %17 = vector.shape_cast %16 : vector<1x16x16x128xf32> to vector<16x16x128xf32>
    %c0_27 = arith.constant 0 : index
    %c1_28 = arith.constant 1 : index
    %c1_29 = arith.constant 1 : index
    %c0_30 = arith.constant 0 : index
    %18 = vector.load %arg1[%c0_27, %c1_28, %c1_29, %c0_30] : memref<2x18x18x128xf32, #tpu.memory_space<vmem>>, vector<1x16x16x128xf32>
    %19 = vector.shape_cast %18 : vector<1x16x16x128xf32> to vector<16x16x128xf32>
    %c0_31 = arith.constant 0 : index
    %c1_32 = arith.constant 1 : index
    %c2_33 = arith.constant 2 : index
    %c0_34 = arith.constant 0 : index
    %20 = vector.load %arg1[%c0_31, %c1_32, %c2_33, %c0_34] : memref<2x18x18x128xf32, #tpu.memory_space<vmem>>, vector<1x16x16x128xf32>
    %21 = vector.shape_cast %20 : vector<1x16x16x128xf32> to vector<16x16x128xf32>
    %22 = tpu.concatenate %17, %19, %21 in 2 : vector<16x16x128xf32>, vector<16x16x128xf32>, vector<16x16x128xf32> -> vector<16x16x384xf32>
    %c1_35 = arith.constant 1 : index
    %c0_36 = arith.constant 0 : index
    %c0_37 = arith.constant 0 : index
    %23 = vector.load %arg2[%c1_35, %c0_36, %c0_37] : memref<3x384x128xf32, #tpu.memory_space<vmem>>, vector<1x384x128xf32>
    %24 = vector.shape_cast %23 : vector<1x384x128xf32> to vector<384x128xf32>
    %cst_38 = arith.constant dense<0.000000e+00> : vector<16x16x128xf32>
    %25 = tpu.matmul %22, %24, %cst_38 {dimension_numbers = #tpu.dot_dimension_numbers<[2], [0], [0, 1], [1], [0, 0, 0, 1, 1, 1], [], []>} : vector<16x16x384xf32>, vector<384x128xf32>, vector<16x16x128xf32> -> vector<16x16x128xf32>
    %26 = arith.addf %15, %25 : vector<16x16x128xf32>
    %c0_39 = arith.constant 0 : index
    %c2_40 = arith.constant 2 : index
    %c0_41 = arith.constant 0 : index
    %c0_42 = arith.constant 0 : index
    %27 = vector.load %arg1[%c0_39, %c2_40, %c0_41, %c0_42] : memref<2x18x18x128xf32, #tpu.memory_space<vmem>>, vector<1x16x16x128xf32>
    %28 = vector.shape_cast %27 : vector<1x16x16x128xf32> to vector<16x16x128xf32>
    %c0_43 = arith.constant 0 : index
    %c2_44 = arith.constant 2 : index
    %c1_45 = arith.constant 1 : index
    %c0_46 = arith.constant 0 : index
    %29 = vector.load %arg1[%c0_43, %c2_44, %c1_45, %c0_46] : memref<2x18x18x128xf32, #tpu.memory_space<vmem>>, vector<1x16x16x128xf32>
    %30 = vector.shape_cast %29 : vector<1x16x16x128xf32> to vector<16x16x128xf32>
    %c0_47 = arith.constant 0 : index
    %c2_48 = arith.constant 2 : index
    %c2_49 = arith.constant 2 : index
    %c0_50 = arith.constant 0 : index
    %31 = vector.load %arg1[%c0_47, %c2_48, %c2_49, %c0_50] : memref<2x18x18x128xf32, #tpu.memory_space<vmem>>, vector<1x16x16x128xf32>
    %32 = vector.shape_cast %31 : vector<1x16x16x128xf32> to vector<16x16x128xf32>
    %33 = tpu.concatenate %28, %30, %32 in 2 : vector<16x16x128xf32>, vector<16x16x128xf32>, vector<16x16x128xf32> -> vector<16x16x384xf32>
    %c2_51 = arith.constant 2 : index
    %c0_52 = arith.constant 0 : index
    %c0_53 = arith.constant 0 : index
    %34 = vector.load %arg2[%c2_51, %c0_52, %c0_53] : memref<3x384x128xf32, #tpu.memory_space<vmem>>, vector<1x384x128xf32>
    %35 = vector.shape_cast %34 : vector<1x384x128xf32> to vector<384x128xf32>
    %cst_54 = arith.constant dense<0.000000e+00> : vector<16x16x128xf32>
    %36 = tpu.matmul %33, %35, %cst_54 {dimension_numbers = #tpu.dot_dimension_numbers<[2], [0], [0, 1], [1], [0, 0, 0, 1, 1, 1], [], []>} : vector<16x16x384xf32>, vector<384x128xf32>, vector<16x16x128xf32> -> vector<16x16x128xf32>
    %37 = arith.addf %26, %36 : vector<16x16x128xf32>
    %c0_55 = arith.constant 0 : index
    %c0_56 = arith.constant 0 : index
    %c0_57 = arith.constant 0 : index
    %38 = vector.load %arg3[%c0_55, %c0_56, %c0_57] : memref<1x1x128xf32, #tpu.memory_space<vmem>>, vector<1x1x128xf32>
    %39 = vector.broadcast %38 : vector<1x1x128xf32> to vector<16x16x128xf32>
    %40 = arith.addf %37, %39 : vector<16x16x128xf32>
    %cst_58 = arith.constant 0.000000e+00 : f32
    %41 = vector.broadcast %cst_58 : f32 to vector<16x16x128xf32>
    %42 = arith.maximumf %40, %41 : vector<16x16x128xf32>
    %c1_59 = arith.constant 1 : index
    %c8 = arith.constant 8 : index
    %c0_60 = arith.constant 0 : index
    %43 = vector.load %arg7[%c1_59, %c8, %c0_60] : memref<18x32x128xf32, #tpu.memory_space<vmem>>, vector<16x16x128xf32>
    tpu.vector_store %arg7[%c1_59, %c8, %c0_60], %42 {strides = array<i32>} : memref<18x32x128xf32, #tpu.memory_space<vmem>>, vector<16x16x128xf32>,
    %c0_61 = arith.constant 0 : index
    %c7_62 = arith.constant 7 : index
    %c0_63 = arith.constant 0 : index
    %44 = vector.load %arg7[%c0_61, %c7_62, %c0_63] : memref<18x32x128xf32, #tpu.memory_space<vmem>>, vector<16x16x128xf32>
    %c0_64 = arith.constant 0 : index
    %c8_65 = arith.constant 8 : index
    %c0_66 = arith.constant 0 : index
    %45 = vector.load %arg7[%c0_64, %c8_65, %c0_66] : memref<18x32x128xf32, #tpu.memory_space<vmem>>, vector<16x16x128xf32>
    %c0_67 = arith.constant 0 : index
    %c9 = arith.constant 9 : index
    %c0_68 = arith.constant 0 : index
    %46 = vector.load %arg7[%c0_67, %c9, %c0_68] : memref<18x32x128xf32, #tpu.memory_space<vmem>>, vector<16x16x128xf32>
    %47 = tpu.concatenate %44, %45, %46 in 2 : vector<16x16x128xf32>, vector<16x16x128xf32>, vector<16x16x128xf32> -> vector<16x16x384xf32>
    %c0_69 = arith.constant 0 : index
    %c0_70 = arith.constant 0 : index
    %c0_71 = arith.constant 0 : index
    %48 = vector.load %arg4[%c0_69, %c0_70, %c0_71] : memref<3x384x128xf32, #tpu.memory_space<vmem>>, vector<1x384x128xf32>
    %49 = vector.shape_cast %48 : vector<1x384x128xf32> to vector<384x128xf32>
    %cst_72 = arith.constant dense<0.000000e+00> : vector<16x16x128xf32>
    %50 = tpu.matmul %47, %49, %cst_72 {dimension_numbers = #tpu.dot_dimension_numbers<[2], [0], [0, 1], [1], [0, 0, 0, 1, 1, 1], [], []>} : vector<16x16x384xf32>, vector<384x128xf32>, vector<16x16x128xf32> -> vector<16x16x128xf32>
    %c1_73 = arith.constant 1 : index
    %c7_74 = arith.constant 7 : index
    %c0_75 = arith.constant 0 : index
    %51 = vector.load %arg7[%c1_73, %c7_74, %c0_75] : memref<18x32x128xf32, #tpu.memory_space<vmem>>, vector<16x16x128xf32>
    %c1_76 = arith.constant 1 : index
    %c8_77 = arith.constant 8 : index
    %c0_78 = arith.constant 0 : index
    %52 = vector.load %arg7[%c1_76, %c8_77, %c0_78] : memref<18x32x128xf32, #tpu.memory_space<vmem>>, vector<16x16x128xf32>
    %c1_79 = arith.constant 1 : index
    %c9_80 = arith.constant 9 : index
    %c0_81 = arith.constant 0 : index
    %53 = vector.load %arg7[%c1_79, %c9_80, %c0_81] : memref<18x32x128xf32, #tpu.memory_space<vmem>>, vector<16x16x128xf32>
    %54 = tpu.concatenate %51, %52, %53 in 2 : vector<16x16x128xf32>, vector<16x16x128xf32>, vector<16x16x128xf32> -> vector<16x16x384xf32>
    %c1_82 = arith.constant 1 : index
    %c0_83 = arith.constant 0 : index
    %c0_84 = arith.constant 0 : index
    %55 = vector.load %arg4[%c1_82, %c0_83, %c0_84] : memref<3x384x128xf32, #tpu.memory_space<vmem>>, vector<1x384x128xf32>
    %56 = vector.shape_cast %55 : vector<1x384x128xf32> to vector<384x128xf32>
    %cst_85 = arith.constant dense<0.000000e+00> : vector<16x16x128xf32>
    %57 = tpu.matmul %54, %56, %cst_85 {dimension_numbers = #tpu.dot_dimension_numbers<[2], [0], [0, 1], [1], [0, 0, 0, 1, 1, 1], [], []>} : vector<16x16x384xf32>, vector<384x128xf32>, vector<16x16x128xf32> -> vector<16x16x128xf32>
    %58 = arith.addf %50, %57 : vector<16x16x128xf32>
    %c2_86 = arith.constant 2 : index
    %c7_87 = arith.constant 7 : index
    %c0_88 = arith.constant 0 : index
    %59 = vector.load %arg7[%c2_86, %c7_87, %c0_88] : memref<18x32x128xf32, #tpu.memory_space<vmem>>, vector<16x16x128xf32>
    %c2_89 = arith.constant 2 : index
    %c8_90 = arith.constant 8 : index
    %c0_91 = arith.constant 0 : index
    %60 = vector.load %arg7[%c2_89, %c8_90, %c0_91] : memref<18x32x128xf32, #tpu.memory_space<vmem>>, vector<16x16x128xf32>
    %c2_92 = arith.constant 2 : index
    %c9_93 = arith.constant 9 : index
    %c0_94 = arith.constant 0 : index
    %61 = vector.load %arg7[%c2_92, %c9_93, %c0_94] : memref<18x32x128xf32, #tpu.memory_space<vmem>>, vector<16x16x128xf32>
    %62 = tpu.concatenate %59, %60, %61 in 2 : vector<16x16x128xf32>, vector<16x16x128xf32>, vector<16x16x128xf32> -> vector<16x16x384xf32>
    %c2_95 = arith.constant 2 : index
    %c0_96 = arith.constant 0 : index
    %c0_97 = arith.constant 0 : index
    %63 = vector.load %arg4[%c2_95, %c0_96, %c0_97] : memref<3x384x128xf32, #tpu.memory_space<vmem>>, vector<1x384x128xf32>
    %64 = vector.shape_cast %63 : vector<1x384x128xf32> to vector<384x128xf32>
    %cst_98 = arith.constant dense<0.000000e+00> : vector<16x16x128xf32>
    %65 = tpu.matmul %62, %64, %cst_98 {dimension_numbers = #tpu.dot_dimension_numbers<[2], [0], [0, 1], [1], [0, 0, 0, 1, 1, 1], [], []>} : vector<16x16x384xf32>, vector<384x128xf32>, vector<16x16x128xf32> -> vector<16x16x128xf32>
    %66 = arith.addf %58, %65 : vector<16x16x128xf32>
    %c0_99 = arith.constant 0 : index
    %c0_100 = arith.constant 0 : index
    %c0_101 = arith.constant 0 : index
    %67 = vector.load %arg5[%c0_99, %c0_100, %c0_101] : memref<1x1x128xf32, #tpu.memory_space<vmem>>, vector<1x1x128xf32>
    %68 = vector.broadcast %67 : vector<1x1x128xf32> to vector<16x16x128xf32>
    %69 = arith.addf %66, %68 : vector<16x16x128xf32>
    %c0_102 = arith.constant 0 : index
    %c1_103 = arith.constant 1 : index
    %c1_104 = arith.constant 1 : index
    %c0_105 = arith.constant 0 : index
    %70 = vector.load %arg1[%c0_102, %c1_103, %c1_104, %c0_105] : memref<2x18x18x128xf32, #tpu.memory_space<vmem>>, vector<1x16x16x128xf32>
    %71 = vector.shape_cast %70 : vector<1x16x16x128xf32> to vector<16x16x128xf32>
    %72 = arith.addf %69, %71 : vector<16x16x128xf32>
    %cst_106 = arith.constant 0.000000e+00 : f32
    %73 = vector.broadcast %cst_106 : f32 to vector<16x16x128xf32>
    %74 = arith.maximumf %72, %73 : vector<16x16x128xf32>
    %c0_107 = arith.constant 0 : index
    %c0_108 = arith.constant 0 : index
    %c0_109 = arith.constant 0 : index
    %c0_110 = arith.constant 0 : index
    %75 = vector.load %arg6[%c0_107, %c0_108, %c0_109, %c0_110] : memref<2x16x16x128xf32, #tpu.memory_space<vmem>>, vector<1x16x16x128xf32>
    %76 = vector.shape_cast %75 : vector<1x16x16x128xf32> to vector<16x16x128xf32>
    %77 = vector.shape_cast %74 : vector<16x16x128xf32> to vector<1x16x16x128xf32>
    tpu.vector_store %arg6[%c0_107, %c0_108, %c0_109, %c0_110], %77 {strides = array<i32>} : memref<2x16x16x128xf32, #tpu.memory_space<vmem>>, vector<1x16x16x128xf32>,
    %c1_111 = arith.constant 1 : index
    %c0_112 = arith.constant 0 : index
    %c0_113 = arith.constant 0 : index
    %c0_114 = arith.constant 0 : index
    %78 = vector.load %arg1[%c1_111, %c0_112, %c0_113, %c0_114] : memref<2x18x18x128xf32, #tpu.memory_space<vmem>>, vector<1x16x16x128xf32>
    %79 = vector.shape_cast %78 : vector<1x16x16x128xf32> to vector<16x16x128xf32>
    %c1_115 = arith.constant 1 : index
    %c0_116 = arith.constant 0 : index
    %c1_117 = arith.constant 1 : index
    %c0_118 = arith.constant 0 : index
    %80 = vector.load %arg1[%c1_115, %c0_116, %c1_117, %c0_118] : memref<2x18x18x128xf32, #tpu.memory_space<vmem>>, vector<1x16x16x128xf32>
    %81 = vector.shape_cast %80 : vector<1x16x16x128xf32> to vector<16x16x128xf32>
    %c1_119 = arith.constant 1 : index
    %c0_120 = arith.constant 0 : index
    %c2_121 = arith.constant 2 : index
    %c0_122 = arith.constant 0 : index
    %82 = vector.load %arg1[%c1_119, %c0_120, %c2_121, %c0_122] : memref<2x18x18x128xf32, #tpu.memory_space<vmem>>, vector<1x16x16x128xf32>
    %83 = vector.shape_cast %82 : vector<1x16x16x128xf32> to vector<16x16x128xf32>
    %84 = tpu.concatenate %79, %81, %83 in 2 : vector<16x16x128xf32>, vector<16x16x128xf32>, vector<16x16x128xf32> -> vector<16x16x384xf32>
    %c0_123 = arith.constant 0 : index
    %c0_124 = arith.constant 0 : index
    %c0_125 = arith.constant 0 : index
    %85 = vector.load %arg2[%c0_123, %c0_124, %c0_125] : memref<3x384x128xf32, #tpu.memory_space<vmem>>, vector<1x384x128xf32>
    %86 = vector.shape_cast %85 : vector<1x384x128xf32> to vector<384x128xf32>
    %cst_126 = arith.constant dense<0.000000e+00> : vector<16x16x128xf32>
    %87 = tpu.matmul %84, %86, %cst_126 {dimension_numbers = #tpu.dot_dimension_numbers<[2], [0], [0, 1], [1], [0, 0, 0, 1, 1, 1], [], []>} : vector<16x16x384xf32>, vector<384x128xf32>, vector<16x16x128xf32> -> vector<16x16x128xf32>
    %c1_127 = arith.constant 1 : index
    %c1_128 = arith.constant 1 : index
    %c0_129 = arith.constant 0 : index
    %c0_130 = arith.constant 0 : index
    %88 = vector.load %arg1[%c1_127, %c1_128, %c0_129, %c0_130] : memref<2x18x18x128xf32, #tpu.memory_space<vmem>>, vector<1x16x16x128xf32>
    %89 = vector.shape_cast %88 : vector<1x16x16x128xf32> to vector<16x16x128xf32>
    %c1_131 = arith.constant 1 : index
    %c1_132 = arith.constant 1 : index
    %c1_133 = arith.constant 1 : index
    %c0_134 = arith.constant 0 : index
    %90 = vector.load %arg1[%c1_131, %c1_132, %c1_133, %c0_134] : memref<2x18x18x128xf32, #tpu.memory_space<vmem>>, vector<1x16x16x128xf32>
    %91 = vector.shape_cast %90 : vector<1x16x16x128xf32> to vector<16x16x128xf32>
    %c1_135 = arith.constant 1 : index
    %c1_136 = arith.constant 1 : index
    %c2_137 = arith.constant 2 : index
    %c0_138 = arith.constant 0 : index
    %92 = vector.load %arg1[%c1_135, %c1_136, %c2_137, %c0_138] : memref<2x18x18x128xf32, #tpu.memory_space<vmem>>, vector<1x16x16x128xf32>
    %93 = vector.shape_cast %92 : vector<1x16x16x128xf32> to vector<16x16x128xf32>
    %94 = tpu.concatenate %89, %91, %93 in 2 : vector<16x16x128xf32>, vector<16x16x128xf32>, vector<16x16x128xf32> -> vector<16x16x384xf32>
    %c1_139 = arith.constant 1 : index
    %c0_140 = arith.constant 0 : index
    %c0_141 = arith.constant 0 : index
    %95 = vector.load %arg2[%c1_139, %c0_140, %c0_141] : memref<3x384x128xf32, #tpu.memory_space<vmem>>, vector<1x384x128xf32>
    %96 = vector.shape_cast %95 : vector<1x384x128xf32> to vector<384x128xf32>
    %cst_142 = arith.constant dense<0.000000e+00> : vector<16x16x128xf32>
    %97 = tpu.matmul %94, %96, %cst_142 {dimension_numbers = #tpu.dot_dimension_numbers<[2], [0], [0, 1], [1], [0, 0, 0, 1, 1, 1], [], []>} : vector<16x16x384xf32>, vector<384x128xf32>, vector<16x16x128xf32> -> vector<16x16x128xf32>
    %98 = arith.addf %87, %97 : vector<16x16x128xf32>
    %c1_143 = arith.constant 1 : index
    %c2_144 = arith.constant 2 : index
    %c0_145 = arith.constant 0 : index
    %c0_146 = arith.constant 0 : index
    %99 = vector.load %arg1[%c1_143, %c2_144, %c0_145, %c0_146] : memref<2x18x18x128xf32, #tpu.memory_space<vmem>>, vector<1x16x16x128xf32>
    %100 = vector.shape_cast %99 : vector<1x16x16x128xf32> to vector<16x16x128xf32>
    %c1_147 = arith.constant 1 : index
    %c2_148 = arith.constant 2 : index
    %c1_149 = arith.constant 1 : index
    %c0_150 = arith.constant 0 : index
    %101 = vector.load %arg1[%c1_147, %c2_148, %c1_149, %c0_150] : memref<2x18x18x128xf32, #tpu.memory_space<vmem>>, vector<1x16x16x128xf32>
    %102 = vector.shape_cast %101 : vector<1x16x16x128xf32> to vector<16x16x128xf32>
    %c1_151 = arith.constant 1 : index
    %c2_152 = arith.constant 2 : index
    %c2_153 = arith.constant 2 : index
    %c0_154 = arith.constant 0 : index
    %103 = vector.load %arg1[%c1_151, %c2_152, %c2_153, %c0_154] : memref<2x18x18x128xf32, #tpu.memory_space<vmem>>, vector<1x16x16x128xf32>
    %104 = vector.shape_cast %103 : vector<1x16x16x128xf32> to vector<16x16x128xf32>
    %105 = tpu.concatenate %100, %102, %104 in 2 : vector<16x16x128xf32>, vector<16x16x128xf32>, vector<16x16x128xf32> -> vector<16x16x384xf32>
    %c2_155 = arith.constant 2 : index
    %c0_156 = arith.constant 0 : index
    %c0_157 = arith.constant 0 : index
    %106 = vector.load %arg2[%c2_155, %c0_156, %c0_157] : memref<3x384x128xf32, #tpu.memory_space<vmem>>, vector<1x384x128xf32>
    %107 = vector.shape_cast %106 : vector<1x384x128xf32> to vector<384x128xf32>
    %cst_158 = arith.constant dense<0.000000e+00> : vector<16x16x128xf32>
    %108 = tpu.matmul %105, %107, %cst_158 {dimension_numbers = #tpu.dot_dimension_numbers<[2], [0], [0, 1], [1], [0, 0, 0, 1, 1, 1], [], []>} : vector<16x16x384xf32>, vector<384x128xf32>, vector<16x16x128xf32> -> vector<16x16x128xf32>
    %109 = arith.addf %98, %108 : vector<16x16x128xf32>
    %c0_159 = arith.constant 0 : index
    %c0_160 = arith.constant 0 : index
    %c0_161 = arith.constant 0 : index
    %110 = vector.load %arg3[%c0_159, %c0_160, %c0_161] : memref<1x1x128xf32, #tpu.memory_space<vmem>>, vector<1x1x128xf32>
    %111 = vector.broadcast %110 : vector<1x1x128xf32> to vector<16x16x128xf32>
    %112 = arith.addf %109, %111 : vector<16x16x128xf32>
    %cst_162 = arith.constant 0.000000e+00 : f32
    %113 = vector.broadcast %cst_162 : f32 to vector<16x16x128xf32>
    %114 = arith.maximumf %112, %113 : vector<16x16x128xf32>
    %c1_163 = arith.constant 1 : index
    %c8_164 = arith.constant 8 : index
    %c0_165 = arith.constant 0 : index
    %115 = vector.load %arg7[%c1_163, %c8_164, %c0_165] : memref<18x32x128xf32, #tpu.memory_space<vmem>>, vector<16x16x128xf32>
    tpu.vector_store %arg7[%c1_163, %c8_164, %c0_165], %114 {strides = array<i32>} : memref<18x32x128xf32, #tpu.memory_space<vmem>>, vector<16x16x128xf32>,
    %c0_166 = arith.constant 0 : index
    %c7_167 = arith.constant 7 : index
    %c0_168 = arith.constant 0 : index
    %116 = vector.load %arg7[%c0_166, %c7_167, %c0_168] : memref<18x32x128xf32, #tpu.memory_space<vmem>>, vector<16x16x128xf32>
    %c0_169 = arith.constant 0 : index
    %c8_170 = arith.constant 8 : index
    %c0_171 = arith.constant 0 : index
    %117 = vector.load %arg7[%c0_169, %c8_170, %c0_171] : memref<18x32x128xf32, #tpu.memory_space<vmem>>, vector<16x16x128xf32>
    %c0_172 = arith.constant 0 : index
    %c9_173 = arith.constant 9 : index
    %c0_174 = arith.constant 0 : index
    %118 = vector.load %arg7[%c0_172, %c9_173, %c0_174] : memref<18x32x128xf32, #tpu.memory_space<vmem>>, vector<16x16x128xf32>
    %119 = tpu.concatenate %116, %117, %118 in 2 : vector<16x16x128xf32>, vector<16x16x128xf32>, vector<16x16x128xf32> -> vector<16x16x384xf32>
    %c0_175 = arith.constant 0 : index
    %c0_176 = arith.constant 0 : index
    %c0_177 = arith.constant 0 : index
    %120 = vector.load %arg4[%c0_175, %c0_176, %c0_177] : memref<3x384x128xf32, #tpu.memory_space<vmem>>, vector<1x384x128xf32>
    %121 = vector.shape_cast %120 : vector<1x384x128xf32> to vector<384x128xf32>
    %cst_178 = arith.constant dense<0.000000e+00> : vector<16x16x128xf32>
    %122 = tpu.matmul %119, %121, %cst_178 {dimension_numbers = #tpu.dot_dimension_numbers<[2], [0], [0, 1], [1], [0, 0, 0, 1, 1, 1], [], []>} : vector<16x16x384xf32>, vector<384x128xf32>, vector<16x16x128xf32> -> vector<16x16x128xf32>
    %c1_179 = arith.constant 1 : index
    %c7_180 = arith.constant 7 : index
    %c0_181 = arith.constant 0 : index
    %123 = vector.load %arg7[%c1_179, %c7_180, %c0_181] : memref<18x32x128xf32, #tpu.memory_space<vmem>>, vector<16x16x128xf32>
    %c1_182 = arith.constant 1 : index
    %c8_183 = arith.constant 8 : index
    %c0_184 = arith.constant 0 : index
    %124 = vector.load %arg7[%c1_182, %c8_183, %c0_184] : memref<18x32x128xf32, #tpu.memory_space<vmem>>, vector<16x16x128xf32>
    %c1_185 = arith.constant 1 : index
    %c9_186 = arith.constant 9 : index
    %c0_187 = arith.constant 0 : index
    %125 = vector.load %arg7[%c1_185, %c9_186, %c0_187] : memref<18x32x128xf32, #tpu.memory_space<vmem>>, vector<16x16x128xf32>
    %126 = tpu.concatenate %123, %124, %125 in 2 : vector<16x16x128xf32>, vector<16x16x128xf32>, vector<16x16x128xf32> -> vector<16x16x384xf32>
    %c1_188 = arith.constant 1 : index
    %c0_189 = arith.constant 0 : index
    %c0_190 = arith.constant 0 : index
    %127 = vector.load %arg4[%c1_188, %c0_189, %c0_190] : memref<3x384x128xf32, #tpu.memory_space<vmem>>, vector<1x384x128xf32>
    %128 = vector.shape_cast %127 : vector<1x384x128xf32> to vector<384x128xf32>
    %cst_191 = arith.constant dense<0.000000e+00> : vector<16x16x128xf32>
    %129 = tpu.matmul %126, %128, %cst_191 {dimension_numbers = #tpu.dot_dimension_numbers<[2], [0], [0, 1], [1], [0, 0, 0, 1, 1, 1], [], []>} : vector<16x16x384xf32>, vector<384x128xf32>, vector<16x16x128xf32> -> vector<16x16x128xf32>
    %130 = arith.addf %122, %129 : vector<16x16x128xf32>
    %c2_192 = arith.constant 2 : index
    %c7_193 = arith.constant 7 : index
    %c0_194 = arith.constant 0 : index
    %131 = vector.load %arg7[%c2_192, %c7_193, %c0_194] : memref<18x32x128xf32, #tpu.memory_space<vmem>>, vector<16x16x128xf32>
    %c2_195 = arith.constant 2 : index
    %c8_196 = arith.constant 8 : index
    %c0_197 = arith.constant 0 : index
    %132 = vector.load %arg7[%c2_195, %c8_196, %c0_197] : memref<18x32x128xf32, #tpu.memory_space<vmem>>, vector<16x16x128xf32>
    %c2_198 = arith.constant 2 : index
    %c9_199 = arith.constant 9 : index
    %c0_200 = arith.constant 0 : index
    %133 = vector.load %arg7[%c2_198, %c9_199, %c0_200] : memref<18x32x128xf32, #tpu.memory_space<vmem>>, vector<16x16x128xf32>
    %134 = tpu.concatenate %131, %132, %133 in 2 : vector<16x16x128xf32>, vector<16x16x128xf32>, vector<16x16x128xf32> -> vector<16x16x384xf32>
    %c2_201 = arith.constant 2 : index
    %c0_202 = arith.constant 0 : index
    %c0_203 = arith.constant 0 : index
    %135 = vector.load %arg4[%c2_201, %c0_202, %c0_203] : memref<3x384x128xf32, #tpu.memory_space<vmem>>, vector<1x384x128xf32>
    %136 = vector.shape_cast %135 : vector<1x384x128xf32> to vector<384x128xf32>
    %cst_204 = arith.constant dense<0.000000e+00> : vector<16x16x128xf32>
    %137 = tpu.matmul %134, %136, %cst_204 {dimension_numbers = #tpu.dot_dimension_numbers<[2], [0], [0, 1], [1], [0, 0, 0, 1, 1, 1], [], []>} : vector<16x16x384xf32>, vector<384x128xf32>, vector<16x16x128xf32> -> vector<16x16x128xf32>
    %138 = arith.addf %130, %137 : vector<16x16x128xf32>
    %c0_205 = arith.constant 0 : index
    %c0_206 = arith.constant 0 : index
    %c0_207 = arith.constant 0 : index
    %139 = vector.load %arg5[%c0_205, %c0_206, %c0_207] : memref<1x1x128xf32, #tpu.memory_space<vmem>>, vector<1x1x128xf32>
    %140 = vector.broadcast %139 : vector<1x1x128xf32> to vector<16x16x128xf32>
    %141 = arith.addf %138, %140 : vector<16x16x128xf32>
    %c1_208 = arith.constant 1 : index
    %c1_209 = arith.constant 1 : index
    %c1_210 = arith.constant 1 : index
    %c0_211 = arith.constant 0 : index
    %142 = vector.load %arg1[%c1_208, %c1_209, %c1_210, %c0_211] : memref<2x18x18x128xf32, #tpu.memory_space<vmem>>, vector<1x16x16x128xf32>
    %143 = vector.shape_cast %142 : vector<1x16x16x128xf32> to vector<16x16x128xf32>
    %144 = arith.addf %141, %143 : vector<16x16x128xf32>
    %cst_212 = arith.constant 0.000000e+00 : f32
    %145 = vector.broadcast %cst_212 : f32 to vector<16x16x128xf32>
    %146 = arith.maximumf %144, %145 : vector<16x16x128xf32>
    %c1_213 = arith.constant 1 : index
    %c0_214 = arith.constant 0 : index
    %c0_215 = arith.constant 0 : index
    %c0_216 = arith.constant 0 : index
    %147 = vector.load %arg6[%c1_213, %c0_214, %c0_215, %c0_216] : memref<2x16x16x128xf32, #tpu.memory_space<vmem>>, vector<1x16x16x128xf32>
    %148 = vector.shape_cast %147 : vector<1x16x16x128xf32> to vector<16x16x128xf32>
    %149 = vector.shape_cast %146 : vector<16x16x128xf32> to vector<1x16x16x128xf32>
    tpu.vector_store %arg6[%c1_213, %c0_214, %c0_215, %c0_216], %149 {strides = array<i32>} : memref<2x16x16x128xf32, #tpu.memory_space<vmem>>, vector<1x16x16x128xf32>,
    return
  }
  func.func @transform_0(%arg0: i32) -> (i32, i32, i32, i32) {
    %c0_i32 = arith.constant 0 : i32
    %c0_i32_0 = arith.constant 0 : i32
    %c0_i32_1 = arith.constant 0 : i32
    %c0_i32_2 = arith.constant 0 : i32
    return %arg0, %c0_i32, %c0_i32_0, %c0_i32_1 : i32, i32, i32, i32
  }
  func.func @transform_1(%arg0: i32) -> (i32, i32, i32) {
    %c0_i32 = arith.constant 0 : i32
    %c0_i32_0 = arith.constant 0 : i32
    %c0_i32_1 = arith.constant 0 : i32
    %c0_i32_2 = arith.constant 0 : i32
    return %c0_i32, %c0_i32_0, %c0_i32_1 : i32, i32, i32
  }
  func.func @transform_2(%arg0: i32) -> (i32, i32, i32) {
    %c0_i32 = arith.constant 0 : i32
    %c0_i32_0 = arith.constant 0 : i32
    %c0_i32_1 = arith.constant 0 : i32
    %c0_i32_2 = arith.constant 0 : i32
    return %c0_i32, %c0_i32_0, %c0_i32_1 : i32, i32, i32
  }
  func.func @transform_3(%arg0: i32) -> (i32, i32, i32) {
    %c0_i32 = arith.constant 0 : i32
    %c0_i32_0 = arith.constant 0 : i32
    %c0_i32_1 = arith.constant 0 : i32
    %c0_i32_2 = arith.constant 0 : i32
    return %c0_i32, %c0_i32_0, %c0_i32_1 : i32, i32, i32
  }
  func.func @transform_4(%arg0: i32) -> (i32, i32, i32) {
    %c0_i32 = arith.constant 0 : i32
    %c0_i32_0 = arith.constant 0 : i32
    %c0_i32_1 = arith.constant 0 : i32
    %c0_i32_2 = arith.constant 0 : i32
    return %c0_i32, %c0_i32_0, %c0_i32_1 : i32, i32, i32
  }
  func.func @transform_5(%arg0: i32) -> (i32, i32, i32, i32) {
    %c0_i32 = arith.constant 0 : i32
    %c0_i32_0 = arith.constant 0 : i32
    %c0_i32_1 = arith.constant 0 : i32
    %c0_i32_2 = arith.constant 0 : i32
    return %arg0, %c0_i32, %c0_i32_0, %c0_i32_1 : i32, i32, i32, i32
  }
}

</mosaic_0001>

<bundles_post_ra>
// kernel: tpu_custom_call.1
= control target key start
LH: loop header
LB: loop body
LE: loop exit
PB: predicated region body
PF: predicated region fallthrough
CT: control target
= control target key end

     0   :  { %10 = vsyncpa [#allocation4], 0  ;;  %s16221_s0 = inlined_call_operand.vmem [shape: f32[2,18,18,128], index: 0, kind: input, shape index: {}]   ;;  %s16222_s1 = inlined_call_operand.vmem [shape: f32[3,384,128], index: 1, kind: input, shape index: {}]   ;;  %s16223_s2 = inlined_call_operand.vmem [shape: f32[1,1,128], index: 2, kind: input, shape index: {}]   ;;  %s16224_s3 = inlined_call_operand.hbm [shape: f32[3,384,128], index: 3, kind: input, shape index: {}]   ;;  %s16225_s4 = inlined_call_operand.vmem [shape: f32[1,1,128], index: 4, kind: input, shape index: {}]   ;;  %s16226_s5 = inlined_call_operand.hbm [shape: f32[2,16,16,128], index: 5, kind: output, shape index: {}]  }
   0x1   :  { %11 = vsyncpa [#allocation5], 0  ;;  %s10242_s18 = smov [#allocation3]  }
   0x2   :  { %s23_s19 = sshll.u32 %s10242_s18, 4  ;;  %s24_s19 = int_to_ptr.vmem [resolvable:$true] %s23_s19 }
   0x3   :  { %s10206_s20 = scalar_lea.vmem %s24_s19, 18432  ;;  %p10211_p1 = scmp.lt.s32.totalorder %s24_s19, %s24_s19 }
   0x4   :  { %p10207_p0 = scmp.ne.s32.totalorder %s24_s19, %s10206_s20  ;;  %p10212_p2 = scmp.lt.s32.totalorder %s10206_s20, %s10206_s20 }
   0x6   :  { %p10213_p3 = por %p10212_p2, %p10211_p1 }
   0x8   :  { %p10214_p4 = pnand %p10213_p3, %p10207_p0 }
   0xa   :  { %10217 = shalt.err (!%p10214_p4)
}
   0xb   :  { %s10243_s21 = smov 128   ;;  %s10244_s22 = smov 8  }
   0xc   :  { %29 = dma.hbm_to_vmem [thread:$0]  %s16224_s3, 18432, %s24_s19, [#allocation4], %s10243_s21, %s10243_s21, %s10244_s22  }
   0xd   :  { %10238 = dma.done.wait [#allocation4], 18432  }
   0xe   :  { %10239 = vsyncadd [#allocation4], 4294948864  ;;  %v10245_v0 = vmov 0.0   ;;  %v8016_v1 = vld [vmem:[%s16222_s1 + $0x1f8] sm:$0xff]  ;;  %v8015_v3 = vld [vmem:[%s16222_s1 + $0x1f0] sm:$0xff]  ;;  %s10246_s25 = smov [#allocation6]  }
   0xf   :  { %370 = vmatprep.subr.mxu0 %v10245_v0  ;;  %35 = vst [vmem:[#allocation2] sm:$0xff] %v10245_v0  ;;  %36 = vst [vmem:[#allocation2 + $0x8] sm:$0xff] %v10245_v0  ;;  %v8048_v2 = vld [vmem:[%s16222_s1 + $0x2f8] sm:$0xff]  ;;  %v8047_v4 = vld [vmem:[%s16222_s1 + $0x2f0] sm:$0xff]  ;;  %s7893_s26 = sshll.u32 %s10246_s25, 4  ;;  %s7894_s26 = int_to_ptr.vmem [resolvable:$true] %s7893_s26 }
  0x10   :  { %37 = vst [vmem:[#allocation2 + $0x10] sm:$0xff] %v10245_v0  ;;  %38 = vst [vmem:[#allocation2 + $0x18] sm:$0xff] %v10245_v0  ;;  %371 = vmatpush1.msra.mxu0 %v8016_v1  ;;  %9221 = vmatprep.subr.mxu1 %v8048_v2  ;;  %v8014_v5 = vld [vmem:[%s16222_s1 + $0x1e8] sm:$0xff]  ;;  %v8013_v7 = vld [vmem:[%s16222_s1 + $0x1e0] sm:$0xff]  ;;  %s10218_s27 = scalar_lea.vmem %s7894_s26, 8192  ;;  %p10223_p6 = scmp.lt.s32.totalorder %s7894_s26, %s7894_s26 }
  0x11   :  { %40 = vst [vmem:[#allocation2 + $0x220] sm:$0xff] %v10245_v0  ;;  %41 = vst [vmem:[#allocation2 + $0x228] sm:$0xff] %v10245_v0  ;;  %372 = vmatprep.subr.mxu0 %v10245_v0  ;;  %9222 = vmatpush3.msra.mxu1 %v8048_v2  ;;  %v8046_v6 = vld [vmem:[%s16222_s1 + $0x2e8] sm:$0xff]  ;;  %v8045_v8 = vld [vmem:[%s16222_s1 + $0x2e0] sm:$0xff]  ;;  %p10219_p5 = scmp.ne.s32.totalorder %s7894_s26, %s10218_s27  ;;  %p10224_p7 = scmp.lt.s32.totalorder %s10218_s27, %s10218_s27 }
  0x12   :  { %42 = vst [vmem:[#allocation2 + $0x230] sm:$0xff] %v10245_v0  ;;  %43 = vst [vmem:[#allocation2 + $0x238] sm:$0xff] %v10245_v0  ;;  %373 = vmatpush1.msra.mxu0 %v8015_v3  ;;  %9223 = vmatprep.subr.mxu1 %v8047_v4  ;;  %v8012_v9 = vld [vmem:[%s16222_s1 + $0x1d8] sm:$0xff]  ;;  %v8011_v11 = vld [vmem:[%s16222_s1 + $0x1d0] sm:$0xff] }
  0x13   :  { %45 = vst [vmem:[#allocation2 + $0x27] sm:$0x1] %v10245_v0  ;;  %46 = vst [vmem:[#allocation2 + $0x47] sm:$0x1] %v10245_v0  ;;  %374 = vmatprep.subr.mxu0 %v10245_v0  ;;  %9224 = vmatpush3.msra.mxu1 %v8047_v4  ;;  %v8044_v10 = vld [vmem:[%s16222_s1 + $0x2d8] sm:$0xff]  ;;  %v8043_v12 = vld [vmem:[%s16222_s1 + $0x2d0] sm:$0xff]  ;;  %p10225_p8 = por %p10224_p7, %p10223_p6 }
  0x14   :  { %47 = vst [vmem:[#allocation2 + $0x67] sm:$0x1] %v10245_v0  ;;  %48 = vst [vmem:[#allocation2 + $0x87] sm:$0x1] %v10245_v0  ;;  %375 = vmatpush1.msra.mxu0 %v8014_v5  ;;  %9225 = vmatprep.subr.mxu1 %v8046_v6  ;;  %v8010_v13 = vld [vmem:[%s16222_s1 + $0x1c8] sm:$0xff]  ;;  %v8009_v15 = vld [vmem:[%s16222_s1 + $0x1c0] sm:$0xff] }
  0x15   :  { %49 = vst [vmem:[#allocation2 + $0xa7] sm:$0x1] %v10245_v0  ;;  %50 = vst [vmem:[#allocation2 + $0xc7] sm:$0x1] %v10245_v0  ;;  %376 = vmatprep.subr.mxu0 %v10245_v0  ;;  %9226 = vmatpush3.msra.mxu1 %v8046_v6  ;;  %v8042_v14 = vld [vmem:[%s16222_s1 + $0x2c8] sm:$0xff]  ;;  %v8041_v16 = vld [vmem:[%s16222_s1 + $0x2c0] sm:$0xff]  ;;  %p10226_p9 = pnand %p10225_p8, %p10219_p5 }
  0x16   :  { %51 = vst [vmem:[#allocation2 + $0xe7] sm:$0x1] %v10245_v0  ;;  %52 = vst [vmem:[#allocation2 + $0x107] sm:$0x1] %v10245_v0  ;;  %377 = vmatpush1.msra.mxu0 %v8013_v7  ;;  %9227 = vmatprep.subr.mxu1 %v8045_v8  ;;  %v8008_v17 = vld [vmem:[%s16222_s1 + $0x1b8] sm:$0xff]  ;;  %v8007_v19 = vld [vmem:[%s16222_s1 + $0x1b0] sm:$0xff] }
  0x17   :  { %53 = vst [vmem:[#allocation2 + $0x127] sm:$0x1] %v10245_v0  ;;  %54 = vst [vmem:[#allocation2 + $0x147] sm:$0x1] %v10245_v0  ;;  %378 = vmatprep.subr.mxu0 %v10245_v0  ;;  %9228 = vmatpush3.msra.mxu1 %v8045_v8  ;;  %v8040_v18 = vld [vmem:[%s16222_s1 + $0x2b8] sm:$0xff]  ;;  %v8039_v20 = vld [vmem:[%s16222_s1 + $0x2b0] sm:$0xff] }
  0x18   :  { %55 = vst [vmem:[#allocation2 + $0x167] sm:$0x1] %v10245_v0  ;;  %56 = vst [vmem:[#allocation2 + $0x187] sm:$0x1] %v10245_v0  ;;  %379 = vmatpush1.msra.mxu0 %v8012_v9  ;;  %9229 = vmatprep.subr.mxu1 %v8044_v10  ;;  %v8006_v21 = vld [vmem:[%s16222_s1 + $0x1a8] sm:$0xff]  ;;  %v8005_v23 = vld [vmem:[%s16222_s1 + $0x1a0] sm:$0xff] }
  0x19   :  { %57 = vst [vmem:[#allocation2 + $0x1a7] sm:$0x1] %v10245_v0  ;;  %58 = vst [vmem:[#allocation2 + $0x1c7] sm:$0x1] %v10245_v0  ;;  %380 = vmatprep.subr.mxu0 %v10245_v0  ;;  %9230 = vmatpush3.msra.mxu1 %v8044_v10  ;;  %v8038_v22 = vld [vmem:[%s16222_s1 + $0x2a8] sm:$0xff]  ;;  %v8037_v24 = vld [vmem:[%s16222_s1 + $0x2a0] sm:$0xff] }
  0x1a   :  { %59 = vst [vmem:[#allocation2 + $0x1e7] sm:$0x1] %v10245_v0  ;;  %60 = vst [vmem:[#allocation2 + $0x207] sm:$0x1] %v10245_v0  ;;  %381 = vmatpush1.msra.mxu0 %v8011_v11  ;;  %9231 = vmatprep.subr.mxu1 %v8043_v12  ;;  %v8004_v25 = vld [vmem:[%s16222_s1 + $0x198] sm:$0xff]  ;;  %v8003_v27 = vld [vmem:[%s16222_s1 + $0x190] sm:$0xff] }
  0x1b   :  { %63 = vst [vmem:[#allocation2 + $0x38] sm:$0x1] %v10245_v0  ;;  %64 = vst [vmem:[#allocation2 + $0x58] sm:$0x1] %v10245_v0  ;;  %382 = vmatprep.subr.mxu0 %v10245_v0  ;;  %9232 = vmatpush3.msra.mxu1 %v8043_v12  ;;  %v8036_v26 = vld [vmem:[%s16222_s1 + $0x298] sm:$0xff]  ;;  %v8035_v28 = vld [vmem:[%s16222_s1 + $0x290] sm:$0xff] }
  0x1c   :  { %65 = vst [vmem:[#allocation2 + $0x78] sm:$0x1] %v10245_v0  ;;  %66 = vst [vmem:[#allocation2 + $0x98] sm:$0x1] %v10245_v0  ;;  %383 = vmatpush1.msra.mxu0 %v8010_v13  ;;  %9233 = vmatprep.subr.mxu1 %v8042_v14  ;;  %v8002_v29 = vld [vmem:[%s16222_s1 + $0x188] sm:$0xff]  ;;  %v8001_v31 = vld [vmem:[%s16222_s1 + $0x180] sm:$0xff] }
  0x1d   :  { %67 = vst [vmem:[#allocation2 + $0xb8] sm:$0x1] %v10245_v0  ;;  %68 = vst [vmem:[#allocation2 + $0xd8] sm:$0x1] %v10245_v0  ;;  %384 = vmatprep.subr.mxu0 %v10245_v0  ;;  %9234 = vmatpush3.msra.mxu1 %v8042_v14  ;;  %v8034_v30 = vld [vmem:[%s16222_s1 + $0x288] sm:$0xff]  ;;  %v8033_v32 = vld [vmem:[%s16222_s1 + $0x280] sm:$0xff] }
  0x1e   :  { %69 = vst [vmem:[#allocation2 + $0xf8] sm:$0x1] %v10245_v0  ;;  %70 = vst [vmem:[#allocation2 + $0x118] sm:$0x1] %v10245_v0  ;;  %385 = vmatpush1.msra.mxu0 %v8009_v15  ;;  %9235 = vmatprep.subr.mxu1 %v8041_v16  ;;  %v7969_v33 = vld [vmem:[%s16221_s0 + $0x1a] sm:$0xff]  ;;  %v7970_v35 = vld [vmem:[%s16221_s0 + $0x22] sm:$0xff] }
  0x1f   :  { %71 = vst [vmem:[#allocation2 + $0x138] sm:$0x1] %v10245_v0  ;;  %72 = vst [vmem:[#allocation2 + $0x158] sm:$0x1] %v10245_v0  ;;  %386 = vmatprep.subr.mxu0 %v10245_v0  ;;  %9236 = vmatpush3.msra.mxu1 %v8041_v16  ;;  %v8032_v34 = vld [vmem:[%s16222_s1 + $0x278] sm:$0xff]  ;;  %v8031_v37 = vld [vmem:[%s16222_s1 + $0x270] sm:$0xff] }
  0x20   :  { %73 = vst [vmem:[#allocation2 + $0x178] sm:$0x1] %v10245_v0  ;;  %74 = vst [vmem:[#allocation2 + $0x198] sm:$0x1] %v10245_v0  ;;  %387 = vmatpush1.msra.mxu0 %v8008_v17  ;;  %9237 = vmatprep.subr.mxu1 %v8040_v18  ;;  %v191_v36 = vld [vmem:[%s16222_s1 + $0x78] sm:$0xff]  ;;  %v190_v39 = vld [vmem:[%s16222_s1 + $0x70] sm:$0xff] }
  0x21   :  { %75 = vst [vmem:[#allocation2 + $0x1b8] sm:$0x1] %v10245_v0  ;;  %76 = vst [vmem:[#allocation2 + $0x1d8] sm:$0x1] %v10245_v0  ;;  %388 = vmatprep.subr.mxu0 %v10245_v0  ;;  %9238 = vmatpush3.msra.mxu1 %v8040_v18  ;;  %v7971_v38 = vld [vmem:[%s16221_s0 + $0x32] sm:$0xff]  ;;  %v8030_v40 = vld [vmem:[%s16222_s1 + $0x268] sm:$0xff] }
  0x22   :  { %77 = vst [vmem:[#allocation2 + $0x1f8] sm:$0x1] %v10245_v0  ;;  %78 = vst [vmem:[#allocation2 + $0x218] sm:$0x1] %v10245_v0  ;;  %389 = vmatpush1.msra.mxu0 %v8007_v19  ;;  %9239 = vmatprep.subr.mxu1 %v8039_v20  ;;  %v7972_v41 = vld [vmem:[%s16221_s0 + $0x3a] sm:$0xff]  ;;  %v189_v42 = vld [vmem:[%s16222_s1 + $0x68] sm:$0xff] }
  0x23   :  { %44 = vst [vmem:[#allocation2 + $0x7] sm:$0x1] %v10245_v0  ;;  %61 = vst [vmem:[#allocation2 + $0x227] sm:$0x1] %v10245_v0  ;;  %390 = vmatprep.subr.mxu0 %v10245_v0  ;;  %9240 = vmatpush3.msra.mxu1 %v8039_v20  ;;  %v8029_v43 = vld [vmem:[%s16222_s1 + $0x260] sm:$0xff]  ;;  %v7973_v44 = vld [vmem:[%s16221_s0 + $0x4a] sm:$0xff] }
  0x24   :  { %62 = vst [vmem:[#allocation2 + $0x18] sm:$0x1] %v10245_v0  ;;  %79 = vst [vmem:[#allocation2 + $0x238] sm:$0x1] %v10245_v0  ;;  %391 = vmatpush1.msra.mxu0 %v8006_v21  ;;  %9241 = vmatprep.subr.mxu1 %v8038_v22  ;;  %v188_v45 = vld [vmem:[%s16222_s1 + $0x60] sm:$0xff]  ;;  %v8028_v46 = vld [vmem:[%s16222_s1 + $0x258] sm:$0xff] }
  0x25   :  { %392 = vmatprep.subr.mxu0 %v10245_v0  ;;  %9242 = vmatpush3.msra.mxu1 %v8038_v22  ;;  %v7974_v47 = vld [vmem:[%s16221_s0 + $0x52] sm:$0xff]  ;;  %v7975_v50 = vld [vmem:[%s16221_s0 + $0x62] sm:$0xff]  ;;  %v7976_v53 = vld [vmem:[%s16221_s0 + $0x6a] sm:$0xff] }
  0x26   :  { %393 = vmatpush1.msra.mxu0 %v8005_v23  ;;  %9243 = vmatprep.subr.mxu1 %v8037_v24  ;;  %v187_v48 = vld [vmem:[%s16222_s1 + $0x58] sm:$0xff]  ;;  %v8027_v49 = vld [vmem:[%s16222_s1 + $0x250] sm:$0xff]  ;;  %v8026_v52 = vld [vmem:[%s16222_s1 + $0x248] sm:$0xff] }
  0x27   :  { %394 = vmatprep.subr.mxu0 %v10245_v0  ;;  %9244 = vmatpush3.msra.mxu1 %v8037_v24  ;;  %v186_v51 = vld [vmem:[%s16222_s1 + $0x50] sm:$0xff]  ;;  %v185_v54 = vld [vmem:[%s16222_s1 + $0x48] sm:$0xff]  ;;  %v8025_v55 = vld [vmem:[%s16222_s1 + $0x240] sm:$0xff] }
  0x28   :  { %395 = vmatpush1.msra.mxu0 %v8004_v25  ;;  %9245 = vmatprep.subr.mxu1 %v8036_v26  ;;  %v7977_v56 = vld [vmem:[%s16221_s0 + $0x7a] sm:$0xff]  ;;  %v7978_v59 = vld [vmem:[%s16221_s0 + $0x82] sm:$0xff]  ;;  %v8023_v61 = vld [vmem:[%s16222_s1 + $0x230] sm:$0xff] }
  0x29   :  { %396 = vmatprep.subr.mxu0 %v10245_v0  ;;  %9246 = vmatpush3.msra.mxu1 %v8036_v26  ;;  %v184_v57 = vld [vmem:[%s16222_s1 + $0x40] sm:$0xff]  ;;  %v8024_v58 = vld [vmem:[%s16222_s1 + $0x238] sm:$0xff]  ;;  %v182_v63 = vld [vmem:[%s16222_s1 + $0x30] sm:$0xff] }
  0x2a   :  { %397 = vmatpush1.msra.mxu0 %v8003_v27  ;;  %9247 = vmatprep.subr.mxu1 %v8035_v28  ;;  %v183_v60 = vld [vmem:[%s16222_s1 + $0x38] sm:$0xff]  ;;  %v8022_v1 = vld [vmem:[%s16222_s1 + $0x228] sm:$0xff]  ;;  %v8021_v4 = vld [vmem:[%s16222_s1 + $0x220] sm:$0xff] }
  0x2b   :  { %398 = vmatprep.subr.mxu0 %v10245_v0  ;;  %9248 = vmatpush3.msra.mxu1 %v8035_v28  ;;  %v7979_v62 = vld [vmem:[%s16221_s0 + $0x92] sm:$0xff]  ;;  %v7980_v2 = vld [vmem:[%s16221_s0 + $0x9a] sm:$0xff]  ;;  %v181_v3 = vld [vmem:[%s16222_s1 + $0x28] sm:$0xff] }
  0x2c   :  { %399 = vmatpush1.msra.mxu0 %v8002_v29  ;;  %9249 = vmatprep.subr.mxu1 %v8034_v30  ;;  %v7981_v5 = vld [vmem:[%s16221_s0 + $0xaa] sm:$0xff]  ;;  %v180_v6 = vld [vmem:[%s16222_s1 + $0x20] sm:$0xff]  ;;  %v8020_v7 = vld [vmem:[%s16222_s1 + $0x218] sm:$0xff] }
  0x2d   :  { %400 = vmatprep.subr.mxu0 %v10245_v0  ;;  %9250 = vmatpush3.msra.mxu1 %v8034_v30  ;;  %v7982_v8 = vld [vmem:[%s16221_s0 + $0xb2] sm:$0xff]  ;;  %v7983_v11 = vld [vmem:[%s16221_s0 + $0xc2] sm:$0xff]  ;;  %v7984_v14 = vld [vmem:[%s16221_s0 + $0xca] sm:$0xff] }
  0x2e   :  { %401 = vmatpush1.msra.mxu0 %v8001_v31  ;;  %9251 = vmatprep.subr.mxu1 %v8033_v32  ;;  %v179_v9 = vld [vmem:[%s16222_s1 + $0x18] sm:$0xff]  ;;  %v8019_v10 = vld [vmem:[%s16222_s1 + $0x210] sm:$0xff]  ;;  %v8018_v13 = vld [vmem:[%s16222_s1 + $0x208] sm:$0xff] }
  0x2f   :  { %402 = vmatprep.subr.mxu0 %v10245_v0  ;;  %9252 = vmatpush3.msra.mxu1 %v8033_v32  ;;  %v178_v12 = vld [vmem:[%s16222_s1 + $0x10] sm:$0xff]  ;;  %v177_v15 = vld [vmem:[%s16222_s1 + $0x8] sm:$0xff]  ;;  %v8017_v16 = vld [vmem:[%s16222_s1 + $0x200] sm:$0xff] }
  0x30   :  { %9253 = vmatprep.mubr.f32.mxu1 %v7969_v33  ;;  %403 = vmatpush2.msra.mxu0 %v8032_v34  ;;  %v10612_v17 = vld [vmem:[%s16221_s0 + $0x19] sm:$0xff]  ;;  %v7986_v22 = vld [vmem:[%s16221_s0 + $0xe2] sm:$0xff]  ;;  %v206_v27 = vld [vmem:[%s16222_s1 + $0xf0] sm:$0xff] }
  0x31   :  { %9254 = vmatmul.mubr.f32.vlgmr.msra.gmra.mxu1 %v7970_v35  ;;  %820 = vmatprep.subr.mxu1 %v10245_v0  ;;  %v10618_v18 = vld [vmem:[%s16221_s0 + $0x18] sm:$0xff]  ;;  %v176_v20 = vld [vmem:[%s16222_s1] sm:$0xff]  ;;  %v205_v29 = vld [vmem:[%s16222_s1 + $0xe8] sm:$0xff] }
  0x32   :  { %404 = vmatprep.subr.mxu0 %v10245_v0  ;;  %821 = vmatpush1.msra.mxu1 %v191_v36  ;;  %v7985_v19 = vld [vmem:[%s16221_s0 + $0xda] sm:$0xff]  ;;  %v7987_v26 = vld [vmem:[%s16221_s0 + $0xf2] sm:$0xff]  ;;  %v7989_v32 = vld [vmem:[%s16221_s0 + $0x10a] sm:$0xff] }
  0x33   :  { %405 = vmatpush2.msra.mxu0 %v8031_v37  ;;  %822 = vmatprep.subr.mxu1 %v10245_v0  ;;  %v223_v21 = vld [vmem:[%s16222_s1 + $0x178] sm:$0xff]  ;;  %v10642_v24 = vld [vmem:[%s16221_s0 + $0x21] sm:$0xff]  ;;  %v10673_v31 = vld [vmem:[%s16221_s0 + $0x30] sm:$0xff] }
  0x34   :  { %406 = vmatprep.subr.mxu0 %v10245_v0  ;;  %9256 = vmatprep.mubr.f32.mxu1 %v7971_v38  ;;  %v207_v23 = vld [vmem:[%s16222_s1 + $0xf8] sm:$0xff]  ;;  %v10647_v25 = vld [vmem:[%s16221_s0 + $0x20] sm:$0xff]  ;;  %v222_v34 = vld [vmem:[%s16222_s1 + $0x170] sm:$0xff] }
  0x35   :  { %823 = vmatpush1.msra.mxu1 %v190_v39  ;;  %407 = vmatpush2.msra.mxu0 %v8030_v40  ;;  %v7988_v28 = vld [vmem:[%s16221_s0 + $0xfa] sm:$0xff]  ;;  %v10668_v30 = vld [vmem:[%s16221_s0 + $0x31] sm:$0xff]  ;;  %v7991_v39 = vld [vmem:[%s16221_s0 + $0x122] sm:$0xff] }
  0x36   :  { %9257 = vmatmul.mubr.f32.gmra.mxu1 %v7972_v41  ;;  %824 = vmatprep.subr.mxu1 %v10245_v0  ;;  %v204_v33 = vld [vmem:[%s16222_s1 + $0xe0] sm:$0xff]  ;;  %v7990_v35 = vld [vmem:[%s16221_s0 + $0x112] sm:$0xff]  ;;  %v7992_v41 = vld [vmem:[%s16221_s0 + $0x12a] sm:$0xff] }
  0x37   :  { %408 = vmatprep.subr.mxu0 %v10245_v0  ;;  %825 = vmatpush1.msra.mxu1 %v189_v42  ;;  %v203_v36 = vld [vmem:[%s16222_s1 + $0xd8] sm:$0xff]  ;;  %v202_v40 = vld [vmem:[%s16222_s1 + $0xd0] sm:$0xff]  ;;  %v201_v42 = vld [vmem:[%s16222_s1 + $0xc8] sm:$0xff] }
  0x38   :  { %409 = vmatpush2.msra.mxu0 %v8029_v43  ;;  %826 = vmatprep.subr.mxu1 %v10245_v0  ;;  %v10697_v37 = vld [vmem:[%s16221_s0 + $0x39] sm:$0xff]  ;;  %v10723_v43 = vld [vmem:[%s16221_s0 + $0x49] sm:$0xff] }
  0x39   :  { %410 = vmatprep.subr.mxu0 %v10245_v0  ;;  %9259 = vmatprep.mubr.f32.mxu1 %v7973_v44  ;;  %v10702_v38 = vld [vmem:[%s16221_s0 + $0x38] sm:$0xff]  ;;  %v10728_v44 = vld [vmem:[%s16221_s0 + $0x48] sm:$0xff] }
  0x3a   :  { %827 = vmatpush1.msra.mxu1 %v188_v45  ;;  %411 = vmatpush2.msra.mxu0 %v8028_v46  ;;  %v7993_v45 = vld [vmem:[%s16221_s0 + $0x13a] sm:$0xff] }
  0x3b   :  { %9260 = vmatmul.mubr.f32.gmra.mxu1 %v7974_v47  ;;  %828 = vmatprep.subr.mxu1 %v10245_v0  ;;  %v200_v46 = vld [vmem:[%s16222_s1 + $0xc0] sm:$0xff]  ;;  %v221_v47 = vld [vmem:[%s16222_s1 + $0x168] sm:$0xff] }
  0x3c   :  { %412 = vmatprep.subr.mxu0 %v10245_v0  ;;  %829 = vmatpush1.msra.mxu1 %v187_v48  ;;  %v7994_v48 = vld [vmem:[%s16221_s0 + $0x142] sm:$0xff] }
  0x3d   :  { %413 = vmatpush2.msra.mxu0 %v8027_v49  ;;  %830 = vmatprep.subr.mxu1 %v10245_v0  ;;  %v199_v49 = vld [vmem:[%s16222_s1 + $0xb8] sm:$0xff] }
  0x3e   :  { %414 = vmatprep.subr.mxu0 %v10245_v0  ;;  %9262 = vmatprep.mubr.f32.mxu1 %v7975_v50  ;;  %v10752_v50 = vld [vmem:[%s16221_s0 + $0x51] sm:$0xff] }
  0x3f   :  { %831 = vmatpush1.msra.mxu1 %v186_v51  ;;  %415 = vmatpush2.msra.mxu0 %v8026_v52  ;;  %v10757_v51 = vld [vmem:[%s16221_s0 + $0x50] sm:$0xff] }
  0x40   :  { %9263 = vmatmul.mubr.f32.gmra.mxu1 %v7976_v53  ;;  %832 = vmatprep.subr.mxu1 %v10245_v0  ;;  %v7995_v52 = vld [vmem:[%s16221_s0 + $0x152] sm:$0xff] }
  0x41   :  { %416 = vmatprep.subr.mxu0 %v10245_v0  ;;  %833 = vmatpush1.msra.mxu1 %v185_v54  ;;  %v198_v53 = vld [vmem:[%s16222_s1 + $0xb0] sm:$0xff]  ;;  %v7996_v54 = vld [vmem:[%s16221_s0 + $0x15a] sm:$0xff] }
  0x42   :  { %417 = vmatpush2.msra.mxu0 %v8025_v55  ;;  %834 = vmatprep.subr.mxu1 %v10245_v0  ;;  %v197_v55 = vld [vmem:[%s16222_s1 + $0xa8] sm:$0xff] }
  0x43   :  { %418 = vmatprep.subr.mxu0 %v10245_v0  ;;  %9265 = vmatprep.mubr.f32.mxu1 %v7977_v56  ;;  %v10778_v56 = vld [vmem:[%s16221_s0 + $0x61] sm:$0xff] }
  0x44   :  { %835 = vmatpush1.msra.mxu1 %v184_v57  ;;  %419 = vmatpush2.msra.mxu0 %v8024_v58  ;;  %v10783_v57 = vld [vmem:[%s16221_s0 + $0x60] sm:$0xff]  ;;  %v7997_v58 = vld [vmem:[%s16221_s0 + $0x16a] sm:$0xff] }
  0x45   :  { %9266 = vmatmul.mubr.f32.gmra.mxu1 %v7978_v59  ;;  %836 = vmatprep.subr.mxu1 %v10245_v0  ;;  %v196_v59 = vld [vmem:[%s16222_s1 + $0xa0] sm:$0xff] }
  0x46   :  { %420 = vmatprep.subr.mxu0 %v10245_v0  ;;  %837 = vmatpush1.msra.mxu1 %v183_v60  ;;  %v220_v60 = vld [vmem:[%s16222_s1 + $0x160] sm:$0xff] }
  0x47   :  { %421 = vmatpush2.msra.mxu0 %v8023_v61  ;;  %838 = vmatprep.subr.mxu1 %v10245_v0  ;;  %v7998_v61 = vld [vmem:[%s16221_s0 + $0x172] sm:$0xff] }
  0x48   :  { %422 = vmatprep.subr.mxu0 %v10245_v0  ;;  %9268 = vmatprep.mubr.f32.mxu1 %v7979_v62  ;;  %v195_v62 = vld [vmem:[%s16222_s1 + $0x98] sm:$0xff] }
  0x49   :  { %839 = vmatpush1.msra.mxu1 %v182_v63  ;;  %423 = vmatpush2.msra.mxu0 %v8022_v1  ;;  %v10807_v63 = vld [vmem:[%s16221_s0 + $0x69] sm:$0xff] }
  0x4a   :  { %9269 = vmatmul.mubr.f32.gmra.mxu1 %v7980_v2  ;;  %840 = vmatprep.subr.mxu1 %v10245_v0  ;;  %v10812_v1 = vld [vmem:[%s16221_s0 + $0x68] sm:$0xff] }
  0x4b   :  { %424 = vmatprep.subr.mxu0 %v10245_v0  ;;  %841 = vmatpush1.msra.mxu1 %v181_v3  ;;  %v7999_v2 = vld [vmem:[%s16221_s0 + $0x182] sm:$0xff]  ;;  %v194_v3 = vld [vmem:[%s16222_s1 + $0x90] sm:$0xff] }
  0x4c   :  { %425 = vmatpush2.msra.mxu0 %v8021_v4  ;;  %842 = vmatprep.subr.mxu1 %v10245_v0  ;;  %v8000_v4 = vld [vmem:[%s16221_s0 + $0x18a] sm:$0xff] }
  0x4d   :  { %426 = vmatprep.subr.mxu0 %v10245_v0  ;;  %9271 = vmatprep.mubr.f32.mxu1 %v7981_v5  ;;  %v193_v5 = vld [vmem:[%s16222_s1 + $0x88] sm:$0xff] }
  0x4e   :  { %843 = vmatpush1.msra.mxu1 %v180_v6  ;;  %427 = vmatpush2.msra.mxu0 %v8020_v7  ;;  %v10833_v6 = vld [vmem:[%s16221_s0 + $0x79] sm:$0xff] }
  0x4f   :  { %9272 = vmatmul.mubr.f32.gmra.mxu1 %v7982_v8  ;;  %844 = vmatprep.subr.mxu1 %v10245_v0  ;;  %v10838_v7 = vld [vmem:[%s16221_s0 + $0x78] sm:$0xff]  ;;  %v192_v8 = vld [vmem:[%s16222_s1 + $0x80] sm:$0xff] }
  0x50   :  { %428 = vmatprep.subr.mxu0 %v10245_v0  ;;  %845 = vmatpush1.msra.mxu1 %v179_v9  ;;  %v112_v9 = vld [vmem:[%s16221_s0 + $0x1] sm:$0xff] }
  0x51   :  { %429 = vmatpush2.msra.mxu0 %v8019_v10  ;;  %846 = vmatprep.subr.mxu1 %v10245_v0  ;;  %v219_v10 = vld [vmem:[%s16222_s1 + $0x158] sm:$0xff] }
  0x52   :  { %430 = vmatprep.subr.mxu0 %v10245_v0  ;;  %9274 = vmatprep.mubr.f32.mxu1 %v7983_v11  ;;  %v80_v11 = vld [vmem:[%s16221_s0] sm:$0xff] }
  0x53   :  { %847 = vmatpush1.msra.mxu1 %v178_v12  ;;  %431 = vmatpush2.msra.mxu0 %v8018_v13  ;;  %v10859_v12 = vld [vmem:[%s16221_s0 + $0x81] sm:$0xff] }
  0x54   :  { %9275 = vmatmul.mubr.f32.gmra.mxu1 %v7984_v14  ;;  %848 = vmatprep.subr.mxu1 %v10245_v0  ;;  %v10864_v13 = vld [vmem:[%s16221_s0 + $0x80] sm:$0xff]  ;;  %v113_v14 = vld [vmem:[%s16221_s0 + $0x9] sm:$0xff] }
  0x55   :  { %432 = vmatprep.subr.mxu0 %v10245_v0  ;;  %849 = vmatpush1.msra.mxu1 %v177_v15  ;;  %v10872_v15 = vld [vmem:[%s16221_s0 + $0x91] sm:$0xff] }
  0x56   :  { %433 = vmatpush2.msra.mxu0 %v8017_v16  ;;  %434 = vmatprep.mubr.f32.mxu0 %v10612_v17  ;;  %v218_v16 = vld [vmem:[%s16222_s1 + $0x150] sm:$0xff] }
  0x57   :  { %850 = vmatprep.subr.mxu1 %v10245_v0  ;;  %435 = vmatmul.mubr.f32.vlgmr.msra.gmra.mxu0 %v10618_v18 }
  0x58   :  { %9277 = vmatprep.mubr.f32.mxu1 %v7985_v19  ;;  %851 = vmatpush1.msra.mxu1 %v176_v20  ;;  %v81_v19 = vld [vmem:[%s16221_s0 + $0x8] sm:$0xff] }
  0x59   :  { %9301 = vmatprep.subr.mxu0 %v223_v21  ;;  %9278 = vmatmul.mubr.f32.gmra.mxu1 %v7986_v22  ;;  %v217_v20 = vld [vmem:[%s16222_s1 + $0x148] sm:$0xff]  ;;  %v10894_v22 = vld [vmem:[%s16221_s0 + $0x99] sm:$0xff] }
  0x5a   :  { %852 = vmatprep.subr.mxu1 %v10245_v0  ;;  %9302 = vmatpush3.msra.mxu0 %v223_v21  ;;  %v10889_v21 = vld [vmem:[%s16221_s0 + $0x90] sm:$0xff] }
  0x5b   :  { %853 = vmatpush2.msra.mxu1 %v207_v23  ;;  %439 = vmatprep.mubr.f32.mxu0 %v10642_v24  ;;  %v216_v23 = vld [vmem:[%s16222_s1 + $0x140] sm:$0xff] }
  0x5c   :  { %854 = vmatprep.subr.mxu1 %v10245_v0  ;;  %440 = vmatmul.mubr.f32.gmra.mxu0 %v10647_v25 }
  0x5d   :  { %9280 = vmatprep.mubr.f32.mxu1 %v7987_v26  ;;  %855 = vmatpush2.msra.mxu1 %v206_v27  ;;  %v10906_v26 = vld [vmem:[%s16221_s0 + $0x98] sm:$0xff]  ;;  %v10915_v27 = vld [vmem:[%s16221_s0 + $0xa9] sm:$0xff] }
  0x5e   :  { %9281 = vmatmul.mubr.f32.gmra.mxu1 %v7988_v28  ;;  %856 = vmatprep.subr.mxu1 %v10245_v0  ;;  %v214_v28 = vld [vmem:[%s16222_s1 + $0x130] sm:$0xff] }
  0x5f   :  { %857 = vmatpush2.msra.mxu1 %v205_v29  ;;  %444 = vmatprep.mubr.f32.mxu0 %v10668_v30  ;;  %v10929_v29 = vld [vmem:[%s16221_s0 + $0xa8] sm:$0xff] }
  0x60   :  { %858 = vmatprep.subr.mxu1 %v10245_v0  ;;  %445 = vmatmul.mubr.f32.gmra.mxu0 %v10673_v31 }
  0x61   :  { %9283 = vmatprep.mubr.f32.mxu1 %v7989_v32  ;;  %859 = vmatpush2.msra.mxu1 %v204_v33  ;;  %v8159_v32 = vld [vmem:[%s16222_s1 + $0x370] sm:$0xff]  ;;  %v8158_v33 = vld [vmem:[%s16222_s1 + $0x368] sm:$0xff] }
  0x62   :  { %9303 = vmatprep.subr.mxu0 %v222_v34  ;;  %9284 = vmatmul.mubr.f32.gmra.mxu1 %v7990_v35  ;;  %v213_v35 = vld [vmem:[%s16222_s1 + $0x128] sm:$0xff] }
  0x63   :  { %860 = vmatprep.subr.mxu1 %v10245_v0  ;;  %9304 = vmatpush3.msra.mxu0 %v222_v34  ;;  %v10956_v34 = vld [vmem:[%s16221_s0 + $0xc1] sm:$0xff] }
  0x64   :  { %861 = vmatpush2.msra.mxu1 %v203_v36  ;;  %449 = vmatprep.mubr.f32.mxu0 %v10697_v37  ;;  %v10971_v36 = vld [vmem:[%s16221_s0 + $0xc0] sm:$0xff] }
  0x65   :  { %862 = vmatprep.subr.mxu1 %v10245_v0  ;;  %450 = vmatmul.mubr.f32.gmra.mxu0 %v10702_v38 }
  0x66   :  { %9286 = vmatprep.mubr.f32.mxu1 %v7991_v39  ;;  %863 = vmatpush2.msra.mxu1 %v202_v40  ;;  %v10978_v39 = vld [vmem:[%s16221_s0 + $0xc9] sm:$0xff]  ;;  %v212_v40 = vld [vmem:[%s16222_s1 + $0x120] sm:$0xff] }
  0x67   :  { %9287 = vmatmul.mubr.f32.gmra.mxu1 %v7992_v41  ;;  %864 = vmatprep.subr.mxu1 %v10245_v0  ;;  %v8156_v41 = vld [vmem:[%s16222_s1 + $0x358] sm:$0xff] }
  0x68   :  { %865 = vmatpush2.msra.mxu1 %v201_v42  ;;  %454 = vmatprep.mubr.f32.mxu0 %v10723_v43  ;;  %v10993_v42 = vld [vmem:[%s16221_s0 + $0xc8] sm:$0xff] }
  0x69   :  { %866 = vmatprep.subr.mxu1 %v10245_v0  ;;  %455 = vmatmul.mubr.f32.gmra.mxu0 %v10728_v44 }
  0x6a   :  { %9289 = vmatprep.mubr.f32.mxu1 %v7993_v45  ;;  %867 = vmatpush2.msra.mxu1 %v200_v46  ;;  %v10999_v45 = vld [vmem:[%s16221_s0 + $0xd9] sm:$0xff]  ;;  %v8155_v46 = vld [vmem:[%s16222_s1 + $0x350] sm:$0xff] }
  0x6b   :  { %9305 = vmatprep.subr.mxu0 %v221_v47  ;;  %9290 = vmatmul.mubr.f32.gmra.mxu1 %v7994_v48  ;;  %v8154_v48 = vld [vmem:[%s16222_s1 + $0x348] sm:$0xff] }
  0x6c   :  { %868 = vmatprep.subr.mxu1 %v10245_v0  ;;  %9306 = vmatpush3.msra.mxu0 %v221_v47  ;;  %v11011_v47 = vld [vmem:[%s16221_s0 + $0xd8] sm:$0xff] }
  0x6d   :  { %869 = vmatpush2.msra.mxu1 %v199_v49  ;;  %459 = vmatprep.mubr.f32.mxu0 %v10752_v50  ;;  %v11020_v49 = vld [vmem:[%s16221_s0 + $0xe1] sm:$0xff] }
  0x6e   :  { %870 = vmatprep.subr.mxu1 %v10245_v0  ;;  %460 = vmatmul.mubr.f32.gmra.mxu0 %v10757_v51 }
  0x6f   :  { %9292 = vmatprep.mubr.f32.mxu1 %v7995_v52  ;;  %871 = vmatpush2.msra.mxu1 %v198_v53  ;;  %v211_v52 = vld [vmem:[%s16222_s1 + $0x118] sm:$0xff]  ;;  %v8153_v53 = vld [vmem:[%s16222_s1 + $0x340] sm:$0xff] }
  0x70   :  { %9293 = vmatmul.mubr.f32.gmra.mxu1 %v7996_v54  ;;  %872 = vmatprep.subr.mxu1 %v10245_v0  ;;  %v11035_v54 = vld [vmem:[%s16221_s0 + $0xe0] sm:$0xff] }
  0x71   :  { %873 = vmatpush2.msra.mxu1 %v197_v55  ;;  %464 = vmatprep.mubr.f32.mxu0 %v10778_v56  ;;  %v11042_v55 = vld [vmem:[%s16221_s0 + $0xf1] sm:$0xff] }
  0x72   :  { %874 = vmatprep.subr.mxu1 %v10245_v0  ;;  %465 = vmatmul.mubr.f32.gmra.mxu0 %v10783_v57 }
  0x73   :  { %9295 = vmatprep.mubr.f32.mxu1 %v7997_v58  ;;  %875 = vmatpush2.msra.mxu1 %v196_v59  ;;  %v210_v58 = vld [vmem:[%s16222_s1 + $0x110] sm:$0xff]  ;;  %v8152_v59 = vld [vmem:[%s16222_s1 + $0x338] sm:$0xff] }
  0x74   :  { %9307 = vmatprep.subr.mxu0 %v220_v60  ;;  %9296 = vmatmul.mubr.f32.gmra.mxu1 %v7998_v61  ;;  %v11063_v61 = vld [vmem:[%s16221_s0 + $0xf9] sm:$0xff] }
  0x75   :  { %876 = vmatprep.subr.mxu1 %v10245_v0  ;;  %9308 = vmatpush3.msra.mxu0 %v220_v60  ;;  %v11057_v60 = vld [vmem:[%s16221_s0 + $0xf0] sm:$0xff] }
  0x76   :  { %877 = vmatpush2.msra.mxu1 %v195_v62  ;;  %469 = vmatprep.mubr.f32.mxu0 %v10807_v63  ;;  %v11070_v62 = vld [vmem:[#allocation2 + $0x8] sm:$0xff] }
  0x77   :  { %878 = vmatprep.subr.mxu1 %v10245_v0  ;;  %470 = vmatmul.mubr.f32.gmra.mxu0 %v10812_v1 }
  0x78   :  { %9298 = vmatprep.mubr.f32.mxu1 %v7999_v2  ;;  %879 = vmatpush2.msra.mxu1 %v194_v3  ;;  %v11077_v2 = vld [vmem:[%s16221_s0 + $0xf8] sm:$0xff]  ;;  %v8150_v3 = vld [vmem:[%s16222_s1 + $0x328] sm:$0xff] }
  0x79   :  { %9299 = vmatmul.mubr.f32.gmra.mxu1 %v8000_v4  ;;  %880 = vmatprep.subr.mxu1 %v10245_v0  ;;  %v11086_v4 = vld [vmem:[%s16221_s0 + $0x109] sm:$0xff] }
  0x7a   :  { %881 = vmatpush2.msra.mxu1 %v193_v5  ;;  %474 = vmatprep.mubr.f32.mxu0 %v10833_v6  ;;  %v209_v5 = vld [vmem:[%s16222_s1 + $0x108] sm:$0xff] }
  0x7b   :  { %882 = vmatprep.subr.mxu1 %v10245_v0  ;;  %475 = vmatmul.mubr.f32.gmra.mxu0 %v10838_v7 }
  0x7c   :  { %883 = vmatpush2.msra.mxu1 %v192_v8  ;;  %884 = vmatprep.mubr.f32.mxu1 %v112_v9  ;;  %v8149_v8 = vld [vmem:[%s16222_s1 + $0x320] sm:$0xff]  ;;  %v11101_v9 = vld [vmem:[%s16221_s0 + $0x108] sm:$0xff] }
  0x7d   :  { %9309 = vmatprep.subr.mxu0 %v219_v10  ;;  %885 = vmatmul.mubr.f32.vlgmr.msra.gmra.mxu1 %v80_v11  ;;  %v208_v11 = vld [vmem:[%s16222_s1 + $0x100] sm:$0xff] }
  0x7e   :  { %9310 = vmatpush3.msra.mxu0 %v219_v10  ;;  %479 = vmatprep.mubr.f32.mxu0 %v10859_v12  ;;  %v11108_v10 = vld [vmem:[%s16221_s0 + $0x111] sm:$0xff] }
  0x7f   :  { %480 = vmatmul.mubr.f32.gmra.mxu0 %v10864_v13  ;;  %889 = vmatprep.mubr.f32.mxu1 %v113_v14  ;;  %v8148_v14 = vld [vmem:[%s16222_s1 + $0x318] sm:$0xff] }
  0x80   :  { %484 = vmatprep.mubr.f32.mxu0 %v10872_v15  ;;  %9311 = vmatprep.subr.mxu0 %v218_v16 }
  0x81   :  { %890 = vmatmul.mubr.f32.gmra.mxu1 %v81_v19  ;;  %9312 = vmatpush3.msra.mxu0 %v218_v16  ;;  %v11123_v16 = vld [vmem:[%s16221_s0 + $0x110] sm:$0xff]  ;;  %v11129_v19 = vld [vmem:[%s16221_s0 + $0x121] sm:$0xff] }
  0x82   :  { %894 = vmatprep.mubr.f32.mxu1 %v10612_v17  ;;  %9313 = vmatprep.subr.mxu0 %v217_v20  ;;  %v215_v17 = vld [vmem:[%s16222_s1 + $0x138] sm:$0xff] }
  0x83   :  { %485 = vmatmul.mubr.f32.gmra.mxu0 %v10889_v21  ;;  %1416 = vmatprep.subr.mxu1 %v10245_v0 }
  0x84   :  { %489 = vmatprep.mubr.f32.mxu0 %v10894_v22  ;;  %9314 = vmatpush3.msra.mxu0 %v217_v20  ;;  %v8147_v20 = vld [vmem:[%s16222_s1 + $0x310] sm:$0xff] }
  0x85   :  { %895 = vmatmul.mubr.f32.gmra.mxu1 %v10618_v18  ;;  %9315 = vmatprep.subr.mxu0 %v216_v23  ;;  %v8160_v18 = vld [vmem:[%s16222_s1 + $0x378] sm:$0xff] }
  0x86   :  { %899 = vmatprep.mubr.f32.mxu1 %v10642_v24  ;;  %9316 = vmatpush3.msra.mxu0 %v216_v23  ;;  %v10935_v24 = vld [vmem:[%s16221_s0 + $0xb1] sm:$0xff]  ;;  %v11141_v23 = vld [vmem:[%s16221_s0 + $0x120] sm:$0xff] }
  0x87   :  { %490 = vmatmul.mubr.f32.gmra.mxu0 %v10906_v26  ;;  %9317 = vmatprep.subr.mxu0 %v215_v17 }
  0x88   :  { %494 = vmatprep.mubr.f32.mxu0 %v10915_v27  ;;  %9318 = vmatpush3.msra.mxu0 %v215_v17  ;;  %v8146_v17 = vld [vmem:[%s16222_s1 + $0x308] sm:$0xff] }
  0x89   :  { %900 = vmatmul.mubr.f32.gmra.mxu1 %v10647_v25  ;;  %9319 = vmatprep.subr.mxu0 %v214_v28  ;;  %v10947_v25 = vld [vmem:[%s16221_s0 + $0xb0] sm:$0xff] }
  0x8a   :  { %904 = vmatprep.mubr.f32.mxu1 %v10668_v30  ;;  %1417 = vmatpush1.msra.mxu1 %v8160_v18  ;;  %v11157_v18 = vld [vmem:[%s16222_s1 + $0x478] sm:$0xff] }
  0x8b   :  { %495 = vmatmul.mubr.f32.gmra.mxu0 %v10929_v29  ;;  %1418 = vmatprep.subr.mxu1 %v10245_v0 }
  0x8c   :  { %499 = vmatprep.mubr.f32.mxu0 %v10935_v24  ;;  %1419 = vmatpush1.msra.mxu1 %v8159_v32  ;;  %v8145_v32 = vld [vmem:[%s16222_s1 + $0x300] sm:$0xff] }
  0x8d   :  { %905 = vmatmul.mubr.f32.gmra.mxu1 %v10673_v31  ;;  %9320 = vmatpush3.msra.mxu0 %v214_v28  ;;  %v8157_v31 = vld [vmem:[%s16222_s1 + $0x360] sm:$0xff]  ;;  %v11150_v28 = vld [vmem:[%s16221_s0 + $0x129] sm:$0xff] }
  0x8e   :  { %909 = vmatprep.mubr.f32.mxu1 %v10697_v37  ;;  %1420 = vmatprep.subr.mxu1 %v10245_v0 }
  0x8f   :  { %500 = vmatmul.mubr.f32.gmra.mxu0 %v10947_v25  ;;  %1421 = vmatpush1.msra.mxu1 %v8158_v33  ;;  %v11167_v33 = vld [vmem:[%s16221_s0 + $0x128] sm:$0xff] }
  0x90   :  { %504 = vmatprep.mubr.f32.mxu0 %v10956_v34  ;;  %1422 = vmatprep.subr.mxu1 %v10245_v0 }
  0x91   :  { %910 = vmatmul.mubr.f32.gmra.mxu1 %v10702_v38  ;;  %9321 = vmatprep.subr.mxu0 %v213_v35 }
  0x92   :  { %914 = vmatprep.mubr.f32.mxu1 %v10723_v43  ;;  %1423 = vmatpush1.msra.mxu1 %v8157_v31  ;;  %v8176_v31 = vld [vmem:[%s16222_s1 + $0x3f8] sm:$0xff] }
  0x93   :  { %505 = vmatmul.mubr.f32.gmra.mxu0 %v10971_v36  ;;  %1424 = vmatprep.subr.mxu1 %v10245_v0 }
  0x94   :  { %509 = vmatprep.mubr.f32.mxu0 %v10978_v39  ;;  %9322 = vmatpush3.msra.mxu0 %v213_v35  ;;  %v11174_v35 = vld [vmem:[%s16221_s0 + $0x139] sm:$0xff] }
  0x95   :  { %915 = vmatmul.mubr.f32.gmra.mxu1 %v10728_v44  ;;  %9323 = vmatprep.subr.mxu0 %v212_v40 }
  0x96   :  { %919 = vmatprep.mubr.f32.mxu1 %v10752_v50  ;;  %1425 = vmatpush1.msra.mxu1 %v8156_v41  ;;  %v11190_v41 = vld [vmem:[%s16221_s0 + $0x138] sm:$0xff] }
  0x97   :  { %510 = vmatmul.mubr.f32.gmra.mxu0 %v10993_v42  ;;  %1426 = vmatprep.subr.mxu1 %v10245_v0 }
  0x98   :  { %514 = vmatprep.mubr.f32.mxu0 %v10999_v45  ;;  %1427 = vmatpush1.msra.mxu1 %v8155_v46  ;;  %v11196_v46 = vld [vmem:[%s16221_s0 + $0x141] sm:$0xff] }
  0x99   :  { %920 = vmatmul.mubr.f32.gmra.mxu1 %v10757_v51  ;;  %9324 = vmatpush3.msra.mxu0 %v212_v40  ;;  %v8175_v40 = vld [vmem:[%s16222_s1 + $0x3f0] sm:$0xff] }
  0x9a   :  { %924 = vmatprep.mubr.f32.mxu1 %v10778_v56  ;;  %1428 = vmatprep.subr.mxu1 %v10245_v0 }
  0x9b   :  { %515 = vmatmul.mubr.f32.gmra.mxu0 %v11011_v47  ;;  %1429 = vmatpush1.msra.mxu1 %v8154_v48  ;;  %v8174_v48 = vld [vmem:[%s16222_s1 + $0x3e8] sm:$0xff] }
  0x9c   :  { %519 = vmatprep.mubr.f32.mxu0 %v11020_v49  ;;  %1430 = vmatprep.subr.mxu1 %v10245_v0 }
  0x9d   :  { %925 = vmatmul.mubr.f32.gmra.mxu1 %v10783_v57  ;;  %9325 = vmatprep.subr.mxu0 %v211_v52 }
  0x9e   :  { %929 = vmatprep.mubr.f32.mxu1 %v10807_v63  ;;  %1431 = vmatpush1.msra.mxu1 %v8153_v53  ;;  %v8172_v53 = vld [vmem:[%s16222_s1 + $0x3d8] sm:$0xff] }
  0x9f   :  { %520 = vmatmul.mubr.f32.gmra.mxu0 %v11035_v54  ;;  %1432 = vmatprep.subr.mxu1 %v10245_v0  ;;  %v8151_v0 = vld [vmem:[%s16222_s1 + $0x330] sm:$0xff] }
  0xa0   :  { %524 = vmatprep.mubr.f32.mxu0 %v11042_v55  ;;  %9326 = vmatpush3.msra.mxu0 %v211_v52  ;;  %v11212_v52 = vld [vmem:[%s16221_s0 + $0x140] sm:$0xff] }
  0xa1   :  { %930 = vmatmul.mubr.f32.gmra.mxu1 %v10812_v1  ;;  %9327 = vmatprep.subr.mxu0 %v210_v58 }
  0xa2   :  { %934 = vmatprep.mubr.f32.mxu1 %v10833_v6  ;;  %1433 = vmatpush1.msra.mxu1 %v8152_v59  ;;  %v8170_v59 = vld [vmem:[%s16222_s1 + $0x3c8] sm:$0xff] }
  0xa3   :  { %525 = vmatmul.mubr.f32.gmra.mxu0 %v11057_v60  ;;  %1434 = vmatprep.subr.mxu1 %v11070_v62 }
  0xa4   :  { %529 = vmatprep.mubr.f32.mxu0 %v11063_v61  ;;  %1435 = vmatpush1.msra.mxu1 %v8151_v0  ;;  %v11256_v0 = vld [vmem:[%s16221_s0 + $0x158] sm:$0xff] }
  0xa5   :  { %935 = vmatmul.mubr.f32.gmra.mxu1 %v10838_v7  ;;  %9328 = vmatpush3.msra.mxu0 %v210_v58  ;;  %v11234_v58 = vld [vmem:[%s16221_s0 + $0x150] sm:$0xff] }
  0xa6   :  { %939 = vmatprep.mubr.f32.mxu1 %v10859_v12  ;;  %1436 = vmatprep.subr.mxu1 %v11070_v62 }
  0xa7   :  { %530 = vmatmul.mubr.f32.gmra.mxu0 %v11077_v2  ;;  %1437 = vmatpush1.msra.mxu1 %v8150_v3  ;;  %v8168_v3 = vld [vmem:[%s16222_s1 + $0x3b8] sm:$0xff] }
  0xa8   :  { %534 = vmatprep.mubr.f32.mxu0 %v11086_v4  ;;  %1438 = vmatprep.subr.mxu1 %v11070_v62 }
  0xa9   :  { %940 = vmatmul.mubr.f32.gmra.mxu1 %v10864_v13  ;;  %9329 = vmatprep.subr.mxu0 %v209_v5 }
  0xaa   :  { %944 = vmatprep.mubr.f32.mxu1 %v10872_v15  ;;  %1439 = vmatpush1.msra.mxu1 %v8149_v8  ;;  %v8166_v8 = vld [vmem:[%s16222_s1 + $0x3a8] sm:$0xff] }
  0xab   :  { %535 = vmatmul.mubr.f32.gmra.mxu0 %v11101_v9  ;;  %1440 = vmatprep.subr.mxu1 %v11070_v62 }
  0xac   :  { %539 = vmatprep.mubr.f32.mxu0 %v11108_v10  ;;  %9330 = vmatpush3.msra.mxu0 %v209_v5  ;;  %v11278_v5 = vld [vmem:[%s16221_s0 + $0x168] sm:$0xff] }
  0xad   :  { %945 = vmatmul.mubr.f32.gmra.mxu1 %v10889_v21  ;;  %9331 = vmatprep.subr.mxu0 %v208_v11 }
  0xae   :  { %949 = vmatprep.mubr.f32.mxu1 %v10894_v22  ;;  %1441 = vmatpush1.msra.mxu1 %v8148_v14  ;;  %v8164_v14 = vld [vmem:[%s16222_s1 + $0x398] sm:$0xff] }
  0xaf   :  { %540 = vmatmul.mubr.f32.gmra.mxu0 %v11123_v16  ;;  %1442 = vmatprep.subr.mxu1 %v11070_v62 }
  0xb0   :  { %544 = vmatprep.mubr.f32.mxu0 %v11129_v19  ;;  %1443 = vmatpush1.msra.mxu1 %v8147_v20  ;;  %v7935_v20 = vld [vmem:[%s16221_s0 + $0x180] sm:$0xff] }
  0xb1   :  { %950 = vmatmul.mubr.f32.gmra.mxu1 %v10906_v26  ;;  %9332 = vmatpush3.msra.mxu0 %v208_v11  ;;  %v11300_v11 = vld [vmem:[%s16221_s0 + $0x170] sm:$0xff] }
  0xb2   :  { %954 = vmatprep.mubr.f32.mxu1 %v10915_v27  ;;  %1444 = vmatprep.subr.mxu1 %v11070_v62 }
  0xb3   :  { %545 = vmatmul.mubr.f32.gmra.mxu0 %v11141_v23  ;;  %1445 = vmatpush1.msra.mxu1 %v8146_v17  ;;  %v8162_v17 = vld [vmem:[%s16222_s1 + $0x388] sm:$0xff] }
  0xb4   :  { %549 = vmatprep.mubr.f32.mxu0 %v11150_v28  ;;  %1446 = vmatprep.subr.mxu1 %v11070_v62 }
  0xb5   :  { %955 = vmatmul.mubr.f32.gmra.mxu1 %v10929_v29  ;;  %9381 = vmatprep.subr.mxu0 %v11157_v18 }
  0xb6   :  { %959 = vmatprep.mubr.f32.mxu1 %v10935_v24  ;;  %1447 = vmatpush1.msra.mxu1 %v8145_v32  ;;  %v7936_v32 = vld [vmem:[%s16221_s0 + $0x188] sm:$0xff] }
  0xb7   :  { %550 = vmatmul.mubr.f32.gmra.mxu0 %v11167_v33  ;;  %1448 = vmatprep.subr.mxu1 %v11070_v62 }
  0xb8   :  { %554 = vmatprep.mubr.f32.mxu0 %v11174_v35  ;;  %1449 = vmatpush2.msra.mxu1 %v8176_v31  ;;  %v145_v31 = vld [vmem:[%s16221_s0 + $0xa] sm:$0xff] }
  0xb9   :  { %960 = vmatmul.mubr.f32.gmra.mxu1 %v10947_v25  ;;  %1450 = vmatprep.subr.mxu1 %v11070_v62  ;;  %v8173_v25 = vld [vmem:[%s16222_s1 + $0x3e0] sm:$0xff] }
  0xba   :  { %964 = vmatprep.mubr.f32.mxu1 %v10956_v34  ;;  %1451 = vmatpush2.msra.mxu1 %v8175_v40  ;;  %v11218_v34 = vld [vmem:[%s16221_s0 + $0x151] sm:$0xff] }
  0xbb   :  { %555 = vmatmul.mubr.f32.gmra.mxu0 %v11190_v41  ;;  %1452 = vmatprep.subr.mxu1 %v11070_v62  ;;  %v8191_v40 = vld [vmem:[%s16222_s1 + $0x470] sm:$0xff] }
  0xbc   :  { %559 = vmatprep.mubr.f32.mxu0 %v11196_v46  ;;  %1453 = vmatpush2.msra.mxu1 %v8174_v48  ;;  %v8188_v48 = vld [vmem:[%s16222_s1 + $0x458] sm:$0xff] }
  0xbd   :  { %965 = vmatmul.mubr.f32.gmra.mxu1 %v10971_v36  ;;  %1454 = vmatprep.subr.mxu1 %v11070_v62  ;;  %v8171_v36 = vld [vmem:[%s16222_s1 + $0x3d0] sm:$0xff] }
  0xbe   :  { %969 = vmatprep.mubr.f32.mxu1 %v10978_v39  ;;  %1455 = vmatpush2.msra.mxu1 %v8173_v25  ;;  %v11240_v39 = vld [vmem:[%s16221_s0 + $0x159] sm:$0xff]  ;;  %v8187_v25 = vld [vmem:[%s16222_s1 + $0x450] sm:$0xff] }
  0xbf   :  { %560 = vmatmul.mubr.f32.gmra.mxu0 %v11212_v52  ;;  %1456 = vmatprep.subr.mxu1 %v11070_v62 }
  0xc0   :  { %564 = vmatprep.mubr.f32.mxu0 %v11218_v34  ;;  %1457 = vmatpush2.msra.mxu1 %v8172_v53  ;;  %v11402_v53 = vld [vmem:[%s16221_s0 + $0x62] sm:$0xff] }
  0xc1   :  { %970 = vmatmul.mubr.f32.gmra.mxu1 %v10993_v42  ;;  %1458 = vmatprep.subr.mxu1 %v11070_v62  ;;  %v8169_v42 = vld [vmem:[%s16222_s1 + $0x3c0] sm:$0xff] }
  0xc2   :  { %974 = vmatprep.mubr.f32.mxu1 %v10999_v45  ;;  %1459 = vmatpush2.msra.mxu1 %v8171_v36  ;;  %v11262_v45 = vld [vmem:[%s16221_s0 + $0x169] sm:$0xff]  ;;  %v8185_v36 = vld [vmem:[%s16222_s1 + $0x440] sm:$0xff] }
  0xc3   :  { %565 = vmatmul.mubr.f32.gmra.mxu0 %v11234_v58  ;;  %1460 = vmatprep.subr.mxu1 %v11070_v62 }
  0xc4   :  { %569 = vmatprep.mubr.f32.mxu0 %v11240_v39  ;;  %1461 = vmatpush2.msra.mxu1 %v8170_v59  ;;  %v11422_v59 = vld [vmem:[%s16221_s0 + $0x7a] sm:$0xff] }
  0xc5   :  { %975 = vmatmul.mubr.f32.gmra.mxu1 %v11011_v47  ;;  %1462 = vmatprep.subr.mxu1 %v11070_v62  ;;  %v8167_v47 = vld [vmem:[%s16222_s1 + $0x3b0] sm:$0xff] }
  0xc6   :  { %979 = vmatprep.mubr.f32.mxu1 %v11020_v49  ;;  %1463 = vmatpush2.msra.mxu1 %v8169_v42  ;;  %v11284_v49 = vld [vmem:[%s16221_s0 + $0x171] sm:$0xff] }
  0xc7   :  { %570 = vmatmul.mubr.f32.gmra.mxu0 %v11256_v0  ;;  %1464 = vmatprep.subr.mxu1 %v11070_v62  ;;  %v8183_v42 = vld [vmem:[%s16222_s1 + $0x430] sm:$0xff] }
  0xc8   :  { %574 = vmatprep.mubr.f32.mxu0 %v11262_v45  ;;  %1465 = vmatpush2.msra.mxu1 %v8168_v3  ;;  %v11442_v3 = vld [vmem:[%s16221_s0 + $0x92] sm:$0xff] }
  0xc9   :  { %980 = vmatmul.mubr.f32.gmra.mxu1 %v11035_v54  ;;  %1466 = vmatprep.subr.mxu1 %v11070_v62  ;;  %v8165_v54 = vld [vmem:[%s16222_s1 + $0x3a0] sm:$0xff] }
  0xca   :  { %984 = vmatprep.mubr.f32.mxu1 %v11042_v55  ;;  %1467 = vmatpush2.msra.mxu1 %v8167_v47  ;;  %v7967_v55 = vld [vmem:[%s16221_s0 + $0x181] sm:$0xff] }
  0xcb   :  { %575 = vmatmul.mubr.f32.gmra.mxu0 %v11278_v5  ;;  %1468 = vmatprep.subr.mxu1 %v11070_v62  ;;  %v8181_v47 = vld [vmem:[%s16222_s1 + $0x420] sm:$0xff] }
  0xcc   :  { %579 = vmatprep.mubr.f32.mxu0 %v11284_v49  ;;  %1469 = vmatpush2.msra.mxu1 %v8166_v8  ;;  %v11462_v8 = vld [vmem:[%s16221_s0 + $0xaa] sm:$0xff] }
  0xcd   :  { %985 = vmatmul.mubr.f32.gmra.mxu1 %v11057_v60  ;;  %1470 = vmatprep.subr.mxu1 %v11070_v62  ;;  %v8163_v60 = vld [vmem:[%s16222_s1 + $0x390] sm:$0xff] }
  0xce   :  { %989 = vmatprep.mubr.f32.mxu1 %v11063_v61  ;;  %1471 = vmatpush2.msra.mxu1 %v8165_v54  ;;  %v7968_v61 = vld [vmem:[%s16221_s0 + $0x189] sm:$0xff] }
  0xcf   :  { %580 = vmatmul.mubr.f32.gmra.mxu0 %v11300_v11  ;;  %1472 = vmatprep.subr.mxu1 %v11070_v62 }
  0xd0   :  { %584 = vmatprep.mubr.f32.mxu0 %v7967_v55  ;;  %1473 = vmatpush2.msra.mxu1 %v8164_v14  ;;  %v8179_v55 = vld [vmem:[%s16222_s1 + $0x410] sm:$0xff] }
  0xd1   :  { %990 = vmatmul.mubr.f32.gmra.mxu1 %v11077_v2  ;;  %1474 = vmatprep.subr.mxu1 %v11070_v62  ;;  %v8161_v2 = vld [vmem:[%s16222_s1 + $0x380] sm:$0xff] }
  0xd2   :  { %994 = vmatprep.mubr.f32.mxu1 %v11086_v4  ;;  %1475 = vmatpush2.msra.mxu1 %v8163_v60  ;;  %v144_v4 = vld [vmem:[%s16221_s0 + $0x2] sm:$0xff] }
  0xd3   :  { %585 = vmatmul.mubr.f32.gmra.mxu0 %v7935_v20  ;;  %1476 = vmatprep.subr.mxu1 %v11070_v62  ;;  %v11486_v60 = vld [vmem:[%s16221_s0 + $0xc2] sm:$0xff] }
  0xd4   :  { %589 = vmatprep.mubr.f32.mxu0 %v7968_v61  ;;  %1477 = vmatpush2.msra.mxu1 %v8162_v17  ;;  %v8177_v61 = vld [vmem:[%s16222_s1 + $0x400] sm:$0xff] }
  0xd5   :  { %995 = vmatmul.mubr.f32.gmra.mxu1 %v11101_v9  ;;  %1478 = vmatprep.subr.mxu1 %v11070_v62  ;;  %v146_v9 = vld [vmem:[%s16221_s0 + $0x1a] sm:$0xff] }
  0xd6   :  { %999 = vmatprep.mubr.f32.mxu1 %v11108_v10  ;;  %1479 = vmatpush2.msra.mxu1 %v8161_v2  ;;  %v147_v10 = vld [vmem:[%s16221_s0 + $0x22] sm:$0xff]  ;;  %v8049_v2 = vld [vmem:[%s16221_s0 + $0x30] sm:$0xff] }
  0xd7   :  { %590 = vmatmul.mubr.f32.gmra.mxu0 %v7936_v32 }
  0xd8   :  { %9333 = vmatprep.mubr.f32.mxu0 %v144_v4 }
  0xd9   :  { %1000 = vmatmul.mubr.f32.gmra.mxu1 %v11123_v16  ;;  %v8190_v16 = vld [vmem:[%s16222_s1 + $0x468] sm:$0xff] }
  0xda   :  { %1004 = vmatprep.mubr.f32.mxu1 %v11129_v19  ;;  %v11363_v19 = vld [vmem:[%s16221_s0 + $0x32] sm:$0xff] }
  0xdb   :  { %9334 = vmatmul.mubr.f32.vlgmr.msra.gmra.mxu0 %v145_v31  ;;  %v11536_v31 = vld [vmem:[%s16221_s0 + $0xfa] sm:$0xff] }
  0xdc   :  { %9382 = vmatpush3.msra.mxu0 %v11157_v18  ;;  %9336 = vmatprep.mubr.f32.mxu0 %v146_v9  ;;  %v8189_v18 = vld [vmem:[%s16222_s1 + $0x460] sm:$0xff] }
  0xdd   :  { %1005 = vmatmul.mubr.f32.gmra.mxu1 %v11141_v23  ;;  %9383 = vmatprep.subr.mxu0 %v8191_v40  ;;  %v11373_v23 = vld [vmem:[%s16221_s0 + $0x3a] sm:$0xff] }
  0xde   :  { %1009 = vmatprep.mubr.f32.mxu1 %v11150_v28  ;;  %9384 = vmatpush3.msra.mxu0 %v8191_v40  ;;  %v11382_v28 = vld [vmem:[%s16221_s0 + $0x4a] sm:$0xff] }
  0xdf   :  { %9337 = vmatmul.mubr.f32.gmra.mxu0 %v147_v10  ;;  %9385 = vmatprep.subr.mxu0 %v8190_v16  ;;  %v11544_v40 = vld [vmem:[%s16221_s0 + $0x10a] sm:$0xff]  ;;  %v11554_v10 = vld [vmem:[%s16221_s0 + $0x112] sm:$0xff] }
  0xe0   :  { %9339 = vmatprep.mubr.f32.mxu0 %v11363_v19  ;;  %9386 = vmatpush3.msra.mxu0 %v8190_v16 }
  0xe1   :  { %1010 = vmatmul.mubr.f32.gmra.mxu1 %v11167_v33  ;;  %9387 = vmatprep.subr.mxu0 %v8189_v18  ;;  %v11393_v33 = vld [vmem:[%s16221_s0 + $0x52] sm:$0xff] }
  0xe2   :  { %1014 = vmatprep.mubr.f32.mxu1 %v11174_v35  ;;  %9388 = vmatpush3.msra.mxu0 %v8189_v18  ;;  %v8186_v35 = vld [vmem:[%s16222_s1 + $0x448] sm:$0xff] }
  0xe3   :  { %9340 = vmatmul.mubr.f32.gmra.mxu0 %v11373_v23  ;;  %9389 = vmatprep.subr.mxu0 %v8188_v48  ;;  %v11572_v18 = vld [vmem:[%s16221_s0 + $0x12a] sm:$0xff] }
  0xe4   :  { %9342 = vmatprep.mubr.f32.mxu0 %v11382_v28  ;;  %9390 = vmatpush3.msra.mxu0 %v8188_v48  ;;  %v11588_v48 = vld [vmem:[%s16221_s0 + $0x142] sm:$0xff] }
  0xe5   :  { %1015 = vmatmul.mubr.f32.gmra.mxu1 %v11190_v41  ;;  %9391 = vmatprep.subr.mxu0 %v8187_v25  ;;  %v11413_v41 = vld [vmem:[%s16221_s0 + $0x6a] sm:$0xff] }
  0xe6   :  { %1019 = vmatprep.mubr.f32.mxu1 %v11196_v46  ;;  %9392 = vmatpush3.msra.mxu0 %v8187_v25  ;;  %v8184_v46 = vld [vmem:[%s16222_s1 + $0x438] sm:$0xff] }
  0xe7   :  { %9343 = vmatmul.mubr.f32.gmra.mxu0 %v11393_v33  ;;  %9393 = vmatprep.subr.mxu0 %v8186_v35 }
  0xe8   :  { %9345 = vmatprep.mubr.f32.mxu0 %v11402_v53  ;;  %9394 = vmatpush3.msra.mxu0 %v8186_v35  ;;  %v11606_v35 = vld [vmem:[%s16221_s0 + $0x15a] sm:$0xff] }
  0xe9   :  { %1020 = vmatmul.mubr.f32.gmra.mxu1 %v11212_v52  ;;  %9395 = vmatprep.subr.mxu0 %v8185_v36  ;;  %v11433_v52 = vld [vmem:[%s16221_s0 + $0x82] sm:$0xff] }
  0xea   :  { %1024 = vmatprep.mubr.f32.mxu1 %v11218_v34  ;;  %9396 = vmatpush3.msra.mxu0 %v8185_v36  ;;  %v8182_v34 = vld [vmem:[%s16222_s1 + $0x428] sm:$0xff] }
  0xeb   :  { %9346 = vmatmul.mubr.f32.gmra.mxu0 %v11413_v41  ;;  %9397 = vmatprep.subr.mxu0 %v8184_v46  ;;  %v11614_v36 = vld [vmem:[%s16221_s0 + $0x16a] sm:$0xff] }
  0xec   :  { %9348 = vmatprep.mubr.f32.mxu0 %v11422_v59  ;;  %9398 = vmatpush3.msra.mxu0 %v8184_v46 }
  0xed   :  { %1025 = vmatmul.mubr.f32.gmra.mxu1 %v11234_v58  ;;  %9399 = vmatprep.subr.mxu0 %v8183_v42  ;;  %v11453_v58 = vld [vmem:[%s16221_s0 + $0x9a] sm:$0xff] }
  0xee   :  { %1029 = vmatprep.mubr.f32.mxu1 %v11240_v39  ;;  %9400 = vmatpush3.msra.mxu0 %v8183_v42  ;;  %v8180_v39 = vld [vmem:[%s16222_s1 + $0x418] sm:$0xff] }
  0xef   :  { %9349 = vmatmul.mubr.f32.gmra.mxu0 %v11433_v52  ;;  %9401 = vmatprep.subr.mxu0 %v8182_v34 }
  0xf0   :  { %9351 = vmatprep.mubr.f32.mxu0 %v11442_v3  ;;  %9402 = vmatpush3.msra.mxu0 %v8182_v34 }
  0xf1   :  { %1030 = vmatmul.mubr.f32.gmra.mxu1 %v11256_v0  ;;  %v11464_v54 = vpop.f32.mrf.mxu1  ;;  %9403 = vmatprep.subr.mxu0 %v8181_v47  ;;  %v11477_v0 = vld [vmem:[%s16221_s0 + $0xb2] sm:$0xff] }
  0xf2   :  { %1034 = vmatprep.mubr.f32.mxu1 %v11262_v45  ;;  %9404 = vmatpush3.msra.mxu0 %v8181_v47  ;;  %v8178_v45 = vld [vmem:[%s16222_s1 + $0x408] sm:$0xff] }
  0xf3   :  { %9352 = vmatmul.mubr.f32.gmra.mxu0 %v11453_v58  ;;  %v11471_v14 = vpop.f32.mrf.mxu1  ;;  %9405 = vmatprep.subr.mxu0 %v8180_v39 }
  0xf4   :  { %9354 = vmatprep.mubr.f32.mxu0 %v11462_v8  ;;  %9406 = vmatpush3.msra.mxu0 %v8180_v39 }
  0xf5   :  { %1035 = vmatmul.mubr.f32.gmra.mxu1 %v11278_v5  ;;  %9407 = vmatprep.subr.mxu0 %v8179_v55  ;;  %v11499_v5 = vld [vmem:[%s16221_s0 + $0xca] sm:$0xff] }
  0xf6   :  { %1039 = vmatprep.mubr.f32.mxu1 %v11284_v49  ;;  %v11489_v20 = vpop.f32.mrf.mxu1  ;;  %9408 = vmatpush3.msra.mxu0 %v8179_v55  ;;  %v11507_v49 = vld [vmem:[%s16221_s0 + $0xda] sm:$0xff] }
  0xf7   :  { %9355 = vmatmul.mubr.f32.gmra.mxu0 %v11477_v0  ;;  %9409 = vmatprep.subr.mxu0 %v8178_v45 }
  0xf8   :  { %9357 = vmatprep.mubr.f32.mxu0 %v11486_v60  ;;  %v11501_v17 = vpop.f32.mrf.mxu1  ;;  %9410 = vmatpush3.msra.mxu0 %v8178_v45 }
  0xf9   :  { %1040 = vmatmul.mubr.f32.gmra.mxu1 %v11300_v11  ;;  %9411 = vmatprep.subr.mxu0 %v8177_v61  ;;  %v11521_v11 = vld [vmem:[%s16221_s0 + $0xe2] sm:$0xff] }
  0xfa   :  { %1480 = vmatprep.mubr.f32.mxu1 %v10668_v30  ;;  %9412 = vmatpush3.msra.mxu0 %v8177_v61  ;;  %v11526_v30 = vld [vmem:[%s16221_s0 + $0xf2] sm:$0xff] }
  0xfb   :  { %9358 = vmatmul.mubr.f32.gmra.mxu0 %v11499_v5  ;;  %v11514_v32 = vpop.f32.mrf.mxu1  ;;  %2291 = vmatprep.subr.mxu0 %v11070_v62 }
  0xfc   :  { %9360 = vmatprep.mubr.f32.mxu0 %v11507_v49 }
  0xfd   :  { %1481 = vmatmul.mubr.f32.vlgmr.msra.gmra.mxu1 %v8049_v2  ;;  %v11528_v4 = vpop.f32.mrf.mxu1  ;;  %v8095_v2 = vld [vmem:[%s16221_s0 + $0xd9] sm:$0xff] }
  0xfe   :  { %1485 = vmatprep.mubr.f32.mxu1 %v10697_v37 }
  0xff   :  { %9361 = vmatmul.mubr.f32.gmra.mxu0 %v11521_v11 }
 0x100   :  { %9363 = vmatprep.mubr.f32.mxu0 %v11526_v30  ;;  %v11538_v9 = vpop.f32.mrf.mxu1 }
 0x101   :  { %1486 = vmatmul.mubr.f32.gmra.mxu1 %v10702_v38  ;;  %v11560_v38 = vld [vmem:[%s16221_s0 + $0x122] sm:$0xff] }
 0x102   :  { %1490 = vmatprep.mubr.f32.mxu1 %v10723_v43  ;;  %v11547_v37 = vpop.f32.mrf.mxu1 }
 0x103   :  { %9364 = vmatmul.mubr.f32.gmra.mxu0 %v11536_v31 }
 0x104   :  { %9366 = vmatprep.mubr.f32.mxu0 %v11544_v40 }
 0x105   :  { %1491 = vmatmul.mubr.f32.gmra.mxu1 %v10728_v44  ;;  %v11562_v16 = vpop.f32.mrf.mxu1  ;;  %v11578_v44 = vld [vmem:[%s16221_s0 + $0x13a] sm:$0xff] }
 0x106   :  { %1495 = vmatprep.mubr.f32.mxu1 %v10752_v50 }
 0x107   :  { %9367 = vmatmul.mubr.f32.gmra.mxu0 %v11554_v10  ;;  %v11566_v43 = vpop.f32.mrf.mxu1 }
 0x108   :  { %9369 = vmatprep.mubr.f32.mxu0 %v11560_v38 }
 0x109   :  { %1496 = vmatmul.mubr.f32.gmra.mxu1 %v10757_v51  ;;  %v11596_v51 = vld [vmem:[%s16221_s0 + $0x152] sm:$0xff] }
 0x10a   :  { %1500 = vmatprep.mubr.f32.mxu1 %v10778_v56  ;;  %v11581_v50 = vpop.f32.mrf.mxu1 }
 0x10b   :  { %9370 = vmatmul.mubr.f32.gmra.mxu0 %v11572_v18 }
 0x10c   :  { %9372 = vmatprep.mubr.f32.mxu0 %v11578_v44  ;;  %v11590_v25 = vpop.f32.mrf.mxu1 }
 0x10d   :  { %1501 = vmatmul.mubr.f32.gmra.mxu1 %v10783_v57 }
 0x10e   :  { %1505 = vmatprep.mubr.f32.mxu1 %v10807_v63  ;;  %v11622_v63 = vld [vmem:[%s16221_s0 + $0x172] sm:$0xff] }
 0x10f   :  { %9373 = vmatmul.mubr.f32.gmra.mxu0 %v11588_v48  ;;  %v11600_v56 = vpop.f32.mrf.mxu1 }
 0x110   :  { %9375 = vmatprep.mubr.f32.mxu0 %v11596_v51 }
 0x111   :  { %1506 = vmatmul.mubr.f32.gmra.mxu1 %v10812_v1  ;;  %v11609_v57 = vpop.f32.mrf.mxu1 }
 0x112   :  { %1510 = vmatprep.mubr.f32.mxu1 %v10833_v6 }
 0x113   :  { %9376 = vmatmul.mubr.f32.gmra.mxu0 %v11606_v35 }
 0x114   :  { %9378 = vmatprep.mubr.f32.mxu0 %v11614_v36  ;;  %v11624_v46 = vpop.f32.mrf.mxu1 }
 0x115   :  { %1511 = vmatmul.mubr.f32.gmra.mxu1 %v10838_v7 }
 0x116   :  { %1515 = vmatprep.mubr.f32.mxu1 %v10859_v12  ;;  %v11628_v1 = vpop.f32.mrf.mxu1 }
 0x117   :  { %9379 = vmatmul.mubr.f32.gmra.mxu0 %v11622_v63  ;;  %v436_v6 = vpop.f32.mrf.mxu0 }
 0x118   :  { %9413 = vmatprep.mubr.f32.mxu0 %v11363_v19  ;;  %v11633_v42 = vadd.f32 %v11471_v14, %v436_v6 }
 0x119   :  { %1516 = vmatmul.mubr.f32.gmra.mxu1 %v10864_v13  ;;  %v11636_v34 = vpop.f32.mrf.mxu1  ;;  %v438_v47 = vpop.f32.mrf.mxu0 }
 0x11a   :  { %1520 = vmatprep.mubr.f32.mxu1 %v10872_v15  ;;  %v2290_v47 = vld [vmem:[#allocation3 + $0x2f8] sm:$0xff] }
 0x11b   :  { %9414 = vmatmul.mubr.f32.vlgmr.msra.gmra.mxu0 %v11373_v23  ;;  %v11640_v7 = vpop.f32.mrf.mxu1  ;;  %9461 = vmatprep.subr.mxu1 %v2290_v47 }
 0x11c   :  { %9416 = vmatprep.mubr.f32.mxu0 %v11382_v28  ;;  %v441_v12 = vpop.f32.mrf.mxu0  ;;  %9462 = vmatpush3.msra.mxu1 %v2290_v47 }
 0x11d   :  { %1521 = vmatmul.mubr.f32.gmra.mxu1 %v10889_v21  ;;  %v11645_v19 = vadd.f32 %v11464_v54, %v441_v12  ;;  %v2257_v12 = vld [vmem:[#allocation3 + $0x1f0] sm:$0xff] }
 0x11e   :  { %1525 = vmatprep.mubr.f32.mxu1 %v10894_v22  ;;  %v11648_v13 = vpop.f32.mrf.mxu1  ;;  %v443_v39 = vpop.f32.mrf.mxu0 }
 0x11f   :  { %9417 = vmatmul.mubr.f32.gmra.mxu0 %v11393_v33 }
 0x120   :  { %v11651_v15 = vpop.f32.mrf.mxu1  ;;  %9419 = vmatprep.mubr.f32.mxu0 %v11402_v53  ;;  %v446_v23 = vpop.f32.mrf.mxu0 }
 0x121   :  { %1526 = vmatmul.mubr.f32.gmra.mxu1 %v10906_v26  ;;  %v11656_v28 = vadd.f32 %v11501_v17, %v446_v23  ;;  %v8060_v26 = vld [vmem:[%s16221_s0 + $0xb0] sm:$0xff]  ;;  %v8062_v17 = vld [vmem:[%s16221_s0 + $0xc8] sm:$0xff] }
 0x122   :  { %1530 = vmatprep.mubr.f32.mxu1 %v10915_v27  ;;  %v11659_v21 = vpop.f32.mrf.mxu1  ;;  %v448_v22 = vpop.f32.mrf.mxu0 }
 0x123   :  { %9420 = vmatmul.mubr.f32.gmra.mxu0 %v11413_v41  ;;  %v2256_v22 = vld [vmem:[#allocation3 + $0x1e8] sm:$0xff] }
 0x124   :  { %v11662_v54 = vpop.f32.mrf.mxu1  ;;  %9422 = vmatprep.mubr.f32.mxu0 %v11422_v59  ;;  %v8093_v59 = vld [vmem:[%s16221_s0 + $0xc1] sm:$0xff] }
 0x125   :  { %1531 = vmatmul.mubr.f32.gmra.mxu1 %v10929_v29  ;;  %v451_v33 = vpop.f32.mrf.mxu0 }
 0x126   :  { %v11667_v53 = vadd.f32 %v11489_v20, %v451_v33  ;;  %1535 = vmatprep.mubr.f32.mxu1 %v10935_v24 }
 0x127   :  { %9423 = vmatmul.mubr.f32.gmra.mxu0 %v11433_v52  ;;  %v11674_v27 = vpop.f32.mrf.mxu1  ;;  %v453_v41 = vpop.f32.mrf.mxu0  ;;  %v8061_v52 = vld [vmem:[%s16221_s0 + $0xc0] sm:$0xff] }
 0x128   :  { %9425 = vmatprep.mubr.f32.mxu0 %v11442_v3  ;;  %v8094_v3 = vld [vmem:[%s16221_s0 + $0xc9] sm:$0xff] }
 0x129   :  { %1536 = vmatmul.mubr.f32.gmra.mxu1 %v8060_v26  ;;  %v11680_v29 = vpop.f32.mrf.mxu1  ;;  %v456_v55 = vpop.f32.mrf.mxu0 }
 0x12a   :  { %v11683_v24 = vadd.f32 %v11528_v4, %v456_v55  ;;  %1540 = vmatprep.mubr.f32.mxu1 %v8093_v59  ;;  %v2258_v4 = vld [vmem:[#allocation3 + $0x1f8] sm:$0xff] }
 0x12b   :  { %9426 = vmatmul.mubr.f32.gmra.mxu0 %v11453_v58  ;;  %v11689_v14 = vpop.f32.mrf.mxu1  ;;  %v458_v45 = vpop.f32.mrf.mxu0 }
 0x12c   :  { %9428 = vmatprep.mubr.f32.mxu0 %v11462_v8  ;;  %2292 = vmatpush1.msra.mxu0 %v2258_v4 }
 0x12d   :  { %1541 = vmatmul.mubr.f32.gmra.mxu1 %v8061_v52  ;;  %v11695_v20 = vpop.f32.mrf.mxu1  ;;  %2293 = vmatprep.subr.mxu0 %v11070_v62  ;;  %v2289_v52 = vld [vmem:[#allocation3 + $0x2f0] sm:$0xff] }
 0x12e   :  { %v461_v61 = vpop.f32.mrf.mxu0  ;;  %1545 = vmatprep.mubr.f32.mxu1 %v8094_v3  ;;  %2294 = vmatpush1.msra.mxu0 %v2257_v12  ;;  %v2252_v12 = vld [vmem:[#allocation3 + $0x1c8] sm:$0xff] }
 0x12f   :  { %v11701_v58 = vadd.f32 %v11514_v32, %v461_v61  ;;  %9429 = vmatmul.mubr.f32.gmra.mxu0 %v11477_v0  ;;  %v8063_v0 = vld [vmem:[%s16221_s0 + $0xd8] sm:$0xff]  ;;  %2295 = vmatprep.subr.mxu0 %v11070_v62  ;;  %v8065_v61 = vld [vmem:[%s16221_s0 + $0xf0] sm:$0xff] }
 0x130   :  { %v11707_v8 = vpop.f32.mrf.mxu1  ;;  %v463_v6 = vpop.f32.mrf.mxu0  ;;  %9431 = vmatprep.mubr.f32.mxu0 %v11486_v60  ;;  %v8096_v60 = vld [vmem:[%s16221_s0 + $0xe1] sm:$0xff]  ;;  %2296 = vmatpush1.msra.mxu0 %v2256_v22 }
 0x131   :  { %1546 = vmatmul.mubr.f32.gmra.mxu1 %v8062_v17  ;;  %2297 = vmatprep.subr.mxu0 %v11070_v62 }
 0x132   :  { %v11710_v39 = vpop.f32.mrf.mxu1  ;;  %v466_v32 = vpop.f32.mrf.mxu0  ;;  %1550 = vmatprep.mubr.f32.mxu1 %v8095_v2  ;;  %9463 = vmatprep.subr.mxu1 %v2289_v52  ;;  %v2253_v2 = vld [vmem:[#allocation3 + $0x1d0] sm:$0xff] }
 0x133   :  { %v11716_v23 = vadd.f32 %v11547_v37, %v466_v32  ;;  %9432 = vmatmul.mubr.f32.gmra.mxu0 %v11499_v5  ;;  %v2255_v37 = vld [vmem:[#allocation3 + $0x1e0] sm:$0xff]  ;;  %9464 = vmatpush3.msra.mxu1 %v2289_v52  ;;  %v8066_v32 = vld [vmem:[%s16221_s0 + $0xf8] sm:$0xff] }
 0x134   :  { %v11723_v33 = vpop.f32.mrf.mxu1  ;;  %v468_v26 = vpop.f32.mrf.mxu0  ;;  %9434 = vmatprep.mubr.f32.mxu0 %v11507_v49  ;;  %v8064_v5 = vld [vmem:[%s16221_s0 + $0xe0] sm:$0xff]  ;;  %v8097_v49 = vld [vmem:[%s16221_s0 + $0xf1] sm:$0xff]  ;;  %2298 = vmatpush1.msra.mxu0 %v2255_v37  ;;  %v2288_v37 = vld [vmem:[#allocation3 + $0x2e8] sm:$0xff] }
 0x135   :  { %1551 = vmatmul.mubr.f32.gmra.mxu1 %v8063_v0  ;;  %2299 = vmatprep.subr.mxu0 %v11070_v62 }
 0x136   :  { %v11727_v41 = vpop.f32.mrf.mxu1  ;;  %1555 = vmatprep.mubr.f32.mxu1 %v8096_v60  ;;  %v2251_v60 = vld [vmem:[#allocation3 + $0x1c0] sm:$0xff]  ;;  %9465 = vmatprep.subr.mxu1 %v2288_v37 }
 0x137   :  { %v471_v59 = vpop.f32.mrf.mxu0  ;;  %9435 = vmatmul.mubr.f32.gmra.mxu0 %v11521_v11  ;;  %v2254_v11 = vld [vmem:[#allocation3 + $0x1d8] sm:$0xff]  ;;  %9466 = vmatpush3.msra.mxu1 %v2288_v37 }
 0x138   :  { %v11738_v55 = vadd.f32 %v11538_v9, %v471_v59  ;;  %9437 = vmatprep.mubr.f32.mxu0 %v11526_v30  ;;  %v8098_v30 = vld [vmem:[%s16221_s0 + $0xf9] sm:$0xff]  ;;  %2300 = vmatpush1.msra.mxu0 %v2254_v11  ;;  %v2249_v11 = vld [vmem:[#allocation3 + $0x1b0] sm:$0xff] }
 0x139   :  { %v11741_v45 = vpop.f32.mrf.mxu1  ;;  %1556 = vmatmul.mubr.f32.gmra.mxu1 %v8064_v5  ;;  %v473_v3 = vpop.f32.mrf.mxu0  ;;  %2301 = vmatprep.subr.mxu0 %v11070_v62  ;;  %v8067_v5 = vld [vmem:[%s16221_s0 + $0x108] sm:$0xff]  ;;  %v8103_v37 = vld [vmem:[%s16221_s0 + $0x139] sm:$0xff] }
 0x13a   :  { %1560 = vmatprep.mubr.f32.mxu1 %v8097_v49  ;;  %2302 = vmatpush1.msra.mxu0 %v2253_v2 }
 0x13b   :  { %v11747_v17 = vpop.f32.mrf.mxu1  ;;  %v476_v9 = vpop.f32.mrf.mxu0  ;;  %9438 = vmatmul.mubr.f32.gmra.mxu0 %v11536_v31  ;;  %2303 = vmatprep.subr.mxu0 %v11070_v62 }
 0x13c   :  { %v11754_v4 = vadd.f32 %v11566_v43, %v476_v9  ;;  %9440 = vmatprep.mubr.f32.mxu0 %v11544_v40  ;;  %v8099_v40 = vld [vmem:[%s16221_s0 + $0x109] sm:$0xff]  ;;  %2304 = vmatpush1.msra.mxu0 %v2252_v12 }
 0x13d   :  { %v886_v6 = vpop.f32.mrf.mxu1  ;;  %1561 = vmatmul.mubr.f32.gmra.mxu1 %v8065_v61  ;;  %v478_v47 = vpop.f32.mrf.mxu0  ;;  %2305 = vmatprep.subr.mxu0 %v11070_v62 }
 0x13e   :  { %v11759_v31 = vadd.f32 %v886_v6, %v11633_v42  ;;  %1565 = vmatprep.mubr.f32.mxu1 %v8098_v30  ;;  %2306 = vmatpush1.msra.mxu0 %v2251_v60  ;;  %v2248_v30 = vld [vmem:[#allocation3 + $0x1a8] sm:$0xff]  ;;  %v2247_v47 = vld [vmem:[#allocation3 + $0x1a0] sm:$0xff] }
 0x13f   :  { %v888_v43 = vpop.f32.mrf.mxu1  ;;  %v481_v0 = vpop.f32.mrf.mxu0  ;;  %9441 = vmatmul.mubr.f32.gmra.mxu0 %v11554_v10  ;;  %2307 = vmatprep.subr.mxu0 %v11070_v62  ;;  %v8141_v60 = vld [vmem:[%s16221_s0 + $0x182] sm:$0xff] }
 0x140   :  { %v11770_v42 = vadd.f32 %v11562_v16, %v481_v0  ;;  %9443 = vmatprep.mubr.f32.mxu0 %v11560_v38  ;;  %v2250_v16 = vld [vmem:[#allocation3 + $0x1b8] sm:$0xff]  ;;  %v2287_v43 = vld [vmem:[#allocation3 + $0x2e0] sm:$0xff] }
 0x141   :  { %v891_v22 = vpop.f32.mrf.mxu1  ;;  %1566 = vmatmul.mubr.f32.gmra.mxu1 %v8066_v32  ;;  %v483_v26 = vpop.f32.mrf.mxu0  ;;  %v8100_v38 = vld [vmem:[%s16221_s0 + $0x111] sm:$0xff]  ;;  %2308 = vmatpush1.msra.mxu0 %v2250_v16 }
 0x142   :  { %v11775_v10 = vadd.f32 %v891_v22, %v11645_v19  ;;  %1570 = vmatprep.mubr.f32.mxu1 %v8099_v40  ;;  %2309 = vmatprep.subr.mxu0 %v11070_v62  ;;  %v2246_v22 = vld [vmem:[#allocation3 + $0x198] sm:$0xff] }
 0x143   :  { %v893_v59 = vpop.f32.mrf.mxu1  ;;  %v486_v49 = vpop.f32.mrf.mxu0  ;;  %9444 = vmatmul.mubr.f32.gmra.mxu0 %v11572_v18  ;;  %v8068_v18 = vld [vmem:[%s16221_s0 + $0x110] sm:$0xff]  ;;  %9467 = vmatprep.subr.mxu1 %v2287_v43 }
 0x144   :  { %v11786_v19 = vadd.f32 %v11590_v25, %v486_v49  ;;  %9446 = vmatprep.mubr.f32.mxu0 %v11578_v44  ;;  %v8101_v44 = vld [vmem:[%s16221_s0 + $0x121] sm:$0xff]  ;;  %2310 = vmatpush1.msra.mxu0 %v2249_v11 }
 0x145   :  { %v896_v52 = vpop.f32.mrf.mxu1  ;;  %1571 = vmatmul.mubr.f32.gmra.mxu1 %v8067_v5  ;;  %v488_v3 = vpop.f32.mrf.mxu0  ;;  %2311 = vmatprep.subr.mxu0 %v11070_v62  ;;  %v8143_v49 = vld [vmem:[%s16221_s0 + $0x19a] sm:$0xff] }
 0x146   :  { %v11790_v61 = vadd.f32 %v896_v52, %v11656_v28  ;;  %1575 = vmatprep.mubr.f32.mxu1 %v8100_v38  ;;  %2312 = vmatpush1.msra.mxu0 %v2248_v30  ;;  %v11843_v38 = vld [vmem:[#allocation2 + $0x8] sm:$0xff]  ;;  %v8071_v52 = vld [vmem:[%s16221_s0 + $0x138] sm:$0xff] }
 0x147   :  { %v898_v9 = vpop.f32.mrf.mxu1  ;;  %v491_v25 = vpop.f32.mrf.mxu0  ;;  %9447 = vmatmul.mubr.f32.gmra.mxu0 %v11588_v48  ;;  %v8069_v48 = vld [vmem:[%s16221_s0 + $0x120] sm:$0xff]  ;;  %2313 = vmatprep.subr.mxu0 %v11070_v62 }
 0x148   :  { %v11801_v28 = vadd.f32 %v11581_v50, %v491_v25  ;;  %9449 = vmatprep.mubr.f32.mxu0 %v11596_v51  ;;  %v8102_v51 = vld [vmem:[%s16221_s0 + $0x129] sm:$0xff]  ;;  %2314 = vmatpush1.msra.mxu0 %v2247_v47  ;;  %v2243_v9 = vld [vmem:[#allocation3 + $0x180] sm:$0xff] }
 0x149   :  { %v901_v2 = vpop.f32.mrf.mxu1  ;;  %1576 = vmatmul.mubr.f32.gmra.mxu1 %v8068_v18  ;;  %v493_v6 = vpop.f32.mrf.mxu0  ;;  %2315 = vmatprep.subr.mxu0 %v11070_v62  ;;  %v2245_v62 = vld [vmem:[#allocation3 + $0x190] sm:$0xff]  ;;  %v8104_v18 = vld [vmem:[%s16221_s0 + $0x141] sm:$0xff] }
 0x14a   :  { %v11806_v12 = vadd.f32 %v901_v2, %v11667_v53  ;;  %1580 = vmatprep.mubr.f32.mxu1 %v8101_v44  ;;  %9468 = vmatpush3.msra.mxu1 %v2287_v43  ;;  %v2286_v2 = vld [vmem:[#allocation3 + $0x2d8] sm:$0xff] }
 0x14b   :  { %v903_v50 = vpop.f32.mrf.mxu1  ;;  %v496_v32 = vpop.f32.mrf.mxu0  ;;  %9450 = vmatmul.mubr.f32.gmra.mxu0 %v11606_v35  ;;  %v2274_v6 = vld [vmem:[#allocation3 + $0x278] sm:$0xff]  ;;  %9469 = vmatprep.subr.mxu1 %v2286_v2 }
 0x14c   :  { %v11817_v53 = vadd.f32 %v11609_v57, %v496_v32  ;;  %9452 = vmatprep.mubr.f32.mxu0 %v11614_v36  ;;  %v8070_v57 = vld [vmem:[%s16221_s0 + $0x128] sm:$0xff]  ;;  %2316 = vmatpush1.msra.mxu0 %v2246_v22  ;;  %v8105_v32 = vld [vmem:[%s16221_s0 + $0x151] sm:$0xff] }
 0x14d   :  { %v906_v0 = vpop.f32.mrf.mxu1  ;;  %1581 = vmatmul.mubr.f32.gmra.mxu1 %v8069_v48  ;;  %v498_v40 = vpop.f32.mrf.mxu0  ;;  %2317 = vmatprep.subr.mxu0 %v11843_v38  ;;  %v2272_v22 = vld [vmem:[#allocation3 + $0x268] sm:$0xff] }
 0x14e   :  { %v11825_v35 = vadd.f32 %v906_v0, %v11683_v24  ;;  %1585 = vmatprep.mubr.f32.mxu1 %v8102_v51  ;;  %v8142_v24 = vld [vmem:[%s16221_s0 + $0x18a] sm:$0xff]  ;;  %2318 = vmatpush1.msra.mxu0 %v2245_v62 }
 0x14f   :  { %v908_v36 = vpop.f32.mrf.mxu1  ;;  %v501_v26 = vpop.f32.mrf.mxu0  ;;  %9453 = vmatmul.mubr.f32.gmra.mxu0 %v11622_v63  ;;  %v2244_v63 = vld [vmem:[#allocation3 + $0x188] sm:$0xff]  ;;  %2319 = vmatprep.subr.mxu0 %v11843_v38  ;;  %v2285_v51 = vld [vmem:[#allocation3 + $0x2d0] sm:$0xff] }
 0x150   :  { %v11835_v5 = vadd.f32 %v11600_v56, %v501_v26  ;;  %9455 = vmatprep.mubr.f32.mxu0 %v8141_v60  ;;  %2320 = vmatpush1.msra.mxu0 %v2244_v63  ;;  %v8073_v60 = vld [vmem:[%s16221_s0 + $0x150] sm:$0xff]  ;;  %v8106_v26 = vld [vmem:[%s16221_s0 + $0x159] sm:$0xff]  ;;  %v2284_v62 = vld [vmem:[#allocation3 + $0x2c8] sm:$0xff] }
 0x151   :  { %v911_v16 = vpop.f32.mrf.mxu1  ;;  %1586 = vmatmul.mubr.f32.gmra.mxu1 %v8070_v57  ;;  %v503_v59 = vpop.f32.mrf.mxu0  ;;  %2321 = vmatprep.subr.mxu0 %v11843_v38 }
 0x152   :  { %v11847_v56 = vadd.f32 %v911_v16, %v11701_v58  ;;  %1590 = vmatprep.mubr.f32.mxu1 %v8103_v37  ;;  %v8144_v58 = vld [vmem:[%s16221_s0 + $0x1a2] sm:$0xff]  ;;  %2322 = vmatpush1.msra.mxu0 %v2243_v9 }
 0x153   :  { %v913_v3 = vpop.f32.mrf.mxu1  ;;  %v506_v11 = vpop.f32.mrf.mxu0  ;;  %9456 = vmatmul.mubr.f32.gmra.mxu0 %v8142_v24  ;;  %2323 = vmatprep.subr.mxu0 %v11843_v38 }
 0x154   :  { %v11857_v25 = vadd.f32 %v11628_v1, %v506_v11  ;;  %9458 = vmatprep.mubr.f32.mxu0 %v8143_v49  ;;  %v8072_v1 = vld [vmem:[%s16221_s0 + $0x140] sm:$0xff]  ;;  %2324 = vmatpush2.msra.mxu0 %v2274_v6  ;;  %v8074_v49 = vld [vmem:[%s16221_s0 + $0x158] sm:$0xff]  ;;  %v8107_v3 = vld [vmem:[%s16221_s0 + $0x169] sm:$0xff] }
 0x155   :  { %v916_v44 = vpop.f32.mrf.mxu1  ;;  %1591 = vmatmul.mubr.f32.gmra.mxu1 %v8071_v52  ;;  %v508_v30 = vpop.f32.mrf.mxu0  ;;  %2325 = vmatprep.subr.mxu0 %v11843_v38  ;;  %v2283_v11 = vld [vmem:[#allocation3 + $0x2c0] sm:$0xff] }
 0x156   :  { %v11864_v47 = vadd.f32 %v916_v44, %v11716_v23  ;;  %1595 = vmatprep.mubr.f32.mxu1 %v8104_v18  ;;  %v2273_v23 = vld [vmem:[#allocation3 + $0x270] sm:$0xff]  ;;  %9470 = vmatpush3.msra.mxu1 %v2286_v2  ;;  %v8075_v44 = vld [vmem:[%s16221_s0 + $0x168] sm:$0xff] }
 0x157   :  { %v918_v48 = vpop.f32.mrf.mxu1  ;;  %v11869_v50 = vpop.f32.mrf.mxu0  ;;  %9459 = vmatmul.mubr.f32.gmra.mxu0 %v8144_v58  ;;  %9471 = vmatprep.subr.mxu1 %v2285_v51  ;;  %v2268_v30 = vld [vmem:[#allocation3 + $0x248] sm:$0xff] }
 0x158   :  { %2326 = vmatpush2.msra.mxu0 %v2273_v23  ;;  %9472 = vmatpush3.msra.mxu1 %v2285_v51  ;;  %v2282_v48 = vld [vmem:[#allocation3 + $0x2b8] sm:$0xff] }
 0x159   :  { %v921_v43 = vpop.f32.mrf.mxu1  ;;  %1596 = vmatmul.mubr.f32.gmra.mxu1 %v8072_v1  ;;  %v513_v0 = vpop.f32.mrf.mxu0  ;;  %2327 = vmatprep.subr.mxu0 %v11843_v38  ;;  %v8108_v1 = vld [vmem:[%s16221_s0 + $0x171] sm:$0xff] }
 0x15a   :  { %v11877_v40 = vadd.f32 %v921_v43, %v11738_v55  ;;  %1600 = vmatprep.mubr.f32.mxu1 %v8105_v32  ;;  %v2271_v55 = vld [vmem:[#allocation3 + $0x260] sm:$0xff]  ;;  %2328 = vmatpush2.msra.mxu0 %v2272_v22  ;;  %v8076_v43 = vld [vmem:[%s16221_s0 + $0x170] sm:$0xff]  ;;  %v2266_v0 = vld [vmem:[#allocation3 + $0x238] sm:$0xff] }
 0x15b   :  { %v923_v57 = vpop.f32.mrf.mxu1  ;;  %v516_v36 = vpop.f32.mrf.mxu0  ;;  %2329 = vmatprep.subr.mxu0 %v11843_v38  ;;  %9473 = vmatprep.subr.mxu1 %v2284_v62 }
 0x15c   :  { %v11886_v37 = vadd.f32 %v11640_v7, %v516_v36  ;;  %v2270_v7 = vld [vmem:[#allocation3 + $0x258] sm:$0xff]  ;;  %2330 = vmatpush2.msra.mxu0 %v2271_v55  ;;  %9474 = vmatpush3.msra.mxu1 %v2284_v62  ;;  %v8109_v57 = vld [vmem:[%s16221_s0 + $0x181] sm:$0xff]  ;;  %v2265_v36 = vld [vmem:[#allocation3 + $0x230] sm:$0xff] }
 0x15d   :  { %v926_v24 = vpop.f32.mrf.mxu1  ;;  %1601 = vmatmul.mubr.f32.gmra.mxu1 %v8073_v60  ;;  %v518_v16 = vpop.f32.mrf.mxu0  ;;  %2331 = vmatprep.subr.mxu0 %v11843_v38 }
 0x15e   :  { %v11890_v59 = vadd.f32 %v926_v24, %v11754_v4  ;;  %1605 = vmatprep.mubr.f32.mxu1 %v8106_v26  ;;  %v2269_v4 = vld [vmem:[#allocation3 + $0x250] sm:$0xff]  ;;  %2332 = vmatpush2.msra.mxu0 %v2270_v7  ;;  %v8077_v24 = vld [vmem:[%s16221_s0 + $0x180] sm:$0xff]  ;;  %v2280_v16 = vld [vmem:[#allocation3 + $0x2a8] sm:$0xff] }
 0x15f   :  { %v928_v63 = vpop.f32.mrf.mxu1  ;;  %v11896_v52 = vpop.f32.mrf.mxu0  ;;  %2333 = vmatprep.subr.mxu0 %v11843_v38  ;;  %9475 = vmatprep.subr.mxu1 %v2283_v11 }
 0x160   :  { %2334 = vmatpush2.msra.mxu0 %v2269_v4  ;;  %9476 = vmatpush3.msra.mxu1 %v2283_v11  ;;  %v8110_v63 = vld [vmem:[%s16221_s0 + $0x189] sm:$0xff]  ;;  %v2279_v11 = vld [vmem:[#allocation3 + $0x2a0] sm:$0xff] }
 0x161   :  { %v931_v18 = vpop.f32.mrf.mxu1  ;;  %1606 = vmatmul.mubr.f32.gmra.mxu1 %v8074_v49  ;;  %v523_v9 = vpop.f32.mrf.mxu0  ;;  %2335 = vmatprep.subr.mxu0 %v11843_v38 }
 0x162   :  { %v11903_v58 = vadd.f32 %v931_v18, %v11770_v42  ;;  %1610 = vmatprep.mubr.f32.mxu1 %v8107_v3  ;;  %v2267_v42 = vld [vmem:[#allocation3 + $0x240] sm:$0xff]  ;;  %2336 = vmatpush2.msra.mxu0 %v2268_v30  ;;  %v2264_v3 = vld [vmem:[#allocation3 + $0x228] sm:$0xff] }
 0x163   :  { %v933_v2 = vpop.f32.mrf.mxu1  ;;  %v11909_v6 = vpop.f32.mrf.mxu0  ;;  %2337 = vmatprep.subr.mxu0 %v11843_v38  ;;  %9477 = vmatprep.subr.mxu1 %v2282_v48  ;;  %v2263_v18 = vld [vmem:[#allocation3 + $0x220] sm:$0xff] }
 0x164   :  { %2338 = vmatpush2.msra.mxu0 %v2267_v42  ;;  %9478 = vmatpush3.msra.mxu1 %v2282_v48  ;;  %v2262_v42 = vld [vmem:[#allocation3 + $0x218] sm:$0xff] }
 0x165   :  { %v936_v32 = vpop.f32.mrf.mxu1  ;;  %1611 = vmatmul.mubr.f32.gmra.mxu1 %v8075_v44  ;;  %v528_v23 = vpop.f32.mrf.mxu0  ;;  %2339 = vmatprep.subr.mxu0 %v11843_v38  ;;  %v8078_v44 = vld [vmem:[%s16221_s0 + $0x188] sm:$0xff] }
 0x166   :  { %v11916_v51 = vadd.f32 %v936_v32, %v11786_v19  ;;  %1615 = vmatprep.mubr.f32.mxu1 %v8108_v1  ;;  %v2281_v19 = vld [vmem:[#allocation3 + $0x2b0] sm:$0xff]  ;;  %2340 = vmatpush2.msra.mxu0 %v2266_v0  ;;  %v8111_v1 = vld [vmem:[%s16221_s0 + $0x199] sm:$0xff] }
 0x167   :  { %v938_v60 = vpop.f32.mrf.mxu1  ;;  %v11922_v22 = vpop.f32.mrf.mxu0  ;;  %2341 = vmatprep.subr.mxu0 %v11843_v38  ;;  %9479 = vmatprep.subr.mxu1 %v2281_v19  ;;  %v2277_v0 = vld [vmem:[#allocation3 + $0x290] sm:$0xff] }
 0x168   :  { %2342 = vmatpush2.msra.mxu0 %v2265_v36  ;;  %9480 = vmatpush3.msra.mxu1 %v2281_v19  ;;  %v8112_v19 = vld [vmem:[%s16221_s0 + $0x1a1] sm:$0xff]  ;;  %v2261_v36 = vld [vmem:[#allocation3 + $0x210] sm:$0xff] }
 0x169   :  { %v941_v26 = vpop.f32.mrf.mxu1  ;;  %1616 = vmatmul.mubr.f32.gmra.mxu1 %v8076_v43  ;;  %v533_v55 = vpop.f32.mrf.mxu0  ;;  %2343 = vmatprep.subr.mxu0 %v11843_v38  ;;  %v8079_v43 = vld [vmem:[%s16221_s0 + $0x198] sm:$0xff] }
 0x16a   :  { %v11929_v62 = vadd.f32 %v941_v26, %v11801_v28  ;;  %1620 = vmatprep.mubr.f32.mxu1 %v8109_v57  ;;  %9481 = vmatprep.subr.mxu1 %v2280_v16  ;;  %v2276_v55 = vld [vmem:[#allocation3 + $0x288] sm:$0xff] }
 0x16b   :  { %v943_v49 = vpop.f32.mrf.mxu1  ;;  %v11935_v7 = vpop.f32.mrf.mxu0  ;;  %2344 = vmatpush2.msra.mxu0 %v2264_v3  ;;  %9482 = vmatpush3.msra.mxu1 %v2280_v16 }
 0x16c   :  { %2345 = vmatprep.subr.mxu0 %v11843_v38  ;;  %9483 = vmatprep.subr.mxu1 %v2279_v11  ;;  %v8080_v49 = vld [vmem:[%s16221_s0 + $0x1a0] sm:$0xff] }
 0x16d   :  { %v946_v28 = vpop.f32.mrf.mxu1  ;;  %1621 = vmatmul.mubr.f32.gmra.mxu1 %v8077_v24  ;;  %v538_v4 = vpop.f32.mrf.mxu0  ;;  %2346 = vmatpush2.msra.mxu0 %v2263_v18  ;;  %v2260_v24 = vld [vmem:[#allocation3 + $0x208] sm:$0xff] }
 0x16e   :  { %v11942_v9 = vadd.f32 %v946_v28, %v11817_v53  ;;  %1625 = vmatprep.mubr.f32.mxu1 %v8110_v63  ;;  %v2278_v53 = vld [vmem:[#allocation3 + $0x298] sm:$0xff]  ;;  %2347 = vmatprep.subr.mxu0 %v11843_v38  ;;  %v2259_v28 = vld [vmem:[#allocation3 + $0x200] sm:$0xff]  ;;  %v737_v4 = vadd.f32 %v11624_v46, %v11869_v50 }
 0x16f   :  { %v948_v30 = vpop.f32.mrf.mxu1  ;;  %v11947_v2 = vpop.f32.mrf.mxu0  ;;  %9484 = vmatpush3.msra.mxu1 %v2279_v11  ;;  %2348 = vmatpush2.msra.mxu0 %v2262_v42  ;;  %v11977_v11 = vld [vmem:[#allocation3 + $0x178] sm:$0xff] }
 0x170   :  { %9485 = vmatprep.subr.mxu1 %v2278_v53  ;;  %2349 = vmatprep.subr.mxu0 %v11843_v38 }
 0x171   :  { %v951_v48 = vpop.f32.mrf.mxu1  ;;  %1626 = vmatmul.mubr.f32.gmra.mxu1 %v8078_v44  ;;  %v543_v32 = vpop.f32.mrf.mxu0  ;;  %2350 = vmatpush2.msra.mxu0 %v2261_v36 }
 0x172   :  { %v11955_v23 = vadd.f32 %v951_v48, %v11835_v5  ;;  %1630 = vmatprep.mubr.f32.mxu1 %v8111_v1  ;;  %9486 = vmatpush3.msra.mxu1 %v2278_v53 }
 0x173   :  { %v953_v60 = vpop.f32.mrf.mxu1  ;;  %v11960_v57 = vpop.f32.mrf.mxu0  ;;  %9487 = vmatprep.subr.mxu1 %v2277_v0  ;;  %2351 = vmatprep.subr.mxu0 %v11843_v38 }
 0x174   :  { %9488 = vmatpush3.msra.mxu1 %v2277_v0  ;;  %2352 = vmatpush2.msra.mxu0 %v2260_v24 }
 0x175   :  { %v956_v5 = vpop.f32.mrf.mxu1  ;;  %1631 = vmatmul.mubr.f32.gmra.mxu1 %v8079_v43  ;;  %v548_v26 = vpop.f32.mrf.mxu0  ;;  %9489 = vmatprep.subr.mxu1 %v2276_v55  ;;  %v747_v43 = vadd.f32 %v11636_v34, %v11896_v52 }
 0x176   :  { %v11967_v16 = vadd.f32 %v956_v5, %v11857_v25  ;;  %1635 = vmatprep.mubr.f32.mxu1 %v8112_v19  ;;  %v2275_v25 = vld [vmem:[#allocation3 + $0x280] sm:$0xff]  ;;  %2353 = vmatprep.subr.mxu0 %v11843_v38  ;;  %v752_v26 = vadd.f32 %v11651_v15, %v11909_v6 }
 0x177   :  { %v958_v63 = vpop.f32.mrf.mxu1  ;;  %v11972_v3 = vpop.f32.mrf.mxu0  ;;  %9490 = vmatpush3.msra.mxu1 %v2276_v55  ;;  %2354 = vmatpush2.msra.mxu0 %v2259_v28  ;;  %v757_v28 = vadd.f32 %v11648_v13, %v11922_v22 }
 0x178   :  { %9491 = vmatprep.subr.mxu1 %v2275_v25  ;;  %9541 = vmatprep.subr.mxu0 %v11977_v11 }
 0x179   :  { %v961_v18 = vpop.f32.mrf.mxu1  ;;  %1636 = vmatmul.mubr.f32.gmra.mxu1 %v8080_v49  ;;  %v553_v44 = vpop.f32.mrf.mxu0 }
 0x17a   :  { %v11980_v30 = vadd.f32 %v961_v18, %v737_v4  ;;  %9492 = vmatpush3.msra.mxu1 %v2275_v25  ;;  %v762_v44 = vadd.f32 %v11662_v54, %v11935_v7 }
 0x17b   :  { %v963_v1 = vpop.f32.mrf.mxu1  ;;  %v556_v53 = vpop.f32.mrf.mxu0  ;;  %2741 = vmatprep.subr.mxu1 %v11843_v38 }
 0x17d   :  { %v966_v46 = vpop.f32.mrf.mxu1  ;;  %v558_v50 = vpop.f32.mrf.mxu0 }
 0x17e   :  { %v11985_v42 = vadd.f32 %v966_v46, %v11886_v37 }
 0x17f   :  { %v968_v48 = vpop.f32.mrf.mxu1  ;;  %v561_v32 = vpop.f32.mrf.mxu0 }
 0x180   :  { %v767_v48 = vadd.f32 %v11659_v21, %v11947_v2 }
 0x181   :  { %v971_v0 = vpop.f32.mrf.mxu1  ;;  %v563_v60 = vpop.f32.mrf.mxu0 }
 0x182   :  { %v11989_v19 = vadd.f32 %v971_v0, %v747_v43 }
 0x183   :  { %v973_v36 = vpop.f32.mrf.mxu1  ;;  %v566_v5 = vpop.f32.mrf.mxu0 }
 0x184   :  { %v772_v36 = vadd.f32 %v11680_v29, %v11960_v57 }
 0x185   :  { %v976_v55 = vpop.f32.mrf.mxu1  ;;  %v568_v24 = vpop.f32.mrf.mxu0 }
 0x186   :  { %v11993_v49 = vadd.f32 %v976_v55, %v752_v26 }
 0x187   :  { %v978_v37 = vpop.f32.mrf.mxu1  ;;  %v571_v63 = vpop.f32.mrf.mxu0 }
 0x188   :  { %v777_v37 = vadd.f32 %v11674_v27, %v11972_v3  ;;  %v787_v27 = vadd.f32 %v11689_v14, %v561_v32  ;;  %v797_v32 = vadd.f32 %v11707_v8, %v571_v63 }
 0x189   :  { %v981_v4 = vpop.f32.mrf.mxu1  ;;  %v573_v34 = vpop.f32.mrf.mxu0 }
 0x18a   :  { %v11997_v52 = vadd.f32 %v981_v4, %v757_v28 }
 0x18b   :  { %v983_v25 = vpop.f32.mrf.mxu1  ;;  %v576_v18 = vpop.f32.mrf.mxu0 }
 0x18c   :  { %v782_v25 = vadd.f32 %v11695_v20, %v556_v53  ;;  %v792_v53 = vadd.f32 %v11710_v39, %v566_v5 }
 0x18d   :  { %v986_v1 = vpop.f32.mrf.mxu1  ;;  %v578_v15 = vpop.f32.mrf.mxu0 }
 0x18e   :  { %v12001_v6 = vadd.f32 %v986_v1, %v762_v44 }
 0x18f   :  { %v988_v46 = vpop.f32.mrf.mxu1  ;;  %v581_v50 = vpop.f32.mrf.mxu0 }
 0x191   :  { %v991_v43 = vpop.f32.mrf.mxu1  ;;  %v583_v13 = vpop.f32.mrf.mxu0 }
 0x192   :  { %v12005_v22 = vadd.f32 %v991_v43, %v767_v48 }
 0x193   :  { %v993_v0 = vpop.f32.mrf.mxu1  ;;  %v586_v60 = vpop.f32.mrf.mxu0 }
 0x195   :  { %v996_v26 = vpop.f32.mrf.mxu1  ;;  %v588_v54 = vpop.f32.mrf.mxu0 }
 0x196   :  { %v12009_v7 = vadd.f32 %v996_v26, %v772_v36 }
 0x197   :  { %v998_v55 = vpop.f32.mrf.mxu1  ;;  %v591_v24 = vpop.f32.mrf.mxu0 }
 0x199   :  { %v1001_v28 = vpop.f32.mrf.mxu1  ;;  %v593_v21 = vpop.f32.mrf.mxu0 }
 0x19a   :  { %v12013_v2 = vadd.f32 %v1001_v28, %v777_v37 }
 0x19b   :  { %v1003_v4 = vpop.f32.mrf.mxu1  ;;  %v9335_v34 = vpop.f32.mrf.mxu0 }
 0x19c   :  { %v12017_v44 = vadd.f32 %v9335_v34, %v11775_v10 }
 0x19d   :  { %v1006_v29 = vpop.f32.mrf.mxu1  ;;  %v12019_v57 = vpop.f32.mrf.mxu0 }
 0x19e   :  { %v12021_v1 = vadd.f32 %v1006_v29, %v782_v25 }
 0x19f   :  { %v1008_v15 = vpop.f32.mrf.mxu1  ;;  %v9338_v46 = vpop.f32.mrf.mxu0 }
 0x1a0   :  { %v12025_v3 = vadd.f32 %v9338_v46, %v11806_v12 }
 0x1a1   :  { %v1011_v48 = vpop.f32.mrf.mxu1  ;;  %v12027_v43 = vpop.f32.mrf.mxu0 }
 0x1a2   :  { %v12029_v13 = vadd.f32 %v1011_v48, %v787_v27 }
 0x1a3   :  { %v1013_v20 = vpop.f32.mrf.mxu1  ;;  %v9341_v10 = vpop.f32.mrf.mxu0 }
 0x1a4   :  { %v12033_v0 = vadd.f32 %v9341_v10, %v11847_v56  ;;  %v802_v56 = vadd.f32 %v11727_v41, %v576_v18 }
 0x1a5   :  { %v1016_v36 = vpop.f32.mrf.mxu1  ;;  %v12035_v26 = vpop.f32.mrf.mxu0 }
 0x1a6   :  { %v12037_v54 = vadd.f32 %v1016_v36, %v792_v53 }
 0x1a7   :  { %v1018_v14 = vpop.f32.mrf.mxu1  ;;  %v9344_v12 = vpop.f32.mrf.mxu0 }
 0x1a8   :  { %16256 = vst [vmem:[#allocation9_spill] sm:$0xff] %v12037_v54  ;;  %v12041_v55 = vadd.f32 %v9344_v12, %v11877_v40  ;;  %v807_v40 = vadd.f32 %v11723_v33, %v581_v50 }
 0x1a9   :  { %v1021_v37 = vpop.f32.mrf.mxu1  ;;  %v12043_v28 = vpop.f32.mrf.mxu0 }
 0x1aa   :  { %v1022_v21 = vadd.f32 %v1021_v37, %v797_v32 }
 0x1ab   :  { %v1023_v39 = vpop.f32.mrf.mxu1  ;;  %v9347_v5 = vpop.f32.mrf.mxu0 }
 0x1ac   :  { %v12047_v4 = vadd.f32 %v9347_v5, %v11903_v58  ;;  %v812_v58 = vadd.f32 %v11747_v17, %v586_v60 }
 0x1ad   :  { %v1026_v34 = vpop.f32.mrf.mxu1  ;;  %v12049_v25 = vpop.f32.mrf.mxu0 }
 0x1ae   :  { %v12051_v29 = vadd.f32 %v1026_v34, %v802_v56 }
 0x1af   :  { %v1028_v8 = vpop.f32.mrf.mxu1  ;;  %v9350_v63 = vpop.f32.mrf.mxu0 }
 0x1b0   :  { %16257 = vst [vmem:[#allocation10_spill] sm:$0xff] %v12051_v29  ;;  %v12055_v15 = vadd.f32 %v9350_v63, %v11929_v62  ;;  %v817_v62 = vadd.f32 %v11741_v45, %v591_v24 }
 0x1b1   :  { %v1031_v46 = vpop.f32.mrf.mxu1  ;;  %v12057_v27 = vpop.f32.mrf.mxu0 }
 0x1b2   :  { %v1032_v48 = vadd.f32 %v1031_v46, %v807_v40 }
 0x1b3   :  { %v1033_v41 = vpop.f32.mrf.mxu1  ;;  %v9353_v18 = vpop.f32.mrf.mxu0 }
 0x1b4   :  { %v12061_v20 = vadd.f32 %v9353_v18, %v11955_v23 }
 0x1b5   :  { %v1036_v10 = vpop.f32.mrf.mxu1  ;;  %v12063_v53 = vpop.f32.mrf.mxu0 }
 0x1b6   :  { %v12065_v36 = vadd.f32 %v1036_v10, %v812_v58 }
 0x1b7   :  { %v1038_v33 = vpop.f32.mrf.mxu1  ;;  %v9356_v50 = vpop.f32.mrf.mxu0 }
 0x1b8   :  { %16258 = vst [vmem:[#allocation11_spill] sm:$0xff] %v12065_v36  ;;  %v12069_v14 = vadd.f32 %v9356_v50, %v11980_v30 }
 0x1b9   :  { %v1041_v12 = vpop.f32.mrf.mxu1  ;;  %v12071_v32 = vpop.f32.mrf.mxu0 }
 0x1ba   :  { %v1042_v37 = vadd.f32 %v1041_v12, %v817_v62 }
 0x1bb   :  { %v1043_v17 = vpop.f32.mrf.mxu1  ;;  %v9359_v60 = vpop.f32.mrf.mxu0 }
 0x1bc   :  { %v12074_v23 = vadd.f32 %v9359_v60, %v11989_v19 }
 0x1bd   :  { %v1482_v39 = vpop.f32.mrf.mxu1  ;;  %v12076_v5 = vpop.f32.mrf.mxu0 }
 0x1bf   :  { %v1484_v56 = vpop.f32.mrf.mxu1  ;;  %v9362_v34 = vpop.f32.mrf.mxu0 }
 0x1c0   :  { %v12079_v8 = vadd.f32 %v9362_v34, %v11997_v52 }
 0x1c1   :  { %v1487_v45 = vpop.f32.mrf.mxu1  ;;  %v12081_v30 = vpop.f32.mrf.mxu0 }
 0x1c3   :  { %v1489_v24 = vpop.f32.mrf.mxu1  ;;  %v9365_v63 = vpop.f32.mrf.mxu0 }
 0x1c4   :  { %v12084_v40 = vadd.f32 %v9365_v63, %v12005_v22 }
 0x1c5   :  { %v1492_v46 = vpop.f32.mrf.mxu1  ;;  %v12086_v41 = vpop.f32.mrf.mxu0 }
 0x1c7   :  { %v1494_v19 = vpop.f32.mrf.mxu1  ;;  %v9368_v18 = vpop.f32.mrf.mxu0 }
 0x1c8   :  { %v12089_v58 = vadd.f32 %v9368_v18, %v12013_v2 }
 0x1c9   :  { %v1497_v10 = vpop.f32.mrf.mxu1  ;;  %v12091_v33 = vpop.f32.mrf.mxu0 }
 0x1cb   :  { %v1499_v52 = vpop.f32.mrf.mxu1  ;;  %v9371_v50 = vpop.f32.mrf.mxu0 }
 0x1cc   :  { %v12094_v62 = vadd.f32 %v9371_v50, %v12029_v13 }
 0x1cd   :  { %v1502_v12 = vpop.f32.mrf.mxu1  ;;  %v12096_v17 = vpop.f32.mrf.mxu0 }
 0x1ce   :  { %16259 = vst [vmem:[#allocation12_spill] sm:$0xff] %v12094_v62 }
 0x1cf   :  { %v1504_v22 = vpop.f32.mrf.mxu1  ;;  %v9374_v60 = vpop.f32.mrf.mxu0 }
 0x1d0   :  { %v12098_v56 = vadd.f32 %v9374_v60, %v1022_v21 }
 0x1d1   :  { %v1507_v34 = vpop.f32.mrf.mxu1  ;;  %v12100_v24 = vpop.f32.mrf.mxu0 }
 0x1d2   :  { %16260 = vst [vmem:[#allocation13_spill] sm:$0xff] %v12098_v56  ;;  %16261 = vst [vmem:[#allocation14_spill] sm:$0xff] %v12100_v24 }
 0x1d3   :  { %v1509_v2 = vpop.f32.mrf.mxu1  ;;  %v9377_v63 = vpop.f32.mrf.mxu0 }
 0x1d4   :  { %v12102_v19 = vadd.f32 %v9377_v63, %v1032_v48  ;;  %v12113_v2 = vld [vmem:[%s16223_s2] ss:$0 sm:$0xff] }
 0x1d5   :  { %v1512_v18 = vpop.f32.mrf.mxu1  ;;  %v12104_v52 = vpop.f32.mrf.mxu0 }
 0x1d6   :  { %16262 = vst [vmem:[#allocation15_spill] sm:$0xff] %v12102_v19  ;;  %16263 = vst [vmem:[#allocation16_spill] sm:$0xff] %v12104_v52 }
 0x1d7   :  { %v1514_v36 = vpop.f32.mrf.mxu1  ;;  %v9380_v13 = vpop.f32.mrf.mxu0 }
 0x1d8   :  { %v12106_v50 = vadd.f32 %v9380_v13, %v1042_v37  ;;  %v1112_v36 = vadd.f32 %v12019_v57, %v11759_v31 }
 0x1d9   :  { %v1517_v29 = vpop.f32.mrf.mxu1  ;;  %v12108_v54 = vpop.f32.mrf.mxu0 }
 0x1da   :  { %16264 = vst [vmem:[#allocation17_spill] sm:$0xff] %v12106_v50  ;;  %16265 = vst [vmem:[#allocation18_spill] sm:$0xff] %v12108_v54  ;;  %v1122_v54 = vadd.f32 %v12027_v43, %v11790_v61  ;;  %v1132_v61 = vadd.f32 %v12035_v26, %v11825_v35 }
 0x1db   :  { %v1519_v22 = vpop.f32.mrf.mxu1  ;;  %v9415_v21 = vpop.f32.mrf.mxu0 }
 0x1dc   :  { %v1713_v60 = vadd.f32 %v9415_v21, %v1487_v45 }
 0x1dd   :  { %v12115_v48 = vpop.f32.mrf.mxu1  ;;  %v1707_v63 = vpop.f32.mrf.mxu0 }
 0x1de   :  { %v1867_v37 = vadd.f32 %v1713_v60, %v12017_v44  ;;  %v1708_v13 = vadd.f32 %v1707_v63, %v1482_v39 }
 0x1df   :  { %v1524_v50 = vpop.f32.mrf.mxu1  ;;  %v9418_v19 = vpop.f32.mrf.mxu0 }
 0x1e0   :  { %v12121_v22 = vadd.f32 %v12113_v2, %v1867_v37  ;;  %v1866_v45 = vadd.f32 %v1708_v13, %v1112_v36  ;;  %v1723_v21 = vadd.f32 %v9418_v19, %v1497_v10  ;;  %v1142_v13 = vadd.f32 %v12043_v28, %v11864_v47 }
 0x1e1   :  { %v1527_v52 = vpop.f32.mrf.mxu1  ;;  %v1717_v56 = vpop.f32.mrf.mxu0 }
 0x1e2   :  { %v1938_v24 = vmax.f32 %v12121_v22, 0.0  ;;  %v1905_v62 = vadd.f32 %v12113_v2, %v1866_v45  ;;  %v1869_v31 = vadd.f32 %v1723_v21, %v12025_v3  ;;  %v1718_v44 = vadd.f32 %v1717_v56, %v1492_v46 }
 0x1e3   :  { %v1529_v57 = vpop.f32.mrf.mxu1  ;;  %v9421_v39 = vpop.f32.mrf.mxu0 }
 0x1e4   :  { %1971 = vst [vmem:[#allocation2 + $0x30] sm:$0xff] %v1938_v24  ;;  %v1937_v50 = vmax.f32 %v1905_v62, 0.0  ;;  %v12129_v60 = vadd.f32 %v12113_v2, %v1869_v31  ;;  %v1868_v10 = vadd.f32 %v1718_v44, %v1122_v54  ;;  %v1733_v19 = vadd.f32 %v9421_v39, %v1507_v34 }
 0x1e5   :  { %v12133_v43 = vpop.f32.mrf.mxu1  ;;  %v1727_v63 = vpop.f32.mrf.mxu0 }
 0x1e6   :  { %1970 = vst [vmem:[#allocation2 + $0x28] sm:$0xff] %v1937_v50  ;;  %v1940_v36 = vmax.f32 %v12129_v60, 0.0  ;;  %v12137_v3 = vadd.f32 %v12113_v2, %v1868_v10  ;;  %v1871_v46 = vadd.f32 %v1733_v19, %v12033_v0  ;;  %v1728_v62 = vadd.f32 %v1727_v63, %v1502_v12  ;;  %2355 = vmatprep.mubr.f32.mxu0 %v1937_v50  ;;  %v2110_v60 = vld [vmem:[#allocation3 + $0x60] sm:$0xff] }
 0x1e7   :  { %v1534_v56 = vpop.f32.mrf.mxu1  ;;  %v9424_v37 = vpop.f32.mrf.mxu0  ;;  %v1152_v50 = vadd.f32 %v12049_v25, %v11890_v59  ;;  %v2144_v25 = vld [vmem:[#allocation3 + $0x170] sm:$0xff] }
 0x1e8   :  { %1973 = vst [vmem:[#allocation2 + $0x50] sm:$0xff] %v1940_v36  ;;  %v1939_v35 = vmax.f32 %v12137_v3, 0.0  ;;  %v12144_v26 = vadd.f32 %v12113_v2, %v1871_v46  ;;  %v1870_v54 = vadd.f32 %v1728_v62, %v1132_v61  ;;  %v1743_v34 = vadd.f32 %v9424_v37, %v1517_v29  ;;  %v2113_v61 = vld [vmem:[#allocation3 + $0x78] sm:$0xff] }
 0x1e9   :  { %v1537_v22 = vpop.f32.mrf.mxu1  ;;  %v1737_v45 = vpop.f32.mrf.mxu0 }
 0x1ea   :  { %1972 = vst [vmem:[#allocation2 + $0x48] sm:$0xff] %v1939_v35  ;;  %v1942_v0 = vmax.f32 %v12144_v26, 0.0  ;;  %v12152_v12 = vadd.f32 %v12113_v2, %v1870_v54  ;;  %v1873_v21 = vadd.f32 %v1743_v34, %v12041_v55  ;;  %v1738_v31 = vadd.f32 %v1737_v45, %v1512_v18 }
 0x1eb   :  { %v1539_v44 = vpop.f32.mrf.mxu1  ;;  %v9427_v57 = vpop.f32.mrf.mxu0  ;;  %v2211_v59 = vld [vmem:[#allocation2 + $0x31] sm:$0xff] }
 0x1ec   :  { %1975 = vst [vmem:[#allocation2 + $0x70] sm:$0xff] %v1942_v0  ;;  %v1941_v47 = vmax.f32 %v12152_v12, 0.0  ;;  %v12159_v28 = vadd.f32 %v12113_v2, %v1873_v21  ;;  %v1872_v29 = vadd.f32 %v1738_v31, %v1142_v13  ;;  %v1753_v39 = vadd.f32 %v9427_v57, %v1527_v52  ;;  %v2112_v44 = vld [vmem:[#allocation3 + $0x70] sm:$0xff]  ;;  %v2109_v12 = vld [vmem:[#allocation3 + $0x58] sm:$0xff] }
 0x1ed   :  { %v12163_v10 = vpop.f32.mrf.mxu1  ;;  %v1747_v19 = vpop.f32.mrf.mxu0  ;;  %v2210_v55 = vld [vmem:[#allocation2 + $0x29] sm:$0xff] }
 0x1ee   :  { %v12165_v18 = vld [vmem:[#allocation2 + $0x27] sm:$0xff]  ;;  %1974 = vst [vmem:[#allocation2 + $0x68] sm:$0xff] %v1941_v47  ;;  %v1944_v63 = vmax.f32 %v12159_v28, 0.0  ;;  %v12171_v46 = vadd.f32 %v12113_v2, %v1872_v29  ;;  %v1875_v52 = vadd.f32 %v1753_v39, %v12047_v4  ;;  %v1748_v62 = vadd.f32 %v1747_v19, %v12115_v48  ;;  %9493 = vmatprep.mubr.f32.mxu1 %v2210_v55 }
 0x1ef   :  { %2356 = vmatmul.mubr.f32.vlgmr.msra.gmra.mxu0 %v12165_v18  ;;  %v1544_v56 = vpop.f32.mrf.mxu1  ;;  %v9430_v37 = vpop.f32.mrf.mxu0  ;;  %9494 = vmatmul.mubr.f32.vlgmr.msra.gmra.mxu1 %v2211_v59  ;;  %v1162_v48 = vadd.f32 %v12057_v27, %v11916_v51  ;;  %v2213_v27 = vld [vmem:[#allocation2 + $0x51] sm:$0xff]  ;;  %v2143_v29 = vld [vmem:[#allocation3 + $0x168] sm:$0xff] }
 0x1f0   :  { %2360 = vmatprep.mubr.f32.mxu0 %v1938_v24  ;;  %1977 = vst [vmem:[#allocation2 + $0x90] sm:$0xff] %v1944_v63  ;;  %v1943_v54 = vmax.f32 %v12171_v46, 0.0  ;;  %v12180_v34 = vadd.f32 %v12113_v2, %v1875_v52  ;;  %v1874_v4 = vadd.f32 %v1748_v62, %v1152_v50  ;;  %v1763_v13 = vadd.f32 %v9430_v37, %v1537_v22  ;;  %v12185_v24 = vld [vmem:[#allocation2 + $0x2f] sm:$0xff] }
 0x1f1   :  { %9542 = vmatpush3.msra.mxu0 %v11977_v11  ;;  %2742 = vmatpush1.msra.mxu1 %v2113_v61  ;;  %v1547_v45 = vpop.f32.mrf.mxu1  ;;  %v1757_v21 = vpop.f32.mrf.mxu0  ;;  %v2212_v31 = vld [vmem:[#allocation2 + $0x49] sm:$0xff]  ;;  %v1172_v61 = vadd.f32 %v12063_v53, %v11942_v9 }
 0x1f2   :  { %9543 = vmatprep.subr.mxu0 %v2144_v25  ;;  %2743 = vmatprep.subr.mxu1 %v11843_v38  ;;  %1976 = vst [vmem:[#allocation2 + $0x88] sm:$0xff] %v1943_v54  ;;  %v1946_v22 = vmax.f32 %v12180_v34, 0.0  ;;  %v12192_v11 = vadd.f32 %v12113_v2, %v1874_v4  ;;  %v1877_v57 = vadd.f32 %v1763_v13, %v12055_v15  ;;  %v12207_v3 = vld [vmem:[#allocation2 + $0x47] sm:$0xff] }
 0x1f3   :  { %v1758_v51 = vadd.f32 %v1757_v21, %v12133_v43  ;;  %9496 = vmatprep.mubr.f32.mxu1 %v2212_v31  ;;  %2361 = vmatmul.mubr.f32.gmra.mxu0 %v12185_v24  ;;  %v1549_v39 = vpop.f32.mrf.mxu1  ;;  %v9433_v50 = vpop.f32.mrf.mxu0  ;;  %v2215_v53 = vld [vmem:[#allocation2 + $0x71] sm:$0xff]  ;;  %v2142_v4 = vld [vmem:[#allocation3 + $0x160] sm:$0xff]  ;;  %v1182_v21 = vadd.f32 %v12071_v32, %v11967_v16 }
 0x1f4   :  { %9497 = vmatmul.mubr.f32.gmra.mxu1 %v2213_v27  ;;  %2365 = vmatprep.mubr.f32.mxu0 %v1939_v35  ;;  %1979 = vst [vmem:[#allocation2 + $0xb0] sm:$0xff] %v1946_v22  ;;  %v1945_v19 = vmax.f32 %v12192_v11, 0.0  ;;  %v12203_v15 = vadd.f32 %v12113_v2, %v1877_v57  ;;  %v1773_v55 = vadd.f32 %v9433_v50, %v1547_v45  ;;  %v2111_v35 = vld [vmem:[#allocation3 + $0x68] sm:$0xff]  ;;  %v2141_v32 = vld [vmem:[#allocation3 + $0x158] sm:$0xff] }
 0x1f5   :  { %v1876_v43 = vadd.f32 %v1758_v51, %v1162_v48  ;;  %9544 = vmatpush3.msra.mxu0 %v2144_v25  ;;  %2744 = vmatpush1.msra.mxu1 %v2112_v44  ;;  %v1552_v52 = vpop.f32.mrf.mxu1  ;;  %v1767_v62 = vpop.f32.mrf.mxu0  ;;  %v2214_v59 = vld [vmem:[#allocation2 + $0x69] sm:$0xff] }
 0x1f6   :  { %9545 = vmatprep.subr.mxu0 %v2143_v29  ;;  %2745 = vmatprep.subr.mxu1 %v11843_v38  ;;  %1978 = vst [vmem:[#allocation2 + $0xa8] sm:$0xff] %v1945_v19  ;;  %v1948_v56 = vmax.f32 %v12203_v15, 0.0  ;;  %v1879_v37 = vadd.f32 %v1773_v55, %v12061_v20  ;;  %v1768_v9 = vadd.f32 %v1767_v62, %v12163_v10  ;;  %v12229_v51 = vld [vmem:[#allocation2 + $0x4f] sm:$0xff] }
 0x1f7   :  { %v12214_v25 = vadd.f32 %v12113_v2, %v1876_v43  ;;  %9499 = vmatprep.mubr.f32.mxu1 %v2214_v59  ;;  %2366 = vmatmul.mubr.f32.gmra.mxu0 %v12207_v3  ;;  %v1554_v13 = vpop.f32.mrf.mxu1  ;;  %v9436_v48 = vpop.f32.mrf.mxu0  ;;  %v2217_v16 = vld [vmem:[#allocation2 + $0x91] sm:$0xff] }
 0x1f8   :  { %9500 = vmatmul.mubr.f32.gmra.mxu1 %v2215_v53  ;;  %2370 = vmatprep.mubr.f32.mxu0 %v1940_v36  ;;  %1981 = vst [vmem:[#allocation2 + $0xd0] sm:$0xff] %v1948_v56  ;;  %v12225_v20 = vadd.f32 %v12113_v2, %v1879_v37  ;;  %v1878_v10 = vadd.f32 %v1768_v9, %v1172_v61  ;;  %v12247_v9 = vld [vmem:[#allocation2 + $0x67] sm:$0xff] }
 0x1f9   :  { %v1947_v45 = vmax.f32 %v12214_v25, 0.0  ;;  %9546 = vmatpush3.msra.mxu0 %v2143_v29  ;;  %2746 = vmatpush1.msra.mxu1 %v2111_v35  ;;  %v1557_v31 = vpop.f32.mrf.mxu1  ;;  %v1777_v44 = vpop.f32.mrf.mxu0  ;;  %v2216_v57 = vld [vmem:[#allocation2 + $0x89] sm:$0xff] }
 0x1fa   :  { %9547 = vmatprep.subr.mxu0 %v2142_v4  ;;  %2747 = vmatprep.subr.mxu1 %v11843_v38  ;;  %v1950_v36 = vmax.f32 %v12225_v20, 0.0  ;;  %v12236_v27 = vadd.f32 %v12113_v2, %v1878_v10  ;;  %v1783_v29 = vadd.f32 %v9436_v48, %v1557_v31  ;;  %v1778_v39 = vadd.f32 %v1777_v44, %v1552_v52  ;;  %v12263_v44 = vld [vmem:[#allocation2 + $0x6f] sm:$0xff] }
 0x1fb   :  { %1980 = vst [vmem:[#allocation2 + $0xc8] sm:$0xff] %v1947_v45  ;;  %9502 = vmatprep.mubr.f32.mxu1 %v2216_v57  ;;  %2371 = vmatmul.mubr.f32.gmra.mxu0 %v12229_v51  ;;  %v1559_v50 = vpop.f32.mrf.mxu1  ;;  %v9439_v43 = vpop.f32.mrf.mxu0  ;;  %v1192_v52 = vadd.f32 %v12076_v5, %v11985_v42  ;;  %v2219_v42 = vld [vmem:[#allocation2 + $0xb1] sm:$0xff]  ;;  %v12265_v57 = vld [vmem:[#allocation2 + $0x8] sm:$0xff] }
 0x1fc   :  { %9503 = vmatmul.mubr.f32.gmra.mxu1 %v2217_v16  ;;  %2375 = vmatprep.mubr.f32.mxu0 %v1941_v47  ;;  %1983 = vst [vmem:[#allocation2 + $0xf0] sm:$0xff] %v1950_v36  ;;  %v1949_v55 = vmax.f32 %v12236_v27, 0.0  ;;  %v1881_v61 = vadd.f32 %v1783_v29, %v12069_v14  ;;  %v1880_v62 = vadd.f32 %v1778_v39, %v1182_v21  ;;  %v2140_v5 = vld [vmem:[#allocation3 + $0x150] sm:$0xff]  ;;  %v2139_v39 = vld [vmem:[#allocation3 + $0x148] sm:$0xff] }
 0x1fd   :  { %9548 = vmatpush3.msra.mxu0 %v2142_v4  ;;  %2748 = vmatpush1.msra.mxu1 %v2110_v60  ;;  %v1562_v59 = vpop.f32.mrf.mxu1  ;;  %v1787_v35 = vpop.f32.mrf.mxu0  ;;  %v2218_v37 = vld [vmem:[#allocation2 + $0xa9] sm:$0xff] }
 0x1fe   :  { %9549 = vmatprep.subr.mxu0 %v2141_v32  ;;  %2749 = vmatprep.subr.mxu1 %v11843_v38  ;;  %1982 = vst [vmem:[#allocation2 + $0xe8] sm:$0xff] %v1949_v55  ;;  %v12253_v14 = vadd.f32 %v12113_v2, %v1881_v61  ;;  %v12256_v47 = vadd.f32 %v12113_v2, %v1880_v62  ;;  %v2108_v60 = vld [vmem:[#allocation3 + $0x50] sm:$0xff] }
 0x1ff   :  { %v1788_v53 = vadd.f32 %v1787_v35, %v1562_v59  ;;  %9505 = vmatprep.mubr.f32.mxu1 %v2218_v37  ;;  %2376 = vmatmul.mubr.f32.gmra.mxu0 %v12247_v9  ;;  %v1564_v4 = vpop.f32.mrf.mxu1  ;;  %v9442_v38 = vpop.f32.mrf.mxu0  ;;  %v2221_v29 = vld [vmem:[#allocation2 + $0xd1] sm:$0xff]  ;;  %v2107_v59 = vld [vmem:[#allocation3 + $0x48] sm:$0xff]  ;;  %v1202_v35 = vadd.f32 %v12081_v30, %v11993_v49  ;;  %v2138_v37 = vld [vmem:[#allocation3 + $0x140] sm:$0xff] }
 0x200   :  { %9506 = vmatmul.mubr.f32.gmra.mxu1 %v2219_v42  ;;  %2380 = vmatprep.mubr.f32.mxu0 %v1942_v0  ;;  %v1952_v13 = vmax.f32 %v12253_v14, 0.0  ;;  %v1951_v48 = vmax.f32 %v12256_v47, 0.0  ;;  %v12294_v4 = vld [vmem:[#allocation2 + $0x8f] sm:$0xff] }
 0x201   :  { %v1882_v10 = vadd.f32 %v1788_v53, %v1192_v52  ;;  %9550 = vmatpush3.msra.mxu0 %v2141_v32  ;;  %2750 = vmatpush1.msra.mxu1 %v2109_v12  ;;  %v1567_v21 = vpop.f32.mrf.mxu1  ;;  %v1797_v32 = vpop.f32.mrf.mxu0 }
 0x202   :  { %v2220_v31 = vld [vmem:[#allocation2 + $0xc9] sm:$0xff]  ;;  %9551 = vmatprep.subr.mxu0 %v2140_v5  ;;  %2751 = vmatprep.subr.mxu1 %v12265_v57  ;;  %1985 = vst [vmem:[#allocation2 + $0x110] sm:$0xff] %v1952_v13  ;;  %1984 = vst [vmem:[#allocation2 + $0x108] sm:$0xff] %v1951_v48  ;;  %v1793_v0 = vadd.f32 %v9439_v43, %v1567_v21 }
 0x203   :  { %v12273_v26 = vadd.f32 %v12113_v2, %v1882_v10  ;;  %9508 = vmatprep.mubr.f32.mxu1 %v2220_v31  ;;  %2381 = vmatmul.mubr.f32.gmra.mxu0 %v12263_v44  ;;  %v1569_v16 = vpop.f32.mrf.mxu1  ;;  %v12280_v43 = vld [vmem:[#allocation2 + $0x87] sm:$0xff]  ;;  %v9445_v53 = vpop.f32.mrf.mxu0  ;;  %v2137_v31 = vld [vmem:[#allocation3 + $0x138] sm:$0xff] }
 0x204   :  { %9509 = vmatmul.mubr.f32.gmra.mxu1 %v2221_v29  ;;  %2385 = vmatprep.mubr.f32.mxu0 %v1943_v54  ;;  %v1883_v61 = vadd.f32 %v1793_v0, %v12074_v23  ;;  %v2223_v54 = vld [vmem:[#allocation2 + $0xf1] sm:$0xff]  ;;  %v2106_v10 = vld [vmem:[#allocation3 + $0x40] sm:$0xff] }
 0x205   :  { %v1953_v50 = vmax.f32 %v12273_v26, 0.0  ;;  %9552 = vmatpush3.msra.mxu0 %v2140_v5  ;;  %2752 = vmatpush1.msra.mxu1 %v2108_v60  ;;  %v1572_v62 = vpop.f32.mrf.mxu1  ;;  %v2222_v52 = vld [vmem:[#allocation2 + $0xe9] sm:$0xff]  ;;  %v1807_v0 = vpop.f32.mrf.mxu0  ;;  %v2105_v29 = vld [vmem:[#allocation3 + $0x38] sm:$0xff] }
 0x206   :  { %2753 = vmatprep.subr.mxu1 %v12265_v57  ;;  %9553 = vmatprep.subr.mxu0 %v2139_v39  ;;  %v12288_v46 = vadd.f32 %v12113_v2, %v1883_v61  ;;  %v1798_v23 = vadd.f32 %v1797_v32, %v1572_v62  ;;  %v2104_v61 = vld [vmem:[#allocation3 + $0x30] sm:$0xff]  ;;  %v1212_v62 = vadd.f32 %v12086_v41, %v12001_v6 }
 0x207   :  { %1986 = vst [vmem:[#allocation2 + $0x128] sm:$0xff] %v1953_v50  ;;  %9511 = vmatprep.mubr.f32.mxu1 %v2222_v52  ;;  %2386 = vmatmul.mubr.f32.gmra.mxu0 %v12280_v43  ;;  %v1574_v12 = vpop.f32.mrf.mxu1 }
 0x208   :  { %9512 = vmatmul.mubr.f32.gmra.mxu1 %v2223_v54  ;;  %2390 = vmatprep.mubr.f32.mxu0 %v1944_v63  ;;  %v1954_v49 = vmax.f32 %v12288_v46, 0.0  ;;  %v1884_v30 = vadd.f32 %v1798_v23, %v1202_v35  ;;  %v2103_v35 = vld [vmem:[#allocation3 + $0x28] sm:$0xff] }
 0x209   :  { %2754 = vmatpush1.msra.mxu1 %v2107_v59  ;;  %9554 = vmatpush3.msra.mxu0 %v2139_v39  ;;  %v1577_v42 = vpop.f32.mrf.mxu1  ;;  %v2224_v5 = vld [vmem:[#allocation2 + $0x109] sm:$0xff]  ;;  %v2225_v21 = vld [vmem:[#allocation2 + $0x111] sm:$0xff]  ;;  %v9448_v59 = vpop.f32.mrf.mxu0 }
 0x20a   :  { %2755 = vmatprep.subr.mxu1 %v12265_v57  ;;  %9555 = vmatprep.subr.mxu0 %v2138_v37  ;;  %1987 = vst [vmem:[#allocation2 + $0x130] sm:$0xff] %v1954_v49  ;;  %v12300_v28 = vadd.f32 %v12113_v2, %v1884_v30  ;;  %v1803_v63 = vadd.f32 %v9442_v38, %v1577_v42  ;;  %v12307_v38 = vld [vmem:[#allocation2 + $0xa7] sm:$0xff]  ;;  %v12326_v12 = vld [vmem:[#allocation2 + $0xaf] sm:$0xff] }
 0x20b   :  { %9514 = vmatprep.mubr.f32.mxu1 %v2224_v5  ;;  %2391 = vmatmul.mubr.f32.gmra.mxu0 %v12294_v4  ;;  %v1579_v60 = vpop.f32.mrf.mxu1  ;;  %v2135_v30 = vld [vmem:[#allocation3 + $0x128] sm:$0xff]  ;;  %v1817_v5 = vpop.f32.mrf.mxu0 }
 0x20c   :  { %9515 = vmatmul.mubr.f32.gmra.mxu1 %v2225_v21  ;;  %2395 = vmatprep.mubr.f32.mxu0 %v1945_v19  ;;  %v1955_v39 = vmax.f32 %v12300_v28, 0.0  ;;  %v1885_v16 = vadd.f32 %v1803_v63, %v12079_v8  ;;  %v2136_v8 = vld [vmem:[#allocation3 + $0x130] sm:$0xff]  ;;  %v2101_v60 = vld [vmem:[#allocation3 + $0x18] sm:$0xff] }
 0x20d   :  { %2756 = vmatpush1.msra.mxu1 %v2106_v10  ;;  %9556 = vmatpush3.msra.mxu0 %v2138_v37  ;;  %v1582_v32 = vpop.f32.mrf.mxu1  ;;  %v2102_v10 = vld [vmem:[#allocation3 + $0x20] sm:$0xff] }
 0x20e   :  { %2757 = vmatprep.subr.mxu1 %v12265_v57  ;;  %9557 = vmatprep.subr.mxu0 %v2137_v31  ;;  %1988 = vst [vmem:[#allocation2 + $0x148] sm:$0xff] %v1955_v39  ;;  %v12315_v11 = vadd.f32 %v12113_v2, %v1885_v16  ;;  %v1808_v19 = vadd.f32 %v1807_v0, %v1582_v32  ;;  %v9451_v16 = vpop.f32.mrf.mxu0  ;;  %v2100_v32 = vld [vmem:[#allocation3 + $0x10] sm:$0xff] }
 0x20f   :  { %2396 = vmatmul.mubr.f32.gmra.mxu0 %v12307_v38  ;;  %2758 = vmatpush1.msra.mxu1 %v2105_v29  ;;  %v1584_v52 = vpop.f32.mrf.mxu1  ;;  %v1222_v0 = vadd.f32 %v12091_v33, %v12009_v7 }
 0x210   :  { %2400 = vmatprep.mubr.f32.mxu0 %v1946_v22  ;;  %2759 = vmatprep.subr.mxu1 %v12265_v57  ;;  %v1956_v6 = vmax.f32 %v12315_v11, 0.0  ;;  %v1886_v41 = vadd.f32 %v1808_v19, %v1212_v62  ;;  %v2133_v52 = vld [vmem:[#allocation3 + $0x118] sm:$0xff] }
 0x211   :  { %2760 = vmatpush1.msra.mxu1 %v2104_v61  ;;  %9558 = vmatpush3.msra.mxu0 %v2137_v31  ;;  %v1587_v23 = vpop.f32.mrf.mxu1  ;;  %v12322_v54 = vld [vmem:[#allocation2 + $0x129] sm:$0xff]  ;;  %v12324_v37 = vld [vmem:[#allocation2 + $0x131] sm:$0xff] }
 0x212   :  { %2761 = vmatprep.subr.mxu1 %v12265_v57  ;;  %9559 = vmatprep.subr.mxu0 %v2136_v8  ;;  %1989 = vst [vmem:[#allocation2 + $0x150] sm:$0xff] %v1956_v6  ;;  %v12332_v34 = vadd.f32 %v12113_v2, %v1886_v41  ;;  %v1813_v22 = vadd.f32 %v9445_v53, %v1587_v23  ;;  %v12341_v31 = vld [vmem:[#allocation2 + $0xc7] sm:$0xff] }
 0x213   :  { %9517 = vmatprep.mubr.f32.mxu1 %v12322_v54  ;;  %2401 = vmatmul.mubr.f32.gmra.mxu0 %v12326_v12  ;;  %v1589_v42 = vpop.f32.mrf.mxu1  ;;  %v2099_v23 = vld [vmem:[#allocation3 + $0x8] sm:$0xff] }
 0x214   :  { %9518 = vmatmul.mubr.f32.gmra.mxu1 %v12324_v37  ;;  %2405 = vmatprep.mubr.f32.mxu0 %v1947_v45  ;;  %v1957_v63 = vmax.f32 %v12332_v34, 0.0  ;;  %v1887_v21 = vadd.f32 %v1813_v22, %v12084_v40  ;;  %v2134_v40 = vld [vmem:[#allocation3 + $0x120] sm:$0xff] }
 0x215   :  { %2762 = vmatpush1.msra.mxu1 %v2103_v35  ;;  %9560 = vmatpush3.msra.mxu0 %v2136_v8  ;;  %v1592_v53 = vpop.f32.mrf.mxu1  ;;  %v12360_v8 = vld [vmem:[#allocation2 + $0xcf] sm:$0xff]  ;;  %v1827_v35 = vpop.f32.mrf.mxu0  ;;  %v12375_v42 = vld [vmem:[#allocation2 + $0xe7] sm:$0xff] }
 0x216   :  { %2763 = vmatprep.subr.mxu1 %v12265_v57  ;;  %9561 = vmatprep.subr.mxu0 %v2135_v30  ;;  %1990 = vst [vmem:[#allocation2 + $0x168] sm:$0xff] %v1957_v63  ;;  %v12349_v25 = vadd.f32 %v12113_v2, %v1887_v21  ;;  %v1818_v45 = vadd.f32 %v1817_v5, %v1592_v53  ;;  %v2098_v5 = vld [vmem:[#allocation3] sm:$0xff] }
 0x217   :  { %2406 = vmatmul.mubr.f32.gmra.mxu0 %v12341_v31  ;;  %2764 = vmatpush1.msra.mxu1 %v2102_v10  ;;  %v1594_v29 = vpop.f32.mrf.mxu1  ;;  %v1232_v10 = vadd.f32 %v12096_v17, %v12021_v1  ;;  %v9454_v53 = vpop.f32.mrf.mxu0 }
 0x218   :  { %2410 = vmatprep.mubr.f32.mxu0 %v1948_v56  ;;  %2765 = vmatprep.subr.mxu1 %v12265_v57  ;;  %v1958_v7 = vmax.f32 %v12349_v25, 0.0  ;;  %v1888_v33 = vadd.f32 %v1818_v45, %v1222_v0  ;;  %v12394_v29 = vld [vmem:[#allocation2 + $0xef] sm:$0xff] }
 0x219   :  { %2766 = vmatpush1.msra.mxu1 %v2101_v60  ;;  %9562 = vmatpush3.msra.mxu0 %v2135_v30  ;;  %v1597_v61 = vpop.f32.mrf.mxu1  ;;  %v12356_v62 = vld [vmem:[#allocation2 + $0x149] sm:$0xff]  ;;  %v12358_v19 = vld [vmem:[#allocation2 + $0x151] sm:$0xff] }
 0x21a   :  { %2767 = vmatprep.subr.mxu1 %v12265_v57  ;;  %9563 = vmatprep.subr.mxu0 %v2134_v40  ;;  %1991 = vst [vmem:[#allocation2 + $0x170] sm:$0xff] %v1958_v7  ;;  %v12366_v15 = vadd.f32 %v12113_v2, %v1888_v33  ;;  %v1823_v56 = vadd.f32 %v9448_v59, %v1597_v61  ;;  %v2129_v60 = vld [vmem:[#allocation3 + $0xf8] sm:$0xff]  ;;  %v2131_v33 = vld [vmem:[#allocation3 + $0x108] sm:$0xff]  ;;  %v1837_v61 = vpop.f32.mrf.mxu0 }
 0x21b   :  { %9520 = vmatprep.mubr.f32.mxu1 %v12356_v62  ;;  %2411 = vmatmul.mubr.f32.gmra.mxu0 %v12360_v8  ;;  %v1599_v41 = vpop.f32.mrf.mxu1 }
 0x21c   :  { %9521 = vmatmul.mubr.f32.gmra.mxu1 %v12358_v19  ;;  %2415 = vmatprep.mubr.f32.mxu0 %v1949_v55  ;;  %v1959_v22 = vmax.f32 %v12366_v15, 0.0  ;;  %v1889_v30 = vadd.f32 %v1823_v56, %v12089_v58  ;;  %v2132_v58 = vld [vmem:[#allocation3 + $0x110] sm:$0xff]  ;;  %v16266_v41 = vld [vmem:[#allocation12_spill] sm:$0xff] }
 0x21d   :  { %2768 = vmatpush1.msra.mxu1 %v2100_v32  ;;  %9564 = vmatpush3.msra.mxu0 %v2134_v40  ;;  %v1602_v59 = vpop.f32.mrf.mxu1  ;;  %v2128_v56 = vld [vmem:[#allocation3 + $0xf0] sm:$0xff] }
 0x21e   :  { %2769 = vmatprep.subr.mxu1 %v12265_v57  ;;  %9565 = vmatprep.subr.mxu0 %v2133_v52  ;;  %1992 = vst [vmem:[#allocation2 + $0x188] sm:$0xff] %v1959_v22  ;;  %v12383_v27 = vadd.f32 %v12113_v2, %v1889_v30  ;;  %v1828_v55 = vadd.f32 %v1827_v35, %v1602_v59  ;;  %v2127_v30 = vld [vmem:[#allocation3 + $0xe8] sm:$0xff]  ;;  %v16267_v59 = vld [vmem:[#allocation9_spill] sm:$0xff] }
 0x21f   :  { %2416 = vmatmul.mubr.f32.gmra.mxu0 %v12375_v42  ;;  %2770 = vmatpush1.msra.mxu1 %v2099_v23  ;;  %v1604_v21 = vpop.f32.mrf.mxu1  ;;  %v12409_v23 = vld [vmem:[#allocation2 + $0x107] sm:$0xff] }
 0x220   :  { %2420 = vmatprep.mubr.f32.mxu0 %v1950_v36  ;;  %2771 = vmatprep.subr.mxu1 %v12265_v57  ;;  %v1960_v1 = vmax.f32 %v12383_v27, 0.0  ;;  %v1890_v17 = vadd.f32 %v1828_v55, %v1232_v10  ;;  %v2130_v55 = vld [vmem:[#allocation3 + $0x100] sm:$0xff]  ;;  %v9457_v21 = vpop.f32.mrf.mxu0 }
 0x221   :  { %2772 = vmatpush1.msra.mxu1 %v2098_v5  ;;  %9566 = vmatpush3.msra.mxu0 %v2133_v52  ;;  %v1607_v0 = vpop.f32.mrf.mxu1  ;;  %v12390_v45 = vld [vmem:[#allocation2 + $0x169] sm:$0xff]  ;;  %v12392_v40 = vld [vmem:[#allocation2 + $0x171] sm:$0xff] }
 0x222   :  { %2773 = vmatprep.subr.mxu1 %v12265_v57  ;;  %9567 = vmatprep.subr.mxu0 %v2132_v58  ;;  %1993 = vst [vmem:[#allocation2 + $0x190] sm:$0xff] %v1960_v1  ;;  %v12400_v20 = vadd.f32 %v12113_v2, %v1890_v17  ;;  %v1833_v36 = vadd.f32 %v9451_v16, %v1607_v0  ;;  %v16268_v5 = vld [vmem:[#allocation14_spill] sm:$0xff]  ;;  %v2126_v0 = vld [vmem:[#allocation3 + $0xe0] sm:$0xff] }
 0x223   :  { %9523 = vmatprep.mubr.f32.mxu1 %v12390_v45  ;;  %2421 = vmatmul.mubr.f32.gmra.mxu0 %v12394_v29  ;;  %v1609_v32 = vpop.f32.mrf.mxu1  ;;  %v1242_v10 = vadd.f32 %v16268_v5, %v16267_v59  ;;  %v2002_v27 = vld [vmem:[#allocation2 + $0x7] sm:$0xff] }
 0x224   :  { %9524 = vmatmul.mubr.f32.gmra.mxu1 %v12392_v40  ;;  %2425 = vmatprep.mubr.f32.mxu0 %v1951_v48  ;;  %v1961_v52 = vmax.f32 %v12400_v20, 0.0  ;;  %v1891_v35 = vadd.f32 %v1833_v36, %v16266_v41  ;;  %v1847_v41 = vpop.f32.mrf.mxu0 }
 0x225   :  { %2774 = vmatpush2.msra.mxu1 %v2129_v60  ;;  %9568 = vmatpush3.msra.mxu0 %v2132_v58  ;;  %v1612_v16 = vpop.f32.mrf.mxu1  ;;  %v12539_v25 = vld [vmem:[#allocation2 + $0x187] sm:$0xff] }
 0x226   :  { %2775 = vmatprep.subr.mxu1 %v12265_v57  ;;  %9569 = vmatprep.subr.mxu0 %v2131_v33  ;;  %1994 = vst [vmem:[#allocation2 + $0x1a8] sm:$0xff] %v1961_v52  ;;  %v12417_v47 = vadd.f32 %v12113_v2, %v1891_v35  ;;  %v1838_v48 = vadd.f32 %v1837_v61, %v1612_v16  ;;  %v2125_v35 = vld [vmem:[#allocation3 + $0xd8] sm:$0xff] }
 0x227   :  { %2426 = vmatmul.mubr.f32.gmra.mxu0 %v12409_v23  ;;  %2776 = vmatpush2.msra.mxu1 %v2128_v56  ;;  %v1614_v58 = vpop.f32.mrf.mxu1  ;;  %v12428_v56 = vld [vmem:[#allocation2 + $0x10f] sm:$0xff] }
 0x228   :  { %2430 = vmatprep.mubr.f32.mxu0 %v1952_v13  ;;  %2777 = vmatprep.subr.mxu1 %v12265_v57  ;;  %v1962_v17 = vmax.f32 %v12417_v47, 0.0  ;;  %v1892_v60 = vadd.f32 %v1838_v48, %v1242_v10  ;;  %v2124_v10 = vld [vmem:[#allocation3 + $0xd0] sm:$0xff]  ;;  %v16270_v48 = vld [vmem:[#allocation10_spill] sm:$0xff]  ;;  %v16271_v58 = vld [vmem:[#allocation16_spill] sm:$0xff] }
 0x229   :  { %2778 = vmatpush2.msra.mxu1 %v2127_v30  ;;  %9570 = vmatpush3.msra.mxu0 %v2131_v33  ;;  %v1617_v36 = vpop.f32.mrf.mxu1  ;;  %v12424_v32 = vld [vmem:[#allocation2 + $0x189] sm:$0xff]  ;;  %v12426_v61 = vld [vmem:[#allocation2 + $0x191] sm:$0xff]  ;;  %v16269_v30 = vld [vmem:[#allocation13_spill] sm:$0xff] }
 0x22a   :  { %2779 = vmatprep.subr.mxu1 %v12265_v57  ;;  %9571 = vmatprep.subr.mxu0 %v2130_v55  ;;  %1995 = vst [vmem:[#allocation2 + $0x1b0] sm:$0xff] %v1962_v17  ;;  %v12434_v14 = vadd.f32 %v12113_v2, %v1892_v60  ;;  %v1843_v13 = vadd.f32 %v9454_v53, %v1617_v36  ;;  %v12443_v53 = vld [vmem:[#allocation2 + $0x127] sm:$0xff] }
 0x22b   :  { %9526 = vmatprep.mubr.f32.mxu1 %v12424_v32  ;;  %2431 = vmatmul.mubr.f32.gmra.mxu0 %v12428_v56  ;;  %v1619_v33 = vpop.f32.mrf.mxu1  ;;  %v1252_v60 = vadd.f32 %v16271_v58, %v16270_v48 }
 0x22c   :  { %9527 = vmatmul.mubr.f32.gmra.mxu1 %v12426_v61  ;;  %2435 = vmatprep.mubr.f32.mxu0 %v1953_v50  ;;  %v1963_v16 = vmax.f32 %v12434_v14, 0.0  ;;  %v1893_v59 = vadd.f32 %v1843_v13, %v16269_v30  ;;  %v2123_v33 = vld [vmem:[#allocation3 + $0xc8] sm:$0xff] }
 0x22d   :  { %2780 = vmatpush2.msra.mxu1 %v2126_v0  ;;  %9572 = vmatpush3.msra.mxu0 %v2130_v55  ;;  %v1622_v5 = vpop.f32.mrf.mxu1  ;;  %v9460_v0 = vpop.f32.mrf.mxu0 }
 0x22e   :  { %2781 = vmatprep.subr.mxu1 %v12265_v57  ;;  %3337 = vmatprep.subr.mxu0 %v12265_v57  ;;  %1996 = vst [vmem:[#allocation2 + $0x1c8] sm:$0xff] %v1963_v16  ;;  %v12452_v26 = vadd.f32 %v12113_v2, %v1893_v59  ;;  %v1848_v50 = vadd.f32 %v1847_v41, %v1622_v5  ;;  %v12463_v41 = vld [vmem:[#allocation2 + $0x12f] sm:$0xff] }
 0x22f   :  { %2436 = vmatmul.mubr.f32.gmra.mxu0 %v12443_v53  ;;  %2782 = vmatpush2.msra.mxu1 %v2125_v35  ;;  %v1624_v55 = vpop.f32.mrf.mxu1  ;;  %v1857_v5 = vpop.f32.mrf.mxu0 }
 0x230   :  { %2440 = vmatprep.mubr.f32.mxu0 %v1954_v49  ;;  %2783 = vmatprep.subr.mxu1 %v12265_v57  ;;  %v16227_v36 = vmax.f32 %v12452_v26, 0.0  ;;  %v1894_v13 = vadd.f32 %v1848_v50, %v1252_v60  ;;  %v16272_v60 = vld [vmem:[#allocation15_spill] sm:$0xff] }
 0x231   :  { %2784 = vmatpush2.msra.mxu1 %v2124_v10  ;;  %v1627_v30 = vpop.f32.mrf.mxu1  ;;  %v12459_v48 = vld [vmem:[#allocation2 + $0x1a9] sm:$0xff]  ;;  %v12461_v59 = vld [vmem:[#allocation2 + $0x1b1] sm:$0xff]  ;;  %v2122_v10 = vld [vmem:[#allocation3 + $0xc0] sm:$0xff] }
 0x232   :  { %2785 = vmatprep.subr.mxu1 %v12265_v57  ;;  %1997 = vst [vmem:[#allocation2 + $0x1d0] sm:$0xff] %v16227_v36  ;;  %v12469_v46 = vadd.f32 %v12113_v2, %v1894_v13  ;;  %v1853_v49 = vadd.f32 %v9457_v21, %v1627_v30  ;;  %9529 = vmatprep.mubr.f32.mxu1 %v12459_v48  ;;  %v12478_v13 = vld [vmem:[#allocation2 + $0x147] sm:$0xff]  ;;  %v2121_v21 = vld [vmem:[#allocation3 + $0xb8] sm:$0xff]  ;;  %v16273_v30 = vld [vmem:[#allocation11_spill] sm:$0xff] }
 0x233   :  { %2441 = vmatmul.mubr.f32.gmra.mxu0 %v12463_v41  ;;  %v1629_v35 = vpop.f32.mrf.mxu1  ;;  %9530 = vmatmul.mubr.f32.gmra.mxu1 %v12461_v59  ;;  %v12559_v20 = vld [vmem:[#allocation2 + $0x1af] sm:$0xff] }
 0x234   :  { %2445 = vmatprep.mubr.f32.mxu0 %v1955_v39  ;;  %v16228_v58 = vmax.f32 %v12469_v46, 0.0  ;;  %v1895_v50 = vadd.f32 %v1853_v49, %v16272_v60  ;;  %2786 = vmatpush2.msra.mxu1 %v2123_v33  ;;  %v16274_v35 = vld [vmem:[#allocation18_spill] sm:$0xff] }
 0x235   :  { %v1632_v55 = vpop.f32.mrf.mxu1  ;;  %2787 = vmatprep.subr.mxu1 %v12265_v57  ;;  %v1262_v36 = vadd.f32 %v16274_v35, %v16273_v30  ;;  %v2120_v30 = vld [vmem:[#allocation3 + $0xb0] sm:$0xff]  ;;  %v12564_v47 = vld [vmem:[#allocation2 + $0x1c7] sm:$0xff] }
 0x236   :  { %1998 = vst [vmem:[#allocation2 + $0x1e8] sm:$0xff] %v16228_v58  ;;  %v12486_v28 = vadd.f32 %v12113_v2, %v1895_v50  ;;  %v1858_v39 = vadd.f32 %v1857_v5, %v1632_v55  ;;  %2788 = vmatpush2.msra.mxu1 %v2122_v10  ;;  %v12497_v5 = vld [vmem:[#allocation2 + $0x14f] sm:$0xff] }
 0x237   :  { %2446 = vmatmul.mubr.f32.gmra.mxu0 %v12478_v13  ;;  %v1634_v33 = vpop.f32.mrf.mxu1  ;;  %2789 = vmatprep.subr.mxu1 %v12265_v57 }
 0x238   :  { %2450 = vmatprep.mubr.f32.mxu0 %v1956_v6  ;;  %v1966_v49 = vmax.f32 %v12486_v28, 0.0  ;;  %v1896_v60 = vadd.f32 %v1858_v39, %v1262_v36  ;;  %2790 = vmatpush2.msra.mxu1 %v2121_v21  ;;  %v2119_v36 = vld [vmem:[#allocation3 + $0xa8] sm:$0xff]  ;;  %v16275_v21 = vld [vmem:[#allocation17_spill] sm:$0xff] }
 0x239   :  { %v1637_v35 = vpop.f32.mrf.mxu1  ;;  %v12493_v58 = vld [vmem:[#allocation2 + $0x1c9] sm:$0xff]  ;;  %v12495_v50 = vld [vmem:[#allocation2 + $0x1d1] sm:$0xff]  ;;  %2791 = vmatprep.subr.mxu1 %v12265_v57 }
 0x23a   :  { %1999 = vst [vmem:[#allocation2 + $0x1f0] sm:$0xff] %v1966_v49  ;;  %v12503_v11 = vadd.f32 %v12113_v2, %v1896_v60  ;;  %v1863_v6 = vadd.f32 %v9460_v0, %v1637_v35  ;;  %9532 = vmatprep.mubr.f32.mxu1 %v12493_v58  ;;  %2792 = vmatpush2.msra.mxu1 %v2120_v30  ;;  %v12512_v33 = vld [vmem:[#allocation2 + $0x167] sm:$0xff]  ;;  %v12570_v14 = vld [vmem:[#allocation2 + $0x1cf] sm:$0xff] }
 0x23b   :  { %2451 = vmatmul.mubr.f32.gmra.mxu0 %v12497_v5  ;;  %9533 = vmatmul.mubr.f32.gmra.mxu1 %v12495_v50  ;;  %v1639_v10 = vpop.f32.mrf.mxu1  ;;  %v2118_v0 = vld [vmem:[#allocation3 + $0xa0] sm:$0xff] }
 0x23c   :  { %2455 = vmatprep.mubr.f32.mxu0 %v1957_v63  ;;  %v1967_v55 = vmax.f32 %v12503_v11, 0.0  ;;  %v1897_v39 = vadd.f32 %v1863_v6, %v16275_v21  ;;  %2793 = vmatprep.subr.mxu1 %v12265_v57  ;;  %v2117_v63 = vld [vmem:[#allocation3 + $0x98] sm:$0xff]  ;;  %v12529_v6 = vld [vmem:[#allocation2 + $0x16f] sm:$0xff] }
 0x23d   :  { %2794 = vmatpush2.msra.mxu1 %v2119_v36  ;;  %v2114_v36 = vld [vmem:[#allocation3 + $0x80] sm:$0xff]  ;;  %v3336_v21 = vld [vmem:[#allocation3 + $0x478] sm:$0xff] }
 0x23e   :  { %2000 = vst [vmem:[#allocation2 + $0x208] sm:$0xff] %v1967_v55  ;;  %v12518_v60 = vadd.f32 %v12113_v2, %v1897_v39  ;;  %2795 = vmatprep.subr.mxu1 %v12265_v57  ;;  %v2116_v2 = vld [vmem:[#allocation3 + $0x90] sm:$0xff] }
 0x23f   :  { %2456 = vmatmul.mubr.f32.gmra.mxu0 %v12512_v33  ;;  %2796 = vmatpush2.msra.mxu1 %v2118_v0  ;;  %v3335_v39 = vld [vmem:[#allocation3 + $0x470] sm:$0xff] }
 0x240   :  { %2460 = vmatprep.mubr.f32.mxu0 %v1958_v7  ;;  %v1968_v34 = vmax.f32 %v12518_v60, 0.0  ;;  %2797 = vmatprep.subr.mxu1 %v12265_v57  ;;  %v2115_v7 = vld [vmem:[#allocation3 + $0x88] sm:$0xff]  ;;  %v3304_v60 = vld [vmem:[#allocation3 + $0x378] sm:$0xff] }
 0x241   :  { %v12525_v30 = vld [vmem:[#allocation2 + $0x1e9] sm:$0xff]  ;;  %v12527_v35 = vld [vmem:[#allocation2 + $0x1f1] sm:$0xff]  ;;  %2798 = vmatpush2.msra.mxu1 %v2117_v63 }
 0x242   :  { %2001 = vst [vmem:[#allocation2 + $0x210] sm:$0xff] %v1968_v34  ;;  %9535 = vmatprep.mubr.f32.mxu1 %v12525_v30  ;;  %2799 = vmatprep.subr.mxu1 %v12265_v57  ;;  %v2003_v0 = vld [vmem:[#allocation2 + $0xf] sm:$0xff] }
 0x243   :  { %2461 = vmatmul.mubr.f32.gmra.mxu0 %v12529_v6  ;;  %9536 = vmatmul.mubr.f32.gmra.mxu1 %v12527_v35  ;;  %v2036_v63 = vld [vmem:[#allocation2 + $0x28] sm:$0xff] }
 0x244   :  { %2465 = vmatprep.mubr.f32.mxu0 %v1959_v22  ;;  %2800 = vmatpush2.msra.mxu1 %v2116_v2  ;;  %v12546_v22 = vld [vmem:[#allocation2 + $0x18f] sm:$0xff]  ;;  %v3333_v2 = vld [vmem:[#allocation3 + $0x460] sm:$0xff] }
 0x245   :  { %2801 = vmatprep.subr.mxu1 %v12265_v57  ;;  %v2176_v28 = vld [vmem:[#allocation2 + $0x207] sm:$0xff] }
 0x246   :  { %2802 = vmatpush2.msra.mxu1 %v2115_v7  ;;  %v2037_v7 = vld [vmem:[#allocation2 + $0x30] sm:$0xff] }
 0x247   :  { %2466 = vmatmul.mubr.f32.gmra.mxu0 %v12539_v25  ;;  %2803 = vmatprep.subr.mxu1 %v12265_v57 }
 0x248   :  { %2470 = vmatprep.mubr.f32.mxu0 %v1960_v1  ;;  %2804 = vmatpush2.msra.mxu1 %v2114_v36  ;;  %v12553_v1 = vld [vmem:[#allocation2 + $0x1a7] sm:$0xff]  ;;  %v16276_v36 = vmax.f32 %v12452_v26, 0.0 }
 0x249   :  { %v2240_v10 = vld [vmem:[#allocation2 + $0x209] sm:$0xff]  ;;  %v2241_v15 = vld [vmem:[#allocation2 + $0x211] sm:$0xff]  ;;  %9621 = vmatprep.subr.mxu1 %v3336_v21 }
 0x24a   :  { %9538 = vmatprep.mubr.f32.mxu1 %v2240_v10  ;;  %v12574_v10 = vld [vmem:[#allocation2 + $0x48] sm:$0xff] }
 0x24b   :  { %2471 = vmatmul.mubr.f32.gmra.mxu0 %v12546_v22  ;;  %9539 = vmatmul.mubr.f32.gmra.mxu1 %v2241_v15  ;;  %v16277_v15 = vmax.f32 %v12469_v46, 0.0  ;;  %v12579_v26 = vld [vmem:[#allocation2 + $0x1e7] sm:$0xff]  ;;  %v3328_v46 = vld [vmem:[#allocation3 + $0x438] sm:$0xff]  ;;  %v2177_v11 = vld [vmem:[#allocation2 + $0x20f] sm:$0xff] }
 0x24c   :  { %2475 = vmatprep.mubr.f32.mxu0 %v1961_v52  ;;  %2805 = vmatprep.mubr.f32.mxu1 %v12265_v57  ;;  %v3334_v52 = vld [vmem:[#allocation3 + $0x468] sm:$0xff] }
 0x24f   :  { %2476 = vmatmul.mubr.f32.gmra.mxu0 %v12553_v1  ;;  %2806 = vmatmul.mubr.f32.vlgmr.msra.gmra.mxu1 %v2002_v27  ;;  %v12583_v27 = vld [vmem:[#allocation2 + $0x50] sm:$0xff] }
 0x250   :  { %2480 = vmatprep.mubr.f32.mxu0 %v1962_v17  ;;  %2810 = vmatprep.mubr.f32.mxu1 %v12265_v57  ;;  %v3332_v17 = vld [vmem:[#allocation3 + $0x458] sm:$0xff] }
 0x251   :  { %9622 = vmatpush3.msra.mxu1 %v3336_v21  ;;  %v3329_v21 = vld [vmem:[#allocation3 + $0x440] sm:$0xff] }
 0x252   :  { %9623 = vmatprep.subr.mxu1 %v3335_v39 }
 0x253   :  { %2481 = vmatmul.mubr.f32.gmra.mxu0 %v12559_v20  ;;  %9624 = vmatpush3.msra.mxu1 %v3335_v39  ;;  %v12592_v39 = vld [vmem:[#allocation2 + $0x68] sm:$0xff] }
 0x254   :  { %2811 = vmatmul.mubr.f32.gmra.mxu1 %v2003_v0  ;;  %2485 = vmatprep.mubr.f32.mxu0 %v1963_v16  ;;  %v3331_v16 = vld [vmem:[#allocation3 + $0x450] sm:$0xff] }
 0x255   :  { %2815 = vmatprep.mubr.f32.mxu1 %v2036_v63  ;;  %9625 = vmatprep.subr.mxu1 %v3334_v52  ;;  %v12598_v0 = vld [vmem:[#allocation2 + $0x70] sm:$0xff]  ;;  %v3324_v63 = vld [vmem:[#allocation3 + $0x418] sm:$0xff] }
 0x256   :  { %9626 = vmatpush3.msra.mxu1 %v3334_v52  ;;  %v12604_v52 = vld [vmem:[#allocation2 + $0x88] sm:$0xff] }
 0x257   :  { %2486 = vmatmul.mubr.f32.gmra.mxu0 %v12564_v47  ;;  %9627 = vmatprep.subr.mxu1 %v3333_v2 }
 0x258   :  { %2816 = vmatmul.mubr.f32.gmra.mxu1 %v12165_v18  ;;  %2490 = vmatprep.mubr.f32.mxu0 %v16276_v36  ;;  %v3330_v18 = vld [vmem:[#allocation3 + $0x448] sm:$0xff] }
 0x259   :  { %2820 = vmatprep.mubr.f32.mxu1 %v2037_v7  ;;  %9628 = vmatpush3.msra.mxu1 %v3333_v2  ;;  %v12608_v2 = vld [vmem:[#allocation2 + $0x90] sm:$0xff]  ;;  %v3302_v36 = vld [vmem:[#allocation3 + $0x368] sm:$0xff] }
 0x25a   :  { %9629 = vmatprep.subr.mxu1 %v3332_v17  ;;  %v2069_v7 = vld [vmem:[#allocation2 + $0x31] sm:$0xff] }
 0x25b   :  { %2491 = vmatmul.mubr.f32.gmra.mxu0 %v12570_v14  ;;  %9630 = vmatpush3.msra.mxu1 %v3332_v17  ;;  %v3303_v17 = vld [vmem:[#allocation3 + $0x370] sm:$0xff] }
 0x25c   :  { %2821 = vmatmul.mubr.f32.gmra.mxu1 %v12185_v24  ;;  %2495 = vmatprep.mubr.f32.mxu0 %v16277_v15  ;;  %v12588_v24 = vld [vmem:[#allocation2 + $0x1ef] sm:$0xff]  ;;  %v3301_v15 = vld [vmem:[#allocation3 + $0x360] sm:$0xff] }
 0x25d   :  { %2825 = vmatprep.mubr.f32.mxu1 %v12574_v10  ;;  %9631 = vmatprep.subr.mxu1 %v3331_v16 }
 0x25e   :  { %9632 = vmatpush3.msra.mxu1 %v3331_v16  ;;  %v12613_v16 = vld [vmem:[#allocation2 + $0xa8] sm:$0xff] }
 0x25f   :  { %2496 = vmatmul.mubr.f32.gmra.mxu0 %v12579_v26  ;;  %9633 = vmatprep.subr.mxu1 %v3330_v18 }
 0x260   :  { %2826 = vmatmul.mubr.f32.gmra.mxu1 %v12207_v3  ;;  %2500 = vmatprep.mubr.f32.mxu0 %v1966_v49  ;;  %v3327_v3 = vld [vmem:[#allocation3 + $0x430] sm:$0xff]  ;;  %v3326_v49 = vld [vmem:[#allocation3 + $0x428] sm:$0xff] }
 0x261   :  { %2830 = vmatprep.mubr.f32.mxu1 %v12583_v27  ;;  %9634 = vmatpush3.msra.mxu1 %v3330_v18  ;;  %v12621_v18 = vld [vmem:[#allocation2 + $0x51] sm:$0xff] }
 0x262   :  { %9635 = vmatprep.subr.mxu1 %v3329_v21 }
 0x263   :  { %2501 = vmatmul.mubr.f32.gmra.mxu0 %v12588_v24  ;;  %9636 = vmatpush3.msra.mxu1 %v3329_v21  ;;  %v3300_v21 = vld [vmem:[#allocation3 + $0x358] sm:$0xff] }
 0x264   :  { %2831 = vmatmul.mubr.f32.gmra.mxu1 %v12229_v51  ;;  %2505 = vmatprep.mubr.f32.mxu0 %v1967_v55  ;;  %v2066_v51 = vld [vmem:[#allocation2 + $0x9] sm:$0xff]  ;;  %v3325_v55 = vld [vmem:[#allocation3 + $0x420] sm:$0xff] }
 0x265   :  { %2835 = vmatprep.mubr.f32.mxu1 %v12592_v39  ;;  %9637 = vmatprep.subr.mxu1 %v3328_v46 }
 0x266   :  { %9638 = vmatpush3.msra.mxu1 %v3328_v46  ;;  %v12626_v46 = vld [vmem:[#allocation3 + $0x408] sm:$0xff] }
 0x267   :  { %2506 = vmatmul.mubr.f32.gmra.mxu0 %v2176_v28  ;;  %9639 = vmatprep.subr.mxu1 %v3327_v3  ;;  %v3299_v28 = vld [vmem:[#allocation3 + $0x350] sm:$0xff] }
 0x268   :  { %2836 = vmatmul.mubr.f32.gmra.mxu1 %v12247_v9  ;;  %2510 = vmatprep.mubr.f32.mxu0 %v1968_v34  ;;  %v2067_v9 = vld [vmem:[#allocation2 + $0x11] sm:$0xff]  ;;  %v2068_v34 = vld [vmem:[#allocation2 + $0x29] sm:$0xff] }
 0x269   :  { %2840 = vmatprep.mubr.f32.mxu1 %v12598_v0  ;;  %9640 = vmatpush3.msra.mxu1 %v3327_v3  ;;  %v12630_v3 = vld [vmem:[#allocation2 + $0x69] sm:$0xff] }
 0x26a   :  { %9641 = vmatprep.subr.mxu1 %v3326_v49 }
 0x26b   :  { %2511 = vmatmul.mubr.f32.gmra.mxu0 %v2177_v11  ;;  %9642 = vmatpush3.msra.mxu1 %v3326_v49  ;;  %v3298_v49 = vld [vmem:[#allocation3 + $0x348] sm:$0xff] }
 0x26c   :  { %2841 = vmatmul.mubr.f32.gmra.mxu1 %v12263_v44  ;;  %9573 = vmatprep.mubr.f32.mxu0 %v2066_v51  ;;  %v3323_v44 = vld [vmem:[#allocation3 + $0x410] sm:$0xff] }
 0x26d   :  { %2845 = vmatprep.mubr.f32.mxu1 %v12604_v52  ;;  %9643 = vmatprep.subr.mxu1 %v3325_v55  ;;  %v12640_v51 = vld [vmem:[#allocation2 + $0x71] sm:$0xff]  ;;  %v12644_v11 = vld [vmem:[#allocation2 + $0x89] sm:$0xff] }
 0x26e   :  { %9644 = vmatpush3.msra.mxu1 %v3325_v55  ;;  %v3297_v55 = vld [vmem:[#allocation3 + $0x340] sm:$0xff] }
 0x26f   :  { %9574 = vmatmul.mubr.f32.vlgmr.msra.gmra.mxu0 %v2067_v9  ;;  %9645 = vmatprep.subr.mxu1 %v3324_v63  ;;  %v3296_v9 = vld [vmem:[#allocation3 + $0x338] sm:$0xff] }
 0x270   :  { %2846 = vmatmul.mubr.f32.gmra.mxu1 %v12280_v43  ;;  %9576 = vmatprep.mubr.f32.mxu0 %v2068_v34  ;;  %v12617_v43 = vld [vmem:[#allocation2 + $0x49] sm:$0xff] }
 0x271   :  { %2850 = vmatprep.mubr.f32.mxu1 %v12608_v2  ;;  %3338 = vmatpush1.msra.mxu0 %v3304_v60  ;;  %v12656_v60 = vld [vmem:[#allocation2 + $0xa9] sm:$0xff] }
 0x272   :  { %3339 = vmatprep.subr.mxu0 %v12265_v57  ;;  %9646 = vmatpush3.msra.mxu1 %v3324_v63  ;;  %v12652_v63 = vld [vmem:[#allocation2 + $0x91] sm:$0xff] }
 0x273   :  { %3340 = vmatpush1.msra.mxu0 %v3303_v17  ;;  %9647 = vmatprep.subr.mxu1 %v3323_v44  ;;  %v3295_v34 = vld [vmem:[#allocation3 + $0x330] sm:$0xff]  ;;  %v3294_v17 = vld [vmem:[#allocation3 + $0x328] sm:$0xff] }
 0x274   :  { %2851 = vmatmul.mubr.f32.gmra.mxu1 %v12294_v4  ;;  %9577 = vmatmul.mubr.f32.gmra.mxu0 %v2069_v7  ;;  %v12624_v4 = vld [vmem:[#allocation2 + $0xb0] sm:$0xff] }
 0x275   :  { %2855 = vmatprep.mubr.f32.mxu1 %v12613_v16  ;;  %3341 = vmatprep.subr.mxu0 %v12265_v57  ;;  %v12668_v7 = vld [vmem:[#allocation2 + $0xc9] sm:$0xff] }
 0x276   :  { %9579 = vmatprep.mubr.f32.mxu0 %v12617_v43  ;;  %3342 = vmatpush1.msra.mxu0 %v3302_v36  ;;  %v3293_v36 = vld [vmem:[#allocation3 + $0x320] sm:$0xff] }
 0x277   :  { %3343 = vmatprep.subr.mxu0 %v12265_v57  ;;  %9648 = vmatpush3.msra.mxu1 %v3323_v44  ;;  %v12664_v44 = vld [vmem:[#allocation2 + $0xb1] sm:$0xff] }
 0x278   :  { %2856 = vmatmul.mubr.f32.gmra.mxu1 %v12307_v38  ;;  %3344 = vmatpush1.msra.mxu0 %v3301_v15  ;;  %v12637_v38 = vld [vmem:[#allocation2 + $0xc8] sm:$0xff]  ;;  %v3292_v15 = vld [vmem:[#allocation3 + $0x318] sm:$0xff] }
 0x279   :  { %2860 = vmatprep.mubr.f32.mxu1 %v12624_v4  ;;  %9580 = vmatmul.mubr.f32.gmra.mxu0 %v12621_v18 }
 0x27a   :  { %3345 = vmatprep.subr.mxu0 %v12265_v57  ;;  %9582 = vmatprep.mubr.f32.mxu0 %v12630_v3 }
 0x27b   :  { %3346 = vmatpush1.msra.mxu0 %v3300_v21  ;;  %9649 = vmatprep.subr.mxu1 %v12626_v46  ;;  %v12676_v21 = vld [vmem:[#allocation2 + $0xd1] sm:$0xff] }
 0x27c   :  { %3347 = vmatprep.subr.mxu0 %v12265_v57  ;;  %2861 = vmatmul.mubr.f32.gmra.mxu1 %v12326_v12  ;;  %v12649_v12 = vld [vmem:[#allocation2 + $0xd0] sm:$0xff] }
 0x27d   :  { %3348 = vmatpush1.msra.mxu0 %v3299_v28  ;;  %2865 = vmatprep.mubr.f32.mxu1 %v12637_v38  ;;  %v12679_v28 = vld [vmem:[#allocation2 + $0x8] sm:$0xff] }
 0x27e   :  { %9583 = vmatmul.mubr.f32.gmra.mxu0 %v12640_v51  ;;  %3349 = vmatprep.subr.mxu0 %v12265_v57 }
 0x27f   :  { %9585 = vmatprep.mubr.f32.mxu0 %v12644_v11  ;;  %3350 = vmatpush1.msra.mxu0 %v3298_v49  ;;  %v12682_v49 = vld [vmem:[#allocation2 + $0xe9] sm:$0xff] }
 0x280   :  { %3351 = vmatprep.subr.mxu0 %v12265_v57  ;;  %2866 = vmatmul.mubr.f32.gmra.mxu1 %v12341_v31  ;;  %v12661_v31 = vld [vmem:[#allocation2 + $0xe8] sm:$0xff] }
 0x281   :  { %3352 = vmatpush1.msra.mxu0 %v3297_v55  ;;  %2870 = vmatprep.mubr.f32.mxu1 %v12649_v12  ;;  %v3291_v55 = vld [vmem:[#allocation3 + $0x310] sm:$0xff] }
 0x282   :  { %9586 = vmatmul.mubr.f32.gmra.mxu0 %v12652_v63  ;;  %3353 = vmatprep.subr.mxu0 %v12265_v57 }
 0x283   :  { %9588 = vmatprep.mubr.f32.mxu0 %v12656_v60  ;;  %3354 = vmatpush1.msra.mxu0 %v3296_v9  ;;  %v12690_v9 = vld [vmem:[#allocation2 + $0xf1] sm:$0xff] }
 0x284   :  { %3355 = vmatprep.subr.mxu0 %v12265_v57  ;;  %2871 = vmatmul.mubr.f32.gmra.mxu1 %v12360_v8  ;;  %v12673_v8 = vld [vmem:[#allocation2 + $0xf0] sm:$0xff] }
 0x285   :  { %3356 = vmatpush1.msra.mxu0 %v3295_v34  ;;  %2875 = vmatprep.mubr.f32.mxu1 %v12661_v31  ;;  %v12694_v34 = vld [vmem:[#allocation2 + $0x109] sm:$0xff] }
 0x286   :  { %9589 = vmatmul.mubr.f32.gmra.mxu0 %v12664_v44  ;;  %3357 = vmatprep.subr.mxu0 %v12265_v57 }
 0x287   :  { %9591 = vmatprep.mubr.f32.mxu0 %v12668_v7  ;;  %3358 = vmatpush1.msra.mxu0 %v3294_v17  ;;  %v3289_v17 = vld [vmem:[#allocation3 + $0x300] sm:$0xff] }
 0x288   :  { %3359 = vmatprep.subr.mxu0 %v12265_v57  ;;  %2876 = vmatmul.mubr.f32.gmra.mxu1 %v12375_v42  ;;  %v12687_v57 = vld [vmem:[#allocation2 + $0x108] sm:$0xff] }
 0x289   :  { %3360 = vmatpush1.msra.mxu0 %v3293_v36  ;;  %2880 = vmatprep.mubr.f32.mxu1 %v12673_v8  ;;  %v3290_v42 = vld [vmem:[#allocation3 + $0x308] sm:$0xff]  ;;  %v3320_v36 = vld [vmem:[#allocation3 + $0x3f8] sm:$0xff] }
 0x28a   :  { %9592 = vmatmul.mubr.f32.gmra.mxu0 %v12676_v21  ;;  %3361 = vmatprep.subr.mxu0 %v12679_v28 }
 0x28b   :  { %9594 = vmatprep.mubr.f32.mxu0 %v12682_v49  ;;  %3362 = vmatpush1.msra.mxu0 %v3292_v15  ;;  %v12702_v15 = vld [vmem:[#allocation2 + $0x111] sm:$0xff] }
 0x28c   :  { %3363 = vmatprep.subr.mxu0 %v12679_v28  ;;  %2881 = vmatmul.mubr.f32.gmra.mxu1 %v12394_v29  ;;  %v12699_v29 = vld [vmem:[#allocation2 + $0x110] sm:$0xff] }
 0x28d   :  { %3364 = vmatpush1.msra.mxu0 %v3291_v55  ;;  %2885 = vmatprep.mubr.f32.mxu1 %v12687_v57  ;;  %v3319_v55 = vld [vmem:[#allocation3 + $0x3f0] sm:$0xff] }
 0x28e   :  { %9595 = vmatmul.mubr.f32.gmra.mxu0 %v12690_v9  ;;  %3365 = vmatprep.subr.mxu0 %v12679_v28 }
 0x28f   :  { %9597 = vmatprep.mubr.f32.mxu0 %v12694_v34  ;;  %3366 = vmatpush1.msra.mxu0 %v3290_v42  ;;  %v3318_v42 = vld [vmem:[#allocation3 + $0x3e8] sm:$0xff] }
 0x290   :  { %3367 = vmatprep.subr.mxu0 %v12679_v28  ;;  %2886 = vmatmul.mubr.f32.gmra.mxu1 %v12409_v23  ;;  %v12709_v23 = vld [vmem:[#allocation2 + $0x128] sm:$0xff] }
 0x291   :  { %3368 = vmatpush1.msra.mxu0 %v3289_v17  ;;  %2890 = vmatprep.mubr.f32.mxu1 %v12699_v29  ;;  %v3317_v17 = vld [vmem:[#allocation3 + $0x3e0] sm:$0xff] }
 0x292   :  { %9598 = vmatmul.mubr.f32.gmra.mxu0 %v12702_v15  ;;  %3369 = vmatprep.subr.mxu0 %v12679_v28 }
 0x293   :  { %9600 = vmatprep.mubr.f32.mxu0 %v12322_v54  ;;  %3370 = vmatpush2.msra.mxu0 %v3320_v36  ;;  %v12717_v54 = vld [vmem:[#allocation2 + $0x130] sm:$0xff]  ;;  %v8466_v36 = vld [vmem:[%s16222_s1 + $0x2f8] sm:$0xff] }
 0x294   :  { %3371 = vmatprep.subr.mxu0 %v12679_v28  ;;  %2891 = vmatmul.mubr.f32.gmra.mxu1 %v12428_v56  ;;  %v3316_v56 = vld [vmem:[#allocation3 + $0x3d8] sm:$0xff] }
 0x295   :  { %3372 = vmatpush2.msra.mxu0 %v3319_v55  ;;  %2895 = vmatprep.mubr.f32.mxu1 %v12709_v23  ;;  %v12768_v55 = vld [vmem:[#allocation2 + $0x190] sm:$0xff] }
 0x296   :  { %9601 = vmatmul.mubr.f32.gmra.mxu0 %v12324_v37  ;;  %3373 = vmatprep.subr.mxu0 %v12679_v28  ;;  %v3315_v37 = vld [vmem:[#allocation3 + $0x3d0] sm:$0xff] }
 0x297   :  { %9603 = vmatprep.mubr.f32.mxu0 %v12356_v62  ;;  %3374 = vmatpush2.msra.mxu0 %v3318_v42  ;;  %v12725_v62 = vld [vmem:[#allocation2 + $0x148] sm:$0xff] }
 0x298   :  { %3375 = vmatprep.subr.mxu0 %v12679_v28  ;;  %2896 = vmatmul.mubr.f32.gmra.mxu1 %v12443_v53  ;;  %v3314_v53 = vld [vmem:[#allocation3 + $0x3c8] sm:$0xff] }
 0x299   :  { %3376 = vmatpush2.msra.mxu0 %v3317_v17  ;;  %2900 = vmatprep.mubr.f32.mxu1 %v12717_v54 }
 0x29a   :  { %9604 = vmatmul.mubr.f32.gmra.mxu0 %v12358_v19  ;;  %3377 = vmatprep.subr.mxu0 %v12679_v28  ;;  %v3313_v19 = vld [vmem:[#allocation3 + $0x3c0] sm:$0xff] }
 0x29b   :  { %9606 = vmatprep.mubr.f32.mxu0 %v12390_v45  ;;  %3378 = vmatpush2.msra.mxu0 %v3316_v56  ;;  %v12733_v45 = vld [vmem:[#allocation2 + $0x150] sm:$0xff] }
 0x29c   :  { %3379 = vmatprep.subr.mxu0 %v12679_v28  ;;  %2901 = vmatmul.mubr.f32.gmra.mxu1 %v12463_v41  ;;  %v3312_v41 = vld [vmem:[#allocation3 + $0x3b8] sm:$0xff] }
 0x29d   :  { %3380 = vmatpush2.msra.mxu0 %v3315_v37  ;;  %2905 = vmatprep.mubr.f32.mxu1 %v12725_v62  ;;  %v8464_v37 = vld [vmem:[%s16222_s1 + $0x2e8] sm:$0xff] }
 0x29e   :  { %9607 = vmatmul.mubr.f32.gmra.mxu0 %v12392_v40  ;;  %3381 = vmatprep.subr.mxu0 %v12679_v28  ;;  %v3311_v40 = vld [vmem:[#allocation3 + $0x3b0] sm:$0xff] }
 0x29f   :  { %9609 = vmatprep.mubr.f32.mxu0 %v12424_v32  ;;  %3382 = vmatpush2.msra.mxu0 %v3314_v53  ;;  %v12741_v32 = vld [vmem:[#allocation2 + $0x168] sm:$0xff] }
 0x2a0   :  { %3383 = vmatprep.subr.mxu0 %v12679_v28  ;;  %2906 = vmatmul.mubr.f32.gmra.mxu1 %v12478_v13  ;;  %v3310_v13 = vld [vmem:[#allocation3 + $0x3a8] sm:$0xff] }
 0x2a1   :  { %3384 = vmatpush2.msra.mxu0 %v3313_v19  ;;  %2910 = vmatprep.mubr.f32.mxu1 %v12733_v45 }
 0x2a2   :  { %9610 = vmatmul.mubr.f32.gmra.mxu0 %v12426_v61  ;;  %3385 = vmatprep.subr.mxu0 %v12679_v28  ;;  %v3309_v61 = vld [vmem:[#allocation3 + $0x3a0] sm:$0xff] }
 0x2a3   :  { %9612 = vmatprep.mubr.f32.mxu0 %v12459_v48  ;;  %3386 = vmatpush2.msra.mxu0 %v3312_v41  ;;  %v12749_v48 = vld [vmem:[#allocation2 + $0x170] sm:$0xff]  ;;  %v12783_v41 = vld [vmem:[#allocation2 + $0x1a8] sm:$0xff] }
 0x2a4   :  { %3387 = vmatprep.subr.mxu0 %v12679_v28  ;;  %2911 = vmatmul.mubr.f32.gmra.mxu1 %v12497_v5  ;;  %v3308_v5 = vld [vmem:[#allocation3 + $0x398] sm:$0xff] }
 0x2a5   :  { %3388 = vmatpush2.msra.mxu0 %v3311_v40  ;;  %2915 = vmatprep.mubr.f32.mxu1 %v12741_v32  ;;  %v3193_v40 = vld [vmem:[#allocation2 + $0x4f] sm:$0xff] }
 0x2a6   :  { %9613 = vmatmul.mubr.f32.gmra.mxu0 %v12461_v59  ;;  %3389 = vmatprep.subr.mxu0 %v12679_v28  ;;  %v3307_v59 = vld [vmem:[#allocation3 + $0x390] sm:$0xff] }
 0x2a7   :  { %9615 = vmatprep.mubr.f32.mxu0 %v12493_v58  ;;  %3390 = vmatpush2.msra.mxu0 %v3310_v13  ;;  %v12757_v58 = vld [vmem:[#allocation2 + $0x188] sm:$0xff]  ;;  %v8463_v13 = vld [vmem:[%s16222_s1 + $0x2e0] sm:$0xff] }
 0x2a8   :  { %3391 = vmatprep.subr.mxu0 %v12679_v28  ;;  %2916 = vmatmul.mubr.f32.gmra.mxu1 %v12512_v33  ;;  %v3306_v33 = vld [vmem:[#allocation3 + $0x388] sm:$0xff] }
 0x2a9   :  { %3392 = vmatpush2.msra.mxu0 %v3309_v61  ;;  %2920 = vmatprep.mubr.f32.mxu1 %v12749_v48 }
 0x2aa   :  { %9616 = vmatmul.mubr.f32.gmra.mxu0 %v12495_v50  ;;  %3393 = vmatprep.subr.mxu0 %v12679_v28  ;;  %v3305_v50 = vld [vmem:[#allocation3 + $0x380] sm:$0xff] }
 0x2ab   :  { %9618 = vmatprep.mubr.f32.mxu0 %v12525_v30  ;;  %3394 = vmatpush2.msra.mxu0 %v3308_v5 }
 0x2ac   :  { %3395 = vmatprep.subr.mxu0 %v12679_v28  ;;  %2921 = vmatmul.mubr.f32.gmra.mxu1 %v12529_v6 }
 0x2ad   :  { %3396 = vmatpush2.msra.mxu0 %v3307_v59  ;;  %2925 = vmatprep.mubr.f32.mxu1 %v12757_v58 }
 0x2ae   :  { %9619 = vmatmul.mubr.f32.gmra.mxu0 %v12527_v35  ;;  %3397 = vmatprep.subr.mxu0 %v12679_v28  ;;  %v3192_v35 = vld [vmem:[#allocation2 + $0x47] sm:$0xff] }
 0x2af   :  { %3398 = vmatpush2.msra.mxu0 %v3306_v33  ;;  %3401 = vmatprep.mubr.f32.mxu0 %v12574_v10  ;;  %v2357_v30 = vpop.f32.mrf.mxu0  ;;  %v9495_v6 = vpop.f32.mrf.mxu1  ;;  %v8465_v10 = vld [vmem:[%s16222_s1 + $0x2f0] sm:$0xff] }
 0x2b0   :  { %3399 = vmatprep.subr.mxu0 %v12679_v28  ;;  %2926 = vmatmul.mubr.f32.gmra.mxu1 %v12539_v25  ;;  %v12793_v33 = vld [vmem:[#allocation2 + $0x1b0] sm:$0xff] }
 0x2b1   :  { %3400 = vmatpush2.msra.mxu0 %v3305_v50  ;;  %2930 = vmatprep.mubr.f32.mxu1 %v12768_v55  ;;  %v2359_v42 = vpop.f32.mrf.mxu0  ;;  %v2582_v17 = vpop.f32.mrf.mxu1  ;;  %v3321_v50 = vld [vmem:[#allocation3 + $0x400] sm:$0xff] }
 0x2b2   :  { %3402 = vmatmul.mubr.f32.vlgmr.msra.gmra.mxu0 %v3192_v35  ;;  %9701 = vmatprep.subr.mxu0 %v8466_v36  ;;  %v12775_v56 = vadd.f32 %v2582_v17, %v2357_v30  ;;  %v3194_v30 = vld [vmem:[#allocation2 + $0x67] sm:$0xff]  ;;  %v3195_v17 = vld [vmem:[#allocation2 + $0x6f] sm:$0xff] }
 0x2b3   :  { %3406 = vmatprep.mubr.f32.mxu0 %v12583_v27  ;;  %9702 = vmatpush3.msra.mxu0 %v8466_v36  ;;  %v2362_v25 = vpop.f32.mrf.mxu0 }
 0x2b4   :  { %2931 = vmatmul.mubr.f32.gmra.mxu1 %v12546_v22  ;;  %v12781_v53 = vadd.f32 %v9495_v6, %v2362_v25  ;;  %v9498_v19 = vpop.f32.mrf.mxu1  ;;  %9703 = vmatprep.subr.mxu0 %v8465_v10 }
 0x2b5   :  { %2935 = vmatprep.mubr.f32.mxu1 %v12783_v41  ;;  %v2364_v27 = vpop.f32.mrf.mxu0  ;;  %9704 = vmatpush3.msra.mxu0 %v8465_v10  ;;  %v12806_v10 = vld [vmem:[#allocation2 + $0x1c8] sm:$0xff] }
 0x2b6   :  { %3407 = vmatmul.mubr.f32.gmra.mxu0 %v3193_v40  ;;  %v2592_v61 = vpop.f32.mrf.mxu1  ;;  %9705 = vmatprep.subr.mxu0 %v8464_v37  ;;  %v12820_v40 = vld [vmem:[#allocation2 + $0x1d0] sm:$0xff]  ;;  %v3196_v27 = vld [vmem:[#allocation2 + $0x87] sm:$0xff] }
 0x2b7   :  { %3411 = vmatprep.mubr.f32.mxu0 %v12592_v39  ;;  %v2367_v22 = vpop.f32.mrf.mxu0  ;;  %9706 = vmatpush3.msra.mxu0 %v8464_v37  ;;  %v8462_v39 = vld [vmem:[%s16222_s1 + $0x2d8] sm:$0xff] }
 0x2b8   :  { %2936 = vmatmul.mubr.f32.gmra.mxu1 %v12553_v1  ;;  %v12791_v5 = vadd.f32 %v2592_v61, %v2367_v22  ;;  %v9501_v59 = vpop.f32.mrf.mxu1  ;;  %9707 = vmatprep.subr.mxu0 %v8463_v13 }
 0x2b9   :  { %2940 = vmatprep.mubr.f32.mxu1 %v12793_v33  ;;  %v2369_v36 = vpop.f32.mrf.mxu0  ;;  %9708 = vmatpush3.msra.mxu0 %v8463_v13 }
 0x2ba   :  { %3412 = vmatmul.mubr.f32.gmra.mxu0 %v3194_v30  ;;  %v2602_v6 = vpop.f32.mrf.mxu1  ;;  %9650 = vmatpush3.msra.mxu1 %v12626_v46  ;;  %v8460_v46 = vld [vmem:[%s16222_s1 + $0x2c8] sm:$0xff] }
 0x2bb   :  { %3416 = vmatprep.mubr.f32.mxu0 %v12598_v0  ;;  %v2372_v1 = vpop.f32.mrf.mxu0  ;;  %9651 = vmatprep.subr.mxu1 %v3321_v50  ;;  %v8461_v0 = vld [vmem:[%s16222_s1 + $0x2d0] sm:$0xff]  ;;  %v12835_v30 = vld [vmem:[#allocation2 + $0x1e8] sm:$0xff] }
 0x2bc   :  { %2941 = vmatmul.mubr.f32.gmra.mxu1 %v12559_v20  ;;  %v12802_v35 = vadd.f32 %v9498_v19, %v2372_v1  ;;  %v12804_v42 = vpop.f32.mrf.mxu1  ;;  %9709 = vmatprep.subr.mxu0 %v8462_v39  ;;  %v3197_v36 = vld [vmem:[#allocation2 + $0x8f] sm:$0xff] }
 0x2bd   :  { %2945 = vmatprep.mubr.f32.mxu1 %v12806_v10  ;;  %v2374_v25 = vpop.f32.mrf.mxu0  ;;  %9652 = vmatpush3.msra.mxu1 %v3321_v50 }
 0x2be   :  { %3417 = vmatmul.mubr.f32.gmra.mxu0 %v3195_v17  ;;  %4276 = vmatprep.subr.mxu1 %v12679_v28  ;;  %v2612_v37 = vpop.f32.mrf.mxu1  ;;  %v12848_v17 = vld [vmem:[#allocation2 + $0x1f0] sm:$0xff]  ;;  %v3198_v25 = vld [vmem:[#allocation2 + $0xa7] sm:$0xff] }
 0x2bf   :  { %3421 = vmatprep.mubr.f32.mxu0 %v12604_v52  ;;  %v2377_v20 = vpop.f32.mrf.mxu0  ;;  %9710 = vmatpush3.msra.mxu0 %v8462_v39  ;;  %v8459_v52 = vld [vmem:[%s16222_s1 + $0x2c0] sm:$0xff] }
 0x2c0   :  { %2946 = vmatmul.mubr.f32.gmra.mxu1 %v12564_v47  ;;  %v12818_v19 = vadd.f32 %v2602_v6, %v2377_v20  ;;  %9711 = vmatprep.subr.mxu0 %v8461_v0  ;;  %v8458_v47 = vld [vmem:[%s16222_s1 + $0x2b8] sm:$0xff]  ;;  %v12830_v22 = vpop.f32.mrf.mxu1 }
 0x2c1   :  { %2950 = vmatprep.mubr.f32.mxu1 %v12820_v40  ;;  %v2379_v13 = vpop.f32.mrf.mxu0  ;;  %9712 = vmatpush3.msra.mxu0 %v8461_v0 }
 0x2c2   :  { %3422 = vmatmul.mubr.f32.gmra.mxu0 %v3196_v27  ;;  %9713 = vmatprep.subr.mxu0 %v8460_v46  ;;  %v3199_v27 = vld [vmem:[#allocation2 + $0xaf] sm:$0xff] }
 0x2c3   :  { %3426 = vmatprep.mubr.f32.mxu0 %v12608_v2  ;;  %v2382_v61 = vpop.f32.mrf.mxu0  ;;  %9714 = vmatpush3.msra.mxu0 %v8460_v46  ;;  %v8457_v2 = vld [vmem:[%s16222_s1 + $0x2b0] sm:$0xff] }
 0x2c4   :  { %2951 = vmatmul.mubr.f32.gmra.mxu1 %v12570_v14  ;;  %v12833_v50 = vadd.f32 %v9501_v59, %v2382_v61  ;;  %9715 = vmatprep.subr.mxu0 %v8459_v52  ;;  %v8456_v14 = vld [vmem:[%s16222_s1 + $0x2a8] sm:$0xff]  ;;  %v2622_v59 = vpop.f32.mrf.mxu1  ;;  %v8433_v61 = vld [vmem:[%s16222_s1 + $0x1f0] sm:$0xff] }
 0x2c5   :  { %2955 = vmatprep.mubr.f32.mxu1 %v12835_v30  ;;  %v2384_v39 = vpop.f32.mrf.mxu0  ;;  %9716 = vmatpush3.msra.mxu0 %v8459_v52  ;;  %v8434_v52 = vld [vmem:[%s16222_s1 + $0x1f8] sm:$0xff] }
 0x2c6   :  { %3427 = vmatmul.mubr.f32.gmra.mxu0 %v3197_v36  ;;  %9717 = vmatprep.subr.mxu0 %v8458_v47  ;;  %v12858_v46 = vpop.f32.mrf.mxu1 }
 0x2c7   :  { %3431 = vmatprep.mubr.f32.mxu0 %v12613_v16  ;;  %v2387_v6 = vpop.f32.mrf.mxu0  ;;  %9718 = vmatpush3.msra.mxu0 %v8458_v47  ;;  %v8455_v16 = vld [vmem:[%s16222_s1 + $0x2a0] sm:$0xff] }
 0x2c8   :  { %2956 = vmatmul.mubr.f32.gmra.mxu1 %v12579_v26  ;;  %v12846_v1 = vadd.f32 %v2612_v37, %v2387_v6  ;;  %9719 = vmatprep.subr.mxu0 %v8457_v2  ;;  %v8454_v26 = vld [vmem:[%s16222_s1 + $0x298] sm:$0xff]  ;;  %v3200_v47 = vld [vmem:[#allocation2 + $0xc7] sm:$0xff]  ;;  %v3201_v6 = vld [vmem:[#allocation2 + $0xcf] sm:$0xff] }
 0x2c9   :  { %2960 = vmatprep.mubr.f32.mxu1 %v12848_v17  ;;  %v2389_v0 = vpop.f32.mrf.mxu0  ;;  %9720 = vmatpush3.msra.mxu0 %v8457_v2  ;;  %v8431_v2 = vld [vmem:[%s16222_s1 + $0x1e0] sm:$0xff] }
 0x2ca   :  { %3432 = vmatmul.mubr.f32.gmra.mxu0 %v3198_v25  ;;  %9721 = vmatprep.subr.mxu0 %v8456_v14  ;;  %v3202_v25 = vld [vmem:[#allocation2 + $0xe7] sm:$0xff] }
 0x2cb   :  { %3436 = vmatprep.mubr.f32.mxu0 %v12624_v4  ;;  %v2392_v20 = vpop.f32.mrf.mxu0  ;;  %9722 = vmatpush3.msra.mxu0 %v8456_v14  ;;  %v12868_v4 = vld [vmem:[%s16222_s1 + $0x290] sm:$0xff] }
 0x2cc   :  { %2961 = vmatmul.mubr.f32.gmra.mxu1 %v12588_v24  ;;  %v12862_v37 = vadd.f32 %v12804_v42, %v2392_v20  ;;  %9723 = vmatprep.subr.mxu0 %v8455_v16  ;;  %v2632_v42 = vpop.f32.mrf.mxu1  ;;  %v8427_v20 = vld [vmem:[%s16222_s1 + $0x1c0] sm:$0xff] }
 0x2cd   :  { %9653 = vmatprep.mubr.f32.mxu1 %v12617_v43  ;;  %v2394_v13 = vpop.f32.mrf.mxu0  ;;  %9724 = vmatpush3.msra.mxu0 %v8455_v16 }
 0x2ce   :  { %3437 = vmatmul.mubr.f32.gmra.mxu0 %v3199_v27  ;;  %9725 = vmatprep.subr.mxu0 %v8454_v26  ;;  %v12887_v39 = vpop.f32.mrf.mxu1 }
 0x2cf   :  { %3441 = vmatprep.mubr.f32.mxu0 %v12637_v38  ;;  %v2397_v24 = vpop.f32.mrf.mxu0  ;;  %9726 = vmatpush3.msra.mxu0 %v8454_v26  ;;  %v3203_v26 = vld [vmem:[#allocation2 + $0xef] sm:$0xff] }
 0x2d0   :  { %9654 = vmatmul.mubr.f32.vlgmr.msra.gmra.mxu1 %v12621_v18  ;;  %v12875_v43 = vadd.f32 %v2622_v59, %v2397_v24  ;;  %9727 = vmatprep.subr.mxu0 %v12868_v4  ;;  %v8432_v18 = vld [vmem:[%s16222_s1 + $0x1e8] sm:$0xff]  ;;  %v2642_v14 = vpop.f32.mrf.mxu1 }
 0x2d1   :  { %9656 = vmatprep.mubr.f32.mxu1 %v12630_v3  ;;  %4277 = vmatpush1.msra.mxu1 %v8434_v52  ;;  %v2399_v36 = vpop.f32.mrf.mxu0  ;;  %v3204_v52 = vld [vmem:[#allocation2 + $0x107] sm:$0xff] }
 0x2d2   :  { %3442 = vmatmul.mubr.f32.gmra.mxu0 %v3200_v47  ;;  %4278 = vmatprep.subr.mxu1 %v12679_v28  ;;  %v12916_v16 = vpop.f32.mrf.mxu1  ;;  %v3205_v47 = vld [vmem:[#allocation2 + $0x10f] sm:$0xff] }
 0x2d3   :  { %3446 = vmatprep.mubr.f32.mxu0 %v12649_v12  ;;  %4279 = vmatpush1.msra.mxu1 %v8433_v61  ;;  %v2402_v38 = vpop.f32.mrf.mxu0  ;;  %v8423_v61 = vld [vmem:[%s16222_s1 + $0x1a0] sm:$0xff] }
 0x2d4   :  { %9657 = vmatmul.mubr.f32.gmra.mxu1 %v12640_v51  ;;  %4280 = vmatprep.subr.mxu1 %v12679_v28  ;;  %v12892_v3 = vadd.f32 %v12830_v22, %v2402_v38  ;;  %v8430_v51 = vld [vmem:[%s16222_s1 + $0x1d8] sm:$0xff]  ;;  %v2652_v27 = vpop.f32.mrf.mxu1 }
 0x2d5   :  { %9659 = vmatprep.mubr.f32.mxu1 %v12644_v11  ;;  %4281 = vmatpush1.msra.mxu1 %v8432_v18  ;;  %v2404_v12 = vpop.f32.mrf.mxu0  ;;  %v8429_v11 = vld [vmem:[%s16222_s1 + $0x1d0] sm:$0xff] }
 0x2d6   :  { %3447 = vmatmul.mubr.f32.gmra.mxu0 %v3201_v6  ;;  %4282 = vmatprep.subr.mxu1 %v12679_v28  ;;  %v3206_v6 = vld [vmem:[#allocation2 + $0x127] sm:$0xff] }
 0x2d7   :  { %3451 = vmatprep.mubr.f32.mxu0 %v12661_v31  ;;  %4283 = vmatpush1.msra.mxu1 %v8431_v2  ;;  %v2407_v22 = vpop.f32.mrf.mxu0  ;;  %v8421_v2 = vld [vmem:[%s16222_s1 + $0x190] sm:$0xff] }
 0x2d8   :  { %9660 = vmatmul.mubr.f32.gmra.mxu1 %v12652_v63  ;;  %4284 = vmatprep.subr.mxu1 %v12679_v28  ;;  %v12905_v59 = vadd.f32 %v2632_v42, %v2407_v22  ;;  %v8428_v63 = vld [vmem:[%s16222_s1 + $0x1c8] sm:$0xff]  ;;  %v12940_v42 = vpop.f32.mrf.mxu1 }
 0x2d9   :  { %9662 = vmatprep.mubr.f32.mxu1 %v12656_v60  ;;  %4285 = vmatpush1.msra.mxu1 %v8430_v51  ;;  %v2409_v0 = vpop.f32.mrf.mxu0 }
 0x2da   :  { %3452 = vmatmul.mubr.f32.gmra.mxu0 %v3202_v25  ;;  %4286 = vmatprep.subr.mxu1 %v12679_v28  ;;  %v2662_v18 = vpop.f32.mrf.mxu1  ;;  %v8419_v25 = vld [vmem:[%s16222_s1 + $0x180] sm:$0xff]  ;;  %v3207_v0 = vld [vmem:[#allocation2 + $0x12f] sm:$0xff] }
 0x2db   :  { %3456 = vmatprep.mubr.f32.mxu0 %v12673_v8  ;;  %4287 = vmatpush1.msra.mxu1 %v8429_v11  ;;  %v2412_v31 = vpop.f32.mrf.mxu0  ;;  %v3272_v11 = vld [vmem:[#allocation2 + $0x149] sm:$0xff] }
 0x2dc   :  { %9663 = vmatmul.mubr.f32.gmra.mxu1 %v12664_v44  ;;  %4288 = vmatprep.subr.mxu1 %v12679_v28  ;;  %v12921_v60 = vadd.f32 %v12858_v46, %v2412_v31  ;;  %v8426_v44 = vld [vmem:[%s16222_s1 + $0x1b8] sm:$0xff]  ;;  %v12961_v38 = vpop.f32.mrf.mxu1 }
 0x2dd   :  { %9665 = vmatprep.mubr.f32.mxu1 %v12668_v7  ;;  %4289 = vmatpush1.msra.mxu1 %v8428_v63  ;;  %v2414_v8 = vpop.f32.mrf.mxu0  ;;  %v8425_v7 = vld [vmem:[%s16222_s1 + $0x1b0] sm:$0xff]  ;;  %v8450_v31 = vld [vmem:[%s16222_s1 + $0x278] sm:$0xff] }
 0x2de   :  { %3457 = vmatmul.mubr.f32.gmra.mxu0 %v3203_v26  ;;  %4290 = vmatprep.subr.mxu1 %v12679_v28  ;;  %v2672_v22 = vpop.f32.mrf.mxu1  ;;  %v3274_v8 = vld [vmem:[#allocation2 + $0x169] sm:$0xff] }
 0x2df   :  { %3461 = vmatprep.mubr.f32.mxu0 %v12687_v57  ;;  %4291 = vmatpush1.msra.mxu1 %v8427_v20  ;;  %v2417_v46 = vpop.f32.mrf.mxu0 }
 0x2e0   :  { %9666 = vmatmul.mubr.f32.gmra.mxu1 %v12676_v21  ;;  %4292 = vmatprep.subr.mxu1 %v12679_v28  ;;  %v12934_v13 = vadd.f32 %v2642_v14, %v2417_v46  ;;  %v8424_v21 = vld [vmem:[%s16222_s1 + $0x1a8] sm:$0xff] }
 0x2e1   :  { %9668 = vmatprep.mubr.f32.mxu1 %v12682_v49  ;;  %4293 = vmatpush1.msra.mxu1 %v8426_v44  ;;  %v2419_v24 = vpop.f32.mrf.mxu0  ;;  %v8449_v44 = vld [vmem:[%s16222_s1 + $0x270] sm:$0xff]  ;;  %v3208_v46 = vld [vmem:[#allocation2 + $0x147] sm:$0xff] }
 0x2e2   :  { %3462 = vmatmul.mubr.f32.gmra.mxu0 %v3204_v52  ;;  %4294 = vmatprep.subr.mxu1 %v12679_v28  ;;  %v3275_v52 = vld [vmem:[#allocation2 + $0x171] sm:$0xff] }
 0x2e3   :  { %3466 = vmatprep.mubr.f32.mxu0 %v12699_v29  ;;  %4295 = vmatpush1.msra.mxu1 %v8425_v7  ;;  %v2422_v57 = vpop.f32.mrf.mxu0 }
 0x2e4   :  { %9669 = vmatmul.mubr.f32.gmra.mxu1 %v12690_v9  ;;  %4296 = vmatprep.subr.mxu1 %v12679_v28  ;;  %v12950_v49 = vadd.f32 %v12887_v39, %v2422_v57  ;;  %v8422_v9 = vld [vmem:[%s16222_s1 + $0x198] sm:$0xff]  ;;  %v3270_v39 = vld [vmem:[#allocation2 + $0x129] sm:$0xff] }
 0x2e5   :  { %9671 = vmatprep.mubr.f32.mxu1 %v12694_v34  ;;  %4297 = vmatpush1.msra.mxu1 %v8424_v21  ;;  %v2424_v36 = vpop.f32.mrf.mxu0 }
 0x2e6   :  { %3467 = vmatmul.mubr.f32.gmra.mxu0 %v3205_v47  ;;  %4298 = vmatprep.subr.mxu1 %v12679_v28  ;;  %v8447_v47 = vld [vmem:[%s16222_s1 + $0x260] sm:$0xff]  ;;  %v3209_v36 = vld [vmem:[#allocation2 + $0x14f] sm:$0xff] }
 0x2e7   :  { %3471 = vmatprep.mubr.f32.mxu0 %v12709_v23  ;;  %4299 = vmatpush1.msra.mxu1 %v8423_v61  ;;  %v2427_v29 = vpop.f32.mrf.mxu0  ;;  %v3271_v23 = vld [vmem:[#allocation2 + $0x131] sm:$0xff]  ;;  %v3276_v61 = vld [vmem:[#allocation2 + $0x189] sm:$0xff] }
 0x2e8   :  { %9672 = vmatmul.mubr.f32.gmra.mxu1 %v12702_v15  ;;  %4300 = vmatprep.subr.mxu1 %v12679_v28  ;;  %v12965_v34 = vadd.f32 %v2652_v27, %v2427_v29  ;;  %v8420_v15 = vld [vmem:[%s16222_s1 + $0x188] sm:$0xff] }
 0x2e9   :  { %9674 = vmatprep.mubr.f32.mxu1 %v3270_v39  ;;  %4301 = vmatpush1.msra.mxu1 %v8422_v9  ;;  %v2429_v12 = vpop.f32.mrf.mxu0 }
 0x2ea   :  { %3472 = vmatmul.mubr.f32.gmra.mxu0 %v3206_v6  ;;  %4302 = vmatprep.subr.mxu1 %v12679_v28  ;;  %v8445_v6 = vld [vmem:[%s16222_s1 + $0x250] sm:$0xff]  ;;  %v3210_v12 = vld [vmem:[#allocation2 + $0x167] sm:$0xff] }
 0x2eb   :  { %3476 = vmatprep.mubr.f32.mxu0 %v12717_v54  ;;  %4303 = vmatpush1.msra.mxu1 %v8421_v2  ;;  %v2432_v51 = vpop.f32.mrf.mxu0  ;;  %v12982_v54 = vpop.f32.mrf.mxu1  ;;  %v3278_v2 = vld [vmem:[#allocation2 + $0x1a9] sm:$0xff] }
 0x2ec   :  { %9675 = vmatmul.mubr.f32.gmra.mxu1 %v3271_v23  ;;  %4304 = vmatprep.subr.mxu1 %v12679_v28  ;;  %v12977_v14 = vadd.f32 %v12916_v16, %v2432_v51  ;;  %v3273_v16 = vld [vmem:[#allocation2 + $0x151] sm:$0xff]  ;;  %v8444_v23 = vld [vmem:[%s16222_s1 + $0x248] sm:$0xff] }
 0x2ed   :  { %9677 = vmatprep.mubr.f32.mxu1 %v3272_v11  ;;  %4305 = vmatpush1.msra.mxu1 %v8420_v15  ;;  %v2434_v63 = vpop.f32.mrf.mxu0  ;;  %v12995_v7 = vpop.f32.mrf.mxu1  ;;  %v3279_v51 = vld [vmem:[#allocation2 + $0x1b1] sm:$0xff] }
 0x2ee   :  { %3477 = vmatmul.mubr.f32.gmra.mxu0 %v3207_v0  ;;  %4306 = vmatprep.subr.mxu1 %v12679_v28  ;;  %v8443_v0 = vld [vmem:[%s16222_s1 + $0x240] sm:$0xff]  ;;  %v3211_v63 = vld [vmem:[#allocation2 + $0x16f] sm:$0xff] }
 0x2ef   :  { %3481 = vmatprep.mubr.f32.mxu0 %v12725_v62  ;;  %4307 = vmatpush1.msra.mxu1 %v8419_v25  ;;  %v2437_v20 = vpop.f32.mrf.mxu0  ;;  %v8448_v62 = vld [vmem:[%s16222_s1 + $0x268] sm:$0xff]  ;;  %v13002_v21 = vpop.f32.mrf.mxu1 }
 0x2f0   :  { %9678 = vmatmul.mubr.f32.gmra.mxu1 %v3273_v16  ;;  %4308 = vmatprep.subr.mxu1 %v12679_v28  ;;  %v12990_v26 = vadd.f32 %v2662_v18, %v2437_v20  ;;  %v8446_v18 = vld [vmem:[%s16222_s1 + $0x258] sm:$0xff]  ;;  %v3280_v25 = vld [vmem:[#allocation2 + $0x1c9] sm:$0xff] }
 0x2f1   :  { %9680 = vmatprep.mubr.f32.mxu1 %v3274_v8  ;;  %4309 = vmatpush2.msra.mxu1 %v8450_v31  ;;  %v2439_v27 = vpop.f32.mrf.mxu0  ;;  %v13016_v29 = vpop.f32.mrf.mxu1 }
 0x2f2   :  { %3482 = vmatmul.mubr.f32.gmra.mxu0 %v3208_v46  ;;  %4310 = vmatprep.subr.mxu1 %v12679_v28  ;;  %v3282_v46 = vld [vmem:[#allocation2 + $0x1e9] sm:$0xff] }
 0x2f3   :  { %3486 = vmatprep.mubr.f32.mxu0 %v12733_v45  ;;  %4311 = vmatpush2.msra.mxu1 %v8449_v44  ;;  %v2442_v24 = vpop.f32.mrf.mxu0  ;;  %v8441_v27 = vld [vmem:[%s16222_s1 + $0x230] sm:$0xff] }
 0x2f4   :  { %9681 = vmatmul.mubr.f32.gmra.mxu1 %v3275_v52  ;;  %4312 = vmatprep.subr.mxu1 %v12679_v28  ;;  %v13006_v57 = vadd.f32 %v12940_v42, %v2442_v24  ;;  %v3277_v42 = vld [vmem:[#allocation2 + $0x191] sm:$0xff]  ;;  %v8440_v52 = vld [vmem:[%s16222_s1 + $0x228] sm:$0xff] }
 0x2f5   :  { %9683 = vmatprep.mubr.f32.mxu1 %v3276_v61  ;;  %4313 = vmatpush2.msra.mxu1 %v8448_v62  ;;  %v2444_v45 = vpop.f32.mrf.mxu0  ;;  %v3212_v62 = vld [vmem:[#allocation2 + $0x187] sm:$0xff] }
 0x2f6   :  { %3487 = vmatmul.mubr.f32.gmra.mxu0 %v3209_v36  ;;  %4314 = vmatprep.subr.mxu1 %v12679_v28  ;;  %v3284_v36 = vld [vmem:[#allocation2 + $0x209] sm:$0xff]  ;;  %v8439_v45 = vld [vmem:[%s16222_s1 + $0x220] sm:$0xff] }
 0x2f7   :  { %3491 = vmatprep.mubr.f32.mxu0 %v12741_v32  ;;  %4315 = vmatpush2.msra.mxu1 %v8447_v47  ;;  %v2447_v9 = vpop.f32.mrf.mxu0  ;;  %v13024_v32 = vpop.f32.mrf.mxu1 }
 0x2f8   :  { %9684 = vmatmul.mubr.f32.gmra.mxu1 %v3277_v42  ;;  %4316 = vmatprep.subr.mxu1 %v12679_v28  ;;  %v13019_v39 = vadd.f32 %v2672_v22, %v2447_v9  ;;  %v8438_v9 = vld [vmem:[%s16222_s1 + $0x218] sm:$0xff] }
 0x2f9   :  { %9686 = vmatprep.mubr.f32.mxu1 %v3278_v2  ;;  %4317 = vmatpush2.msra.mxu1 %v8446_v18  ;;  %v2449_v15 = vpop.f32.mrf.mxu0  ;;  %v13038_v16 = vpop.f32.mrf.mxu1  ;;  %v3213_v18 = vld [vmem:[#allocation2 + $0x18f] sm:$0xff] }
 0x2fa   :  { %3492 = vmatmul.mubr.f32.gmra.mxu0 %v3210_v12  ;;  %4318 = vmatprep.subr.mxu1 %v12679_v28  ;;  %v3285_v2 = vld [vmem:[#allocation2 + $0x211] sm:$0xff] }
 0x2fb   :  { %3496 = vmatprep.mubr.f32.mxu0 %v12749_v48  ;;  %4319 = vmatpush2.msra.mxu1 %v8445_v6  ;;  %v2452_v22 = vpop.f32.mrf.mxu0  ;;  %v8442_v48 = vld [vmem:[%s16222_s1 + $0x238] sm:$0xff]  ;;  %v13045_v8 = vpop.f32.mrf.mxu1  ;;  %v8437_v15 = vld [vmem:[%s16222_s1 + $0x210] sm:$0xff] }
 0x2fc   :  { %9687 = vmatmul.mubr.f32.gmra.mxu1 %v3279_v51  ;;  %4320 = vmatprep.subr.mxu1 %v12679_v28  ;;  %v13033_v11 = vadd.f32 %v12961_v38, %v2452_v22  ;;  %v3281_v38 = vld [vmem:[#allocation2 + $0x1d1] sm:$0xff] }
 0x2fd   :  { %9689 = vmatprep.mubr.f32.mxu1 %v3280_v25  ;;  %4321 = vmatpush2.msra.mxu1 %v8444_v23  ;;  %v2454_v31 = vpop.f32.mrf.mxu0  ;;  %v13059_v61 = vpop.f32.mrf.mxu1  ;;  %v3214_v23 = vld [vmem:[#allocation2 + $0x1a7] sm:$0xff]  ;;  %v3287_v22 = vld [vmem:[#allocation2 + $0x231] sm:$0xff] }
 0x2fe   :  { %3497 = vmatmul.mubr.f32.gmra.mxu0 %v3211_v63  ;;  %4322 = vmatprep.subr.mxu1 %v12679_v28 }
 0x2ff   :  { %3501 = vmatprep.mubr.f32.mxu0 %v12757_v58  ;;  %4323 = vmatpush2.msra.mxu1 %v8443_v0  ;;  %v2457_v20 = vpop.f32.mrf.mxu0 }
 0x300   :  { %9690 = vmatmul.mubr.f32.gmra.mxu1 %v3281_v38  ;;  %4324 = vmatprep.subr.mxu1 %v12679_v28  ;;  %v13049_v44 = vadd.f32 %v12995_v7, %v2457_v20  ;;  %v3283_v7 = vld [vmem:[#allocation2 + $0x1f1] sm:$0xff] }
 0x301   :  { %9692 = vmatprep.mubr.f32.mxu1 %v3282_v46  ;;  %4325 = vmatpush2.msra.mxu1 %v8442_v48  ;;  %v2459_v58 = vpop.f32.mrf.mxu0  ;;  %v8435_v48 = vld [vmem:[%s16222_s1 + $0x200] sm:$0xff]  ;;  %v3215_v38 = vld [vmem:[#allocation2 + $0x1af] sm:$0xff] }
 0x302   :  { %3502 = vmatmul.mubr.f32.gmra.mxu0 %v3212_v62  ;;  %4326 = vmatprep.subr.mxu1 %v12679_v28  ;;  %v4130_v58 = vld [vmem:[%s16222_s1 + $0x178] sm:$0xff] }
 0x303   :  { %3506 = vmatprep.mubr.f32.mxu0 %v12768_v55  ;;  %4327 = vmatpush2.msra.mxu1 %v8441_v27  ;;  %v2462_v24 = vpop.f32.mrf.mxu0  ;;  %v13068_v42 = vpop.f32.mrf.mxu1  ;;  %v8452_v27 = vld [vmem:[%s16222_s1 + $0x288] sm:$0xff] }
 0x304   :  { %9693 = vmatmul.mubr.f32.gmra.mxu1 %v3283_v7  ;;  %4328 = vmatprep.subr.mxu1 %v12679_v28  ;;  %v13063_v47 = vadd.f32 %v12982_v54, %v2462_v24  ;;  %v3286_v54 = vld [vmem:[#allocation2 + $0x229] sm:$0xff] }
 0x305   :  { %9695 = vmatprep.mubr.f32.mxu1 %v3284_v36  ;;  %4329 = vmatpush2.msra.mxu1 %v8440_v52  ;;  %v2464_v55 = vpop.f32.mrf.mxu0  ;;  %v13082_v25 = vpop.f32.mrf.mxu1  ;;  %v3216_v24 = vld [vmem:[#allocation2 + $0x1c7] sm:$0xff] }
 0x306   :  { %3507 = vmatmul.mubr.f32.gmra.mxu0 %v3213_v18  ;;  %4330 = vmatprep.subr.mxu1 %v12679_v28 }
 0x307   :  { %3511 = vmatprep.mubr.f32.mxu0 %v12783_v41  ;;  %4331 = vmatpush2.msra.mxu1 %v8439_v45  ;;  %v2467_v6 = vpop.f32.mrf.mxu0  ;;  %v8436_v41 = vld [vmem:[%s16222_s1 + $0x208] sm:$0xff]  ;;  %v8451_v45 = vld [vmem:[%s16222_s1 + $0x280] sm:$0xff] }
 0x308   :  { %9696 = vmatmul.mubr.f32.gmra.mxu1 %v3285_v2  ;;  %4332 = vmatprep.subr.mxu1 %v12679_v28  ;;  %v13077_v12 = vadd.f32 %v13016_v29, %v2467_v6  ;;  %v8355_v29 = vld [vmem:[%s16221_s0 + $0x1c9] sm:$0xff]  ;;  %v8325_v6 = vld [vmem:[%s16221_s0 + $0x1e0] sm:$0xff] }
 0x309   :  { %4333 = vmatpush2.msra.mxu1 %v8438_v9  ;;  %v2469_v51 = vpop.f32.mrf.mxu0  ;;  %9698 = vmatprep.mubr.f32.mxu1 %v3286_v54  ;;  %v3217_v54 = vld [vmem:[#allocation2 + $0x1cf] sm:$0xff] }
 0x30a   :  { %3512 = vmatmul.mubr.f32.gmra.mxu0 %v3214_v23  ;;  %4334 = vmatprep.subr.mxu1 %v12679_v28  ;;  %v4128_v51 = vld [vmem:[%s16222_s1 + $0x168] sm:$0xff] }
 0x30b   :  { %3516 = vmatprep.mubr.f32.mxu0 %v12793_v33  ;;  %4335 = vmatpush2.msra.mxu1 %v8437_v15  ;;  %v2472_v0 = vpop.f32.mrf.mxu0  ;;  %v13092_v63 = vpop.f32.mrf.mxu1  ;;  %v8323_v33 = vld [vmem:[%s16221_s0 + $0x1c8] sm:$0xff] }
 0x30c   :  { %9699 = vmatmul.mubr.f32.gmra.mxu1 %v3287_v22  ;;  %4336 = vmatprep.subr.mxu1 %v12679_v28  ;;  %v13096_v31 = vadd.f32 %v13002_v21, %v2472_v0  ;;  %v8356_v21 = vld [vmem:[%s16221_s0 + $0x1d1] sm:$0xff]  ;;  %v3218_v0 = vld [vmem:[#allocation2 + $0x1e7] sm:$0xff] }
 0x30d   :  { %4337 = vmatpush2.msra.mxu1 %v8436_v41  ;;  %v2474_v20 = vpop.f32.mrf.mxu0  ;;  %4340 = vmatprep.mubr.f32.mxu1 %v8355_v29  ;;  %v13104_v46 = vpop.f32.mrf.mxu1 }
 0x30e   :  { %3517 = vmatmul.mubr.f32.gmra.mxu0 %v3215_v38  ;;  %4338 = vmatprep.subr.mxu1 %v12679_v28  ;;  %v4127_v38 = vld [vmem:[%s16222_s1 + $0x160] sm:$0xff] }
 0x30f   :  { %3521 = vmatprep.mubr.f32.mxu0 %v12806_v10  ;;  %4339 = vmatpush2.msra.mxu1 %v8435_v48  ;;  %v2477_v62 = vpop.f32.mrf.mxu0  ;;  %v2807_v52 = vpop.f32.mrf.mxu1  ;;  %v8324_v10 = vld [vmem:[%s16221_s0 + $0x1d0] sm:$0xff] }
 0x310   :  { %4341 = vmatmul.mubr.f32.vlgmr.msra.gmra.mxu1 %v8323_v33  ;;  %v13118_v28 = vadd.f32 %v13038_v16, %v2477_v62  ;;  %9728 = vmatpush3.msra.mxu0 %v12868_v4  ;;  %v13122_v7 = vadd.f32 %v2807_v52, %v12775_v56  ;;  %v8357_v4 = vld [vmem:[%s16221_s0 + $0x1e1] sm:$0xff]  ;;  %v4126_v33 = vld [vmem:[%s16222_s1 + $0x158] sm:$0xff] }
 0x311   :  { %v2479_v36 = vpop.f32.mrf.mxu0  ;;  %4345 = vmatprep.mubr.f32.mxu1 %v8356_v21  ;;  %9729 = vmatprep.subr.mxu0 %v8452_v27  ;;  %v2809_v16 = vpop.f32.mrf.mxu1 }
 0x312   :  { %3522 = vmatmul.mubr.f32.gmra.mxu0 %v3216_v24  ;;  %9781 = vmatprep.subr.mxu1 %v4130_v58  ;;  %v4125_v24 = vld [vmem:[%s16222_s1 + $0x150] sm:$0xff] }
 0x313   :  { %3526 = vmatprep.mubr.f32.mxu0 %v12820_v40  ;;  %v2482_v56 = vpop.f32.mrf.mxu0  ;;  %9730 = vmatpush3.msra.mxu0 %v8452_v27  ;;  %v4129_v40 = vld [vmem:[%s16222_s1 + $0x170] sm:$0xff] }
 0x314   :  { %v2812_v18 = vpop.f32.mrf.mxu1  ;;  %4346 = vmatmul.mubr.f32.gmra.mxu1 %v8324_v10  ;;  %v13135_v55 = vadd.f32 %v13024_v32, %v2482_v56  ;;  %9731 = vmatprep.subr.mxu0 %v8451_v45  ;;  %v8358_v32 = vld [vmem:[%s16221_s0 + $0x1e9] sm:$0xff] }
 0x315   :  { %v13138_v9 = vadd.f32 %v2812_v18, %v12781_v53  ;;  %v2484_v2 = vpop.f32.mrf.mxu0  ;;  %4350 = vmatprep.mubr.f32.mxu1 %v8357_v4  ;;  %9732 = vmatpush3.msra.mxu0 %v8451_v45  ;;  %v13149_v53 = vld [vmem:[#allocation2 + $0x8] sm:$0xff] }
 0x316   :  { %3527 = vmatmul.mubr.f32.gmra.mxu0 %v3217_v54  ;;  %v2814_v15 = vpop.f32.mrf.mxu1  ;;  %4726 = vmatprep.subr.mxu0 %v13149_v53  ;;  %v4124_v45 = vld [vmem:[%s16222_s1 + $0x148] sm:$0xff]  ;;  %v8328_v2 = vld [vmem:[%s16221_s0 + $0x200] sm:$0xff] }
 0x317   :  { %3531 = vmatprep.mubr.f32.mxu0 %v12835_v30  ;;  %v2487_v23 = vpop.f32.mrf.mxu0  ;;  %9782 = vmatpush3.msra.mxu1 %v4130_v58  ;;  %v8326_v30 = vld [vmem:[%s16221_s0 + $0x1e8] sm:$0xff] }
 0x318   :  { %v2817_v22 = vpop.f32.mrf.mxu1  ;;  %4351 = vmatmul.mubr.f32.gmra.mxu1 %v8325_v6  ;;  %v13157_v41 = vadd.f32 %v13059_v61, %v2487_v23  ;;  %9783 = vmatprep.subr.mxu1 %v4129_v40  ;;  %v8359_v61 = vld [vmem:[%s16221_s0 + $0x1f9] sm:$0xff]  ;;  %v3219_v58 = vld [vmem:[#allocation2 + $0x1ef] sm:$0xff]  ;;  %v3220_v18 = vld [vmem:[#allocation2 + $0x207] sm:$0xff] }
 0x319   :  { %v13160_v29 = vadd.f32 %v2817_v22, %v12791_v5  ;;  %v2489_v48 = vpop.f32.mrf.mxu0  ;;  %4355 = vmatprep.mubr.f32.mxu1 %v8358_v32  ;;  %9784 = vmatpush3.msra.mxu1 %v4129_v40  ;;  %v4123_v6 = vld [vmem:[%s16222_s1 + $0x140] sm:$0xff]  ;;  %v4122_v32 = vld [vmem:[%s16222_s1 + $0x138] sm:$0xff] }
 0x31a   :  { %3532 = vmatmul.mubr.f32.gmra.mxu0 %v3218_v0  ;;  %v2819_v20 = vpop.f32.mrf.mxu1  ;;  %9785 = vmatprep.subr.mxu1 %v4128_v51  ;;  %v3221_v0 = vld [vmem:[#allocation2 + $0x20f] sm:$0xff] }
 0x31b   :  { %3536 = vmatprep.mubr.f32.mxu0 %v12848_v17  ;;  %v2492_v5 = vpop.f32.mrf.mxu0  ;;  %9786 = vmatpush3.msra.mxu1 %v4128_v51  ;;  %v8327_v17 = vld [vmem:[%s16221_s0 + $0x1f8] sm:$0xff] }
 0x31c   :  { %v2822_v21 = vpop.f32.mrf.mxu1  ;;  %4356 = vmatmul.mubr.f32.gmra.mxu1 %v8326_v30  ;;  %v13176_v27 = vadd.f32 %v13045_v8, %v2492_v5  ;;  %9787 = vmatprep.subr.mxu1 %v4127_v38  ;;  %v3252_v8 = vld [vmem:[#allocation2 + $0x208] sm:$0xff]  ;;  %v8329_v30 = vld [vmem:[%s16221_s0 + $0x210] sm:$0xff] }
 0x31d   :  { %v13179_v62 = vadd.f32 %v2822_v21, %v12802_v35  ;;  %v2494_v52 = vpop.f32.mrf.mxu0  ;;  %4360 = vmatprep.mubr.f32.mxu1 %v8359_v61  ;;  %9788 = vmatpush3.msra.mxu1 %v4127_v38  ;;  %v8360_v35 = vld [vmem:[%s16221_s0 + $0x201] sm:$0xff]  ;;  %v4121_v38 = vld [vmem:[%s16222_s1 + $0x130] sm:$0xff] }
 0x31e   :  { %3537 = vmatmul.mubr.f32.gmra.mxu0 %v3219_v58  ;;  %v2824_v36 = vpop.f32.mrf.mxu1  ;;  %9789 = vmatprep.subr.mxu1 %v4126_v33  ;;  %v3222_v61 = vld [vmem:[#allocation2 + $0x227] sm:$0xff] }
 0x31f   :  { %3541 = vmatprep.mubr.f32.mxu0 %v3252_v8  ;;  %v2497_v10 = vpop.f32.mrf.mxu0  ;;  %9790 = vmatpush3.msra.mxu1 %v4126_v33  ;;  %v4120_v5 = vld [vmem:[%s16222_s1 + $0x128] sm:$0xff] }
 0x320   :  { %v2827_v16 = vpop.f32.mrf.mxu1  ;;  %4361 = vmatmul.mubr.f32.gmra.mxu1 %v8327_v17  ;;  %v13194_v4 = vadd.f32 %v13082_v25, %v2497_v10  ;;  %9791 = vmatprep.subr.mxu1 %v4125_v24  ;;  %v3253_v25 = vld [vmem:[#allocation2 + $0x210] sm:$0xff]  ;;  %v8330_v17 = vld [vmem:[%s16221_s0 + $0x218] sm:$0xff] }
 0x321   :  { %v13197_v56 = vadd.f32 %v2827_v16, %v12818_v19  ;;  %v2499_v54 = vpop.f32.mrf.mxu0  ;;  %4365 = vmatprep.mubr.f32.mxu1 %v8360_v35  ;;  %9792 = vmatpush3.msra.mxu1 %v4125_v24  ;;  %v8361_v19 = vld [vmem:[%s16221_s0 + $0x211] sm:$0xff]  ;;  %v4119_v24 = vld [vmem:[%s16222_s1 + $0x120] sm:$0xff] }
 0x322   :  { %3542 = vmatmul.mubr.f32.gmra.mxu0 %v3220_v18  ;;  %v2829_v40 = vpop.f32.mrf.mxu1  ;;  %9793 = vmatprep.subr.mxu1 %v4124_v45  ;;  %v3223_v8 = vld [vmem:[#allocation2 + $0x22f] sm:$0xff]  ;;  %v4118_v35 = vld [vmem:[%s16222_s1 + $0x118] sm:$0xff] }
 0x323   :  { %3546 = vmatprep.mubr.f32.mxu0 %v3253_v25  ;;  %v2502_v15 = vpop.f32.mrf.mxu0  ;;  %9794 = vmatpush3.msra.mxu1 %v4124_v45  ;;  %v8387_v16 = vld [vmem:[%s16221_s0 + $0x1ca] sm:$0xff]  ;;  %v8388_v25 = vld [vmem:[%s16221_s0 + $0x1d2] sm:$0xff] }
 0x324   :  { %v2832_v23 = vpop.f32.mrf.mxu1  ;;  %4366 = vmatmul.mubr.f32.gmra.mxu1 %v8328_v2  ;;  %v13212_v51 = vadd.f32 %v13068_v42, %v2502_v15  ;;  %9795 = vmatprep.subr.mxu1 %v4123_v6  ;;  %v8362_v42 = vld [vmem:[%s16221_s0 + $0x219] sm:$0xff]  ;;  %v8331_v2 = vld [vmem:[%s16221_s0 + $0x228] sm:$0xff]  ;;  %v8364_v40 = vld [vmem:[%s16221_s0 + $0x231] sm:$0xff] }
 0x325   :  { %v13215_v22 = vadd.f32 %v2832_v23, %v12833_v50  ;;  %v2504_v48 = vpop.f32.mrf.mxu0  ;;  %4370 = vmatprep.mubr.f32.mxu1 %v8361_v19  ;;  %9796 = vmatpush3.msra.mxu1 %v4123_v6  ;;  %v13273_v19 = vld [vmem:[%s16222_s1 + $0x108] sm:$0xff]  ;;  %v4098_v23 = vld [vmem:[%s16222_s1 + $0x78] sm:$0xff] }
 0x326   :  { %3547 = vmatmul.mubr.f32.gmra.mxu0 %v3221_v0  ;;  %v2834_v20 = vpop.f32.mrf.mxu1  ;;  %9797 = vmatprep.subr.mxu1 %v4122_v32  ;;  %v8389_v0 = vld [vmem:[%s16221_s0 + $0x1e2] sm:$0xff] }
 0x327   :  { %3551 = vmatprep.mubr.f32.mxu0 %v13149_v53  ;;  %v2507_v50 = vpop.f32.mrf.mxu0  ;;  %9798 = vmatpush3.msra.mxu1 %v4122_v32 }
 0x328   :  { %v2837_v33 = vpop.f32.mrf.mxu1  ;;  %4371 = vmatmul.mubr.f32.gmra.mxu1 %v8329_v30  ;;  %v13231_v21 = vadd.f32 %v13104_v46, %v2507_v50  ;;  %9799 = vmatprep.subr.mxu1 %v4121_v38  ;;  %v8363_v46 = vld [vmem:[%s16221_s0 + $0x229] sm:$0xff] }
 0x329   :  { %v13234_v58 = vadd.f32 %v2837_v33, %v12846_v1  ;;  %v2509_v52 = vpop.f32.mrf.mxu0  ;;  %4375 = vmatprep.mubr.f32.mxu1 %v8362_v42  ;;  %9800 = vmatpush3.msra.mxu1 %v4121_v38  ;;  %v8332_v38 = vld [vmem:[%s16221_s0 + $0x230] sm:$0xff]  ;;  %v8391_v33 = vld [vmem:[%s16221_s0 + $0x1fa] sm:$0xff] }
 0x32a   :  { %3552 = vmatmul.mubr.f32.gmra.mxu0 %v3222_v61  ;;  %v2839_v36 = vpop.f32.mrf.mxu1  ;;  %9801 = vmatprep.subr.mxu1 %v4120_v5  ;;  %v4097_v42 = vld [vmem:[%s16222_s1 + $0x70] sm:$0xff] }
 0x32b   :  { %3556 = vmatprep.mubr.f32.mxu0 %v13149_v53  ;;  %v2512_v1 = vpop.f32.mrf.mxu0  ;;  %9802 = vmatpush3.msra.mxu1 %v4120_v5  ;;  %v8390_v50 = vld [vmem:[%s16221_s0 + $0x1ea] sm:$0xff] }
 0x32c   :  { %v2842_v10 = vpop.f32.mrf.mxu1  ;;  %4376 = vmatmul.mubr.f32.gmra.mxu1 %v8330_v17  ;;  %v13250_v45 = vadd.f32 %v13092_v63, %v2512_v1  ;;  %9803 = vmatprep.subr.mxu1 %v4119_v24  ;;  %v4117_v63 = vld [vmem:[%s16222_s1 + $0x110] sm:$0xff]  ;;  %v4096_v5 = vld [vmem:[%s16222_s1 + $0x68] sm:$0xff]  ;;  %v4095_v1 = vld [vmem:[%s16222_s1 + $0x60] sm:$0xff] }
 0x32d   :  { %v13256_v18 = vadd.f32 %v2842_v10, %v12862_v37  ;;  %v2514_v54 = vpop.f32.mrf.mxu0  ;;  %4380 = vmatprep.mubr.f32.mxu1 %v8363_v46  ;;  %9804 = vmatpush3.msra.mxu1 %v4119_v24  ;;  %v8333_v24 = vld [vmem:[%s16221_s0 + $0x240] sm:$0xff]  ;;  %v4094_v10 = vld [vmem:[%s16222_s1 + $0x58] sm:$0xff] }
 0x32e   :  { %3557 = vmatmul.mubr.f32.gmra.mxu0 %v3223_v8  ;;  %v2844_v6 = vpop.f32.mrf.mxu1  ;;  %9805 = vmatprep.subr.mxu1 %v4118_v35  ;;  %v8392_v8 = vld [vmem:[%s16221_s0 + $0x202] sm:$0xff] }
 0x32f   :  { %9733 = vmatprep.mubr.f32.mxu0 %v8387_v16  ;;  %v9575_v37 = vpop.f32.mrf.mxu0  ;;  %9806 = vmatpush3.msra.mxu1 %v4118_v35  ;;  %v8393_v16 = vld [vmem:[%s16221_s0 + $0x212] sm:$0xff] }
 0x330   :  { %v2847_v15 = vpop.f32.mrf.mxu1  ;;  %4381 = vmatmul.mubr.f32.gmra.mxu1 %v8331_v2  ;;  %v13276_v32 = vadd.f32 %v9575_v37, %v13138_v9  ;;  %9807 = vmatprep.subr.mxu1 %v4117_v63  ;;  %v8334_v2 = vld [vmem:[%s16221_s0 + $0x248] sm:$0xff] }
 0x331   :  { %v13285_v48 = vadd.f32 %v2847_v15, %v12875_v43  ;;  %v3032_v30 = vpop.f32.mrf.mxu0  ;;  %4385 = vmatprep.mubr.f32.mxu1 %v8364_v40  ;;  %9808 = vmatpush3.msra.mxu1 %v4117_v63  ;;  %v8365_v43 = vld [vmem:[%s16221_s0 + $0x241] sm:$0xff]  ;;  %v4093_v40 = vld [vmem:[%s16222_s1 + $0x50] sm:$0xff] }
 0x332   :  { %9734 = vmatmul.mubr.f32.vlgmr.msra.gmra.mxu0 %v8388_v25  ;;  %v2849_v9 = vpop.f32.mrf.mxu1  ;;  %v13291_v20 = vadd.f32 %v3032_v30, %v13122_v7  ;;  %9809 = vmatprep.subr.mxu1 %v13273_v19 }
 0x333   :  { %4727 = vmatpush1.msra.mxu0 %v4098_v23  ;;  %9736 = vmatprep.mubr.f32.mxu0 %v8389_v0  ;;  %v4092_v23 = vld [vmem:[%s16222_s1 + $0x48] sm:$0xff] }
 0x334   :  { %4728 = vmatprep.subr.mxu0 %v13149_v53  ;;  %v2852_v7 = vpop.f32.mrf.mxu1  ;;  %4386 = vmatmul.mubr.f32.gmra.mxu1 %v8332_v38  ;;  %v9578_v61 = vpop.f32.mrf.mxu0  ;;  %v8395_v0 = vld [vmem:[%s16221_s0 + $0x22a] sm:$0xff] }
 0x335   :  { %v13311_v52 = vadd.f32 %v2852_v7, %v12892_v3  ;;  %4729 = vmatpush1.msra.mxu0 %v4097_v42  ;;  %v13314_v17 = vadd.f32 %v9578_v61, %v13179_v62  ;;  %4390 = vmatprep.mubr.f32.mxu1 %v8365_v43  ;;  %v8366_v3 = vld [vmem:[%s16221_s0 + $0x249] sm:$0xff]  ;;  %v4091_v42 = vld [vmem:[%s16222_s1 + $0x40] sm:$0xff] }
 0x336   :  { %9737 = vmatmul.mubr.f32.gmra.mxu0 %v8390_v50  ;;  %4730 = vmatprep.subr.mxu0 %v13149_v53  ;;  %v2854_v36 = vpop.f32.mrf.mxu1  ;;  %v3042_v46 = vpop.f32.mrf.mxu0  ;;  %v8368_v43 = vld [vmem:[%s16221_s0 + $0x261] sm:$0xff]  ;;  %v8396_v50 = vld [vmem:[%s16221_s0 + $0x232] sm:$0xff] }
 0x337   :  { %4731 = vmatpush1.msra.mxu0 %v4096_v5  ;;  %v13327_v62 = vadd.f32 %v3042_v46, %v13160_v29  ;;  %9739 = vmatprep.mubr.f32.mxu0 %v8391_v33  ;;  %v4090_v5 = vld [vmem:[%s16222_s1 + $0x38] sm:$0xff]  ;;  %v8336_v36 = vld [vmem:[%s16221_s0 + $0x260] sm:$0xff] }
 0x338   :  { %4732 = vmatprep.subr.mxu0 %v13149_v53  ;;  %v2857_v35 = vpop.f32.mrf.mxu1  ;;  %4391 = vmatmul.mubr.f32.gmra.mxu1 %v8333_v24 }
 0x339   :  { %v13340_v29 = vadd.f32 %v2857_v35, %v12905_v59  ;;  %4733 = vmatpush1.msra.mxu0 %v4095_v1  ;;  %v9581_v54 = vpop.f32.mrf.mxu0  ;;  %4395 = vmatprep.mubr.f32.mxu1 %v8366_v3  ;;  %v8367_v59 = vld [vmem:[%s16221_s0 + $0x259] sm:$0xff]  ;;  %v4089_v3 = vld [vmem:[%s16222_s1 + $0x30] sm:$0xff] }
 0x33a   :  { %v13346_v63 = vadd.f32 %v9581_v54, %v13215_v22  ;;  %9740 = vmatmul.mubr.f32.gmra.mxu0 %v8392_v8  ;;  %4734 = vmatprep.subr.mxu0 %v13149_v53  ;;  %v2859_v6 = vpop.f32.mrf.mxu1  ;;  %v8394_v22 = vld [vmem:[%s16221_s0 + $0x21a] sm:$0xff]  ;;  %v8398_v8 = vld [vmem:[%s16221_s0 + $0x24a] sm:$0xff] }
 0x33b   :  { %4735 = vmatpush1.msra.mxu0 %v4094_v10  ;;  %v3052_v37 = vpop.f32.mrf.mxu0  ;;  %9742 = vmatprep.mubr.f32.mxu0 %v8393_v16  ;;  %v4088_v16 = vld [vmem:[%s16222_s1 + $0x28] sm:$0xff]  ;;  %v8337_v6 = vld [vmem:[%s16221_s0 + $0x270] sm:$0xff] }
 0x33c   :  { %v13359_v25 = vadd.f32 %v3052_v37, %v13197_v56  ;;  %4736 = vmatprep.subr.mxu0 %v13149_v53  ;;  %v2862_v15 = vpop.f32.mrf.mxu1  ;;  %4396 = vmatmul.mubr.f32.gmra.mxu1 %v8334_v2  ;;  %v8335_v56 = vld [vmem:[%s16221_s0 + $0x258] sm:$0xff]  ;;  %v4087_v37 = vld [vmem:[%s16222_s1 + $0x20] sm:$0xff] }
 0x33d   :  { %v2863_v30 = vadd.f32 %v2862_v15, %v12921_v60  ;;  %4737 = vmatpush1.msra.mxu0 %v4093_v40  ;;  %4400 = vmatprep.mubr.f32.mxu1 %v8367_v59 }
 0x33e   :  { %v9584_v38 = vpop.f32.mrf.mxu0  ;;  %9743 = vmatmul.mubr.f32.gmra.mxu0 %v8394_v22  ;;  %4738 = vmatprep.subr.mxu0 %v13149_v53  ;;  %v2864_v9 = vpop.f32.mrf.mxu1  ;;  %v8400_v22 = vld [vmem:[%s16221_s0 + $0x262] sm:$0xff] }
 0x33f   :  { %v13380_v60 = vadd.f32 %v9584_v38, %v13256_v18  ;;  %4739 = vmatpush1.msra.mxu0 %v4092_v23  ;;  %9745 = vmatprep.mubr.f32.mxu0 %v8395_v0  ;;  %v8397_v18 = vld [vmem:[%s16221_s0 + $0x242] sm:$0xff]  ;;  %v4086_v0 = vld [vmem:[%s16222_s1 + $0x18] sm:$0xff] }
 0x340   :  { %v3062_v7 = vpop.f32.mrf.mxu0  ;;  %4740 = vmatprep.subr.mxu0 %v13149_v53  ;;  %v2867_v61 = vpop.f32.mrf.mxu1  ;;  %4401 = vmatmul.mubr.f32.gmra.mxu1 %v8335_v56  ;;  %v8338_v9 = vld [vmem:[%s16221_s0 + $0x278] sm:$0xff] }
 0x341   :  { %v13393_v33 = vadd.f32 %v3062_v7, %v13234_v58  ;;  %v2868_v24 = vadd.f32 %v2867_v61, %v12934_v13  ;;  %4741 = vmatpush1.msra.mxu0 %v4091_v42  ;;  %4405 = vmatprep.mubr.f32.mxu1 %v8368_v43  ;;  %v8369_v58 = vld [vmem:[%s16221_s0 + $0x271] sm:$0xff]  ;;  %v8402_v7 = vld [vmem:[%s16221_s0 + $0x27a] sm:$0xff] }
 0x342   :  { %v9587_v46 = vpop.f32.mrf.mxu0  ;;  %9746 = vmatmul.mubr.f32.gmra.mxu0 %v8396_v50  ;;  %4742 = vmatprep.subr.mxu0 %v13149_v53  ;;  %v2869_v1 = vpop.f32.mrf.mxu1  ;;  %v4085_v50 = vld [vmem:[%s16222_s1 + $0x10] sm:$0xff] }
 0x343   :  { %v13407_v13 = vadd.f32 %v9587_v46, %v13311_v52  ;;  %4743 = vmatpush1.msra.mxu0 %v4090_v5  ;;  %9748 = vmatprep.mubr.f32.mxu0 %v8397_v18  ;;  %v8399_v52 = vld [vmem:[%s16221_s0 + $0x25a] sm:$0xff]  ;;  %v4084_v18 = vld [vmem:[%s16222_s1 + $0x8] sm:$0xff] }
 0x344   :  { %v3072_v35 = vpop.f32.mrf.mxu0  ;;  %4744 = vmatprep.subr.mxu0 %v13149_v53  ;;  %v2872_v10 = vpop.f32.mrf.mxu1  ;;  %4406 = vmatmul.mubr.f32.gmra.mxu1 %v8336_v36  ;;  %v8403_v36 = vld [vmem:[%s16221_s0 + $0x28a] sm:$0xff] }
 0x345   :  { %v13420_v54 = vadd.f32 %v3072_v35, %v13285_v48  ;;  %v2873_v2 = vadd.f32 %v2872_v10, %v12950_v49  ;;  %4745 = vmatpush1.msra.mxu0 %v4089_v3  ;;  %4410 = vmatprep.mubr.f32.mxu1 %v8369_v58  ;;  %v8370_v48 = vld [vmem:[%s16221_s0 + $0x279] sm:$0xff]  ;;  %v8339_v3 = vld [vmem:[%s16221_s0 + $0x288] sm:$0xff] }
 0x346   :  { %v9590_v40 = vpop.f32.mrf.mxu0  ;;  %9749 = vmatmul.mubr.f32.gmra.mxu0 %v8398_v8  ;;  %4746 = vmatprep.subr.mxu0 %v13149_v53  ;;  %v2874_v59 = vpop.f32.mrf.mxu1  ;;  %v4083_v35 = vld [vmem:[%s16222_s1] sm:$0xff]  ;;  %v8404_v10 = vld [vmem:[%s16221_s0 + $0x292] sm:$0xff] }
 0x347   :  { %v13433_v49 = vadd.f32 %v9590_v40, %v2863_v30  ;;  %4747 = vmatpush1.msra.mxu0 %v4088_v16  ;;  %9751 = vmatprep.mubr.f32.mxu0 %v8399_v52  ;;  %v8401_v30 = vld [vmem:[%s16221_s0 + $0x272] sm:$0xff] }
 0x348   :  { %v3082_v15 = vpop.f32.mrf.mxu0  ;;  %4748 = vmatprep.subr.mxu0 %v13149_v53  ;;  %v2877_v23 = vpop.f32.mrf.mxu1  ;;  %4411 = vmatmul.mubr.f32.gmra.mxu1 %v8337_v6  ;;  %v8405_v6 = vld [vmem:[%s16221_s0 + $0x2a2] sm:$0xff] }
 0x349   :  { %v13446_v56 = vadd.f32 %v3082_v15, %v13340_v29  ;;  %v2878_v38 = vadd.f32 %v2877_v23, %v12965_v34  ;;  %4749 = vmatpush1.msra.mxu0 %v4087_v37  ;;  %4415 = vmatprep.mubr.f32.mxu1 %v8370_v48  ;;  %v8371_v29 = vld [vmem:[%s16221_s0 + $0x289] sm:$0xff]  ;;  %v8373_v23 = vld [vmem:[%s16221_s0 + $0x2a1] sm:$0xff] }
 0x34a   :  { %v9593_v42 = vpop.f32.mrf.mxu0  ;;  %9752 = vmatmul.mubr.f32.gmra.mxu0 %v8400_v22  ;;  %4750 = vmatprep.subr.mxu0 %v13149_v53  ;;  %v2879_v43 = vpop.f32.mrf.mxu1  ;;  %v8340_v37 = vld [vmem:[%s16221_s0 + $0x290] sm:$0xff] }
 0x34b   :  { %v13459_v34 = vadd.f32 %v9593_v42, %v2873_v2  ;;  %4751 = vmatpush1.msra.mxu0 %v4086_v0  ;;  %9754 = vmatprep.mubr.f32.mxu0 %v8401_v30  ;;  %v4114_v2 = vld [vmem:[%s16222_s1 + $0xf8] sm:$0xff]  ;;  %v4113_v15 = vld [vmem:[%s16222_s1 + $0xf0] sm:$0xff] }
 0x34c   :  { %v3092_v61 = vpop.f32.mrf.mxu0  ;;  %4752 = vmatprep.subr.mxu0 %v13149_v53  ;;  %v2882_v5 = vpop.f32.mrf.mxu1  ;;  %4416 = vmatmul.mubr.f32.gmra.mxu1 %v8338_v9  ;;  %v8407_v9 = vld [vmem:[%s16221_s0 + $0x2ba] sm:$0xff] }
 0x34d   :  { %v13471_v46 = vadd.f32 %v3092_v61, %v2868_v24  ;;  %v2883_v1 = vadd.f32 %v2882_v5, %v12977_v14  ;;  %4753 = vmatpush1.msra.mxu0 %v4085_v50  ;;  %4420 = vmatprep.mubr.f32.mxu1 %v8371_v29  ;;  %v8372_v24 = vld [vmem:[%s16221_s0 + $0x291] sm:$0xff]  ;;  %v8341_v50 = vld [vmem:[%s16221_s0 + $0x2a0] sm:$0xff]  ;;  %v8374_v5 = vld [vmem:[%s16221_s0 + $0x2a9] sm:$0xff] }
 0x34e   :  { %v9596_v58 = vpop.f32.mrf.mxu0  ;;  %9755 = vmatmul.mubr.f32.gmra.mxu0 %v8402_v7  ;;  %4754 = vmatprep.subr.mxu0 %v13149_v53  ;;  %v2884_v8 = vpop.f32.mrf.mxu1  ;;  %v4111_v61 = vld [vmem:[%s16222_s1 + $0xe0] sm:$0xff] }
 0x34f   :  { %v13484_v14 = vadd.f32 %v9596_v58, %v2883_v1  ;;  %4755 = vmatpush1.msra.mxu0 %v4084_v18  ;;  %9757 = vmatprep.mubr.f32.mxu0 %v8403_v36  ;;  %v8408_v18 = vld [vmem:[%s16221_s0 + $0x2c2] sm:$0xff]  ;;  %v8409_v58 = vld [vmem:[%s16221_s0 + $0x2d2] sm:$0xff] }
 0x350   :  { %v3102_v16 = vpop.f32.mrf.mxu0  ;;  %4756 = vmatprep.subr.mxu0 %v13149_v53  ;;  %v2887_v52 = vpop.f32.mrf.mxu1  ;;  %4421 = vmatmul.mubr.f32.gmra.mxu1 %v8339_v3  ;;  %v4110_v3 = vld [vmem:[%s16222_s1 + $0xd8] sm:$0xff] }
 0x351   :  { %v13496_v40 = vadd.f32 %v3102_v16, %v2878_v38  ;;  %v2888_v59 = vadd.f32 %v2887_v52, %v12990_v26  ;;  %4757 = vmatpush1.msra.mxu0 %v4083_v35  ;;  %4425 = vmatprep.mubr.f32.mxu1 %v8372_v24  ;;  %v8406_v26 = vld [vmem:[%s16221_s0 + $0x2aa] sm:$0xff] }
 0x352   :  { %v9599_v48 = vpop.f32.mrf.mxu0  ;;  %9758 = vmatmul.mubr.f32.gmra.mxu0 %v8404_v10  ;;  %4758 = vmatprep.subr.mxu0 %v13149_v53  ;;  %v2889_v22 = vpop.f32.mrf.mxu1  ;;  %v4112_v38 = vld [vmem:[%s16222_s1 + $0xe8] sm:$0xff]  ;;  %v4109_v16 = vld [vmem:[%s16222_s1 + $0xd0] sm:$0xff] }
 0x353   :  { %4759 = vmatpush2.msra.mxu0 %v4114_v2  ;;  %9760 = vmatprep.mubr.f32.mxu0 %v8405_v6  ;;  %v8342_v35 = vld [vmem:[%s16221_s0 + $0x2a8] sm:$0xff]  ;;  %v8410_v2 = vld [vmem:[%s16221_s0 + $0x2da] sm:$0xff] }
 0x354   :  { %v3112_v0 = vpop.f32.mrf.mxu0  ;;  %4760 = vmatprep.subr.mxu0 %v13149_v53  ;;  %v2892_v30 = vpop.f32.mrf.mxu1  ;;  %4426 = vmatmul.mubr.f32.gmra.mxu1 %v8340_v37  ;;  %v4108_v37 = vld [vmem:[%s16222_s1 + $0xc8] sm:$0xff] }
 0x355   :  { %v13519_v42 = vadd.f32 %v3112_v0, %v2888_v59  ;;  %v2893_v43 = vadd.f32 %v2892_v30, %v13006_v57  ;;  %4761 = vmatpush2.msra.mxu0 %v4113_v15  ;;  %4430 = vmatprep.mubr.f32.mxu1 %v8373_v23  ;;  %v8343_v15 = vld [vmem:[%s16221_s0 + $0x2b8] sm:$0xff]  ;;  %v4107_v0 = vld [vmem:[%s16222_s1 + $0xc0] sm:$0xff] }
 0x356   :  { %v9602_v29 = vpop.f32.mrf.mxu0  ;;  %9761 = vmatmul.mubr.f32.gmra.mxu0 %v8406_v26  ;;  %4762 = vmatprep.subr.mxu0 %v13149_v53  ;;  %v2894_v7 = vpop.f32.mrf.mxu1 }
 0x357   :  { %v13532_v57 = vadd.f32 %v9599_v48, %v2893_v43  ;;  %4763 = vmatpush2.msra.mxu0 %v4112_v38  ;;  %9763 = vmatprep.mubr.f32.mxu0 %v8407_v9  ;;  %v8411_v48 = vld [vmem:[%s16221_s0 + $0x2ea] sm:$0xff]  ;;  %v8412_v38 = vld [vmem:[%s16221_s0 + $0x2f2] sm:$0xff] }
 0x358   :  { %v3122_v36 = vpop.f32.mrf.mxu0  ;;  %4764 = vmatprep.subr.mxu0 %v13149_v53  ;;  %v2897_v1 = vpop.f32.mrf.mxu1  ;;  %4431 = vmatmul.mubr.f32.gmra.mxu1 %v8341_v50  ;;  %v4106_v50 = vld [vmem:[%s16222_s1 + $0xb8] sm:$0xff] }
 0x359   :  { %v2898_v8 = vadd.f32 %v2897_v1, %v13019_v39  ;;  %4765 = vmatpush2.msra.mxu0 %v4111_v61  ;;  %4435 = vmatprep.mubr.f32.mxu1 %v8374_v5  ;;  %v8375_v39 = vld [vmem:[%s16221_s0 + $0x2b9] sm:$0xff] }
 0x35a   :  { %v13548_v24 = vpop.f32.mrf.mxu0  ;;  %9764 = vmatmul.mubr.f32.gmra.mxu0 %v8408_v18  ;;  %4766 = vmatprep.subr.mxu0 %v13149_v53  ;;  %v2899_v10 = vpop.f32.mrf.mxu1  ;;  %v8344_v61 = vld [vmem:[%s16221_s0 + $0x2c0] sm:$0xff] }
 0x35b   :  { %v13557_v52 = vadd.f32 %v3122_v36, %v2898_v8  ;;  %4767 = vmatpush2.msra.mxu0 %v4110_v3  ;;  %9766 = vmatprep.mubr.f32.mxu0 %v8409_v58  ;;  %v4105_v36 = vld [vmem:[%s16222_s1 + $0xb0] sm:$0xff]  ;;  %v8415_v10 = vld [vmem:[%s16221_s0 + $0x31a] sm:$0xff] }
 0x35c   :  { %v3132_v6 = vpop.f32.mrf.mxu0  ;;  %4768 = vmatprep.subr.mxu0 %v13149_v53  ;;  %v2902_v59 = vpop.f32.mrf.mxu1  ;;  %4436 = vmatmul.mubr.f32.gmra.mxu1 %v8342_v35  ;;  %v8414_v3 = vld [vmem:[%s16221_s0 + $0x30a] sm:$0xff] }
 0x35d   :  { %v2903_v22 = vadd.f32 %v2902_v59, %v13033_v11  ;;  %4769 = vmatpush2.msra.mxu0 %v4109_v16  ;;  %4440 = vmatprep.mubr.f32.mxu1 %v8375_v39  ;;  %v8376_v11 = vld [vmem:[%s16221_s0 + $0x2c1] sm:$0xff]  ;;  %v8345_v39 = vld [vmem:[%s16221_s0 + $0x2d0] sm:$0xff] }
 0x35e   :  { %v13573_v23 = vpop.f32.mrf.mxu0  ;;  %9767 = vmatmul.mubr.f32.gmra.mxu0 %v8410_v2  ;;  %4770 = vmatprep.subr.mxu0 %v13149_v53  ;;  %v2904_v26 = vpop.f32.mrf.mxu1  ;;  %v4104_v35 = vld [vmem:[%s16222_s1 + $0xa8] sm:$0xff]  ;;  %v4103_v59 = vld [vmem:[%s16222_s1 + $0xa0] sm:$0xff] }
 0x35f   :  { %v13582_v30 = vadd.f32 %v9602_v29, %v2903_v22  ;;  %4771 = vmatpush2.msra.mxu0 %v4108_v37  ;;  %9769 = vmatprep.mubr.f32.mxu0 %v8411_v48  ;;  %v8413_v29 = vld [vmem:[%s16221_s0 + $0x302] sm:$0xff]  ;;  %v4102_v26 = vld [vmem:[%s16222_s1 + $0x98] sm:$0xff] }
 0x360   :  { %v3142_v9 = vpop.f32.mrf.mxu0  ;;  %4772 = vmatprep.subr.mxu0 %v13149_v53  ;;  %v2907_v43 = vpop.f32.mrf.mxu1  ;;  %4441 = vmatmul.mubr.f32.gmra.mxu1 %v8343_v15  ;;  %v8416_v48 = vld [vmem:[%s16221_s0 + $0x322] sm:$0xff] }
 0x361   :  { %v2908_v7 = vadd.f32 %v2907_v43, %v13049_v44  ;;  %4773 = vmatpush2.msra.mxu0 %v4107_v0  ;;  %4445 = vmatprep.mubr.f32.mxu1 %v8376_v11  ;;  %v8377_v44 = vld [vmem:[%s16221_s0 + $0x2d1] sm:$0xff] }
 0x362   :  { %v13598_v5 = vpop.f32.mrf.mxu0  ;;  %9770 = vmatmul.mubr.f32.gmra.mxu0 %v8412_v38  ;;  %4774 = vmatprep.subr.mxu0 %v13149_v53  ;;  %v2909_v18 = vpop.f32.mrf.mxu1  ;;  %v8346_v11 = vld [vmem:[%s16221_s0 + $0x2d8] sm:$0xff] }
 0x363   :  { %v13607_v1 = vadd.f32 %v3132_v6, %v2908_v7  ;;  %4775 = vmatpush2.msra.mxu0 %v4106_v50  ;;  %9772 = vmatprep.mubr.f32.mxu0 %v8413_v29  ;;  %v4101_v50 = vld [vmem:[%s16222_s1 + $0x90] sm:$0xff]  ;;  %v8418_v7 = vld [vmem:[%s16221_s0 + $0x33a] sm:$0xff] }
 0x364   :  { %v13612_v58 = vpop.f32.mrf.mxu0  ;;  %4776 = vmatprep.subr.mxu0 %v13149_v53  ;;  %v2912_v8 = vpop.f32.mrf.mxu1  ;;  %4446 = vmatmul.mubr.f32.gmra.mxu1 %v8344_v61 }
 0x365   :  { %v2913_v16 = vadd.f32 %v2912_v8, %v13063_v47  ;;  %4777 = vmatpush2.msra.mxu0 %v4105_v36  ;;  %4450 = vmatprep.mubr.f32.mxu1 %v8377_v44  ;;  %v8378_v47 = vld [vmem:[%s16221_s0 + $0x2d9] sm:$0xff]  ;;  %v4100_v36 = vld [vmem:[%s16222_s1 + $0x88] sm:$0xff] }
 0x366   :  { %v13625_v2 = vpop.f32.mrf.mxu0  ;;  %9773 = vmatmul.mubr.f32.gmra.mxu0 %v8414_v3  ;;  %4778 = vmatprep.subr.mxu0 %v13149_v53  ;;  %v2914_v6 = vpop.f32.mrf.mxu1  ;;  %v8347_v3 = vld [vmem:[%s16221_s0 + $0x2e8] sm:$0xff] }
 0x367   :  { %v13635_v37 = vadd.f32 %v13548_v24, %v2913_v16  ;;  %4779 = vmatpush2.msra.mxu0 %v4104_v35  ;;  %9775 = vmatprep.mubr.f32.mxu0 %v8415_v10  ;;  %v8417_v24 = vld [vmem:[%s16221_s0 + $0x332] sm:$0xff]  ;;  %v4099_v10 = vld [vmem:[%s16222_s1 + $0x80] sm:$0xff] }
 0x368   :  { %v13640_v22 = vpop.f32.mrf.mxu0  ;;  %4780 = vmatprep.subr.mxu0 %v13149_v53  ;;  %v2917_v15 = vpop.f32.mrf.mxu1  ;;  %4451 = vmatmul.mubr.f32.gmra.mxu1 %v8345_v39  ;;  %v8227_v39 = vld [vmem:[%s16221_s0 + $0x1b0] sm:$0xff]  ;;  %v8610_v6 = vld [vmem:[%s16222_s1 + $0x478] sm:$0xff] }
 0x369   :  { %v2918_v0 = vadd.f32 %v2917_v15, %v13077_v12  ;;  %4781 = vmatpush2.msra.mxu0 %v4103_v59  ;;  %4455 = vmatprep.mubr.f32.mxu1 %v8378_v47  ;;  %v8379_v12 = vld [vmem:[%s16221_s0 + $0x2e9] sm:$0xff] }
 0x36a   :  { %v13653_v38 = vpop.f32.mrf.mxu0  ;;  %9776 = vmatmul.mubr.f32.gmra.mxu0 %v8416_v48  ;;  %4782 = vmatprep.subr.mxu0 %v13149_v53  ;;  %v2919_v43 = vpop.f32.mrf.mxu1  ;;  %v8348_v15 = vld [vmem:[%s16221_s0 + $0x2f0] sm:$0xff] }
 0x36b   :  { %v13662_v29 = vadd.f32 %v3142_v9, %v2918_v0  ;;  %4783 = vmatpush2.msra.mxu0 %v4102_v26  ;;  %9778 = vmatprep.mubr.f32.mxu0 %v8417_v24  ;;  %v8259_v9 = vld [vmem:[%s16221_s0 + $0x1b1] sm:$0xff]  ;;  %v8381_v0 = vld [vmem:[%s16221_s0 + $0x301] sm:$0xff] }
 0x36c   :  { %v13667_v61 = vpop.f32.mrf.mxu0  ;;  %4784 = vmatprep.subr.mxu0 %v13149_v53  ;;  %v2922_v18 = vpop.f32.mrf.mxu1  ;;  %4456 = vmatmul.mubr.f32.gmra.mxu1 %v8346_v11  ;;  %v8609_v26 = vld [vmem:[%s16222_s1 + $0x470] sm:$0xff]  ;;  %v8228_v11 = vld [vmem:[%s16221_s0 + $0x1b8] sm:$0xff]  ;;  %v8608_v43 = vld [vmem:[%s16222_s1 + $0x468] sm:$0xff] }
 0x36d   :  { %v2923_v44 = vadd.f32 %v2922_v18, %v13096_v31  ;;  %4785 = vmatpush2.msra.mxu0 %v4101_v50  ;;  %4460 = vmatprep.mubr.f32.mxu1 %v8379_v12  ;;  %v8380_v31 = vld [vmem:[%s16221_s0 + $0x2f1] sm:$0xff]  ;;  %v8349_v18 = vld [vmem:[%s16221_s0 + $0x300] sm:$0xff] }
 0x36e   :  { %v13680_v8 = vpop.f32.mrf.mxu0  ;;  %9779 = vmatmul.mubr.f32.gmra.mxu0 %v8418_v7  ;;  %4786 = vmatprep.subr.mxu0 %v13149_v53  ;;  %v2924_v35 = vpop.f32.mrf.mxu1  ;;  %v8261_v7 = vld [vmem:[%s16221_s0 + $0x1c9] sm:$0xff] }
 0x36f   :  { %v13690_v16 = vadd.f32 %v13573_v23, %v2923_v44  ;;  %4787 = vmatpush2.msra.mxu0 %v4100_v36  ;;  %4790 = vmatprep.mubr.f32.mxu0 %v8259_v9  ;;  %v8260_v23 = vld [vmem:[%s16221_s0 + $0x1b9] sm:$0xff]  ;;  %v8229_v35 = vld [vmem:[%s16221_s0 + $0x1c8] sm:$0xff] }
 0x370   :  { %v13698_v59 = vpop.f32.mrf.mxu0  ;;  %4788 = vmatprep.subr.mxu0 %v13149_v53  ;;  %v2927_v47 = vpop.f32.mrf.mxu1  ;;  %4461 = vmatmul.mubr.f32.gmra.mxu1 %v8347_v3  ;;  %v8607_v36 = vld [vmem:[%s16222_s1 + $0x460] sm:$0xff]  ;;  %v8382_v3 = vld [vmem:[%s16221_s0 + $0x309] sm:$0xff] }
 0x371   :  { %v2928_v48 = vadd.f32 %v2927_v47, %v13118_v28  ;;  %4789 = vmatpush2.msra.mxu0 %v4099_v10  ;;  %4465 = vmatprep.mubr.f32.mxu1 %v8380_v31  ;;  %v8350_v47 = vld [vmem:[%s16221_s0 + $0x308] sm:$0xff] }
 0x372   :  { %v13711_v24 = vpop.f32.mrf.mxu0  ;;  %4791 = vmatmul.mubr.f32.vlgmr.msra.gmra.mxu0 %v8227_v39  ;;  %9861 = vmatprep.subr.mxu0 %v8610_v6  ;;  %v2929_v53 = vpop.f32.mrf.mxu1  ;;  %v8262_v39 = vld [vmem:[%s16221_s0 + $0x1d1] sm:$0xff] }
 0x373   :  { %v13717_v28 = vadd.f32 %v13612_v58, %v2928_v48  ;;  %9862 = vmatpush3.msra.mxu0 %v8610_v6  ;;  %4795 = vmatprep.mubr.f32.mxu0 %v8260_v23  ;;  %v4115_v6 = vld [vmem:[%s16222_s1 + $0x100] sm:$0xff]  ;;  %v8606_v23 = vld [vmem:[%s16222_s1 + $0x458] sm:$0xff]  ;;  %v8230_v53 = vld [vmem:[%s16221_s0 + $0x1d0] sm:$0xff] }
 0x374   :  { %v3405_v50 = vpop.f32.mrf.mxu0  ;;  %v2932_v12 = vpop.f32.mrf.mxu1  ;;  %4466 = vmatmul.mubr.f32.gmra.mxu1 %v8348_v15  ;;  %9863 = vmatprep.subr.mxu0 %v8609_v26 }
 0x375   :  { %v2933_v58 = vadd.f32 %v2932_v12, %v13135_v55  ;;  %4470 = vmatprep.mubr.f32.mxu1 %v8381_v0  ;;  %9864 = vmatpush3.msra.mxu0 %v8609_v26  ;;  %v8383_v26 = vld [vmem:[%s16221_s0 + $0x319] sm:$0xff] }
 0x376   :  { %v13735_v9 = vpop.f32.mrf.mxu0  ;;  %4796 = vmatmul.mubr.f32.gmra.mxu0 %v8228_v11  ;;  %v2934_v44 = vpop.f32.mrf.mxu1  ;;  %9865 = vmatprep.subr.mxu0 %v8608_v43 }
 0x377   :  { %v13741_v55 = vadd.f32 %v13598_v5, %v2933_v58  ;;  %4800 = vmatprep.mubr.f32.mxu0 %v8261_v7  ;;  %9866 = vmatpush3.msra.mxu0 %v8608_v43  ;;  %v8263_v43 = vld [vmem:[%s16221_s0 + $0x1e1] sm:$0xff] }
 0x378   :  { %v3410_v10 = vpop.f32.mrf.mxu0  ;;  %v2937_v31 = vpop.f32.mrf.mxu1  ;;  %4471 = vmatmul.mubr.f32.gmra.mxu1 %v8349_v18  ;;  %9867 = vmatprep.subr.mxu0 %v8607_v36  ;;  %v8384_v58 = vld [vmem:[%s16221_s0 + $0x321] sm:$0xff] }
 0x379   :  { %v2938_v5 = vadd.f32 %v2937_v31, %v13157_v41  ;;  %4475 = vmatprep.mubr.f32.mxu1 %v8382_v3  ;;  %9868 = vmatpush3.msra.mxu0 %v8607_v36  ;;  %v13786_v18 = vld [vmem:[#allocation2 + $0x8] sm:$0xff]  ;;  %v8231_v36 = vld [vmem:[%s16221_s0 + $0x1e0] sm:$0xff] }
 0x37a   :  { %v13759_v48 = vpop.f32.mrf.mxu0  ;;  %4801 = vmatmul.mubr.f32.gmra.mxu0 %v8229_v35  ;;  %v2939_v15 = vpop.f32.mrf.mxu1  ;;  %9810 = vmatpush3.msra.mxu1 %v13273_v19  ;;  %v8351_v19 = vld [vmem:[%s16221_s0 + $0x318] sm:$0xff]  ;;  %v8604_v44 = vld [vmem:[%s16222_s1 + $0x448] sm:$0xff]  ;;  %v8352_v31 = vld [vmem:[%s16221_s0 + $0x320] sm:$0xff] }
 0x37b   :  { %v13766_v41 = vadd.f32 %v13640_v22, %v2938_v5  ;;  %4805 = vmatprep.mubr.f32.mxu0 %v8262_v39  ;;  %9811 = vmatprep.subr.mxu1 %v4115_v6  ;;  %v8605_v22 = vld [vmem:[%s16222_s1 + $0x450] sm:$0xff]  ;;  %v8603_v39 = vld [vmem:[%s16222_s1 + $0x440] sm:$0xff]  ;;  %v8602_v15 = vld [vmem:[%s16222_s1 + $0x438] sm:$0xff] }
 0x37c   :  { %v3415_v0 = vpop.f32.mrf.mxu0  ;;  %v2942_v11 = vpop.f32.mrf.mxu1  ;;  %4476 = vmatmul.mubr.f32.gmra.mxu1 %v8350_v47  ;;  %9869 = vmatprep.subr.mxu0 %v8606_v23  ;;  %v8264_v10 = vld [vmem:[%s16221_s0 + $0x1e9] sm:$0xff]  ;;  %v8385_v47 = vld [vmem:[%s16221_s0 + $0x331] sm:$0xff] }
 0x37d   :  { %v2943_v50 = vadd.f32 %v2942_v11, %v13176_v27  ;;  %4480 = vmatprep.mubr.f32.mxu1 %v8383_v26  ;;  %9812 = vmatpush3.msra.mxu1 %v4115_v6  ;;  %v8265_v0 = vld [vmem:[%s16221_s0 + $0x1f9] sm:$0xff]  ;;  %v8353_v11 = vld [vmem:[%s16221_s0 + $0x330] sm:$0xff] }
 0x37e   :  { %v13781_v12 = vpop.f32.mrf.mxu0  ;;  %4806 = vmatmul.mubr.f32.gmra.mxu0 %v8230_v53  ;;  %v2944_v7 = vpop.f32.mrf.mxu1  ;;  %5321 = vmatprep.subr.mxu1 %v13786_v18 }
 0x37f   :  { %v13790_v27 = vadd.f32 %v13625_v2, %v2943_v50  ;;  %4810 = vmatprep.mubr.f32.mxu0 %v8263_v43  ;;  %9870 = vmatpush3.msra.mxu0 %v8606_v23  ;;  %v8232_v23 = vld [vmem:[%s16221_s0 + $0x1e8] sm:$0xff]  ;;  %v8601_v43 = vld [vmem:[%s16222_s1 + $0x430] sm:$0xff]  ;;  %v8233_v7 = vld [vmem:[%s16221_s0 + $0x1f8] sm:$0xff] }
 0x380   :  { %v3420_v3 = vpop.f32.mrf.mxu0  ;;  %v2947_v35 = vpop.f32.mrf.mxu1  ;;  %4481 = vmatmul.mubr.f32.gmra.mxu1 %v8351_v19  ;;  %9871 = vmatprep.subr.mxu0 %v8605_v22 }
 0x381   :  { %v2948_v2 = vadd.f32 %v2947_v35, %v13194_v4  ;;  %4485 = vmatprep.mubr.f32.mxu1 %v8384_v58  ;;  %9872 = vmatpush3.msra.mxu0 %v8605_v22  ;;  %v8386_v22 = vld [vmem:[%s16221_s0 + $0x339] sm:$0xff]  ;;  %v8600_v58 = vld [vmem:[%s16222_s1 + $0x428] sm:$0xff] }
 0x382   :  { %v13808_v6 = vpop.f32.mrf.mxu0  ;;  %4811 = vmatmul.mubr.f32.gmra.mxu0 %v8231_v36  ;;  %v2949_v5 = vpop.f32.mrf.mxu1  ;;  %9873 = vmatprep.subr.mxu0 %v8604_v44  ;;  %v8266_v3 = vld [vmem:[%s16221_s0 + $0x201] sm:$0xff]  ;;  %v8354_v35 = vld [vmem:[%s16221_s0 + $0x338] sm:$0xff] }
 0x383   :  { %v13814_v4 = vadd.f32 %v13667_v61, %v2948_v2  ;;  %4815 = vmatprep.mubr.f32.mxu0 %v8264_v10  ;;  %9874 = vmatpush3.msra.mxu0 %v8604_v44  ;;  %v8599_v10 = vld [vmem:[%s16222_s1 + $0x420] sm:$0xff] }
 0x384   :  { %v3425_v26 = vpop.f32.mrf.mxu0  ;;  %v2952_v53 = vpop.f32.mrf.mxu1  ;;  %4486 = vmatmul.mubr.f32.gmra.mxu1 %v8352_v31  ;;  %9875 = vmatprep.subr.mxu0 %v8603_v39  ;;  %v8234_v5 = vld [vmem:[%s16221_s0 + $0x200] sm:$0xff] }
 0x385   :  { %v2953_v61 = vadd.f32 %v2952_v53, %v13212_v51  ;;  %4490 = vmatprep.mubr.f32.mxu1 %v8385_v47  ;;  %9876 = vmatpush3.msra.mxu0 %v8603_v39  ;;  %v8291_v39 = vld [vmem:[%s16221_s0 + $0x1b2] sm:$0xff]  ;;  %v8292_v53 = vld [vmem:[%s16221_s0 + $0x1ba] sm:$0xff] }
 0x386   :  { %v13832_v50 = vpop.f32.mrf.mxu0  ;;  %4816 = vmatmul.mubr.f32.gmra.mxu0 %v8232_v23  ;;  %v2954_v19 = vpop.f32.mrf.mxu1  ;;  %9877 = vmatprep.subr.mxu0 %v8602_v15  ;;  %v8598_v47 = vld [vmem:[%s16222_s1 + $0x418] sm:$0xff] }
 0x387   :  { %v13838_v51 = vadd.f32 %v13653_v38, %v2953_v61  ;;  %4820 = vmatprep.mubr.f32.mxu0 %v8265_v0  ;;  %9878 = vmatpush3.msra.mxu0 %v8602_v15  ;;  %v8267_v26 = vld [vmem:[%s16221_s0 + $0x211] sm:$0xff] }
 0x388   :  { %v3430_v36 = vpop.f32.mrf.mxu0  ;;  %v2957_v44 = vpop.f32.mrf.mxu1  ;;  %4491 = vmatmul.mubr.f32.gmra.mxu1 %v8353_v11  ;;  %9879 = vmatprep.subr.mxu0 %v8601_v43  ;;  %v13880_v0 = vld [vmem:[%s16222_s1 + $0x410] sm:$0xff] }
 0x389   :  { %v2958_v38 = vadd.f32 %v2957_v44, %v13231_v21  ;;  %4495 = vmatprep.mubr.f32.mxu1 %v8386_v22  ;;  %9880 = vmatpush3.msra.mxu0 %v8601_v43  ;;  %v8578_v43 = vld [vmem:[%s16222_s1 + $0x378] sm:$0xff]  ;;  %v8235_v22 = vld [vmem:[%s16221_s0 + $0x210] sm:$0xff] }
 0x38a   :  { %v13856_v2 = vpop.f32.mrf.mxu0  ;;  %4821 = vmatmul.mubr.f32.gmra.mxu0 %v8233_v7  ;;  %v2959_v31 = vpop.f32.mrf.mxu1  ;;  %9881 = vmatprep.subr.mxu0 %v8600_v58  ;;  %v8577_v36 = vld [vmem:[%s16222_s1 + $0x370] sm:$0xff]  ;;  %v8268_v44 = vld [vmem:[%s16221_s0 + $0x219] sm:$0xff] }
 0x38b   :  { %v13862_v21 = vadd.f32 %v13698_v59, %v2958_v38  ;;  %4825 = vmatprep.mubr.f32.mxu0 %v8266_v3  ;;  %9882 = vmatpush3.msra.mxu0 %v8600_v58  ;;  %v8294_v3 = vld [vmem:[%s16221_s0 + $0x1d2] sm:$0xff]  ;;  %v13910_v38 = vld [vmem:[%s16225_s4] ss:$0 sm:$0xff]  ;;  %v8295_v31 = vld [vmem:[%s16221_s0 + $0x1e2] sm:$0xff] }
 0x38c   :  { %v3435_v23 = vpop.f32.mrf.mxu0  ;;  %v2962_v15 = vpop.f32.mrf.mxu1  ;;  %4496 = vmatmul.mubr.f32.gmra.mxu1 %v8354_v35  ;;  %9883 = vmatprep.subr.mxu0 %v8599_v10 }
 0x38d   :  { %v2963_v59 = vadd.f32 %v2962_v15, %v13250_v45  ;;  %9813 = vmatprep.mubr.f32.mxu1 %v8291_v39  ;;  %9884 = vmatpush3.msra.mxu0 %v8599_v10  ;;  %v8293_v45 = vld [vmem:[%s16221_s0 + $0x1ca] sm:$0xff]  ;;  %v8196_v23 = vld [vmem:[%s16221_s0 + $0x21] sm:$0xff] }
 0x38e   :  { %v13882_v61 = vpop.f32.mrf.mxu0  ;;  %4826 = vmatmul.mubr.f32.gmra.mxu0 %v8234_v5  ;;  %v2964_v11 = vpop.f32.mrf.mxu1  ;;  %9885 = vmatprep.subr.mxu0 %v8598_v47 }
 0x38f   :  { %v13891_v19 = vadd.f32 %v13680_v8, %v2963_v59  ;;  %4830 = vmatprep.mubr.f32.mxu0 %v8267_v26  ;;  %9886 = vmatpush3.msra.mxu0 %v8598_v47  ;;  %v8236_v47 = vld [vmem:[%s16221_s0 + $0x218] sm:$0xff]  ;;  %v8269_v11 = vld [vmem:[%s16221_s0 + $0x229] sm:$0xff] }
 0x390   :  { %v3440_v7 = vpop.f32.mrf.mxu0  ;;  %v9655_v58 = vpop.f32.mrf.mxu1  ;;  %9814 = vmatmul.mubr.f32.vlgmr.msra.gmra.mxu1 %v8292_v53  ;;  %9887 = vmatprep.subr.mxu0 %v13880_v0 }
 0x391   :  { %v3634_v8 = vadd.f32 %v9655_v58, %v13735_v9  ;;  %5322 = vmatpush1.msra.mxu1 %v8578_v43  ;;  %9816 = vmatprep.mubr.f32.mxu1 %v8293_v45  ;;  %v8576_v9 = vld [vmem:[%s16222_s1 + $0x368] sm:$0xff]  ;;  %v8195_v45 = vld [vmem:[%s16221_s0 + $0x19] sm:$0xff] }
 0x392   :  { %v13912_v35 = vpop.f32.mrf.mxu0  ;;  %4831 = vmatmul.mubr.f32.gmra.mxu0 %v8235_v22  ;;  %v3628_v10 = vpop.f32.mrf.mxu1  ;;  %5323 = vmatprep.subr.mxu1 %v13786_v18  ;;  %v8296_v43 = vld [vmem:[%s16221_s0 + $0x1ea] sm:$0xff] }
 0x393   :  { %v3788_v39 = vadd.f32 %v3634_v8, %v13276_v32  ;;  %v3629_v5 = vadd.f32 %v3628_v10, %v13711_v24  ;;  %5324 = vmatpush1.msra.mxu1 %v8577_v36  ;;  %4835 = vmatprep.mubr.f32.mxu0 %v8268_v44  ;;  %v8575_v32 = vld [vmem:[%s16222_s1 + $0x360] sm:$0xff]  ;;  %v8237_v8 = vld [vmem:[%s16221_s0 + $0x228] sm:$0xff] }
 0x394   :  { %v3445_v15 = vpop.f32.mrf.mxu0  ;;  %v9658_v26 = vpop.f32.mrf.mxu1  ;;  %9817 = vmatmul.mubr.f32.gmra.mxu1 %v8294_v3  ;;  %5325 = vmatprep.subr.mxu1 %v13786_v18  ;;  %v8574_v3 = vld [vmem:[%s16222_s1 + $0x358] sm:$0xff] }
 0x395   :  { %v3827_v24 = vadd.f32 %v13910_v38, %v3788_v39  ;;  %v3787_v59 = vadd.f32 %v3629_v5, %v13291_v20  ;;  %v3644_v53 = vadd.f32 %v9658_v26, %v13781_v12  ;;  %5326 = vmatpush1.msra.mxu1 %v8576_v9  ;;  %9819 = vmatprep.mubr.f32.mxu1 %v8295_v31  ;;  %v8297_v12 = vld [vmem:[%s16221_s0 + $0x1fa] sm:$0xff]  ;;  %v8197_v15 = vld [vmem:[%s16221_s0 + $0x31] sm:$0xff] }
 0x396   :  { %v13945_v22 = vpop.f32.mrf.mxu0  ;;  %4836 = vmatmul.mubr.f32.gmra.mxu0 %v8236_v47  ;;  %v3638_v20 = vpop.f32.mrf.mxu1  ;;  %5327 = vmatprep.subr.mxu1 %v13786_v18  ;;  %v8198_v10 = vld [vmem:[%s16221_s0 + $0x39] sm:$0xff] }
 0x397   :  { %v3891_v7 = vadd.f32 %v8196_v23, %v3827_v24  ;;  %v3826_v58 = vadd.f32 %v13910_v38, %v3787_v59  ;;  %v3790_v36 = vadd.f32 %v3644_v53, %v13314_v17  ;;  %v3639_v44 = vadd.f32 %v3638_v20, %v13759_v48  ;;  %5328 = vmatpush1.msra.mxu1 %v8575_v32  ;;  %v8270_v17 = vld [vmem:[%s16221_s0 + $0x231] sm:$0xff] }
 0x398   :  { %v3450_v9 = vpop.f32.mrf.mxu0  ;;  %v9661_v31 = vpop.f32.mrf.mxu1  ;;  %4840 = vmatprep.mubr.f32.mxu0 %v8269_v11  ;;  %9820 = vmatmul.mubr.f32.gmra.mxu1 %v8296_v43  ;;  %v8573_v23 = vld [vmem:[%s16222_s1 + $0x350] sm:$0xff] }
 0x399   :  { %v3923_v48 = vmax.f32 %v3891_v7, 0.0  ;;  %v3890_v39 = vadd.f32 %v8195_v45, %v3826_v58  ;;  %v3829_v5 = vadd.f32 %v13910_v38, %v3790_v36  ;;  %v3789_v47 = vadd.f32 %v3639_v44, %v13327_v62  ;;  %5329 = vmatprep.subr.mxu1 %v13786_v18  ;;  %9822 = vmatprep.mubr.f32.mxu1 %v8297_v12  ;;  %v8298_v62 = vld [vmem:[%s16221_s0 + $0x202] sm:$0xff]  ;;  %v8200_v44 = vld [vmem:[%s16221_s0 + $0x51] sm:$0xff] }
 0x39a   :  { %v3654_v26 = vadd.f32 %v9661_v31, %v13832_v50  ;;  %v13976_v32 = vpop.f32.mrf.mxu0  ;;  %4841 = vmatmul.mubr.f32.gmra.mxu0 %v8237_v8  ;;  %5330 = vmatpush1.msra.mxu1 %v8574_v3  ;;  %v3648_v24 = vpop.f32.mrf.mxu1  ;;  %v8238_v50 = vld [vmem:[%s16221_s0 + $0x230] sm:$0xff]  ;;  %v8572_v45 = vld [vmem:[%s16222_s1 + $0x348] sm:$0xff]  ;;  %v8571_v3 = vld [vmem:[%s16222_s1 + $0x340] sm:$0xff] }
 0x39b   :  { %3955 = vst [vmem:[#allocation6 + $0x8] sm:$0xff] %v3923_v48  ;;  %v3922_v59 = vmax.f32 %v3890_v39, 0.0  ;;  %v3893_v53 = vadd.f32 %v8198_v10, %v3829_v5  ;;  %v3828_v11 = vadd.f32 %v13910_v38, %v3789_v47  ;;  %v3649_v43 = vadd.f32 %v3648_v24, %v13808_v6  ;;  %5331 = vmatprep.subr.mxu1 %v13786_v18  ;;  %v8299_v6 = vld [vmem:[%s16221_s0 + $0x212] sm:$0xff]  ;;  %v8300_v31 = vld [vmem:[%s16221_s0 + $0x21a] sm:$0xff] }
 0x39c   :  { %4845 = vmatprep.mubr.f32.mxu0 %v8270_v17  ;;  %v3792_v20 = vadd.f32 %v3654_v26, %v13346_v63  ;;  %v3455_v12 = vpop.f32.mrf.mxu0  ;;  %5332 = vmatpush1.msra.mxu1 %v8573_v23  ;;  %v9664_v7 = vpop.f32.mrf.mxu1  ;;  %v14023_v47 = vld [vmem:[%s16221_s0 + $0x240] sm:$0xff] }
 0x39d   :  { %9888 = vmatpush3.msra.mxu0 %v13880_v0  ;;  %3954 = vst [vmem:[#allocation6] sm:$0xff] %v3922_v59  ;;  %v3925_v58 = vmax.f32 %v3893_v53, 0.0  ;;  %v3892_v36 = vadd.f32 %v8197_v15, %v3828_v11  ;;  %v3791_v8 = vadd.f32 %v3649_v43, %v13359_v25  ;;  %v3664_v63 = vadd.f32 %v9664_v7, %v13882_v61  ;;  %v14007_v0 = vld [vmem:[%s16221_s0 + $0x241] sm:$0xff]  ;;  %v8199_v25 = vld [vmem:[%s16221_s0 + $0x49] sm:$0xff] }
 0x39e   :  { %9823 = vmatmul.mubr.f32.gmra.mxu1 %v8298_v62  ;;  %5333 = vmatprep.subr.mxu1 %v13786_v18  ;;  %v3831_v10 = vadd.f32 %v13910_v38, %v3792_v20  ;;  %v3458_v9 = vpop.f32.mrf.mxu0  ;;  %v3658_v61 = vpop.f32.mrf.mxu1  ;;  %v8202_v15 = vld [vmem:[%s16221_s0 + $0x69] sm:$0xff] }
 0x39f   :  { %4846 = vmatmul.mubr.f32.gmra.mxu0 %v8238_v50  ;;  %5334 = vmatpush1.msra.mxu1 %v8572_v45  ;;  %3957 = vst [vmem:[#allocation6 + $0x18] sm:$0xff] %v3925_v58  ;;  %v3924_v17 = vmax.f32 %v3892_v36, 0.0  ;;  %v3830_v48 = vadd.f32 %v13910_v38, %v3791_v8  ;;  %v3794_v39 = vadd.f32 %v3664_v63, %v13380_v60  ;;  %v8570_v60 = vld [vmem:[%s16222_s1 + $0x338] sm:$0xff]  ;;  %v14041_v43 = vld [vmem:[%s16221_s0 + $0x249] sm:$0xff]  ;;  %v8201_v45 = vld [vmem:[%s16221_s0 + $0x61] sm:$0xff] }
 0x3a0   :  { %v3659_v5 = vadd.f32 %v3658_v61, %v13856_v2  ;;  %5335 = vmatprep.subr.mxu1 %v13786_v18  ;;  %9825 = vmatprep.mubr.f32.mxu1 %v8299_v6  ;;  %v3895_v23 = vadd.f32 %v8200_v44, %v3831_v10  ;;  %v3460_v26 = vpop.f32.mrf.mxu0  ;;  %v9667_v24 = vpop.f32.mrf.mxu1  ;;  %v8301_v2 = vld [vmem:[%s16221_s0 + $0x22a] sm:$0xff]  ;;  %v8302_v44 = vld [vmem:[%s16221_s0 + $0x232] sm:$0xff]  ;;  %v8204_v8 = vld [vmem:[%s16221_s0 + $0x81] sm:$0xff] }
 0x3a1   :  { %5336 = vmatpush1.msra.mxu1 %v8571_v3  ;;  %4850 = vmatprep.mubr.f32.mxu0 %v14007_v0  ;;  %3956 = vst [vmem:[#allocation6 + $0x10] sm:$0xff] %v3924_v17  ;;  %v3894_v62 = vadd.f32 %v8199_v25, %v3830_v48  ;;  %v3833_v59 = vadd.f32 %v13910_v38, %v3794_v39  ;;  %v14056_v12 = vld [vmem:[%s16222_s1 + $0x408] sm:$0xff] }
 0x3a2   :  { %v3793_v53 = vadd.f32 %v3659_v5, %v13393_v33  ;;  %v3674_v11 = vadd.f32 %v9667_v24, %v13945_v22  ;;  %9826 = vmatmul.mubr.f32.gmra.mxu1 %v8300_v31  ;;  %v3927_v50 = vmax.f32 %v3895_v23, 0.0  ;;  %5337 = vmatprep.subr.mxu1 %v13786_v18  ;;  %v14047_v20 = vpop.f32.mrf.mxu0  ;;  %v3668_v33 = vpop.f32.mrf.mxu1  ;;  %v8569_v22 = vld [vmem:[%s16222_s1 + $0x330] sm:$0xff]  ;;  %v8568_v25 = vld [vmem:[%s16222_s1 + $0x328] sm:$0xff] }
 0x3a3   :  { %4851 = vmatmul.mubr.f32.gmra.mxu0 %v14023_v47  ;;  %v3926_v7 = vmax.f32 %v3894_v62, 0.0  ;;  %v3897_v6 = vadd.f32 %v8202_v15, %v3833_v59  ;;  %5338 = vmatpush1.msra.mxu1 %v8570_v60  ;;  %v3669_v63 = vadd.f32 %v3668_v33, %v13912_v35  ;;  %v14081_v48 = vld [vmem:[%s16221_s0 + $0x242] sm:$0xff]  ;;  %v14103_v62 = vld [vmem:[%s16221_s0 + $0x24a] sm:$0xff] }
 0x3a4   :  { %v3832_v58 = vadd.f32 %v13910_v38, %v3793_v53  ;;  %v3796_v36 = vadd.f32 %v3674_v11, %v13407_v13  ;;  %9828 = vmatprep.mubr.f32.mxu1 %v8301_v2  ;;  %3959 = vst [vmem:[#allocation6 + $0x28] sm:$0xff] %v3927_v50  ;;  %5339 = vmatprep.subr.mxu1 %v13786_v18  ;;  %v3465_v3 = vpop.f32.mrf.mxu0  ;;  %v9670_v10 = vpop.f32.mrf.mxu1  ;;  %v14072_v13 = vld [vmem:[%s16221_s0 + $0x248] sm:$0xff]  ;;  %v8567_v15 = vld [vmem:[%s16222_s1 + $0x320] sm:$0xff]  ;;  %v8566_v50 = vld [vmem:[%s16222_s1 + $0x318] sm:$0xff] }
 0x3a5   :  { %4855 = vmatprep.mubr.f32.mxu0 %v14041_v43  ;;  %3958 = vst [vmem:[#allocation6 + $0x20] sm:$0xff] %v3926_v7  ;;  %v3929_v61 = vmax.f32 %v3897_v6, 0.0  ;;  %5340 = vmatpush1.msra.mxu1 %v8569_v22  ;;  %v3684_v17 = vadd.f32 %v9670_v10, %v3458_v9  ;;  %v3795_v39 = vadd.f32 %v3669_v63, %v13420_v54  ;;  %v14092_v9 = vld [vmem:[%s16221_s0 + $0x259] sm:$0xff]  ;;  %v14138_v63 = vld [vmem:[%s16221_s0 + $0x261] sm:$0xff] }
 0x3a6   :  { %v3896_v31 = vadd.f32 %v8201_v45, %v3832_v58  ;;  %v3835_v35 = vadd.f32 %v13910_v38, %v3796_v36  ;;  %9889 = vmatprep.subr.mxu0 %v14056_v12  ;;  %9829 = vmatmul.mubr.f32.gmra.mxu1 %v8302_v44  ;;  %v3468_v5 = vpop.f32.mrf.mxu0  ;;  %v3678_v23 = vpop.f32.mrf.mxu1  ;;  %v8203_v54 = vld [vmem:[%s16221_s0 + $0x79] sm:$0xff]  ;;  %v8205_v36 = vld [vmem:[%s16221_s0 + $0x91] sm:$0xff] }
 0x3a7   :  { %5341 = vmatprep.subr.mxu1 %v13786_v18  ;;  %3961 = vst [vmem:[#allocation6 + $0x38] sm:$0xff] %v3929_v61  ;;  %v3798_v60 = vadd.f32 %v3684_v17, %v13433_v49  ;;  %4856 = vmatmul.mubr.f32.gmra.mxu0 %v14072_v13  ;;  %v3679_v2 = vadd.f32 %v3678_v23, %v13976_v32  ;;  %v8206_v53 = vld [vmem:[%s16221_s0 + $0x99] sm:$0xff]  ;;  %v14146_v61 = vld [vmem:[%s16221_s0 + $0x262] sm:$0xff] }
 0x3a8   :  { %v3928_v26 = vmax.f32 %v3896_v31, 0.0  ;;  %v3899_v24 = vadd.f32 %v8204_v8, %v3835_v35  ;;  %5342 = vmatpush1.msra.mxu1 %v8568_v25  ;;  %v3834_v59 = vadd.f32 %v13910_v38, %v3795_v39  ;;  %v3470_v11 = vpop.f32.mrf.mxu0  ;;  %9831 = vmatprep.mubr.f32.mxu1 %v14081_v48  ;;  %v9673_v49 = vpop.f32.mrf.mxu1  ;;  %v14114_v32 = vld [vmem:[%s16221_s0 + $0x258] sm:$0xff]  ;;  %v8565_v8 = vld [vmem:[%s16222_s1 + $0x310] sm:$0xff]  ;;  %v8564_v23 = vld [vmem:[%s16222_s1 + $0x308] sm:$0xff] }
 0x3a9   :  { %5343 = vmatprep.subr.mxu1 %v13786_v18  ;;  %v3837_v33 = vadd.f32 %v13910_v38, %v3798_v60  ;;  %v3797_v22 = vadd.f32 %v3679_v2, %v13446_v56  ;;  %v3694_v7 = vadd.f32 %v9673_v49, %v3468_v5  ;;  %4860 = vmatprep.mubr.f32.mxu0 %v14092_v9  ;;  %v14125_v6 = vld [vmem:[%s16221_s0 + $0x25a] sm:$0xff]  ;;  %v8208_v35 = vld [vmem:[%s16221_s0 + $0xb1] sm:$0xff] }
 0x3aa   :  { %3960 = vst [vmem:[#allocation6 + $0x30] sm:$0xff] %v3928_v26  ;;  %v3931_v45 = vmax.f32 %v3899_v24, 0.0  ;;  %5344 = vmatpush1.msra.mxu1 %v8567_v15  ;;  %v3898_v58 = vadd.f32 %v8203_v54, %v3834_v59  ;;  %v3473_v44 = vpop.f32.mrf.mxu0  ;;  %v3688_v56 = vpop.f32.mrf.mxu1  ;;  %v14157_v5 = vld [vmem:[%s16221_s0 + $0x260] sm:$0xff]  ;;  %9890 = vmatpush3.msra.mxu0 %v14056_v12  ;;  %v14554_v12 = vld [vmem:[%s16221_s0 + $0x2d8] sm:$0xff] }
 0x3ab   :  { %9832 = vmatmul.mubr.f32.gmra.mxu1 %v14103_v62  ;;  %5345 = vmatprep.subr.mxu1 %v13786_v18  ;;  %v3901_v3 = vadd.f32 %v8206_v53, %v3837_v33  ;;  %v3836_v10 = vadd.f32 %v13910_v38, %v3797_v22  ;;  %v3800_v25 = vadd.f32 %v3694_v7, %v13459_v34  ;;  %v8563_v59 = vld [vmem:[%s16222_s1 + $0x300] sm:$0xff]  ;;  %v14178_v53 = vld [vmem:[%s16221_s0 + $0x271] sm:$0xff] }
 0x3ac   :  { %3963 = vst [vmem:[#allocation6 + $0x48] sm:$0xff] %v3931_v45  ;;  %4861 = vmatmul.mubr.f32.gmra.mxu0 %v14114_v32  ;;  %5346 = vmatpush1.msra.mxu1 %v8566_v50  ;;  %v3930_v31 = vmax.f32 %v3898_v58, 0.0  ;;  %v3689_v17 = vadd.f32 %v3688_v56, %v14047_v20  ;;  %v3475_v39 = vpop.f32.mrf.mxu0  ;;  %v9676_v34 = vpop.f32.mrf.mxu1  ;;  %v14167_v20 = vld [vmem:[%s16221_s0 + $0x272] sm:$0xff]  ;;  %v14187_v33 = vld [vmem:[%s16221_s0 + $0x27a] sm:$0xff] }
 0x3ad   :  { %5347 = vmatprep.subr.mxu1 %v13786_v18  ;;  %9834 = vmatprep.mubr.f32.mxu1 %v14125_v6  ;;  %v3933_v15 = vmax.f32 %v3901_v3, 0.0  ;;  %v3900_v26 = vadd.f32 %v8205_v36, %v3836_v10  ;;  %v3839_v24 = vadd.f32 %v13910_v38, %v3800_v25  ;;  %v14195_v36 = vld [vmem:[%s16221_s0 + $0x270] sm:$0xff]  ;;  %v14222_v39 = vld [vmem:[%s16221_s0 + $0x279] sm:$0xff] }
 0x3ae   :  { %5348 = vmatpush1.msra.mxu1 %v8565_v8  ;;  %4865 = vmatprep.mubr.f32.mxu0 %v14138_v63  ;;  %3962 = vst [vmem:[#allocation6 + $0x40] sm:$0xff] %v3930_v31  ;;  %v3799_v54 = vadd.f32 %v3689_v17, %v13471_v46  ;;  %v3478_v60 = vpop.f32.mrf.mxu0  ;;  %v3698_v2 = vpop.f32.mrf.mxu1  ;;  %v8207_v46 = vld [vmem:[%s16221_s0 + $0xa9] sm:$0xff] }
 0x3af   :  { %9835 = vmatmul.mubr.f32.gmra.mxu1 %v14146_v61  ;;  %5349 = vmatprep.subr.mxu1 %v13786_v18  ;;  %3965 = vst [vmem:[#allocation6 + $0x58] sm:$0xff] %v3933_v15  ;;  %v3932_v11 = vmax.f32 %v3900_v26, 0.0  ;;  %v3903_v49 = vadd.f32 %v8208_v35, %v3839_v24  ;;  %v3704_v50 = vadd.f32 %v9676_v34, %v3478_v60  ;;  %v8210_v3 = vld [vmem:[%s16221_s0 + $0xc9] sm:$0xff]  ;;  %v8209_v35 = vld [vmem:[%s16221_s0 + $0xc1] sm:$0xff]  ;;  %v14230_v26 = vld [vmem:[%s16221_s0 + $0x292] sm:$0xff] }
 0x3b0   :  { %4866 = vmatmul.mubr.f32.gmra.mxu0 %v14157_v5  ;;  %5350 = vmatpush1.msra.mxu1 %v8564_v23  ;;  %v3699_v45 = vadd.f32 %v3698_v2, %v3473_v44  ;;  %v3838_v22 = vadd.f32 %v13910_v38, %v3799_v54  ;;  %v3480_v7 = vpop.f32.mrf.mxu0  ;;  %v9679_v58 = vpop.f32.mrf.mxu1  ;;  %v8594_v44 = vld [vmem:[%s16222_s1 + $0x3f8] sm:$0xff]  ;;  %v14209_v25 = vld [vmem:[%s16221_s0 + $0x28a] sm:$0xff] }
 0x3b1   :  { %5351 = vmatprep.subr.mxu1 %v13786_v18  ;;  %9837 = vmatprep.mubr.f32.mxu1 %v14167_v20  ;;  %3964 = vst [vmem:[#allocation6 + $0x50] sm:$0xff] %v3932_v11  ;;  %v3935_v56 = vmax.f32 %v3903_v49, 0.0  ;;  %v3802_v8 = vadd.f32 %v3704_v50, %v13484_v14  ;;  %v14239_v2 = vld [vmem:[%s16221_s0 + $0x278] sm:$0xff]  ;;  %v14249_v50 = vld [vmem:[%s16221_s0 + $0x2a2] sm:$0xff] }
 0x3b2   :  { %v3801_v10 = vadd.f32 %v3699_v45, %v13496_v40  ;;  %5352 = vmatpush1.msra.mxu1 %v8563_v59  ;;  %4870 = vmatprep.mubr.f32.mxu0 %v14178_v53  ;;  %v3902_v31 = vadd.f32 %v8207_v46, %v3838_v22  ;;  %v3483_v14 = vpop.f32.mrf.mxu0  ;;  %v3708_v17 = vpop.f32.mrf.mxu1  ;;  %v8593_v40 = vld [vmem:[%s16222_s1 + $0x3f0] sm:$0xff]  ;;  %v8592_v59 = vld [vmem:[%s16222_s1 + $0x3e8] sm:$0xff]  ;;  %v8211_v45 = vld [vmem:[%s16221_s0 + $0xd9] sm:$0xff] }
 0x3b3   :  { %9838 = vmatmul.mubr.f32.gmra.mxu1 %v14187_v33  ;;  %5353 = vmatprep.subr.mxu1 %v13786_v18  ;;  %3967 = vst [vmem:[#allocation6 + $0x68] sm:$0xff] %v3935_v56  ;;  %v3841_v34 = vadd.f32 %v13910_v38, %v3802_v8  ;;  %v3709_v15 = vadd.f32 %v3708_v17, %v3483_v14  ;;  %v14278_v17 = vld [vmem:[%s16221_s0 + $0x288] sm:$0xff] }
 0x3b4   :  { %v3840_v23 = vadd.f32 %v13910_v38, %v3801_v10  ;;  %4871 = vmatmul.mubr.f32.gmra.mxu0 %v14195_v36  ;;  %5354 = vmatpush2.msra.mxu1 %v8594_v44  ;;  %v3934_v24 = vmax.f32 %v3902_v31, 0.0  ;;  %v3485_v54 = vpop.f32.mrf.mxu0  ;;  %v14234_v60 = vpop.f32.mrf.mxu1  ;;  %v14262_v44 = vld [vmem:[%s16221_s0 + $0x289] sm:$0xff] }
 0x3b5   :  { %5355 = vmatprep.subr.mxu1 %v13786_v18  ;;  %9840 = vmatprep.mubr.f32.mxu1 %v14209_v25  ;;  %v3905_v11 = vadd.f32 %v8210_v3, %v3841_v34  ;;  %v3803_v46 = vadd.f32 %v3709_v15, %v13519_v42  ;;  %v8591_v42 = vld [vmem:[%s16222_s1 + $0x3e0] sm:$0xff]  ;;  %v14269_v31 = vld [vmem:[%s16221_s0 + $0x2aa] sm:$0xff] }
 0x3b6   :  { %v3904_v49 = vadd.f32 %v8209_v35, %v3840_v23  ;;  %5356 = vmatpush2.msra.mxu1 %v8593_v40  ;;  %4875 = vmatprep.mubr.f32.mxu0 %v14222_v39  ;;  %3966 = vst [vmem:[#allocation6 + $0x60] sm:$0xff] %v3934_v24  ;;  %v3488_v22 = vpop.f32.mrf.mxu0  ;;  %v3718_v7 = vpop.f32.mrf.mxu1  ;;  %v14288_v23 = vld [vmem:[%s16221_s0 + $0x2ba] sm:$0xff] }
 0x3b7   :  { %9841 = vmatmul.mubr.f32.gmra.mxu1 %v14230_v26  ;;  %5357 = vmatprep.subr.mxu1 %v13786_v18  ;;  %v3937_v56 = vmax.f32 %v3905_v11, 0.0  ;;  %v3842_v3 = vadd.f32 %v13910_v38, %v3803_v46  ;;  %v3714_v10 = vadd.f32 %v9679_v58, %v3488_v22  ;;  %v8590_v58 = vld [vmem:[%s16222_s1 + $0x3d8] sm:$0xff]  ;;  %16278 = vst [vmem:[#allocation12_spill] sm:$0xff] %v14288_v23  ;;  %v8212_v15 = vld [vmem:[%s16221_s0 + $0xe1] sm:$0xff] }
 0x3b8   :  { %v3936_v8 = vmax.f32 %v3904_v49, 0.0  ;;  %4876 = vmatmul.mubr.f32.gmra.mxu0 %v14239_v2  ;;  %5358 = vmatpush2.msra.mxu1 %v8592_v59  ;;  %v3490_v35 = vpop.f32.mrf.mxu0  ;;  %v14273_v14 = vpop.f32.mrf.mxu1  ;;  %v14301_v59 = vld [vmem:[%s16221_s0 + $0x291] sm:$0xff] }
 0x3b9   :  { %5359 = vmatprep.subr.mxu1 %v13786_v18  ;;  %9843 = vmatprep.mubr.f32.mxu1 %v14249_v50  ;;  %3969 = vst [vmem:[#allocation6 + $0x78] sm:$0xff] %v3937_v56  ;;  %v3906_v40 = vadd.f32 %v8211_v45, %v3842_v3  ;;  %v3804_v34 = vadd.f32 %v3714_v10, %v13532_v57  ;;  %v8589_v57 = vld [vmem:[%s16222_s1 + $0x3d0] sm:$0xff]  ;;  %v14308_v45 = vld [vmem:[%s16221_s0 + $0x2c2] sm:$0xff] }
 0x3ba   :  { %3968 = vst [vmem:[#allocation6 + $0x70] sm:$0xff] %v3936_v8  ;;  %5360 = vmatpush2.msra.mxu1 %v8591_v42  ;;  %4880 = vmatprep.mubr.f32.mxu0 %v14262_v44  ;;  %v3493_v24 = vpop.f32.mrf.mxu0  ;;  %v3728_v54 = vpop.f32.mrf.mxu1  ;;  %16279 = vst [vmem:[#allocation9_spill] sm:$0xff] %v14308_v45  ;;  %v14317_v56 = vld [vmem:[%s16221_s0 + $0x290] sm:$0xff] }
 0x3bb   :  { %9844 = vmatmul.mubr.f32.gmra.mxu1 %v14269_v31  ;;  %5361 = vmatprep.subr.mxu1 %v13786_v18  ;;  %v3938_v11 = vmax.f32 %v3906_v40, 0.0  ;;  %v3843_v49 = vadd.f32 %v13910_v38, %v3804_v34  ;;  %v3719_v46 = vadd.f32 %v3718_v7, %v3493_v24  ;;  %v8588_v7 = vld [vmem:[%s16222_s1 + $0x3c8] sm:$0xff]  ;;  %v14327_v10 = vld [vmem:[%s16221_s0 + $0x2d2] sm:$0xff] }
 0x3bc   :  { %4881 = vmatmul.mubr.f32.gmra.mxu0 %v14278_v17  ;;  %5362 = vmatpush2.msra.mxu1 %v8590_v58  ;;  %v3495_v22 = vpop.f32.mrf.mxu0  ;;  %v14312_v42 = vpop.f32.mrf.mxu1  ;;  %16280 = vst [vmem:[#allocation14_spill] sm:$0xff] %v14327_v10  ;;  %v8213_v35 = vld [vmem:[%s16221_s0 + $0xf1] sm:$0xff]  ;;  %v14342_v34 = vld [vmem:[%s16221_s0 + $0x2a1] sm:$0xff] }
 0x3bd   :  { %5363 = vmatprep.subr.mxu1 %v13786_v18  ;;  %9846 = vmatprep.mubr.f32.mxu1 %v14288_v23  ;;  %3970 = vst [vmem:[#allocation6 + $0x80] sm:$0xff] %v3938_v11  ;;  %v3907_v8 = vadd.f32 %v8212_v15, %v3843_v49  ;;  %v3805_v3 = vadd.f32 %v3719_v46, %v13557_v52  ;;  %v8587_v52 = vld [vmem:[%s16222_s1 + $0x3c0] sm:$0xff] }
 0x3be   :  { %5364 = vmatpush2.msra.mxu1 %v8589_v57  ;;  %4885 = vmatprep.mubr.f32.mxu0 %v14301_v59  ;;  %v3498_v58 = vpop.f32.mrf.mxu0  ;;  %v14334_v40 = vpop.f32.mrf.mxu1  ;;  %v14350_v11 = vld [vmem:[%s16221_s0 + $0x2da] sm:$0xff] }
 0x3bf   :  { %9847 = vmatmul.mubr.f32.gmra.mxu1 %v14308_v45  ;;  %5365 = vmatprep.subr.mxu1 %v13786_v18  ;;  %v3939_v15 = vmax.f32 %v3907_v8, 0.0  ;;  %v3844_v24 = vadd.f32 %v13910_v38, %v3805_v3  ;;  %v3724_v57 = vadd.f32 %v14234_v60, %v3498_v58  ;;  %16281 = vst [vmem:[#allocation13_spill] sm:$0xff] %v14350_v11  ;;  %v14359_v22 = vld [vmem:[%s16221_s0 + $0x2a0] sm:$0xff]  ;;  %v8586_v60 = vld [vmem:[%s16222_s1 + $0x3b8] sm:$0xff]  ;;  %v14369_v3 = vld [vmem:[%s16221_s0 + $0x2ea] sm:$0xff] }
 0x3c0   :  { %4886 = vmatmul.mubr.f32.gmra.mxu0 %v14317_v56  ;;  %5366 = vmatpush2.msra.mxu1 %v8588_v7  ;;  %v3500_v49 = vpop.f32.mrf.mxu0  ;;  %v14354_v46 = vpop.f32.mrf.mxu1  ;;  %16282 = vst [vmem:[#allocation10_spill] sm:$0xff] %v14369_v3  ;;  %v8214_v58 = vld [vmem:[%s16221_s0 + $0xf9] sm:$0xff] }
 0x3c1   :  { %5367 = vmatprep.subr.mxu1 %v13786_v18  ;;  %9849 = vmatprep.mubr.f32.mxu1 %v14327_v10  ;;  %3971 = vst [vmem:[#allocation6 + $0x88] sm:$0xff] %v3939_v15  ;;  %v3908_v7 = vadd.f32 %v8213_v35, %v3844_v24  ;;  %v3806_v8 = vadd.f32 %v3724_v57, %v13582_v30  ;;  %v8585_v30 = vld [vmem:[%s16222_s1 + $0x3b0] sm:$0xff] }
 0x3c2   :  { %5368 = vmatpush2.msra.mxu1 %v8587_v52  ;;  %4890 = vmatprep.mubr.f32.mxu0 %v14342_v34  ;;  %v3503_v15 = vpop.f32.mrf.mxu0  ;;  %v14376_v35 = vpop.f32.mrf.mxu1  ;;  %v14384_v52 = vld [vmem:[%s16221_s0 + $0x2a9] sm:$0xff] }
 0x3c3   :  { %9850 = vmatmul.mubr.f32.gmra.mxu1 %v14350_v11  ;;  %5369 = vmatprep.subr.mxu1 %v13786_v18  ;;  %16283 = vst [vmem:[#allocation16_spill] sm:$0xff] %v14384_v52  ;;  %v3940_v24 = vmax.f32 %v3908_v7, 0.0  ;;  %v3845_v57 = vadd.f32 %v13910_v38, %v3806_v8  ;;  %v3729_v49 = vadd.f32 %v3728_v54, %v3503_v15  ;;  %v14391_v11 = vld [vmem:[%s16221_s0 + $0x2f2] sm:$0xff]  ;;  %v14400_v7 = vld [vmem:[%s16221_s0 + $0x2a8] sm:$0xff] }
 0x3c4   :  { %4891 = vmatmul.mubr.f32.gmra.mxu0 %v14359_v22  ;;  %5370 = vmatpush2.msra.mxu1 %v8586_v60  ;;  %16284 = vst [vmem:[#allocation15_spill] sm:$0xff] %v14391_v11  ;;  %v3505_v10 = vpop.f32.mrf.mxu0  ;;  %v14395_v45 = vpop.f32.mrf.mxu1  ;;  %16285 = vst [vmem:[#allocation11_spill] sm:$0xff] %v14400_v7  ;;  %v8584_v54 = vld [vmem:[%s16222_s1 + $0x3a8] sm:$0xff] }
 0x3c5   :  { %5371 = vmatprep.subr.mxu1 %v13786_v18  ;;  %9852 = vmatprep.mubr.f32.mxu1 %v14369_v3  ;;  %3972 = vst [vmem:[#allocation6 + $0x90] sm:$0xff] %v3940_v24  ;;  %v3909_v60 = vadd.f32 %v8214_v58, %v3845_v57  ;;  %v3807_v8 = vadd.f32 %v3729_v49, %v13607_v1  ;;  %v14410_v10 = vld [vmem:[%s16221_s0 + $0x302] sm:$0xff] }
 0x3c6   :  { %5372 = vmatpush2.msra.mxu1 %v8585_v30  ;;  %4895 = vmatprep.mubr.f32.mxu0 %v14384_v52  ;;  %16286 = vst [vmem:[#allocation18_spill] sm:$0xff] %v14410_v10  ;;  %v8215_v15 = vld [vmem:[%s16221_s0 + $0x109] sm:$0xff]  ;;  %v3508_v24 = vpop.f32.mrf.mxu0  ;;  %v14417_v58 = vpop.f32.mrf.mxu1  ;;  %v8583_v1 = vld [vmem:[%s16222_s1 + $0x3a0] sm:$0xff] }
 0x3c7   :  { %9853 = vmatmul.mubr.f32.gmra.mxu1 %v14391_v11  ;;  %5373 = vmatprep.subr.mxu1 %v13786_v18  ;;  %v14425_v30 = vld [vmem:[%s16221_s0 + $0x2b9] sm:$0xff]  ;;  %v3941_v57 = vmax.f32 %v3909_v60, 0.0  ;;  %v3846_v49 = vadd.f32 %v13910_v38, %v3807_v8  ;;  %v3734_v3 = vadd.f32 %v14273_v14, %v3508_v24  ;;  %v14433_v11 = vld [vmem:[%s16221_s0 + $0x30a] sm:$0xff] }
 0x3c8   :  { %16287 = vst [vmem:[#allocation17_spill] sm:$0xff] %v14425_v30  ;;  %4896 = vmatmul.mubr.f32.gmra.mxu0 %v14400_v7  ;;  %5374 = vmatpush2.msra.mxu1 %v8584_v54  ;;  %16288 = vst [vmem:[#allocation19_spill] sm:$0xff] %v14433_v11  ;;  %v3510_v23 = vpop.f32.mrf.mxu0  ;;  %v14437_v52 = vpop.f32.mrf.mxu1  ;;  %v14442_v60 = vld [vmem:[%s16221_s0 + $0x2b8] sm:$0xff] }
 0x3c9   :  { %5375 = vmatprep.subr.mxu1 %v13786_v18  ;;  %9855 = vmatprep.mubr.f32.mxu1 %v14410_v10  ;;  %16289 = vst [vmem:[#allocation20_spill] sm:$0xff] %v14442_v60  ;;  %v8582_v14 = vld [vmem:[%s16222_s1 + $0x398] sm:$0xff]  ;;  %3973 = vst [vmem:[#allocation6 + $0x98] sm:$0xff] %v3941_v57  ;;  %v3910_v54 = vadd.f32 %v8215_v15, %v3846_v49  ;;  %v3808_v8 = vadd.f32 %v3734_v3, %v13635_v37  ;;  %v8581_v37 = vld [vmem:[%s16222_s1 + $0x390] sm:$0xff] }
 0x3ca   :  { %5376 = vmatpush2.msra.mxu1 %v8583_v1  ;;  %4900 = vmatprep.mubr.f32.mxu0 %v14425_v30  ;;  %v14452_v23 = vld [vmem:[%s16221_s0 + $0x31a] sm:$0xff]  ;;  %v8216_v24 = vld [vmem:[%s16221_s0 + $0x111] sm:$0xff]  ;;  %v3513_v57 = vpop.f32.mrf.mxu0  ;;  %v14459_v15 = vpop.f32.mrf.mxu1 }
 0x3cb   :  { %16290 = vst [vmem:[#allocation21_spill] sm:$0xff] %v14452_v23  ;;  %9856 = vmatmul.mubr.f32.gmra.mxu1 %v14433_v11  ;;  %5377 = vmatprep.subr.mxu1 %v13786_v18  ;;  %v14467_v3 = vld [vmem:[%s16221_s0 + $0x2c1] sm:$0xff]  ;;  %v3942_v1 = vmax.f32 %v3910_v54, 0.0  ;;  %v3847_v49 = vadd.f32 %v13910_v38, %v3808_v8  ;;  %v3739_v10 = vadd.f32 %v14334_v40, %v3513_v57 }
 0x3cc   :  { %16291 = vst [vmem:[#allocation22_spill] sm:$0xff] %v14467_v3  ;;  %4901 = vmatmul.mubr.f32.gmra.mxu0 %v14442_v60  ;;  %5378 = vmatpush2.msra.mxu1 %v8582_v14  ;;  %v14475_v11 = vld [vmem:[%s16221_s0 + $0x322] sm:$0xff]  ;;  %v3515_v30 = vpop.f32.mrf.mxu0  ;;  %v14479_v7 = vpop.f32.mrf.mxu1 }
 0x3cd   :  { %16292 = vst [vmem:[#allocation23_spill] sm:$0xff] %v14475_v11  ;;  %5379 = vmatprep.subr.mxu1 %v13786_v18  ;;  %9858 = vmatprep.mubr.f32.mxu1 %v14452_v23  ;;  %v14484_v54 = vld [vmem:[%s16221_s0 + $0x2c0] sm:$0xff]  ;;  %v8580_v40 = vld [vmem:[%s16222_s1 + $0x388] sm:$0xff]  ;;  %3974 = vst [vmem:[#allocation6 + $0xa0] sm:$0xff] %v3942_v1  ;;  %v3911_v14 = vadd.f32 %v8216_v24, %v3847_v49  ;;  %v3809_v8 = vadd.f32 %v3739_v10, %v13662_v29 }
 0x3ce   :  { %16293 = vst [vmem:[#allocation24_spill] sm:$0xff] %v14484_v54  ;;  %5380 = vmatpush2.msra.mxu1 %v8581_v37  ;;  %4905 = vmatprep.mubr.f32.mxu0 %v14467_v3  ;;  %v8499_v18 = vld [vmem:[%s16221_s0 + $0x1e1] sm:$0xff]  ;;  %v3518_v24 = vpop.f32.mrf.mxu0  ;;  %v14501_v1 = vpop.f32.mrf.mxu1  ;;  %v14509_v10 = vld [vmem:[%s16221_s0 + $0x2d1] sm:$0xff] }
 0x3cf   :  { %v8217_v30 = vld [vmem:[%s16221_s0 + $0x121] sm:$0xff]  ;;  %9859 = vmatmul.mubr.f32.gmra.mxu1 %v14475_v11  ;;  %16294 = vst [vmem:[#allocation25_spill] sm:$0xff] %v14509_v10  ;;  %v3943_v37 = vmax.f32 %v3911_v14, 0.0  ;;  %v3848_v49 = vadd.f32 %v13910_v38, %v3809_v8  ;;  %v3744_v11 = vadd.f32 %v14312_v42, %v3518_v24  ;;  %v14523_v14 = vld [vmem:[%s16221_s0 + $0x2d0] sm:$0xff] }
 0x3d0   :  { %v14498_v57 = vld [vmem:[#allocation2 + $0x8] sm:$0xff]  ;;  %v8579_v29 = vld [vmem:[%s16222_s1 + $0x380] sm:$0xff]  ;;  %4906 = vmatmul.mubr.f32.gmra.mxu0 %v14484_v54  ;;  %v3520_v3 = vpop.f32.mrf.mxu0  ;;  %5385 = vmatprep.mubr.f32.mxu1 %v8499_v18  ;;  %v14518_v60 = vpop.f32.mrf.mxu1 }
 0x3d1   :  { %5381 = vmatprep.subr.mxu1 %v14498_v57  ;;  %v8467_v23 = vld [vmem:[%s16221_s0 + $0x1e0] sm:$0xff]  ;;  %v8500_v42 = vld [vmem:[%s16221_s0 + $0x1e9] sm:$0xff]  ;;  %3975 = vst [vmem:[#allocation6 + $0xa8] sm:$0xff] %v3943_v37  ;;  %v3810_v8 = vadd.f32 %v3744_v11, %v13690_v16  ;;  %4910 = vmatprep.mubr.f32.mxu0 %v14509_v10 }
 0x3d2   :  { %5382 = vmatpush2.msra.mxu1 %v8580_v40  ;;  %v3912_v40 = vadd.f32 %v8217_v30, %v3848_v49  ;;  %v14533_v3 = vld [vmem:[%s16221_s0 + $0x2d9] sm:$0xff]  ;;  %v8218_v24 = vld [vmem:[%s16221_s0 + $0x129] sm:$0xff]  ;;  %v3523_v30 = vpop.f32.mrf.mxu0  ;;  %v4344_v37 = vpop.f32.mrf.mxu1 }
 0x3d3   :  { %5383 = vmatprep.subr.mxu1 %v14498_v57  ;;  %v8595_v18 = vld [vmem:[%s16222_s1 + $0x400] sm:$0xff]  ;;  %v3849_v11 = vadd.f32 %v13910_v38, %v3810_v8  ;;  %v8468_v49 = vld [vmem:[%s16221_s0 + $0x1e8] sm:$0xff] }
 0x3d4   :  { %5384 = vmatpush2.msra.mxu1 %v8579_v29  ;;  %v3944_v16 = vmax.f32 %v3912_v40, 0.0  ;;  %v3749_v29 = vadd.f32 %v14376_v35, %v3523_v30  ;;  %4911 = vmatmul.mubr.f32.gmra.mxu0 %v14523_v14  ;;  %v3525_v10 = vpop.f32.mrf.mxu0  ;;  %v14548_v54 = vpop.f32.mrf.mxu1  ;;  %v8501_v35 = vld [vmem:[%s16221_s0 + $0x1f9] sm:$0xff] }
 0x3d5   :  { %5386 = vmatmul.mubr.f32.vlgmr.msra.gmra.mxu1 %v8467_v23  ;;  %4915 = vmatprep.mubr.f32.mxu0 %v14533_v3  ;;  %v3913_v23 = vadd.f32 %v8218_v24, %v3849_v11  ;;  %v14563_v10 = vld [vmem:[%s16221_s0 + $0x2e9] sm:$0xff]  ;;  %v8219_v40 = vld [vmem:[%s16221_s0 + $0x139] sm:$0xff] }
 0x3d6   :  { %5390 = vmatprep.mubr.f32.mxu1 %v8500_v42  ;;  %9891 = vmatprep.subr.mxu0 %v8595_v18  ;;  %3976 = vst [vmem:[#allocation6 + $0xb0] sm:$0xff] %v3944_v16  ;;  %v3811_v42 = vadd.f32 %v3749_v29, %v13717_v28  ;;  %16295 = vst [vmem:[#allocation26_spill] sm:$0xff] %v14563_v10  ;;  %v3528_v8 = vpop.f32.mrf.mxu0  ;;  %v4349_v30 = vpop.f32.mrf.mxu1  ;;  %v14581_v29 = vld [vmem:[%s16221_s0 + $0x2e8] sm:$0xff] }
 0x3d7   :  { %9892 = vmatpush3.msra.mxu0 %v8595_v18  ;;  %v3945_v37 = vmax.f32 %v3913_v23, 0.0  ;;  %v3754_v28 = vadd.f32 %v14354_v46, %v3528_v8  ;;  %v8469_v18 = vld [vmem:[%s16221_s0 + $0x1f8] sm:$0xff]  ;;  %v8502_v46 = vld [vmem:[%s16221_s0 + $0x201] sm:$0xff] }
 0x3d8   :  { %6194 = vmatprep.subr.mxu0 %v14498_v57  ;;  %v3850_v24 = vadd.f32 %v13910_v38, %v3811_v42  ;;  %4916 = vmatmul.mubr.f32.gmra.mxu0 %v14554_v12  ;;  %v3530_v16 = vpop.f32.mrf.mxu0  ;;  %v14575_v11 = vpop.f32.mrf.mxu1  ;;  %v14590_v23 = vld [vmem:[%s16221_s0 + $0x2f1] sm:$0xff]  ;;  %v8220_v42 = vld [vmem:[%s16221_s0 + $0x141] sm:$0xff] }
 0x3d9   :  { %5391 = vmatmul.mubr.f32.gmra.mxu1 %v8468_v49  ;;  %4920 = vmatprep.mubr.f32.mxu0 %v14563_v10  ;;  %3977 = vst [vmem:[#allocation6 + $0xb8] sm:$0xff] %v3945_v37 }
 0x3da   :  { %5395 = vmatprep.mubr.f32.mxu1 %v8501_v35  ;;  %v3914_v49 = vadd.f32 %v8219_v40, %v3850_v24  ;;  %v3812_v35 = vadd.f32 %v3754_v28, %v13741_v55  ;;  %v3533_v8 = vpop.f32.mrf.mxu0  ;;  %v4354_v30 = vpop.f32.mrf.mxu1  ;;  %v8470_v55 = vld [vmem:[%s16221_s0 + $0x200] sm:$0xff]  ;;  %v14607_v28 = vld [vmem:[%s16221_s0 + $0x2f0] sm:$0xff] }
 0x3db   :  { %v3759_v37 = vadd.f32 %v14417_v58, %v3533_v8  ;;  %16296 = vst [vmem:[#allocation27_spill] sm:$0xff] %v14607_v28 }
 0x3dc   :  { %v3946_v16 = vmax.f32 %v3914_v49, 0.0  ;;  %v3851_v10 = vadd.f32 %v13910_v38, %v3812_v35  ;;  %4921 = vmatmul.mubr.f32.gmra.mxu0 %v14581_v29  ;;  %v3535_v40 = vpop.f32.mrf.mxu0  ;;  %v14601_v24 = vpop.f32.mrf.mxu1  ;;  %v8503_v38 = vld [vmem:[%s16221_s0 + $0x211] sm:$0xff] }
 0x3dd   :  { %5396 = vmatmul.mubr.f32.gmra.mxu1 %v8469_v18  ;;  %4925 = vmatprep.mubr.f32.mxu0 %v14590_v23  ;;  %v3813_v18 = vadd.f32 %v3759_v37, %v13766_v41  ;;  %v8221_v49 = vld [vmem:[%s16221_s0 + $0x151] sm:$0xff]  ;;  %v14638_v40 = vld [vmem:[%s16221_s0 + $0x300] sm:$0xff] }
 0x3de   :  { %5400 = vmatprep.mubr.f32.mxu1 %v8502_v46  ;;  %3978 = vst [vmem:[#allocation6 + $0xc0] sm:$0xff] %v3946_v16  ;;  %v3915_v58 = vadd.f32 %v8220_v42, %v3851_v10  ;;  %v14616_v46 = vld [vmem:[%s16221_s0 + $0x301] sm:$0xff]  ;;  %v3538_v35 = vpop.f32.mrf.mxu0  ;;  %v4359_v8 = vpop.f32.mrf.mxu1  ;;  %v14624_v16 = vld [vmem:[%s16225_s4] ss:$0 sm:$0xff]  ;;  %v8471_v42 = vld [vmem:[%s16221_s0 + $0x210] sm:$0xff] }
 0x3df   :  { %16297 = vst [vmem:[#allocation28_spill] sm:$0xff] %v14616_v46  ;;  %v3852_v41 = vadd.f32 %v14624_v16, %v3813_v18  ;;  %v3764_v10 = vadd.f32 %v14395_v45, %v3538_v35  ;;  %v8504_v45 = vld [vmem:[%s16221_s0 + $0x219] sm:$0xff]  ;;  %v14647_v18 = vld [vmem:[%s16221_s0 + $0x309] sm:$0xff] }
 0x3e0   :  { %v3947_v30 = vmax.f32 %v3915_v58, 0.0  ;;  %4926 = vmatmul.mubr.f32.gmra.mxu0 %v14607_v28  ;;  %v3540_v37 = vpop.f32.mrf.mxu0  ;;  %16298 = vst [vmem:[#allocation29_spill] sm:$0xff] %v14647_v18  ;;  %v8222_v35 = vld [vmem:[%s16221_s0 + $0x159] sm:$0xff] }
 0x3e1   :  { %5401 = vmatmul.mubr.f32.gmra.mxu1 %v8470_v55  ;;  %v14632_v55 = vpop.f32.mrf.mxu1  ;;  %4930 = vmatprep.mubr.f32.mxu0 %v14616_v46  ;;  %v3814_v58 = vadd.f32 %v3764_v10, %v13790_v27  ;;  %v8472_v27 = vld [vmem:[%s16221_s0 + $0x218] sm:$0xff]  ;;  %v14664_v10 = vld [vmem:[%s16221_s0 + $0x308] sm:$0xff] }
 0x3e2   :  { %5405 = vmatprep.mubr.f32.mxu1 %v8503_v38  ;;  %3979 = vst [vmem:[#allocation6 + $0xc8] sm:$0xff] %v3947_v30  ;;  %v3916_v38 = vadd.f32 %v8221_v49, %v3852_v41  ;;  %v3543_v8 = vpop.f32.mrf.mxu0 }
 0x3e3   :  { %v4364_v37 = vpop.f32.mrf.mxu1  ;;  %v3853_v28 = vadd.f32 %v14624_v16, %v3814_v58  ;;  %v3769_v30 = vadd.f32 %v14459_v15, %v3543_v8  ;;  %v8505_v15 = vld [vmem:[%s16221_s0 + $0x229] sm:$0xff] }
 0x3e4   :  { %v3948_v46 = vmax.f32 %v3916_v38, 0.0  ;;  %4931 = vmatmul.mubr.f32.gmra.mxu0 %v14638_v40  ;;  %v3545_v49 = vpop.f32.mrf.mxu0  ;;  %v14673_v38 = vld [vmem:[%s16221_s0 + $0x319] sm:$0xff]  ;;  %v8223_v58 = vld [vmem:[%s16221_s0 + $0x169] sm:$0xff] }
 0x3e5   :  { %5406 = vmatmul.mubr.f32.gmra.mxu1 %v8471_v42  ;;  %v14658_v41 = vpop.f32.mrf.mxu1  ;;  %4935 = vmatprep.mubr.f32.mxu0 %v14647_v18  ;;  %v3917_v42 = vadd.f32 %v8222_v35, %v3853_v28  ;;  %16299 = vst [vmem:[#allocation30_spill] sm:$0xff] %v14673_v38 }
 0x3e6   :  { %5410 = vmatprep.mubr.f32.mxu1 %v8504_v45  ;;  %3980 = vst [vmem:[#allocation6 + $0xd0] sm:$0xff] %v3948_v46  ;;  %v3815_v45 = vadd.f32 %v3769_v30, %v13814_v4  ;;  %v3548_v8 = vpop.f32.mrf.mxu0  ;;  %v8473_v4 = vld [vmem:[%s16221_s0 + $0x228] sm:$0xff]  ;;  %v14690_v30 = vld [vmem:[%s16221_s0 + $0x318] sm:$0xff] }
 0x3e7   :  { %v4369_v37 = vpop.f32.mrf.mxu1  ;;  %v3949_v49 = vmax.f32 %v3917_v42, 0.0  ;;  %v3774_v46 = vadd.f32 %v14437_v52, %v3548_v8  ;;  %v8506_v52 = vld [vmem:[%s16221_s0 + $0x231] sm:$0xff]  ;;  %v14699_v42 = vld [vmem:[%s16221_s0 + $0x321] sm:$0xff] }
 0x3e8   :  { %v3854_v18 = vadd.f32 %v14624_v16, %v3815_v45  ;;  %4936 = vmatmul.mubr.f32.gmra.mxu0 %v14664_v10  ;;  %v3550_v28 = vpop.f32.mrf.mxu0  ;;  %v8224_v45 = vld [vmem:[%s16221_s0 + $0x171] sm:$0xff] }
 0x3e9   :  { %5411 = vmatmul.mubr.f32.gmra.mxu1 %v8472_v27  ;;  %v14684_v35 = vpop.f32.mrf.mxu1  ;;  %4940 = vmatprep.mubr.f32.mxu0 %v14673_v38  ;;  %3981 = vst [vmem:[#allocation6 + $0xd8] sm:$0xff] %v3949_v49 }
 0x3ea   :  { %5415 = vmatprep.mubr.f32.mxu1 %v8505_v15  ;;  %v3918_v27 = vadd.f32 %v8223_v58, %v3854_v18  ;;  %v3816_v15 = vadd.f32 %v3774_v46, %v13838_v51  ;;  %v3553_v8 = vpop.f32.mrf.mxu0  ;;  %v14713_v58 = vld [vmem:[%s16221_s0 + $0x320] sm:$0xff] }
 0x3eb   :  { %v4374_v37 = vpop.f32.mrf.mxu1  ;;  %v3779_v49 = vadd.f32 %v14501_v1, %v3553_v8  ;;  %v8531_v1 = vld [vmem:[%s16221_s0 + $0x1e2] sm:$0xff] }
 0x3ec   :  { %v3950_v28 = vmax.f32 %v3918_v27, 0.0  ;;  %v3855_v38 = vadd.f32 %v14624_v16, %v3816_v15  ;;  %4941 = vmatmul.mubr.f32.gmra.mxu0 %v14690_v30  ;;  %v3555_v51 = vpop.f32.mrf.mxu0  ;;  %v10194_v27 = vld [vmem:[%s16221_s0 + $0x230] sm:$0xff] }
 0x3ed   :  { %5416 = vmatmul.mubr.f32.gmra.mxu1 %v8473_v4  ;;  %v14707_v18 = vpop.f32.mrf.mxu1  ;;  %4945 = vmatprep.mubr.f32.mxu0 %v14699_v42  ;;  %v3817_v4 = vadd.f32 %v3779_v49, %v13862_v21  ;;  %v8532_v49 = vld [vmem:[%s16221_s0 + $0x1ea] sm:$0xff] }
 0x3ee   :  { %5420 = vmatprep.mubr.f32.mxu1 %v8506_v52  ;;  %3982 = vst [vmem:[#allocation6 + $0xe0] sm:$0xff] %v3950_v28  ;;  %v3919_v46 = vadd.f32 %v8224_v45, %v3855_v38  ;;  %v8225_v52 = vld [vmem:[%s16221_s0 + $0x181] sm:$0xff]  ;;  %v3558_v15 = vpop.f32.mrf.mxu0 }
 0x3ef   :  { %v4379_v8 = vpop.f32.mrf.mxu1  ;;  %v3856_v38 = vadd.f32 %v14624_v16, %v3817_v4  ;;  %v3784_v21 = vadd.f32 %v14479_v7, %v3558_v15  ;;  %v8533_v7 = vld [vmem:[%s16221_s0 + $0x1fa] sm:$0xff] }
 0x3f0   :  { %v3951_v37 = vmax.f32 %v3919_v46, 0.0  ;;  %4946 = vmatmul.mubr.f32.gmra.mxu0 %v14713_v58  ;;  %v3560_v45 = vpop.f32.mrf.mxu0 }
 0x3f1   :  { %5421 = vmatmul.mubr.f32.gmra.mxu1 %v10194_v27  ;;  %v14729_v28 = vpop.f32.mrf.mxu1  ;;  %9893 = vmatprep.mubr.f32.mxu0 %v8531_v1  ;;  %v3920_v51 = vadd.f32 %v8225_v52, %v3856_v38  ;;  %v3818_v46 = vadd.f32 %v3784_v21, %v13891_v19 }
 0x3f2   :  { %5425 = vmatprep.mubr.f32.mxu1 %v14007_v0  ;;  %3983 = vst [vmem:[#allocation6 + $0xe8] sm:$0xff] %v3951_v37  ;;  %v8226_v0 = vld [vmem:[%s16221_s0 + $0x189] sm:$0xff]  ;;  %v9735_v4 = vpop.f32.mrf.mxu0 }
 0x3f3   :  { %v4384_v1 = vpop.f32.mrf.mxu1  ;;  %v3952_v27 = vmax.f32 %v3920_v51, 0.0  ;;  %v3857_v15 = vadd.f32 %v14624_v16, %v3818_v46  ;;  %v14744_v8 = vadd.f32 %v9735_v4, %v14548_v54  ;;  %v8534_v37 = vld [vmem:[%s16221_s0 + $0x202] sm:$0xff]  ;;  %v8535_v54 = vld [vmem:[%s16221_s0 + $0x212] sm:$0xff] }
 0x3f4   :  { %9894 = vmatmul.mubr.f32.vlgmr.msra.gmra.mxu0 %v8532_v49  ;;  %v4567_v19 = vpop.f32.mrf.mxu0 }
 0x3f5   :  { %5426 = vmatmul.mubr.f32.gmra.mxu1 %v14023_v47  ;;  %v4387_v52 = vpop.f32.mrf.mxu1  ;;  %9896 = vmatprep.mubr.f32.mxu0 %v8533_v7  ;;  %3984 = vst [vmem:[#allocation6 + $0xf0] sm:$0xff] %v3952_v27  ;;  %v3921_v47 = vadd.f32 %v8226_v0, %v3857_v15  ;;  %v14751_v38 = vadd.f32 %v4567_v19, %v14518_v60  ;;  %v8536_v60 = vld [vmem:[%s16221_s0 + $0x21a] sm:$0xff] }
 0x3f6   :  { %5430 = vmatprep.mubr.f32.mxu1 %v14041_v43  ;;  %v9738_v16 = vpop.f32.mrf.mxu0 }
 0x3f7   :  { %v4389_v43 = vpop.f32.mrf.mxu1  ;;  %v3953_v21 = vmax.f32 %v3921_v47, 0.0  ;;  %v14758_v45 = vadd.f32 %v9738_v16, %v14601_v24  ;;  %v6160_v16 = vld [vmem:[#allocation3 + $0x1f0] sm:$0xff] }
 0x3f8   :  { %9897 = vmatmul.mubr.f32.gmra.mxu0 %v8534_v37  ;;  %v4577_v49 = vpop.f32.mrf.mxu0 }
 0x3f9   :  { %5431 = vmatmul.mubr.f32.gmra.mxu1 %v14072_v13  ;;  %v4392_v51 = vpop.f32.mrf.mxu1  ;;  %9899 = vmatprep.mubr.f32.mxu0 %v8535_v54  ;;  %3985 = vst [vmem:[#allocation6 + $0xf8] sm:$0xff] %v3953_v21  ;;  %v14765_v46 = vadd.f32 %v4577_v49, %v14575_v11  ;;  %v8537_v13 = vld [vmem:[%s16221_s0 + $0x22a] sm:$0xff]  ;;  %v8538_v11 = vld [vmem:[%s16221_s0 + $0x232] sm:$0xff] }
 0x3fa   :  { %5435 = vmatprep.mubr.f32.mxu1 %v14092_v9  ;;  %v9741_v24 = vpop.f32.mrf.mxu0 }
 0x3fb   :  { %v4394_v7 = vpop.f32.mrf.mxu1  ;;  %v14772_v9 = vadd.f32 %v9741_v24, %v14658_v41 }
 0x3fc   :  { %9900 = vmatmul.mubr.f32.gmra.mxu0 %v8536_v60  ;;  %v4587_v0 = vpop.f32.mrf.mxu0 }
 0x3fd   :  { %5436 = vmatmul.mubr.f32.gmra.mxu1 %v14114_v32  ;;  %v4397_v4 = vpop.f32.mrf.mxu1  ;;  %9902 = vmatprep.mubr.f32.mxu0 %v8537_v13  ;;  %v14779_v1 = vadd.f32 %v4587_v0, %v14632_v55 }
 0x3fe   :  { %5440 = vmatprep.mubr.f32.mxu1 %v14138_v63  ;;  %v9744_v32 = vpop.f32.mrf.mxu0 }
 0x3ff   :  { %v4399_v27 = vpop.f32.mrf.mxu1  ;;  %v14783_v41 = vadd.f32 %v9744_v32, %v14707_v18 }
 0x400   :  { %9903 = vmatmul.mubr.f32.gmra.mxu0 %v8538_v11  ;;  %v4597_v63 = vpop.f32.mrf.mxu0  ;;  %v16302_v11 = vld [vmem:[#allocation11_spill] sm:$0xff] }
 0x401   :  { %5441 = vmatmul.mubr.f32.gmra.mxu1 %v14157_v5  ;;  %v4402_v15 = vpop.f32.mrf.mxu1  ;;  %9905 = vmatprep.mubr.f32.mxu0 %v14081_v48  ;;  %v14788_v19 = vadd.f32 %v4597_v63, %v14684_v35  ;;  %v6156_v27 = vld [vmem:[#allocation3 + $0x1d0] sm:$0xff]  ;;  %v16303_v63 = vld [vmem:[#allocation9_spill] sm:$0xff] }
 0x402   :  { %5445 = vmatprep.mubr.f32.mxu1 %v14178_v53  ;;  %v9747_v55 = vpop.f32.mrf.mxu0 }
 0x403   :  { %v4404_v37 = vpop.f32.mrf.mxu1  ;;  %v14791_v5 = vadd.f32 %v9747_v55, %v4387_v52 }
 0x404   :  { %9906 = vmatmul.mubr.f32.gmra.mxu0 %v14103_v62  ;;  %v4607_v18 = vpop.f32.mrf.mxu0 }
 0x405   :  { %5446 = vmatmul.mubr.f32.gmra.mxu1 %v14195_v36  ;;  %v4407_v47 = vpop.f32.mrf.mxu1  ;;  %9908 = vmatprep.mubr.f32.mxu0 %v14125_v6  ;;  %v14797_v53 = vadd.f32 %v4607_v18, %v14729_v28  ;;  %v6193_v36 = vld [vmem:[#allocation3 + $0x2f8] sm:$0xff]  ;;  %v16305_v18 = vld [vmem:[#allocation14_spill] sm:$0xff] }
 0x406   :  { %5450 = vmatprep.mubr.f32.mxu1 %v14222_v39  ;;  %v9750_v48 = vpop.f32.mrf.mxu0  ;;  %9941 = vmatprep.subr.mxu1 %v6193_v36  ;;  %v6161_v28 = vld [vmem:[#allocation3 + $0x1f8] sm:$0xff] }
 0x407   :  { %v4409_v35 = vpop.f32.mrf.mxu1  ;;  %v14800_v54 = vadd.f32 %v9750_v48, %v4397_v4  ;;  %9942 = vmatpush3.msra.mxu1 %v6193_v36  ;;  %6195 = vmatpush1.msra.mxu0 %v6161_v28  ;;  %v16306_v48 = vld [vmem:[#allocation20_spill] sm:$0xff]  ;;  %v6154_v28 = vld [vmem:[#allocation3 + $0x1c0] sm:$0xff] }
 0x408   :  { %9909 = vmatmul.mubr.f32.gmra.mxu0 %v14146_v61  ;;  %v4617_v62 = vpop.f32.mrf.mxu0  ;;  %6196 = vmatprep.subr.mxu0 %v14498_v57 }
 0x409   :  { %5451 = vmatmul.mubr.f32.gmra.mxu1 %v14239_v2  ;;  %v4412_v39 = vpop.f32.mrf.mxu1  ;;  %9911 = vmatprep.mubr.f32.mxu0 %v14167_v20  ;;  %v14805_v6 = vadd.f32 %v4617_v62, %v4392_v51  ;;  %v6192_v51 = vld [vmem:[#allocation3 + $0x2f0] sm:$0xff]  ;;  %v16307_v62 = vld [vmem:[#allocation22_spill] sm:$0xff] }
 0x40a   :  { %5455 = vmatprep.mubr.f32.mxu1 %v14262_v44  ;;  %v9753_v2 = vpop.f32.mrf.mxu0  ;;  %6197 = vmatpush1.msra.mxu0 %v6160_v16  ;;  %v16309_v16 = vld [vmem:[#allocation10_spill] sm:$0xff] }
 0x40b   :  { %v4414_v52 = vpop.f32.mrf.mxu1  ;;  %v14808_v43 = vadd.f32 %v9753_v2, %v4407_v47  ;;  %6198 = vmatprep.subr.mxu0 %v14498_v57  ;;  %9943 = vmatprep.subr.mxu1 %v6192_v51  ;;  %v6155_v47 = vld [vmem:[#allocation3 + $0x1c8] sm:$0xff] }
 0x40c   :  { %9912 = vmatmul.mubr.f32.gmra.mxu0 %v14187_v33  ;;  %v4627_v61 = vpop.f32.mrf.mxu0  ;;  %9944 = vmatpush3.msra.mxu1 %v6192_v51  ;;  %v6190_v51 = vld [vmem:[#allocation3 + $0x2e0] sm:$0xff] }
 0x40d   :  { %5456 = vmatmul.mubr.f32.gmra.mxu1 %v14278_v17  ;;  %v4417_v44 = vpop.f32.mrf.mxu1  ;;  %9914 = vmatprep.mubr.f32.mxu0 %v14209_v25  ;;  %v14814_v20 = vadd.f32 %v4627_v61, %v4402_v15  ;;  %v6159_v17 = vld [vmem:[#allocation3 + $0x1e8] sm:$0xff]  ;;  %v6158_v25 = vld [vmem:[#allocation3 + $0x1e0] sm:$0xff] }
 0x40e   :  { %5460 = vmatprep.mubr.f32.mxu1 %v14301_v59  ;;  %v9756_v21 = vpop.f32.mrf.mxu0  ;;  %6199 = vmatpush1.msra.mxu0 %v6159_v17  ;;  %v16304_v15 = vld [vmem:[#allocation17_spill] sm:$0xff] }
 0x40f   :  { %v4419_v49 = vpop.f32.mrf.mxu1  ;;  %v14818_v33 = vadd.f32 %v9756_v21, %v4417_v44  ;;  %6200 = vmatprep.subr.mxu0 %v14498_v57  ;;  %v16310_v44 = vld [vmem:[#allocation24_spill] sm:$0xff] }
 0x410   :  { %9915 = vmatmul.mubr.f32.gmra.mxu0 %v14230_v26  ;;  %v4637_v59 = vpop.f32.mrf.mxu0  ;;  %v16300_v26 = vld [vmem:[#allocation16_spill] sm:$0xff] }
 0x411   :  { %5461 = vmatmul.mubr.f32.gmra.mxu1 %v14317_v56  ;;  %v14822_v60 = vpop.f32.mrf.mxu1  ;;  %9917 = vmatprep.mubr.f32.mxu0 %v14249_v50  ;;  %v14825_v13 = vadd.f32 %v4637_v59, %v4412_v39  ;;  %v16301_v50 = vld [vmem:[#allocation12_spill] sm:$0xff]  ;;  %v16308_v39 = vld [vmem:[#allocation13_spill] sm:$0xff]  ;;  %v16312_v59 = vld [vmem:[#allocation15_spill] sm:$0xff] }
 0x412   :  { %5465 = vmatprep.mubr.f32.mxu1 %v14342_v34  ;;  %v9759_v56 = vpop.f32.mrf.mxu0  ;;  %6201 = vmatpush1.msra.mxu0 %v6158_v25  ;;  %v6157_v34 = vld [vmem:[#allocation3 + $0x1d8] sm:$0xff]  ;;  %v16311_v25 = vld [vmem:[#allocation25_spill] sm:$0xff] }
 0x413   :  { %v4424_v24 = vpop.f32.mrf.mxu1  ;;  %6202 = vmatprep.subr.mxu0 %v14498_v57  ;;  %v6153_v49 = vld [vmem:[#allocation3 + $0x1b8] sm:$0xff] }
 0x414   :  { %9918 = vmatmul.mubr.f32.gmra.mxu0 %v14269_v31  ;;  %v14831_v7 = vpop.f32.mrf.mxu0  ;;  %v6191_v31 = vld [vmem:[#allocation3 + $0x2e8] sm:$0xff] }
 0x415   :  { %5466 = vmatmul.mubr.f32.gmra.mxu1 %v14359_v22  ;;  %v4427_v0 = vpop.f32.mrf.mxu1  ;;  %9920 = vmatprep.mubr.f32.mxu0 %v16301_v50 }
 0x416   :  { %5470 = vmatprep.mubr.f32.mxu1 %v16300_v26  ;;  %v14834_v4 = vadd.f32 %v9759_v56, %v4427_v0  ;;  %v9762_v22 = vpop.f32.mrf.mxu0  ;;  %6203 = vmatpush1.msra.mxu0 %v6157_v34  ;;  %v16313_v26 = vld [vmem:[#allocation18_spill] sm:$0xff]  ;;  %v6152_v34 = vld [vmem:[#allocation3 + $0x1b0] sm:$0xff] }
 0x417   :  { %v4429_v32 = vpop.f32.mrf.mxu1  ;;  %6204 = vmatprep.subr.mxu0 %v14498_v57  ;;  %9945 = vmatprep.subr.mxu1 %v6191_v31 }
 0x418   :  { %9921 = vmatmul.mubr.f32.gmra.mxu0 %v16303_v63  ;;  %v14840_v55 = vpop.f32.mrf.mxu0  ;;  %9946 = vmatpush3.msra.mxu1 %v6191_v31  ;;  %v16315_v31 = vld [vmem:[#allocation21_spill] sm:$0xff] }
 0x419   :  { %5471 = vmatmul.mubr.f32.gmra.mxu1 %v16302_v11  ;;  %v14842_v37 = vpop.f32.mrf.mxu1  ;;  %9923 = vmatprep.mubr.f32.mxu0 %v16305_v18  ;;  %v16314_v11 = vld [vmem:[#allocation19_spill] sm:$0xff]  ;;  %v6150_v18 = vld [vmem:[#allocation3 + $0x1a0] sm:$0xff] }
 0x41a   :  { %5475 = vmatprep.mubr.f32.mxu1 %v16304_v15  ;;  %6205 = vmatpush1.msra.mxu0 %v6156_v27  ;;  %v9765_v35 = vpop.f32.mrf.mxu0 }
 0x41b   :  { %v4434_v36 = vpop.f32.mrf.mxu1  ;;  %6206 = vmatprep.subr.mxu0 %v14498_v57  ;;  %9947 = vmatprep.subr.mxu1 %v6190_v51 }
 0x41c   :  { %9924 = vmatmul.mubr.f32.gmra.mxu0 %v16308_v39  ;;  %v14850_v2 = vpop.f32.mrf.mxu0  ;;  %9948 = vmatpush3.msra.mxu1 %v6190_v51  ;;  %v16317_v36 = vld [vmem:[#allocation23_spill] sm:$0xff]  ;;  %v8560_v39 = vld [vmem:[%s16221_s0 + $0x33a] sm:$0xff] }
 0x41d   :  { %5476 = vmatmul.mubr.f32.gmra.mxu1 %v16306_v48  ;;  %v4437_v52 = vpop.f32.mrf.mxu1  ;;  %9926 = vmatprep.mubr.f32.mxu0 %v16309_v16  ;;  %v16316_v48 = vld [vmem:[#allocation26_spill] sm:$0xff]  ;;  %v8562_v51 = vld [vmem:[%s16221_s0 + $0x352] sm:$0xff] }
 0x41e   :  { %5480 = vmatprep.mubr.f32.mxu1 %v16307_v62  ;;  %6207 = vmatpush1.msra.mxu0 %v6155_v47  ;;  %v14853_v61 = vadd.f32 %v9762_v22, %v4437_v52  ;;  %v9768_v17 = vpop.f32.mrf.mxu0  ;;  %v6151_v22 = vld [vmem:[#allocation3 + $0x1a8] sm:$0xff]  ;;  %v6189_v47 = vld [vmem:[#allocation3 + $0x2d8] sm:$0xff] }
 0x41f   :  { %6208 = vmatprep.subr.mxu0 %v14498_v57  ;;  %v4439_v21 = vpop.f32.mrf.mxu1  ;;  %9949 = vmatprep.subr.mxu1 %v6189_v47 }
 0x420   :  { %6209 = vmatpush1.msra.mxu0 %v6154_v28  ;;  %v14859_v56 = vpop.f32.mrf.mxu0  ;;  %v6149_v28 = vld [vmem:[#allocation3 + $0x198] sm:$0xff]  ;;  %9950 = vmatpush3.msra.mxu1 %v6189_v47 }
 0x421   :  { %5481 = vmatmul.mubr.f32.gmra.mxu1 %v16310_v44  ;;  %9927 = vmatmul.mubr.f32.gmra.mxu0 %v16312_v59  ;;  %v14861_v24 = vpop.f32.mrf.mxu1  ;;  %v6148_v44 = vld [vmem:[#allocation3 + $0x190] sm:$0xff] }
 0x422   :  { %5485 = vmatprep.mubr.f32.mxu1 %v16311_v25  ;;  %9929 = vmatprep.mubr.f32.mxu0 %v16313_v26  ;;  %v14866_v0 = vpop.f32.mrf.mxu0  ;;  %v6147_v26 = vld [vmem:[#allocation3 + $0x188] sm:$0xff] }
 0x423   :  { %6210 = vmatprep.subr.mxu0 %v14498_v57  ;;  %v4444_v50 = vpop.f32.mrf.mxu1 }
 0x424   :  { %6211 = vmatpush1.msra.mxu0 %v6153_v49  ;;  %v14871_v32 = vpop.f32.mrf.mxu0  ;;  %v16319_v50 = vld [vmem:[#allocation28_spill] sm:$0xff] }
 0x425   :  { %5486 = vmatmul.mubr.f32.gmra.mxu1 %v14523_v14  ;;  %6212 = vmatprep.subr.mxu0 %v14498_v57  ;;  %v4447_v27 = vpop.f32.mrf.mxu1  ;;  %v8559_v14 = vld [vmem:[%s16221_s0 + $0x332] sm:$0xff] }
 0x426   :  { %5490 = vmatprep.mubr.f32.mxu1 %v14533_v3  ;;  %9930 = vmatmul.mubr.f32.gmra.mxu0 %v16314_v11  ;;  %v14874_v63 = vadd.f32 %v9765_v35, %v4447_v27  ;;  %v14881_v3 = vpop.f32.mrf.mxu0 }
 0x427   :  { %9932 = vmatprep.mubr.f32.mxu0 %v16315_v31  ;;  %6213 = vmatpush1.msra.mxu0 %v6152_v34  ;;  %v4449_v15 = vpop.f32.mrf.mxu1  ;;  %v6188_v34 = vld [vmem:[#allocation3 + $0x2d0] sm:$0xff] }
 0x428   :  { %6214 = vmatprep.subr.mxu0 %v14498_v57  ;;  %v14885_v35 = vpop.f32.mrf.mxu0  ;;  %9951 = vmatprep.subr.mxu1 %v6188_v34 }
 0x429   :  { %5491 = vmatmul.mubr.f32.gmra.mxu1 %v14554_v12  ;;  %6215 = vmatpush1.msra.mxu0 %v6151_v22  ;;  %v14887_v62 = vpop.f32.mrf.mxu1  ;;  %v8561_v12 = vld [vmem:[%s16221_s0 + $0x34a] sm:$0xff] }
 0x42a   :  { %5495 = vmatprep.mubr.f32.mxu1 %v16316_v48  ;;  %9933 = vmatmul.mubr.f32.gmra.mxu0 %v16317_v36  ;;  %v14897_v52 = vpop.f32.mrf.mxu0  ;;  %v6176_v36 = vld [vmem:[#allocation3 + $0x270] sm:$0xff] }
 0x42b   :  { %9935 = vmatprep.mubr.f32.mxu0 %v8559_v14  ;;  %6216 = vmatprep.subr.mxu0 %v14498_v57  ;;  %v4454_v16 = vpop.f32.mrf.mxu1  ;;  %v6177_v14 = vld [vmem:[#allocation3 + $0x278] sm:$0xff] }
 0x42c   :  { %6217 = vmatpush1.msra.mxu0 %v6150_v18  ;;  %v14901_v21 = vpop.f32.mrf.mxu0  ;;  %9952 = vmatpush3.msra.mxu1 %v6188_v34  ;;  %v16320_v18 = vld [vmem:[#allocation29_spill] sm:$0xff] }
 0x42d   :  { %5496 = vmatmul.mubr.f32.gmra.mxu1 %v14581_v29  ;;  %6218 = vmatprep.subr.mxu0 %v14498_v57  ;;  %v4457_v49 = vpop.f32.mrf.mxu1  ;;  %v16318_v29 = vld [vmem:[#allocation27_spill] sm:$0xff] }
 0x42e   :  { %5500 = vmatprep.mubr.f32.mxu1 %v14590_v23  ;;  %9936 = vmatmul.mubr.f32.gmra.mxu0 %v8560_v39  ;;  %v14906_v25 = vadd.f32 %v9768_v17, %v4457_v49  ;;  %v14910_v59 = vpop.f32.mrf.mxu0  ;;  %v6146_v17 = vld [vmem:[#allocation3 + $0x180] sm:$0xff] }
 0x42f   :  { %9938 = vmatprep.mubr.f32.mxu0 %v8561_v12  ;;  %6219 = vmatpush1.msra.mxu0 %v6149_v28  ;;  %v4459_v23 = vpop.f32.mrf.mxu1 }
 0x430   :  { %6220 = vmatprep.subr.mxu0 %v14498_v57  ;;  %v14913_v11 = vpop.f32.mrf.mxu0 }
 0x431   :  { %5501 = vmatmul.mubr.f32.gmra.mxu1 %v16318_v29  ;;  %6221 = vmatpush1.msra.mxu0 %v6148_v44  ;;  %v14915_v22 = vpop.f32.mrf.mxu1  ;;  %v16321_v44 = vld [vmem:[#allocation30_spill] sm:$0xff] }
 0x432   :  { %5505 = vmatprep.mubr.f32.mxu1 %v16319_v50  ;;  %9939 = vmatmul.mubr.f32.gmra.mxu0 %v8562_v51  ;;  %v4792_v27 = vpop.f32.mrf.mxu0 }
 0x433   :  { %6222 = vmatprep.subr.mxu0 %v14498_v57  ;;  %v4464_v31 = vpop.f32.mrf.mxu1  ;;  %v14921_v15 = vadd.f32 %v4792_v27, %v14751_v38  ;;  %v6175_v38 = vld [vmem:[#allocation3 + $0x268] sm:$0xff] }
 0x434   :  { %6223 = vmatpush1.msra.mxu0 %v6147_v26  ;;  %v4794_v47 = vpop.f32.mrf.mxu0 }
 0x435   :  { %5506 = vmatmul.mubr.f32.gmra.mxu1 %v14638_v40  ;;  %6224 = vmatprep.subr.mxu0 %v14498_v57  ;;  %v4467_v48 = vpop.f32.mrf.mxu1  ;;  %v6187_v40 = vld [vmem:[#allocation3 + $0x2c8] sm:$0xff]  ;;  %v8495_v47 = vld [vmem:[%s16221_s0 + $0x330] sm:$0xff] }
 0x436   :  { %5510 = vmatprep.mubr.f32.mxu1 %v16320_v18  ;;  %6225 = vmatpush1.msra.mxu0 %v6146_v17  ;;  %v14926_v39 = vadd.f32 %v14866_v0, %v4467_v48  ;;  %v4797_v12 = vpop.f32.mrf.mxu0  ;;  %v6174_v0 = vld [vmem:[#allocation3 + $0x260] sm:$0xff]  ;;  %v8527_v17 = vld [vmem:[%s16221_s0 + $0x331] sm:$0xff] }
 0x437   :  { %6226 = vmatprep.subr.mxu0 %v14498_v57  ;;  %v4469_v28 = vpop.f32.mrf.mxu1  ;;  %v14931_v16 = vadd.f32 %v4797_v12, %v14744_v8  ;;  %9953 = vmatprep.subr.mxu1 %v6187_v40  ;;  %v6173_v8 = vld [vmem:[#allocation3 + $0x258] sm:$0xff] }
 0x438   :  { %6227 = vmatpush2.msra.mxu0 %v6177_v14  ;;  %v4799_v49 = vpop.f32.mrf.mxu0  ;;  %9954 = vmatpush3.msra.mxu1 %v6187_v40  ;;  %v6171_v14 = vld [vmem:[#allocation3 + $0x248] sm:$0xff]  ;;  %v6169_v28 = vld [vmem:[#allocation3 + $0x238] sm:$0xff] }
 0x439   :  { %5511 = vmatmul.mubr.f32.gmra.mxu1 %v14664_v10  ;;  %6228 = vmatprep.subr.mxu0 %v14498_v57  ;;  %v14934_v51 = vpop.f32.mrf.mxu1  ;;  %v6186_v10 = vld [vmem:[#allocation3 + $0x2c0] sm:$0xff] }
 0x43a   :  { %5515 = vmatprep.mubr.f32.mxu1 %v16321_v44  ;;  %6229 = vmatpush2.msra.mxu0 %v6176_v36  ;;  %v4802_v29 = vpop.f32.mrf.mxu0  ;;  %v6170_v36 = vld [vmem:[#allocation3 + $0x240] sm:$0xff]  ;;  %v8496_v44 = vld [vmem:[%s16221_s0 + $0x338] sm:$0xff] }
 0x43b   :  { %6230 = vmatprep.subr.mxu0 %v14498_v57  ;;  %v4474_v23 = vpop.f32.mrf.mxu1  ;;  %v14940_v26 = vadd.f32 %v4802_v29, %v14765_v46  ;;  %9955 = vmatprep.subr.mxu1 %v6186_v10  ;;  %v6185_v46 = vld [vmem:[#allocation3 + $0x2b8] sm:$0xff]  ;;  %v6168_v29 = vld [vmem:[#allocation3 + $0x230] sm:$0xff] }
 0x43c   :  { %6231 = vmatpush2.msra.mxu0 %v6175_v38  ;;  %v4804_v34 = vpop.f32.mrf.mxu0  ;;  %9956 = vmatpush3.msra.mxu1 %v6186_v10  ;;  %v8529_v10 = vld [vmem:[%s16221_s0 + $0x349] sm:$0xff] }
 0x43d   :  { %5516 = vmatmul.mubr.f32.gmra.mxu1 %v14690_v30  ;;  %6232 = vmatprep.subr.mxu0 %v14498_v57  ;;  %v4477_v50 = vpop.f32.mrf.mxu1  ;;  %v6172_v30 = vld [vmem:[#allocation3 + $0x250] sm:$0xff] }
 0x43e   :  { %5520 = vmatprep.mubr.f32.mxu1 %v14699_v42  ;;  %6233 = vmatpush2.msra.mxu0 %v6174_v0  ;;  %v14948_v27 = vadd.f32 %v14881_v3, %v4477_v50  ;;  %v4807_v42 = vpop.f32.mrf.mxu0  ;;  %v6167_v50 = vld [vmem:[#allocation3 + $0x228] sm:$0xff] }
 0x43f   :  { %6234 = vmatprep.subr.mxu0 %v14498_v57  ;;  %v4479_v31 = vpop.f32.mrf.mxu1  ;;  %v14953_v18 = vadd.f32 %v4807_v42, %v14758_v45  ;;  %9957 = vmatprep.subr.mxu1 %v6185_v46  ;;  %v6184_v45 = vld [vmem:[#allocation3 + $0x2b0] sm:$0xff] }
 0x440   :  { %6235 = vmatpush2.msra.mxu0 %v6173_v8  ;;  %v4809_v3 = vpop.f32.mrf.mxu0  ;;  %9958 = vmatpush3.msra.mxu1 %v6185_v46  ;;  %v8530_v42 = vld [vmem:[%s16221_s0 + $0x351] sm:$0xff]  ;;  %v6182_v31 = vld [vmem:[#allocation3 + $0x2a0] sm:$0xff] }
 0x441   :  { %5521 = vmatmul.mubr.f32.gmra.mxu1 %v14713_v58  ;;  %6236 = vmatprep.subr.mxu0 %v14498_v57  ;;  %v14958_v48 = vpop.f32.mrf.mxu1  ;;  %v8528_v58 = vld [vmem:[%s16221_s0 + $0x339] sm:$0xff] }
 0x442   :  { %5525 = vmatprep.mubr.f32.mxu1 %v8527_v17  ;;  %6237 = vmatpush2.msra.mxu0 %v6172_v30  ;;  %v4812_v40 = vpop.f32.mrf.mxu0  ;;  %v8497_v30 = vld [vmem:[%s16221_s0 + $0x348] sm:$0xff]  ;;  %v6181_v3 = vld [vmem:[#allocation3 + $0x298] sm:$0xff] }
 0x443   :  { %6238 = vmatprep.subr.mxu0 %v14498_v57  ;;  %v4484_v12 = vpop.f32.mrf.mxu1  ;;  %v14966_v38 = vadd.f32 %v4812_v40, %v14779_v1  ;;  %9959 = vmatprep.subr.mxu1 %v6184_v45  ;;  %v6183_v1 = vld [vmem:[#allocation3 + $0x2a8] sm:$0xff] }
 0x444   :  { %6239 = vmatpush2.msra.mxu0 %v6171_v14  ;;  %v4814_v49 = vpop.f32.mrf.mxu0  ;;  %9960 = vmatpush3.msra.mxu1 %v6184_v45  ;;  %v6165_v45 = vld [vmem:[#allocation3 + $0x218] sm:$0xff] }
 0x445   :  { %5526 = vmatmul.mubr.f32.gmra.mxu1 %v8495_v47  ;;  %6240 = vmatprep.subr.mxu0 %v14498_v57  ;;  %v4487_v0 = vpop.f32.mrf.mxu1 }
 0x446   :  { %5530 = vmatprep.mubr.f32.mxu1 %v8528_v58  ;;  %6241 = vmatpush2.msra.mxu0 %v6170_v36  ;;  %v14976_v23 = vadd.f32 %v14897_v52, %v4487_v0  ;;  %v4817_v8 = vpop.f32.mrf.mxu0  ;;  %v8498_v36 = vld [vmem:[%s16221_s0 + $0x350] sm:$0xff] }
 0x447   :  { %6242 = vmatprep.subr.mxu0 %v14498_v57  ;;  %v4489_v34 = vpop.f32.mrf.mxu1  ;;  %v14980_v17 = vadd.f32 %v4817_v8, %v14772_v9  ;;  %9961 = vmatprep.subr.mxu1 %v6183_v1  ;;  %v6166_v9 = vld [vmem:[#allocation3 + $0x220] sm:$0xff] }
 0x448   :  { %6243 = vmatpush2.msra.mxu0 %v6169_v28  ;;  %v4819_v52 = vpop.f32.mrf.mxu0  ;;  %9962 = vmatpush3.msra.mxu1 %v6183_v1  ;;  %v6163_v1 = vld [vmem:[#allocation3 + $0x208] sm:$0xff] }
 0x449   :  { %5531 = vmatmul.mubr.f32.gmra.mxu1 %v8496_v44  ;;  %6244 = vmatprep.subr.mxu0 %v14498_v57  ;;  %v14985_v46 = vpop.f32.mrf.mxu1  ;;  %v15001_v44 = vld [vmem:[#allocation2 + $0x8] sm:$0xff] }
 0x44a   :  { %5535 = vmatprep.mubr.f32.mxu1 %v8529_v10  ;;  %6245 = vmatpush2.msra.mxu0 %v6168_v29  ;;  %v4822_v14 = vpop.f32.mrf.mxu0  ;;  %v6179_v29 = vld [vmem:[#allocation3 + $0x288] sm:$0xff] }
 0x44b   :  { %6246 = vmatprep.subr.mxu0 %v14498_v57  ;;  %v4494_v47 = vpop.f32.mrf.mxu1  ;;  %v14993_v58 = vadd.f32 %v4822_v14, %v14788_v19  ;;  %9963 = vmatprep.subr.mxu1 %v6182_v31  ;;  %v6164_v19 = vld [vmem:[#allocation3 + $0x210] sm:$0xff] }
 0x44c   :  { %6247 = vmatpush2.msra.mxu0 %v6167_v50  ;;  %v4824_v40 = vpop.f32.mrf.mxu0  ;;  %9964 = vmatpush3.msra.mxu1 %v6182_v31  ;;  %v6178_v50 = vld [vmem:[#allocation3 + $0x280] sm:$0xff] }
 0x44d   :  { %5536 = vmatmul.mubr.f32.gmra.mxu1 %v8497_v30  ;;  %6248 = vmatprep.subr.mxu0 %v14498_v57  ;;  %v4497_v12 = vpop.f32.mrf.mxu1  ;;  %v6180_v57 = vld [vmem:[#allocation3 + $0x290] sm:$0xff]  ;;  %v6162_v30 = vld [vmem:[#allocation3 + $0x200] sm:$0xff] }
 0x44e   :  { %5540 = vmatprep.mubr.f32.mxu1 %v8530_v42  ;;  %6249 = vmatpush2.msra.mxu0 %v6166_v9  ;;  %v14999_v28 = vadd.f32 %v14910_v59, %v4497_v12  ;;  %v4827_v49 = vpop.f32.mrf.mxu0 }
 0x44f   :  { %6250 = vmatprep.subr.mxu0 %v15001_v44  ;;  %9965 = vmatprep.subr.mxu1 %v6181_v3  ;;  %v4499_v0 = vpop.f32.mrf.mxu1  ;;  %v4828_v10 = vadd.f32 %v4827_v49, %v14783_v41  ;;  %v15012_v41 = vld [vmem:[#allocation3 + $0x178] sm:$0xff] }
 0x450   :  { %6251 = vmatpush2.msra.mxu0 %v6165_v45  ;;  %9966 = vmatpush3.msra.mxu1 %v6181_v3  ;;  %v4829_v59 = vpop.f32.mrf.mxu0 }
 0x451   :  { %5541 = vmatmul.mubr.f32.gmra.mxu1 %v8498_v36  ;;  %6252 = vmatprep.subr.mxu0 %v15001_v44  ;;  %v9815_v8 = vpop.f32.mrf.mxu1 }
 0x452   :  { %9967 = vmatprep.subr.mxu1 %v6180_v57  ;;  %6253 = vmatpush2.msra.mxu0 %v6164_v19  ;;  %v15007_v34 = vadd.f32 %v9815_v8, %v14931_v16  ;;  %v4832_v52 = vpop.f32.mrf.mxu0 }
 0x453   :  { %9968 = vmatpush3.msra.mxu1 %v6180_v57  ;;  %6254 = vmatprep.subr.mxu0 %v15001_v44  ;;  %v15010_v42 = vpop.f32.mrf.mxu1  ;;  %v15015_v31 = vadd.f32 %v4832_v52, %v14797_v53 }
 0x454   :  { %9969 = vmatprep.subr.mxu1 %v6179_v29  ;;  %6255 = vmatpush2.msra.mxu0 %v6163_v1  ;;  %v4834_v16 = vpop.f32.mrf.mxu0 }
 0x455   :  { %9970 = vmatpush3.msra.mxu1 %v6179_v29  ;;  %6256 = vmatprep.subr.mxu0 %v15001_v44  ;;  %v9818_v9 = vpop.f32.mrf.mxu1 }
 0x456   :  { %9971 = vmatprep.subr.mxu1 %v6178_v50  ;;  %6257 = vmatpush2.msra.mxu0 %v6162_v30  ;;  %v15019_v14 = vadd.f32 %v9818_v9, %v14953_v18  ;;  %v4837_v47 = vpop.f32.mrf.mxu0 }
 0x457   :  { %9972 = vmatpush3.msra.mxu1 %v6178_v50  ;;  %10021 = vmatprep.subr.mxu0 %v15012_v41  ;;  %v15022_v3 = vpop.f32.mrf.mxu1  ;;  %v4838_v53 = vadd.f32 %v4837_v47, %v14791_v5 }
 0x458   :  { %6644 = vmatprep.subr.mxu1 %v15001_v44  ;;  %v4839_v36 = vpop.f32.mrf.mxu0 }
 0x459   :  { %v9821_v45 = vpop.f32.mrf.mxu1 }
 0x45a   :  { %v15027_v40 = vadd.f32 %v9821_v45, %v14980_v17  ;;  %v4842_v12 = vpop.f32.mrf.mxu0 }
 0x45b   :  { %v15029_v57 = vpop.f32.mrf.mxu1  ;;  %v15032_v18 = vadd.f32 %v4842_v12, %v14805_v6 }
 0x45c   :  { %v4844_v19 = vpop.f32.mrf.mxu0 }
 0x45e   :  { %v9824_v49 = vpop.f32.mrf.mxu1 }
 0x45f   :  { %v15034_v0 = vadd.f32 %v9824_v49, %v4828_v10  ;;  %v4847_v29 = vpop.f32.mrf.mxu0 }
 0x460   :  { %v4848_v1 = vadd.f32 %v4847_v29, %v14800_v54  ;;  %v15037_v59 = vpop.f32.mrf.mxu1 }
 0x461   :  { %v4849_v5 = vpop.f32.mrf.mxu0 }
 0x462   :  { %v9827_v8 = vpop.f32.mrf.mxu1 }
 0x463   :  { %v15039_v50 = vadd.f32 %v9827_v8, %v4838_v53  ;;  %v4852_v17 = vpop.f32.mrf.mxu0 }
 0x464   :  { %v15042_v30 = vadd.f32 %v4852_v17, %v14814_v20  ;;  %v15044_v52 = vpop.f32.mrf.mxu1  ;;  %v4648_v17 = vadd.f32 %v14831_v7, %v14822_v60 }
 0x465   :  { %v4854_v6 = vpop.f32.mrf.mxu0 }
 0x466   :  { %v9830_v16 = vpop.f32.mrf.mxu1 }
 0x467   :  { %v15046_v9 = vadd.f32 %v9830_v16, %v4848_v1  ;;  %v4857_v10 = vpop.f32.mrf.mxu0 }
 0x468   :  { %v4858_v47 = vadd.f32 %v4857_v10, %v14808_v43  ;;  %v15049_v54 = vpop.f32.mrf.mxu1 }
 0x469   :  { %v4859_v36 = vpop.f32.mrf.mxu0 }
 0x46b   :  { %v9833_v45 = vpop.f32.mrf.mxu1 }
 0x46c   :  { %v15051_v12 = vadd.f32 %v9833_v45, %v4858_v47  ;;  %v4862_v53 = vpop.f32.mrf.mxu0 }
 0x46d   :  { %v15054_v19 = vadd.f32 %v4862_v53, %v14825_v13  ;;  %v15056_v20 = vpop.f32.mrf.mxu1 }
 0x46e   :  { %v4864_v49 = vpop.f32.mrf.mxu0 }
 0x46f   :  { %v9836_v29 = vpop.f32.mrf.mxu1 }
 0x470   :  { %v4867_v5 = vpop.f32.mrf.mxu0 }
 0x471   :  { %v4868_v1 = vadd.f32 %v4867_v5, %v14818_v33  ;;  %v15059_v8 = vpop.f32.mrf.mxu1 }
 0x472   :  { %v4869_v43 = vpop.f32.mrf.mxu0 }
 0x473   :  { %v15063_v6 = vadd.f32 %v9836_v29, %v4868_v1  ;;  %v9839_v16 = vpop.f32.mrf.mxu1  ;;  %v4658_v43 = vadd.f32 %v14840_v55, %v14842_v37 }
 0x474   :  { %v4872_v10 = vpop.f32.mrf.mxu0 }
 0x475   :  { %v15065_v47 = vadd.f32 %v4872_v10, %v4648_v17  ;;  %v15067_v13 = vpop.f32.mrf.mxu1 }
 0x476   :  { %16323 = vst [vmem:[#allocation12_spill] sm:$0xff] %v15067_v13  ;;  %v4874_v36 = vpop.f32.mrf.mxu0 }
 0x477   :  { %16322 = vst [vmem:[#allocation16_spill] sm:$0xff] %v15065_v47  ;;  %v9842_v45 = vpop.f32.mrf.mxu1 }
 0x478   :  { %v4877_v53 = vpop.f32.mrf.mxu0 }
 0x479   :  { %v4878_v49 = vadd.f32 %v4877_v53, %v14834_v4  ;;  %v15070_v33 = vpop.f32.mrf.mxu1 }
 0x47a   :  { %16324 = vst [vmem:[#allocation11_spill] sm:$0xff] %v15070_v33  ;;  %v4879_v5 = vpop.f32.mrf.mxu0 }
 0x47b   :  { %v15074_v60 = vadd.f32 %v9839_v16, %v4878_v49  ;;  %v9845_v7 = vpop.f32.mrf.mxu1  ;;  %v4668_v5 = vadd.f32 %v14850_v2, %v14861_v24 }
 0x47c   :  { %v4882_v29 = vpop.f32.mrf.mxu0 }
 0x47d   :  { %v15076_v1 = vadd.f32 %v4882_v29, %v4658_v43  ;;  %v15078_v17 = vpop.f32.mrf.mxu1 }
 0x47e   :  { %16325 = vst [vmem:[#allocation9_spill] sm:$0xff] %v15078_v17  ;;  %v4884_v10 = vpop.f32.mrf.mxu0 }
 0x47f   :  { %v9848_v36 = vpop.f32.mrf.mxu1 }
 0x480   :  { %v4887_v13 = vpop.f32.mrf.mxu0 }
 0x481   :  { %v4888_v47 = vadd.f32 %v4887_v13, %v14853_v61  ;;  %v15081_v4 = vpop.f32.mrf.mxu1 }
 0x482   :  { %16326 = vst [vmem:[#allocation17_spill] sm:$0xff] %v15081_v4  ;;  %v4889_v53 = vpop.f32.mrf.mxu0 }
 0x483   :  { %v15085_v55 = vadd.f32 %v9842_v45, %v4888_v47  ;;  %v9851_v37 = vpop.f32.mrf.mxu1  ;;  %v4678_v53 = vadd.f32 %v14859_v56, %v14887_v62 }
 0x484   :  { %v4892_v16 = vpop.f32.mrf.mxu0 }
 0x485   :  { %v15087_v49 = vadd.f32 %v4892_v16, %v4668_v5  ;;  %v15089_v43 = vpop.f32.mrf.mxu1 }
 0x486   :  { %16327 = vst [vmem:[#allocation14_spill] sm:$0xff] %v15089_v43  ;;  %v4894_v29 = vpop.f32.mrf.mxu0 }
 0x487   :  { %v9854_v10 = vpop.f32.mrf.mxu1 }
 0x488   :  { %v4897_v17 = vpop.f32.mrf.mxu0 }
 0x489   :  { %v4898_v33 = vadd.f32 %v4897_v17, %v14874_v63  ;;  %v15092_v61 = vpop.f32.mrf.mxu1 }
 0x48a   :  { %16328 = vst [vmem:[#allocation20_spill] sm:$0xff] %v15092_v61  ;;  %v4899_v13 = vpop.f32.mrf.mxu0 }
 0x48b   :  { %v15096_v2 = vadd.f32 %v9845_v7, %v4898_v33  ;;  %v9857_v24 = vpop.f32.mrf.mxu1  ;;  %v4688_v13 = vadd.f32 %v14871_v32, %v14915_v22 }
 0x48c   :  { %v4902_v47 = vpop.f32.mrf.mxu0 }
 0x48d   :  { %v15098_v45 = vadd.f32 %v4902_v47, %v4678_v53  ;;  %v15100_v5 = vpop.f32.mrf.mxu1 }
 0x48e   :  { %16330 = vst [vmem:[#allocation13_spill] sm:$0xff] %v15100_v5  ;;  %v4904_v16 = vpop.f32.mrf.mxu0 }
 0x48f   :  { %16329 = vst [vmem:[#allocation22_spill] sm:$0xff] %v15098_v45  ;;  %v9860_v29 = vpop.f32.mrf.mxu1 }
 0x490   :  { %v4907_v43 = vpop.f32.mrf.mxu0 }
 0x491   :  { %v4908_v4 = vadd.f32 %v4907_v43, %v14906_v25  ;;  %v15103_v63 = vpop.f32.mrf.mxu1  ;;  %v4698_v43 = vadd.f32 %v14885_v35, %v14934_v51 }
 0x492   :  { %16331 = vst [vmem:[#allocation10_spill] sm:$0xff] %v15103_v63  ;;  %v4909_v17 = vpop.f32.mrf.mxu0 }
 0x493   :  { %v15107_v56 = vadd.f32 %v9848_v36, %v4908_v4 }
 0x494   :  { %v4912_v33 = vpop.f32.mrf.mxu0 }
 0x495   :  { %v5387_v62 = vpop.f32.mrf.mxu1  ;;  %v15109_v7 = vadd.f32 %v4912_v33, %v4688_v13 }
 0x496   :  { %v4914_v47 = vpop.f32.mrf.mxu0 }
 0x497   :  { %16332 = vst [vmem:[#allocation24_spill] sm:$0xff] %v15109_v7  ;;  %v5389_v53 = vpop.f32.mrf.mxu1 }
 0x498   :  { %v4917_v16 = vpop.f32.mrf.mxu0 }
 0x499   :  { %v5392_v5 = vpop.f32.mrf.mxu1  ;;  %v4918_v61 = vadd.f32 %v4917_v16, %v14926_v39  ;;  %v4708_v39 = vadd.f32 %v14901_v21, %v14958_v48 }
 0x49a   :  { %v4919_v25 = vpop.f32.mrf.mxu0 }
 0x49b   :  { %v5394_v45 = vpop.f32.mrf.mxu1  ;;  %v15114_v17 = vadd.f32 %v9851_v37, %v4918_v61 }
 0x49c   :  { %v4922_v22 = vpop.f32.mrf.mxu0 }
 0x49d   :  { %v5397_v32 = vpop.f32.mrf.mxu1  ;;  %v15116_v36 = vadd.f32 %v4922_v22, %v4698_v43 }
 0x49e   :  { %v4924_v13 = vpop.f32.mrf.mxu0 }
 0x49f   :  { %v5399_v4 = vpop.f32.mrf.mxu1 }
 0x4a0   :  { %v4927_v53 = vpop.f32.mrf.mxu0 }
 0x4a1   :  { %v5402_v33 = vpop.f32.mrf.mxu1  ;;  %v4928_v47 = vadd.f32 %v4927_v53, %v14948_v27  ;;  %v4718_v27 = vadd.f32 %v14913_v11, %v14985_v46 }
 0x4a2   :  { %v4929_v7 = vpop.f32.mrf.mxu0 }
 0x4a3   :  { %v5404_v63 = vpop.f32.mrf.mxu1  ;;  %v15121_v45 = vadd.f32 %v9854_v10, %v4928_v47 }
 0x4a4   :  { %v4932_v51 = vpop.f32.mrf.mxu0 }
 0x4a5   :  { %v5407_v35 = vpop.f32.mrf.mxu1  ;;  %v15123_v37 = vadd.f32 %v4932_v51, %v4708_v39 }
 0x4a6   :  { %v4934_v16 = vpop.f32.mrf.mxu0 }
 0x4a7   :  { %v5409_v61 = vpop.f32.mrf.mxu1 }
 0x4a8   :  { %v4937_v43 = vpop.f32.mrf.mxu0 }
 0x4a9   :  { %v5412_v25 = vpop.f32.mrf.mxu1  ;;  %v4938_v22 = vadd.f32 %v4937_v43, %v14976_v23 }
 0x4aa   :  { %v4939_v13 = vpop.f32.mrf.mxu0 }
 0x4ab   :  { %v5414_v4 = vpop.f32.mrf.mxu1  ;;  %v15128_v63 = vadd.f32 %v9857_v24, %v4938_v22  ;;  %v15140_v24 = vld [vmem:[%s16223_s2] ss:$0 sm:$0xff]  ;;  %v5018_v13 = vadd.f32 %v15010_v42, %v14921_v15 }
 0x4ac   :  { %v4942_v48 = vpop.f32.mrf.mxu0 }
 0x4ad   :  { %v5417_v21 = vpop.f32.mrf.mxu1  ;;  %v15130_v10 = vadd.f32 %v4942_v48, %v4718_v27 }
 0x4ae   :  { %v4944_v53 = vpop.f32.mrf.mxu0 }
 0x4af   :  { %v5419_v7 = vpop.f32.mrf.mxu1 }
 0x4b0   :  { %v4947_v39 = vpop.f32.mrf.mxu0 }
 0x4b1   :  { %v5422_v47 = vpop.f32.mrf.mxu1  ;;  %v4948_v51 = vadd.f32 %v4947_v39, %v14999_v28 }
 0x4b2   :  { %v4949_v16 = vpop.f32.mrf.mxu0 }
 0x4b3   :  { %v5424_v61 = vpop.f32.mrf.mxu1  ;;  %v15133_v23 = vadd.f32 %v9860_v29, %v4948_v51  ;;  %v5028_v51 = vadd.f32 %v15022_v3, %v14940_v26  ;;  %v5038_v26 = vadd.f32 %v15029_v57, %v14966_v38 }
 0x4b4   :  { %v9895_v4 = vpop.f32.mrf.mxu0 }
 0x4b5   :  { %v15135_v43 = vpop.f32.mrf.mxu1  ;;  %v5618_v11 = vadd.f32 %v9895_v4, %v5392_v5 }
 0x4b6   :  { %v5612_v22 = vpop.f32.mrf.mxu0 }
 0x4b7   :  { %v5429_v46 = vpop.f32.mrf.mxu1  ;;  %v5772_v28 = vadd.f32 %v5618_v11, %v15007_v34  ;;  %v5613_v27 = vadd.f32 %v5612_v22, %v5387_v62 }
 0x4b8   :  { %v9898_v29 = vpop.f32.mrf.mxu0 }
 0x4b9   :  { %v5432_v48 = vpop.f32.mrf.mxu1  ;;  %v15146_v7 = vadd.f32 %v15140_v24, %v5772_v28  ;;  %v5771_v53 = vadd.f32 %v5613_v27, %v5018_v13  ;;  %v5628_v5 = vadd.f32 %v9898_v29, %v5402_v33 }
 0x4ba   :  { %v5622_v61 = vpop.f32.mrf.mxu0 }
 0x4bb   :  { %v5434_v39 = vpop.f32.mrf.mxu1  ;;  %v5843_v16 = vmax.f32 %v15146_v7, 0.0  ;;  %v5810_v4 = vadd.f32 %v15140_v24, %v5771_v53  ;;  %v5774_v15 = vadd.f32 %v5628_v5, %v15019_v14  ;;  %v5623_v34 = vadd.f32 %v5622_v61, %v5397_v32 }
 0x4bc   :  { %v9901_v62 = vpop.f32.mrf.mxu0  ;;  %v5048_v39 = vadd.f32 %v15037_v59, %v14993_v58 }
 0x4bd   :  { %v15153_v42 = vpop.f32.mrf.mxu1  ;;  %5875 = vst [vmem:[#allocation2 + $0x30] sm:$0xff] %v5843_v16  ;;  %v5842_v11 = vmax.f32 %v5810_v4, 0.0  ;;  %v15156_v46 = vadd.f32 %v15140_v24, %v5774_v15  ;;  %v5773_v33 = vadd.f32 %v5623_v34, %v5028_v51  ;;  %v5638_v22 = vadd.f32 %v9901_v62, %v5412_v25 }
 0x4be   :  { %v5632_v3 = vpop.f32.mrf.mxu0 }
 0x4bf   :  { %v5439_v13 = vpop.f32.mrf.mxu1  ;;  %5874 = vst [vmem:[#allocation2 + $0x28] sm:$0xff] %v5842_v11  ;;  %v5845_v28 = vmax.f32 %v15156_v46, 0.0  ;;  %v15162_v14 = vadd.f32 %v15140_v24, %v5773_v33  ;;  %v5776_v32 = vadd.f32 %v5638_v22, %v15027_v40  ;;  %v5633_v27 = vadd.f32 %v5632_v3, %v5407_v35  ;;  %6258 = vmatprep.mubr.f32.mxu0 %v5842_v11 }
 0x4c0   :  { %v9904_v7 = vpop.f32.mrf.mxu0  ;;  %v5058_v33 = vadd.f32 %v15044_v52, %v15015_v31  ;;  %v6017_v13 = vld [vmem:[#allocation3 + $0x78] sm:$0xff]  ;;  %v6048_v52 = vld [vmem:[#allocation3 + $0x170] sm:$0xff] }
 0x4c1   :  { %v5442_v29 = vpop.f32.mrf.mxu1  ;;  %5877 = vst [vmem:[#allocation2 + $0x50] sm:$0xff] %v5845_v28  ;;  %v5844_v25 = vmax.f32 %v15162_v14, 0.0  ;;  %v15169_v38 = vadd.f32 %v15140_v24, %v5776_v32  ;;  %v5775_v57 = vadd.f32 %v5633_v27, %v5038_v26  ;;  %v5648_v53 = vadd.f32 %v9904_v7, %v5422_v47 }
 0x4c2   :  { %v5642_v51 = vpop.f32.mrf.mxu0 }
 0x4c3   :  { %v5444_v5 = vpop.f32.mrf.mxu1  ;;  %5876 = vst [vmem:[#allocation2 + $0x48] sm:$0xff] %v5844_v25  ;;  %v5847_v40 = vmax.f32 %v15169_v38, 0.0  ;;  %v15177_v35 = vadd.f32 %v15140_v24, %v5775_v57  ;;  %v5778_v61 = vadd.f32 %v5648_v53, %v15034_v0  ;;  %v5643_v4 = vadd.f32 %v5642_v51, %v5417_v21 }
 0x4c4   :  { %v9907_v34 = vpop.f32.mrf.mxu0  ;;  %v6115_v31 = vld [vmem:[#allocation2 + $0x31] sm:$0xff] }
 0x4c5   :  { %v15180_v15 = vpop.f32.mrf.mxu1  ;;  %5879 = vst [vmem:[#allocation2 + $0x70] sm:$0xff] %v5847_v40  ;;  %v5846_v58 = vmax.f32 %v15177_v35, 0.0  ;;  %v15186_v59 = vadd.f32 %v15140_v24, %v5778_v61  ;;  %v5777_v47 = vadd.f32 %v5643_v4, %v5048_v39  ;;  %v5658_v62 = vadd.f32 %v9907_v34, %v5432_v48  ;;  %v6016_v4 = vld [vmem:[#allocation3 + $0x70] sm:$0xff]  ;;  %v6013_v35 = vld [vmem:[#allocation3 + $0x58] sm:$0xff] }
 0x4c6   :  { %v5652_v22 = vpop.f32.mrf.mxu0  ;;  %v6114_v0 = vld [vmem:[#allocation2 + $0x29] sm:$0xff]  ;;  %v5068_v39 = vadd.f32 %v15049_v54, %v15032_v18 }
 0x4c7   :  { %v5449_v11 = vpop.f32.mrf.mxu1  ;;  %v15190_v21 = vld [vmem:[#allocation2 + $0x27] sm:$0xff]  ;;  %5878 = vst [vmem:[#allocation2 + $0x68] sm:$0xff] %v5846_v58  ;;  %v5849_v26 = vmax.f32 %v15186_v59, 0.0  ;;  %v15196_v3 = vadd.f32 %v15140_v24, %v5777_v47  ;;  %v5780_v32 = vadd.f32 %v5658_v62, %v15039_v50  ;;  %v5653_v48 = vadd.f32 %v5652_v22, %v15135_v43  ;;  %9973 = vmatprep.mubr.f32.mxu1 %v6114_v0 }
 0x4c8   :  { %6259 = vmatmul.mubr.f32.vlgmr.msra.gmra.mxu0 %v15190_v21  ;;  %v9910_v7 = vpop.f32.mrf.mxu0  ;;  %9974 = vmatmul.mubr.f32.vlgmr.msra.gmra.mxu1 %v6115_v31  ;;  %v6117_v47 = vld [vmem:[#allocation2 + $0x51] sm:$0xff]  ;;  %v6047_v62 = vld [vmem:[#allocation3 + $0x168] sm:$0xff] }
 0x4c9   :  { %v5452_v27 = vpop.f32.mrf.mxu1  ;;  %6263 = vmatprep.mubr.f32.mxu0 %v5843_v16  ;;  %5881 = vst [vmem:[#allocation2 + $0x90] sm:$0xff] %v5849_v26  ;;  %v5848_v57 = vmax.f32 %v15196_v3, 0.0  ;;  %v15205_v53 = vadd.f32 %v15140_v24, %v5780_v32  ;;  %v5779_v50 = vadd.f32 %v5653_v48, %v5058_v33  ;;  %v5668_v5 = vadd.f32 %v9910_v7, %v5442_v29  ;;  %v15210_v16 = vld [vmem:[#allocation2 + $0x2f] sm:$0xff] }
 0x4ca   :  { %10022 = vmatpush3.msra.mxu0 %v15012_v41  ;;  %6645 = vmatpush1.msra.mxu1 %v6017_v13  ;;  %v5662_v51 = vpop.f32.mrf.mxu0  ;;  %v6116_v61 = vld [vmem:[#allocation2 + $0x49] sm:$0xff]  ;;  %v5078_v13 = vadd.f32 %v15056_v20, %v15042_v30 }
 0x4cb   :  { %v5454_v43 = vpop.f32.mrf.mxu1  ;;  %10023 = vmatprep.subr.mxu0 %v6048_v52  ;;  %6646 = vmatprep.subr.mxu1 %v15001_v44  ;;  %5880 = vst [vmem:[#allocation2 + $0x88] sm:$0xff] %v5848_v57  ;;  %v5851_v29 = vmax.f32 %v15205_v53, 0.0  ;;  %v15217_v34 = vadd.f32 %v15140_v24, %v5779_v50  ;;  %v5782_v41 = vadd.f32 %v5668_v5, %v15046_v9  ;;  %v15232_v14 = vld [vmem:[#allocation2 + $0x47] sm:$0xff]  ;;  %v15254_v46 = vld [vmem:[#allocation2 + $0x4f] sm:$0xff] }
 0x4cc   :  { %v5663_v18 = vadd.f32 %v5662_v51, %v15153_v42  ;;  %9976 = vmatprep.mubr.f32.mxu1 %v6116_v61  ;;  %6264 = vmatmul.mubr.f32.gmra.mxu0 %v15210_v16  ;;  %v9913_v11 = vpop.f32.mrf.mxu0  ;;  %v6119_v7 = vld [vmem:[#allocation2 + $0x71] sm:$0xff]  ;;  %v6046_v50 = vld [vmem:[#allocation3 + $0x160] sm:$0xff]  ;;  %v5088_v61 = vadd.f32 %v15059_v8, %v15054_v19 }
 0x4cd   :  { %v5457_v54 = vpop.f32.mrf.mxu1  ;;  %9977 = vmatmul.mubr.f32.gmra.mxu1 %v6117_v47  ;;  %6268 = vmatprep.mubr.f32.mxu0 %v5844_v25  ;;  %5883 = vst [vmem:[#allocation2 + $0xb0] sm:$0xff] %v5851_v29  ;;  %v5850_v33 = vmax.f32 %v15217_v34, 0.0  ;;  %v15228_v9 = vadd.f32 %v15140_v24, %v5782_v41  ;;  %v5678_v22 = vadd.f32 %v9913_v11, %v5452_v27  ;;  %v6015_v25 = vld [vmem:[#allocation3 + $0x68] sm:$0xff]  ;;  %v6006_v53 = vld [vmem:[#allocation3 + $0x20] sm:$0xff] }
 0x4ce   :  { %v5781_v42 = vadd.f32 %v5663_v18, %v5068_v39  ;;  %10024 = vmatpush3.msra.mxu0 %v6048_v52  ;;  %6647 = vmatpush1.msra.mxu1 %v6016_v4  ;;  %v5672_v32 = vpop.f32.mrf.mxu0  ;;  %v6118_v48 = vld [vmem:[#allocation2 + $0x69] sm:$0xff] }
 0x4cf   :  { %v5459_v0 = vpop.f32.mrf.mxu1  ;;  %10025 = vmatprep.subr.mxu0 %v6047_v62  ;;  %6648 = vmatprep.subr.mxu1 %v15001_v44  ;;  %5882 = vst [vmem:[#allocation2 + $0xa8] sm:$0xff] %v5850_v33  ;;  %v5853_v31 = vmax.f32 %v15228_v9, 0.0  ;;  %v5784_v52 = vadd.f32 %v5678_v22, %v15051_v12  ;;  %v5673_v30 = vadd.f32 %v5672_v32, %v15180_v15  ;;  %v6003_v9 = vld [vmem:[#allocation3 + $0x8] sm:$0xff] }
 0x4d0   :  { %v15239_v27 = vadd.f32 %v15140_v24, %v5781_v42  ;;  %9979 = vmatprep.mubr.f32.mxu1 %v6118_v48  ;;  %6269 = vmatmul.mubr.f32.gmra.mxu0 %v15232_v14  ;;  %v9916_v5 = vpop.f32.mrf.mxu0  ;;  %v6121_v8 = vld [vmem:[#allocation2 + $0x91] sm:$0xff] }
 0x4d1   :  { %v5462_v20 = vpop.f32.mrf.mxu1  ;;  %9980 = vmatmul.mubr.f32.gmra.mxu1 %v6119_v7  ;;  %6273 = vmatprep.mubr.f32.mxu0 %v5845_v28  ;;  %5885 = vst [vmem:[#allocation2 + $0xd0] sm:$0xff] %v5853_v31  ;;  %v15250_v12 = vadd.f32 %v15140_v24, %v5784_v52  ;;  %v5783_v15 = vadd.f32 %v5673_v30, %v5078_v13  ;;  %v6014_v28 = vld [vmem:[#allocation3 + $0x60] sm:$0xff]  ;;  %v6045_v42 = vld [vmem:[#allocation3 + $0x158] sm:$0xff] }
 0x4d2   :  { %v5852_v43 = vmax.f32 %v15239_v27, 0.0  ;;  %v5688_v39 = vadd.f32 %v9916_v5, %v5462_v20  ;;  %10026 = vmatpush3.msra.mxu0 %v6047_v62  ;;  %6649 = vmatpush1.msra.mxu1 %v6015_v25  ;;  %v5682_v4 = vpop.f32.mrf.mxu0  ;;  %v6120_v41 = vld [vmem:[#allocation2 + $0x89] sm:$0xff]  ;;  %v16334_v52 = vld [vmem:[#allocation12_spill] sm:$0xff] }
 0x4d3   :  { %v5464_v51 = vpop.f32.mrf.mxu1  ;;  %10027 = vmatprep.subr.mxu0 %v6046_v50  ;;  %6650 = vmatprep.subr.mxu1 %v15001_v44  ;;  %v5855_v18 = vmax.f32 %v15250_v12, 0.0  ;;  %v15261_v47 = vadd.f32 %v15140_v24, %v5783_v15  ;;  %v5683_v11 = vadd.f32 %v5682_v4, %v5457_v54  ;;  %v15273_v25 = vld [vmem:[#allocation2 + $0x67] sm:$0xff]  ;;  %v6032_v12 = vld [vmem:[#allocation3 + $0xf0] sm:$0xff] }
 0x4d4   :  { %5884 = vst [vmem:[#allocation2 + $0xc8] sm:$0xff] %v5852_v43  ;;  %v5786_v62 = vadd.f32 %v5688_v39, %v15063_v6  ;;  %9982 = vmatprep.mubr.f32.mxu1 %v6120_v41  ;;  %6274 = vmatmul.mubr.f32.gmra.mxu0 %v15254_v46  ;;  %v9919_v22 = vpop.f32.mrf.mxu0  ;;  %v6123_v15 = vld [vmem:[#allocation2 + $0xb1] sm:$0xff] }
 0x4d5   :  { %v5467_v19 = vpop.f32.mrf.mxu1  ;;  %9983 = vmatmul.mubr.f32.gmra.mxu1 %v6121_v8  ;;  %6278 = vmatprep.mubr.f32.mxu0 %v5846_v58  ;;  %5887 = vst [vmem:[#allocation2 + $0xf0] sm:$0xff] %v5855_v18  ;;  %v5854_v0 = vmax.f32 %v15261_v47, 0.0  ;;  %v5785_v6 = vadd.f32 %v5683_v11, %v5088_v61  ;;  %v16333_v58 = vld [vmem:[#allocation16_spill] sm:$0xff]  ;;  %v6044_v39 = vld [vmem:[#allocation3 + $0x150] sm:$0xff] }
 0x4d6   :  { %v15271_v13 = vadd.f32 %v15140_v24, %v5786_v62  ;;  %10028 = vmatpush3.msra.mxu0 %v6046_v50  ;;  %6651 = vmatpush1.msra.mxu1 %v6014_v28  ;;  %v5692_v32 = vpop.f32.mrf.mxu0  ;;  %v6122_v48 = vld [vmem:[#allocation2 + $0xa9] sm:$0xff]  ;;  %v5098_v30 = vadd.f32 %v16334_v52, %v16333_v58 }
 0x4d7   :  { %v5469_v54 = vpop.f32.mrf.mxu1  ;;  %10029 = vmatprep.subr.mxu0 %v6045_v42  ;;  %6652 = vmatprep.subr.mxu1 %v15001_v44  ;;  %5886 = vst [vmem:[#allocation2 + $0xe8] sm:$0xff] %v5854_v0  ;;  %v15282_v7 = vadd.f32 %v15140_v24, %v5785_v6  ;;  %v5693_v50 = vadd.f32 %v5692_v32, %v5467_v19  ;;  %v15291_v8 = vld [vmem:[#allocation2 + $0x6f] sm:$0xff] }
 0x4d8   :  { %v5857_v20 = vmax.f32 %v15271_v13, 0.0  ;;  %9985 = vmatprep.mubr.f32.mxu1 %v6122_v48  ;;  %6279 = vmatmul.mubr.f32.gmra.mxu0 %v15273_v25  ;;  %v9922_v61 = vpop.f32.mrf.mxu0  ;;  %v16335_v6 = vld [vmem:[#allocation11_spill] sm:$0xff]  ;;  %v6029_v13 = vld [vmem:[#allocation3 + $0xd8] sm:$0xff] }
 0x4d9   :  { %v5472_v5 = vpop.f32.mrf.mxu1  ;;  %9986 = vmatmul.mubr.f32.gmra.mxu1 %v6123_v15  ;;  %6283 = vmatprep.mubr.f32.mxu0 %v5847_v40  ;;  %v5856_v4 = vmax.f32 %v15282_v7, 0.0  ;;  %v5787_v41 = vadd.f32 %v5693_v50, %v5098_v30  ;;  %v5108_v54 = vadd.f32 %v16335_v6, %v15076_v1  ;;  %v15309_v15 = vld [vmem:[#allocation2 + $0x87] sm:$0xff] }
 0x4da   :  { %v5698_v51 = vadd.f32 %v9919_v22, %v5472_v5  ;;  %5889 = vst [vmem:[#allocation2 + $0x110] sm:$0xff] %v5857_v20  ;;  %10030 = vmatpush3.msra.mxu0 %v6045_v42  ;;  %6653 = vmatpush1.msra.mxu1 %v6013_v35  ;;  %v5702_v11 = vpop.f32.mrf.mxu0  ;;  %v6012_v22 = vld [vmem:[#allocation3 + $0x50] sm:$0xff]  ;;  %v6011_v1 = vld [vmem:[#allocation3 + $0x48] sm:$0xff] }
 0x4db   :  { %v5474_v28 = vpop.f32.mrf.mxu1  ;;  %v6124_v19 = vld [vmem:[#allocation2 + $0xc9] sm:$0xff]  ;;  %6654 = vmatprep.subr.mxu1 %v15001_v44  ;;  %10031 = vmatprep.subr.mxu0 %v6044_v39  ;;  %5888 = vst [vmem:[#allocation2 + $0x108] sm:$0xff] %v5856_v4  ;;  %v15297_v38 = vadd.f32 %v15140_v24, %v5787_v41  ;;  %v6125_v42 = vld [vmem:[#allocation2 + $0xd1] sm:$0xff] }
 0x4dc   :  { %v5788_v62 = vadd.f32 %v5698_v51, %v15074_v60  ;;  %9988 = vmatprep.mubr.f32.mxu1 %v6124_v19  ;;  %6284 = vmatmul.mubr.f32.gmra.mxu0 %v15291_v8  ;;  %v6043_v60 = vld [vmem:[#allocation3 + $0x148] sm:$0xff]  ;;  %v9925_v52 = vpop.f32.mrf.mxu0  ;;  %v6042_v51 = vld [vmem:[#allocation3 + $0x140] sm:$0xff] }
 0x4dd   :  { %v5477_v40 = vpop.f32.mrf.mxu1  ;;  %9989 = vmatmul.mubr.f32.gmra.mxu1 %v6125_v42  ;;  %6288 = vmatprep.mubr.f32.mxu0 %v5848_v57  ;;  %v5858_v35 = vmax.f32 %v15297_v38, 0.0  ;;  %v6127_v57 = vld [vmem:[#allocation2 + $0xf1] sm:$0xff]  ;;  %v6010_v42 = vld [vmem:[#allocation3 + $0x40] sm:$0xff] }
 0x4de   :  { %v15303_v32 = vadd.f32 %v15140_v24, %v5788_v62  ;;  %v5703_v48 = vadd.f32 %v5702_v11, %v5477_v40  ;;  %6655 = vmatpush1.msra.mxu1 %v6012_v22  ;;  %10032 = vmatpush3.msra.mxu0 %v6044_v39  ;;  %v6126_v5 = vld [vmem:[#allocation2 + $0xe9] sm:$0xff]  ;;  %v5712_v62 = vpop.f32.mrf.mxu0 }
 0x4df   :  { %v5479_v58 = vpop.f32.mrf.mxu1  ;;  %6656 = vmatprep.subr.mxu1 %v15001_v44  ;;  %10033 = vmatprep.subr.mxu0 %v6043_v60  ;;  %5890 = vst [vmem:[#allocation2 + $0x128] sm:$0xff] %v5858_v35  ;;  %v15326_v40 = vld [vmem:[#allocation2 + $0x8f] sm:$0xff] }
 0x4e0   :  { %v5859_v30 = vmax.f32 %v15303_v32, 0.0  ;;  %v5789_v50 = vadd.f32 %v5703_v48, %v5108_v54  ;;  %9991 = vmatprep.mubr.f32.mxu1 %v6126_v5  ;;  %6289 = vmatmul.mubr.f32.gmra.mxu0 %v15309_v15  ;;  %v6009_v48 = vld [vmem:[#allocation3 + $0x38] sm:$0xff]  ;;  %v6026_v32 = vld [vmem:[#allocation3 + $0xc0] sm:$0xff] }
 0x4e1   :  { %v5482_v3 = vpop.f32.mrf.mxu1  ;;  %9992 = vmatmul.mubr.f32.gmra.mxu1 %v6127_v57  ;;  %6293 = vmatprep.mubr.f32.mxu0 %v5849_v26  ;;  %v6129_v59 = vld [vmem:[#allocation2 + $0x111] sm:$0xff] }
 0x4e2   :  { %5891 = vst [vmem:[#allocation2 + $0x130] sm:$0xff] %v5859_v30  ;;  %v15318_v39 = vadd.f32 %v15140_v24, %v5789_v50  ;;  %v5708_v41 = vadd.f32 %v9922_v61, %v5482_v3  ;;  %6657 = vmatpush1.msra.mxu1 %v6011_v1  ;;  %10034 = vmatpush3.msra.mxu0 %v6043_v60  ;;  %v15324_v22 = vld [vmem:[#allocation2 + $0x109] sm:$0xff]  ;;  %v6041_v26 = vld [vmem:[#allocation3 + $0x138] sm:$0xff]  ;;  %v16336_v60 = vld [vmem:[#allocation9_spill] sm:$0xff]  ;;  %v9928_v50 = vpop.f32.mrf.mxu0 }
 0x4e3   :  { %v5484_v28 = vpop.f32.mrf.mxu1  ;;  %6658 = vmatprep.subr.mxu1 %v15001_v44  ;;  %10035 = vmatprep.subr.mxu0 %v6042_v51  ;;  %v5118_v6 = vadd.f32 %v16336_v60, %v15087_v49  ;;  %v15341_v49 = vld [vmem:[#allocation2 + $0xa7] sm:$0xff] }
 0x4e4   :  { %v5860_v11 = vmax.f32 %v15318_v39, 0.0  ;;  %v5790_v19 = vadd.f32 %v5708_v41, %v15085_v55  ;;  %9994 = vmatprep.mubr.f32.mxu1 %v15324_v22  ;;  %6294 = vmatmul.mubr.f32.gmra.mxu0 %v15326_v40  ;;  %v6025_v39 = vld [vmem:[#allocation3 + $0xb8] sm:$0xff] }
 0x4e5   :  { %v5487_v61 = vpop.f32.mrf.mxu1  ;;  %9995 = vmatmul.mubr.f32.gmra.mxu1 %v6129_v59  ;;  %6298 = vmatprep.mubr.f32.mxu0 %v5850_v33  ;;  %v6008_v33 = vld [vmem:[#allocation3 + $0x30] sm:$0xff] }
 0x4e6   :  { %5892 = vst [vmem:[#allocation2 + $0x148] sm:$0xff] %v5860_v11  ;;  %v15336_v55 = vadd.f32 %v15140_v24, %v5790_v19  ;;  %v5713_v54 = vadd.f32 %v5712_v62, %v5487_v61  ;;  %6659 = vmatpush1.msra.mxu1 %v6010_v42  ;;  %10036 = vmatpush3.msra.mxu0 %v6042_v51  ;;  %v5722_v62 = vpop.f32.mrf.mxu0  ;;  %v6007_v19 = vld [vmem:[#allocation3 + $0x28] sm:$0xff] }
 0x4e7   :  { %v5489_v58 = vpop.f32.mrf.mxu1  ;;  %6660 = vmatprep.subr.mxu1 %v15001_v44  ;;  %10037 = vmatprep.subr.mxu0 %v6041_v26  ;;  %v15361_v59 = vld [vmem:[#allocation2 + $0xaf] sm:$0xff] }
 0x4e8   :  { %v5861_v5 = vmax.f32 %v15336_v55, 0.0  ;;  %v5791_v1 = vadd.f32 %v5713_v54, %v5118_v6  ;;  %6299 = vmatmul.mubr.f32.gmra.mxu0 %v15341_v49  ;;  %6661 = vmatpush1.msra.mxu1 %v6009_v48  ;;  %v16338_v6 = vld [vmem:[#allocation17_spill] sm:$0xff]  ;;  %v9931_v58 = vpop.f32.mrf.mxu0 }
 0x4e9   :  { %v5492_v3 = vpop.f32.mrf.mxu1  ;;  %v15345_v57 = vld [vmem:[#allocation2 + $0x129] sm:$0xff]  ;;  %v15347_v34 = vld [vmem:[#allocation2 + $0x131] sm:$0xff]  ;;  %6303 = vmatprep.mubr.f32.mxu0 %v5851_v29  ;;  %6662 = vmatprep.subr.mxu1 %v15001_v44 }
 0x4ea   :  { %5893 = vst [vmem:[#allocation2 + $0x150] sm:$0xff] %v5861_v5  ;;  %v15352_v51 = vadd.f32 %v15140_v24, %v5791_v1  ;;  %v5718_v41 = vadd.f32 %v9925_v52, %v5492_v3  ;;  %9997 = vmatprep.mubr.f32.mxu1 %v15345_v57  ;;  %6663 = vmatpush1.msra.mxu1 %v6008_v33  ;;  %v6040_v52 = vld [vmem:[#allocation3 + $0x130] sm:$0xff]  ;;  %v16337_v29 = vld [vmem:[#allocation22_spill] sm:$0xff] }
 0x4eb   :  { %v5494_v28 = vpop.f32.mrf.mxu1  ;;  %9998 = vmatmul.mubr.f32.gmra.mxu1 %v15347_v34  ;;  %10038 = vmatpush3.msra.mxu0 %v6041_v26  ;;  %v5128_v54 = vadd.f32 %v16338_v6, %v16337_v29  ;;  %v15376_v33 = vld [vmem:[#allocation2 + $0xc7] sm:$0xff] }
 0x4ec   :  { %v5862_v42 = vmax.f32 %v15352_v51, 0.0  ;;  %v5792_v61 = vadd.f32 %v5718_v41, %v15096_v2  ;;  %6304 = vmatmul.mubr.f32.gmra.mxu0 %v15361_v59  ;;  %6664 = vmatprep.subr.mxu1 %v15001_v44  ;;  %v6039_v41 = vld [vmem:[#allocation3 + $0x128] sm:$0xff]  ;;  %v6021_v51 = vld [vmem:[#allocation3 + $0x98] sm:$0xff] }
 0x4ed   :  { %v5497_v60 = vpop.f32.mrf.mxu1  ;;  %6308 = vmatprep.mubr.f32.mxu0 %v5852_v43  ;;  %6665 = vmatpush1.msra.mxu1 %v6007_v19  ;;  %v6005_v43 = vld [vmem:[#allocation3 + $0x18] sm:$0xff] }
 0x4ee   :  { %5894 = vst [vmem:[#allocation2 + $0x168] sm:$0xff] %v5862_v42  ;;  %v15370_v48 = vadd.f32 %v15140_v24, %v5792_v61  ;;  %v5723_v2 = vadd.f32 %v5722_v62, %v5497_v60  ;;  %6666 = vmatprep.subr.mxu1 %v15001_v44  ;;  %10039 = vmatprep.subr.mxu0 %v6040_v52  ;;  %v5732_v60 = vpop.f32.mrf.mxu0 }
 0x4ef   :  { %v5499_v26 = vpop.f32.mrf.mxu1  ;;  %6667 = vmatpush1.msra.mxu1 %v6006_v53  ;;  %10040 = vmatpush3.msra.mxu0 %v6040_v52  ;;  %v6004_v53 = vld [vmem:[#allocation3 + $0x10] sm:$0xff] }
 0x4f0   :  { %v5863_v1 = vmax.f32 %v15370_v48, 0.0  ;;  %v5793_v3 = vadd.f32 %v5723_v2, %v5128_v54  ;;  %6309 = vmatmul.mubr.f32.gmra.mxu0 %v15376_v33  ;;  %6668 = vmatprep.subr.mxu1 %v15001_v44  ;;  %v15395_v54 = vld [vmem:[#allocation2 + $0xcf] sm:$0xff] }
 0x4f1   :  { %v5502_v28 = vpop.f32.mrf.mxu1  ;;  %v15379_v62 = vld [vmem:[#allocation2 + $0x149] sm:$0xff]  ;;  %v15381_v27 = vld [vmem:[#allocation2 + $0x151] sm:$0xff]  ;;  %6313 = vmatprep.mubr.f32.mxu0 %v5853_v31  ;;  %10041 = vmatprep.subr.mxu0 %v6039_v41 }
 0x4f2   :  { %5895 = vst [vmem:[#allocation2 + $0x170] sm:$0xff] %v5863_v1  ;;  %v15387_v19 = vadd.f32 %v15140_v24, %v5793_v3  ;;  %v5728_v61 = vadd.f32 %v9928_v50, %v5502_v28  ;;  %10000 = vmatprep.mubr.f32.mxu1 %v15379_v62  ;;  %6669 = vmatpush1.msra.mxu1 %v6005_v43  ;;  %v6038_v50 = vld [vmem:[#allocation3 + $0x120] sm:$0xff]  ;;  %v16339_v31 = vld [vmem:[#allocation24_spill] sm:$0xff]  ;;  %v16340_v26 = vld [vmem:[#allocation14_spill] sm:$0xff]  ;;  %v9934_v43 = vpop.f32.mrf.mxu0 }
 0x4f3   :  { %v5504_v52 = vpop.f32.mrf.mxu1  ;;  %10001 = vmatmul.mubr.f32.gmra.mxu1 %v15381_v27  ;;  %10042 = vmatpush3.msra.mxu0 %v6039_v41  ;;  %v5138_v3 = vadd.f32 %v16340_v26, %v16339_v31  ;;  %v15412_v31 = vld [vmem:[#allocation2 + $0xe7] sm:$0xff] }
 0x4f4   :  { %v16252_v29 = vmax.f32 %v15387_v19, 0.0  ;;  %v5794_v6 = vadd.f32 %v5728_v61, %v15107_v56  ;;  %6314 = vmatmul.mubr.f32.gmra.mxu0 %v15395_v54  ;;  %6670 = vmatprep.subr.mxu1 %v15001_v44  ;;  %v15408_v61 = vld [vmem:[#allocation2 + $0x8] sm:$0xff] }
 0x4f5   :  { %v5507_v2 = vpop.f32.mrf.mxu1  ;;  %6318 = vmatprep.mubr.f32.mxu0 %v5854_v0  ;;  %6671 = vmatpush1.msra.mxu1 %v6004_v53  ;;  %v6002_v53 = vld [vmem:[#allocation3] sm:$0xff] }
 0x4f6   :  { %5896 = vst [vmem:[#allocation2 + $0x188] sm:$0xff] %v16252_v29  ;;  %v15404_v28 = vadd.f32 %v15140_v24, %v5794_v6  ;;  %v5733_v56 = vadd.f32 %v5732_v60, %v5507_v2  ;;  %6672 = vmatprep.subr.mxu1 %v15408_v61  ;;  %10043 = vmatprep.subr.mxu0 %v6038_v50  ;;  %v6037_v6 = vld [vmem:[#allocation3 + $0x118] sm:$0xff] }
 0x4f7   :  { %v5509_v41 = vpop.f32.mrf.mxu1  ;;  %6673 = vmatpush1.msra.mxu1 %v6003_v9  ;;  %10044 = vmatpush3.msra.mxu0 %v6038_v50  ;;  %v5742_v9 = vpop.f32.mrf.mxu0 }
 0x4f8   :  { %v16251_v44 = vmax.f32 %v15404_v28, 0.0  ;;  %v5795_v52 = vadd.f32 %v5733_v56, %v5138_v3  ;;  %6319 = vmatmul.mubr.f32.gmra.mxu0 %v15412_v31  ;;  %6674 = vmatprep.subr.mxu1 %v15408_v61  ;;  %v6033_v3 = vld [vmem:[#allocation3 + $0xf8] sm:$0xff] }
 0x4f9   :  { %v5512_v60 = vpop.f32.mrf.mxu1  ;;  %v15415_v47 = vld [vmem:[#allocation2 + $0x169] sm:$0xff]  ;;  %v15417_v0 = vld [vmem:[#allocation2 + $0x171] sm:$0xff]  ;;  %6323 = vmatprep.mubr.f32.mxu0 %v5855_v18  ;;  %10045 = vmatprep.subr.mxu0 %v6037_v6 }
 0x4fa   :  { %5897 = vst [vmem:[#allocation2 + $0x190] sm:$0xff] %v16251_v44  ;;  %v15423_v2 = vadd.f32 %v15140_v24, %v5795_v52  ;;  %v5738_v26 = vadd.f32 %v9931_v58, %v5512_v60  ;;  %10003 = vmatprep.mubr.f32.mxu1 %v15415_v47  ;;  %v15431_v44 = vld [vmem:[#allocation2 + $0xef] sm:$0xff]  ;;  %6675 = vmatpush1.msra.mxu1 %v6002_v53  ;;  %v16341_v18 = vld [vmem:[#allocation20_spill] sm:$0xff]  ;;  %v9937_v53 = vpop.f32.mrf.mxu0 }
 0x4fb   :  { %v5514_v50 = vpop.f32.mrf.mxu1  ;;  %10004 = vmatmul.mubr.f32.gmra.mxu1 %v15417_v0  ;;  %10046 = vmatpush3.msra.mxu0 %v6037_v6  ;;  %v6036_v58 = vld [vmem:[#allocation3 + $0x110] sm:$0xff]  ;;  %v5148_v60 = vadd.f32 %v16341_v18, %v15116_v36  ;;  %v15446_v36 = vld [vmem:[#allocation2 + $0x107] sm:$0xff] }
 0x4fc   :  { %v16254_v56 = vmax.f32 %v15423_v2, 0.0  ;;  %v5796_v41 = vadd.f32 %v5738_v26, %v15114_v17  ;;  %6324 = vmatmul.mubr.f32.gmra.mxu0 %v15431_v44  ;;  %6676 = vmatprep.subr.mxu1 %v15408_v61  ;;  %v6035_v18 = vld [vmem:[#allocation3 + $0x108] sm:$0xff] }
 0x4fd   :  { %v5517_v52 = vpop.f32.mrf.mxu1  ;;  %6328 = vmatprep.mubr.f32.mxu0 %v5856_v4  ;;  %6677 = vmatpush2.msra.mxu1 %v6033_v3  ;;  %v6031_v4 = vld [vmem:[#allocation3 + $0xe8] sm:$0xff] }
 0x4fe   :  { %5898 = vst [vmem:[#allocation2 + $0x1a8] sm:$0xff] %v16254_v56  ;;  %v15440_v50 = vadd.f32 %v15140_v24, %v5796_v41  ;;  %v5743_v17 = vadd.f32 %v5742_v9, %v5517_v52  ;;  %6678 = vmatprep.subr.mxu1 %v15408_v61  ;;  %10047 = vmatprep.subr.mxu0 %v6036_v58 }
 0x4ff   :  { %v5519_v6 = vpop.f32.mrf.mxu1  ;;  %6679 = vmatpush2.msra.mxu1 %v6032_v12  ;;  %10048 = vmatpush3.msra.mxu0 %v6036_v58  ;;  %v5752_v12 = vpop.f32.mrf.mxu0 }
 0x500   :  { %v16253_v26 = vmax.f32 %v15440_v50, 0.0  ;;  %v5797_v29 = vadd.f32 %v5743_v17, %v5148_v60  ;;  %6329 = vmatmul.mubr.f32.gmra.mxu0 %v15446_v36  ;;  %6680 = vmatprep.subr.mxu1 %v15408_v61  ;;  %v6030_v60 = vld [vmem:[#allocation3 + $0xe0] sm:$0xff] }
 0x501   :  { %v5522_v41 = vpop.f32.mrf.mxu1  ;;  %v15449_v9 = vld [vmem:[#allocation2 + $0x189] sm:$0xff]  ;;  %v15451_v7 = vld [vmem:[#allocation2 + $0x191] sm:$0xff]  ;;  %6333 = vmatprep.mubr.f32.mxu0 %v5857_v20  ;;  %10049 = vmatprep.subr.mxu0 %v6035_v18  ;;  %v16342_v20 = vld [vmem:[#allocation13_spill] sm:$0xff] }
 0x502   :  { %5899 = vst [vmem:[#allocation2 + $0x1b0] sm:$0xff] %v16253_v26  ;;  %v15457_v3 = vadd.f32 %v15140_v24, %v5797_v29  ;;  %v5748_v52 = vadd.f32 %v9934_v43, %v5522_v41  ;;  %10006 = vmatprep.mubr.f32.mxu1 %v15449_v9  ;;  %v15465_v26 = vld [vmem:[#allocation2 + $0x10f] sm:$0xff]  ;;  %6681 = vmatpush2.msra.mxu1 %v6031_v4  ;;  %v6034_v29 = vld [vmem:[#allocation3 + $0x100] sm:$0xff]  ;;  %v9940_v4 = vpop.f32.mrf.mxu0 }
 0x503   :  { %v5524_v58 = vpop.f32.mrf.mxu1  ;;  %10007 = vmatmul.mubr.f32.gmra.mxu1 %v15451_v7  ;;  %10050 = vmatpush3.msra.mxu0 %v6035_v18  ;;  %v5158_v41 = vadd.f32 %v16342_v20, %v15123_v37  ;;  %v15480_v37 = vld [vmem:[#allocation2 + $0x127] sm:$0xff] }
 0x504   :  { %v5868_v17 = vmax.f32 %v15457_v3, 0.0  ;;  %v5798_v6 = vadd.f32 %v5748_v52, %v15121_v45  ;;  %6334 = vmatmul.mubr.f32.gmra.mxu0 %v15465_v26  ;;  %6682 = vmatprep.subr.mxu1 %v15408_v61  ;;  %v7230_v3 = vld [vmem:[#allocation3 + $0x440] sm:$0xff] }
 0x505   :  { %v5527_v43 = vpop.f32.mrf.mxu1  ;;  %6338 = vmatprep.mubr.f32.mxu0 %v5858_v35  ;;  %6683 = vmatpush2.msra.mxu1 %v6030_v60  ;;  %v6028_v35 = vld [vmem:[#allocation3 + $0xd0] sm:$0xff] }
 0x506   :  { %5900 = vst [vmem:[#allocation2 + $0x1c8] sm:$0xff] %v5868_v17  ;;  %v15474_v58 = vadd.f32 %v15140_v24, %v5798_v6  ;;  %v5753_v45 = vadd.f32 %v5752_v12, %v5527_v43  ;;  %6684 = vmatprep.subr.mxu1 %v15408_v61  ;;  %10051 = vmatprep.subr.mxu0 %v6034_v29  ;;  %v5762_v43 = vpop.f32.mrf.mxu0 }
 0x507   :  { %v5529_v18 = vpop.f32.mrf.mxu1  ;;  %6685 = vmatpush2.msra.mxu1 %v6029_v13  ;;  %10052 = vmatpush3.msra.mxu0 %v6034_v29  ;;  %v6027_v13 = vld [vmem:[#allocation3 + $0xc8] sm:$0xff] }
 0x508   :  { %v16255_v52 = vmax.f32 %v15474_v58, 0.0  ;;  %v5799_v56 = vadd.f32 %v5753_v45, %v5158_v41  ;;  %6339 = vmatmul.mubr.f32.gmra.mxu0 %v15480_v37  ;;  %6686 = vmatprep.subr.mxu1 %v15408_v61  ;;  %v15500_v18 = vld [vmem:[#allocation2 + $0x12f] sm:$0xff] }
 0x509   :  { %v5532_v20 = vpop.f32.mrf.mxu1  ;;  %v15483_v12 = vld [vmem:[#allocation2 + $0x1a9] sm:$0xff]  ;;  %v15485_v38 = vld [vmem:[#allocation2 + $0x1b1] sm:$0xff]  ;;  %6343 = vmatprep.mubr.f32.mxu0 %v5859_v30  ;;  %7238 = vmatprep.subr.mxu0 %v15408_v61 }
 0x50a   :  { %5901 = vst [vmem:[#allocation2 + $0x1d0] sm:$0xff] %v16255_v52  ;;  %v15491_v60 = vadd.f32 %v15140_v24, %v5799_v56  ;;  %v5758_v6 = vadd.f32 %v9937_v53, %v5532_v20  ;;  %10009 = vmatprep.mubr.f32.mxu1 %v15483_v12  ;;  %6687 = vmatpush2.msra.mxu1 %v6028_v35  ;;  %v16343_v30 = vld [vmem:[#allocation10_spill] sm:$0xff] }
 0x50b   :  { %v5534_v29 = vpop.f32.mrf.mxu1  ;;  %10010 = vmatmul.mubr.f32.gmra.mxu1 %v15485_v38  ;;  %6688 = vmatprep.subr.mxu1 %v15408_v61  ;;  %v5168_v53 = vadd.f32 %v16343_v30, %v15130_v10  ;;  %v15515_v52 = vld [vmem:[#allocation2 + $0x147] sm:$0xff] }
 0x50c   :  { %v5870_v41 = vmax.f32 %v15491_v60, 0.0  ;;  %v5800_v45 = vadd.f32 %v5758_v6, %v15128_v63  ;;  %6344 = vmatmul.mubr.f32.gmra.mxu0 %v15500_v18  ;;  %6689 = vmatpush2.msra.mxu1 %v6027_v13  ;;  %v6024_v13 = vld [vmem:[#allocation3 + $0xb0] sm:$0xff]  ;;  %v7226_v60 = vld [vmem:[#allocation3 + $0x420] sm:$0xff] }
 0x50d   :  { %v5537_v56 = vpop.f32.mrf.mxu1  ;;  %6348 = vmatprep.mubr.f32.mxu0 %v5860_v11  ;;  %6690 = vmatprep.subr.mxu1 %v15408_v61 }
 0x50e   :  { %5902 = vst [vmem:[#allocation2 + $0x1e8] sm:$0xff] %v5870_v41  ;;  %v15509_v20 = vadd.f32 %v15140_v24, %v5800_v45  ;;  %v5763_v29 = vadd.f32 %v5762_v43, %v5537_v56  ;;  %6691 = vmatpush2.msra.mxu1 %v6026_v32 }
 0x50f   :  { %v5539_v63 = vpop.f32.mrf.mxu1  ;;  %6692 = vmatprep.subr.mxu1 %v15408_v61 }
 0x510   :  { %v5871_v35 = vmax.f32 %v15509_v20, 0.0  ;;  %v5801_v6 = vadd.f32 %v5763_v29, %v5168_v53  ;;  %6349 = vmatmul.mubr.f32.gmra.mxu0 %v15515_v52  ;;  %v15534_v29 = vld [vmem:[#allocation2 + $0x14f] sm:$0xff]  ;;  %6693 = vmatpush2.msra.mxu1 %v6025_v39  ;;  %v16344_v39 = vmax.f32 %v15387_v19, 0.0  ;;  %v6018_v19 = vld [vmem:[#allocation3 + $0x80] sm:$0xff] }
 0x511   :  { %v5542_v10 = vpop.f32.mrf.mxu1  ;;  %v15518_v30 = vld [vmem:[#allocation2 + $0x1c9] sm:$0xff]  ;;  %v15520_v45 = vld [vmem:[#allocation2 + $0x1d1] sm:$0xff]  ;;  %6353 = vmatprep.mubr.f32.mxu0 %v5861_v5  ;;  %6694 = vmatprep.subr.mxu1 %v15408_v61 }
 0x512   :  { %5903 = vst [vmem:[#allocation2 + $0x1f0] sm:$0xff] %v5871_v35  ;;  %v15526_v11 = vadd.f32 %v15140_v24, %v5801_v6  ;;  %v5768_v43 = vadd.f32 %v9940_v4, %v5542_v10  ;;  %10012 = vmatprep.mubr.f32.mxu1 %v15518_v30  ;;  %v6023_v4 = vld [vmem:[#allocation3 + $0xa8] sm:$0xff]  ;;  %6695 = vmatpush2.msra.mxu1 %v6024_v13  ;;  %v6020_v10 = vld [vmem:[#allocation3 + $0x90] sm:$0xff] }
 0x513   :  { %10013 = vmatmul.mubr.f32.gmra.mxu1 %v15520_v45  ;;  %v5544_v56 = vpop.f32.mrf.mxu1  ;;  %6696 = vmatprep.subr.mxu1 %v15408_v61  ;;  %v15547_v5 = vld [vmem:[#allocation2 + $0x167] sm:$0xff]  ;;  %v7224_v20 = vld [vmem:[#allocation3 + $0x410] sm:$0xff] }
 0x514   :  { %v5872_v32 = vmax.f32 %v15526_v11, 0.0  ;;  %v5802_v53 = vadd.f32 %v5768_v43, %v15133_v23  ;;  %6354 = vmatmul.mubr.f32.gmra.mxu0 %v15534_v29  ;;  %6697 = vmatpush2.msra.mxu1 %v6023_v4  ;;  %v15568_v43 = vld [vmem:[#allocation2 + $0x187] sm:$0xff]  ;;  %v16345_v56 = vmax.f32 %v15404_v28, 0.0 }
 0x515   :  { %6358 = vmatprep.mubr.f32.mxu0 %v5862_v42  ;;  %6698 = vmatprep.subr.mxu1 %v15408_v61  ;;  %v15561_v42 = vld [vmem:[#allocation2 + $0x16f] sm:$0xff]  ;;  %v5906_v4 = vld [vmem:[#allocation2 + $0x7] sm:$0xff] }
 0x516   :  { %5904 = vst [vmem:[#allocation2 + $0x208] sm:$0xff] %v5872_v32  ;;  %v15541_v55 = vadd.f32 %v15140_v24, %v5802_v53  ;;  %v6022_v24 = vld [vmem:[#allocation3 + $0xa0] sm:$0xff]  ;;  %v6019_v13 = vld [vmem:[#allocation3 + $0x88] sm:$0xff] }
 0x517   :  { %6699 = vmatpush2.msra.mxu1 %v6022_v24  ;;  %v15574_v53 = vld [vmem:[#allocation2 + $0x18f] sm:$0xff]  ;;  %v7237_v24 = vld [vmem:[#allocation3 + $0x478] sm:$0xff]  ;;  %v15581_v28 = vld [vmem:[#allocation2 + $0x1a7] sm:$0xff] }
 0x518   :  { %v5873_v23 = vmax.f32 %v15541_v55, 0.0  ;;  %6359 = vmatmul.mubr.f32.gmra.mxu0 %v15547_v5  ;;  %6700 = vmatprep.subr.mxu1 %v15408_v61  ;;  %v7222_v11 = vld [vmem:[#allocation3 + $0x400] sm:$0xff]  ;;  %v15636_v55 = vld [vmem:[#allocation2 + $0x90] sm:$0xff] }
 0x519   :  { %v15550_v63 = vld [vmem:[#allocation2 + $0x1e9] sm:$0xff]  ;;  %v15552_v6 = vld [vmem:[#allocation2 + $0x1f1] sm:$0xff]  ;;  %6363 = vmatprep.mubr.f32.mxu0 %v5863_v1  ;;  %6701 = vmatpush2.msra.mxu1 %v6021_v51  ;;  %v16346_v51 = vmax.f32 %v15423_v2, 0.0 }
 0x51a   :  { %5905 = vst [vmem:[#allocation2 + $0x210] sm:$0xff] %v5873_v23  ;;  %10015 = vmatprep.mubr.f32.mxu1 %v15550_v63  ;;  %6702 = vmatprep.subr.mxu1 %v15408_v61  ;;  %v5940_v2 = vld [vmem:[#allocation2 + $0x28] sm:$0xff] }
 0x51b   :  { %10016 = vmatmul.mubr.f32.gmra.mxu1 %v15552_v6 }
 0x51c   :  { %6364 = vmatmul.mubr.f32.gmra.mxu0 %v15561_v42  ;;  %6703 = vmatpush2.msra.mxu1 %v6020_v10  ;;  %v7236_v10 = vld [vmem:[#allocation3 + $0x470] sm:$0xff] }
 0x51d   :  { %6368 = vmatprep.mubr.f32.mxu0 %v16344_v39  ;;  %6704 = vmatprep.subr.mxu1 %v15408_v61  ;;  %v5907_v39 = vld [vmem:[#allocation2 + $0xf] sm:$0xff] }
 0x51e   :  { %6705 = vmatpush2.msra.mxu1 %v6019_v13  ;;  %v7234_v13 = vld [vmem:[#allocation3 + $0x460] sm:$0xff] }
 0x51f   :  { %6706 = vmatprep.subr.mxu1 %v15408_v61 }
 0x520   :  { %6369 = vmatmul.mubr.f32.gmra.mxu0 %v15568_v43  ;;  %6707 = vmatpush2.msra.mxu1 %v6018_v19  ;;  %v7233_v19 = vld [vmem:[#allocation3 + $0x458] sm:$0xff] }
 0x521   :  { %v6144_v48 = vld [vmem:[#allocation2 + $0x209] sm:$0xff]  ;;  %v6145_v1 = vld [vmem:[#allocation2 + $0x211] sm:$0xff]  ;;  %6373 = vmatprep.mubr.f32.mxu0 %v16345_v56  ;;  %10101 = vmatprep.subr.mxu1 %v7237_v24 }
 0x522   :  { %10018 = vmatprep.mubr.f32.mxu1 %v6144_v48  ;;  %v7235_v48 = vld [vmem:[#allocation3 + $0x468] sm:$0xff] }
 0x523   :  { %10019 = vmatmul.mubr.f32.gmra.mxu1 %v6145_v1  ;;  %v16347_v1 = vmax.f32 %v15440_v50, 0.0  ;;  %v15587_v56 = vld [vmem:[#allocation2 + $0x1af] sm:$0xff] }
 0x524   :  { %6708 = vmatprep.mubr.f32.mxu1 %v15408_v61  ;;  %6374 = vmatmul.mubr.f32.gmra.mxu0 %v15574_v53  ;;  %v5941_v50 = vld [vmem:[#allocation2 + $0x30] sm:$0xff] }
 0x525   :  { %6378 = vmatprep.mubr.f32.mxu0 %v16346_v51  ;;  %v7231_v51 = vld [vmem:[#allocation3 + $0x448] sm:$0xff] }
 0x527   :  { %6709 = vmatmul.mubr.f32.vlgmr.msra.gmra.mxu1 %v5906_v4  ;;  %v7232_v4 = vld [vmem:[#allocation3 + $0x450] sm:$0xff] }
 0x528   :  { %6713 = vmatprep.mubr.f32.mxu1 %v15408_v61  ;;  %10102 = vmatpush3.msra.mxu1 %v7237_v24  ;;  %v15593_v24 = vld [vmem:[#allocation2 + $0x1c7] sm:$0xff] }
 0x529   :  { %6379 = vmatmul.mubr.f32.gmra.mxu0 %v15581_v28  ;;  %10103 = vmatprep.subr.mxu1 %v7236_v10 }
 0x52a   :  { %6383 = vmatprep.mubr.f32.mxu0 %v16347_v1  ;;  %10104 = vmatpush3.msra.mxu1 %v7236_v10  ;;  %v16348_v10 = vmax.f32 %v15474_v58, 0.0  ;;  %v7228_v58 = vld [vmem:[#allocation3 + $0x430] sm:$0xff]  ;;  %v7227_v1 = vld [vmem:[#allocation3 + $0x428] sm:$0xff] }
 0x52b   :  { %6714 = vmatmul.mubr.f32.gmra.mxu1 %v5907_v39  ;;  %10105 = vmatprep.subr.mxu1 %v7235_v48  ;;  %v7229_v39 = vld [vmem:[#allocation3 + $0x438] sm:$0xff] }
 0x52c   :  { %6718 = vmatprep.mubr.f32.mxu1 %v5940_v2  ;;  %10106 = vmatpush3.msra.mxu1 %v7235_v48  ;;  %v15611_v48 = vld [vmem:[#allocation2 + $0x1e7] sm:$0xff] }
 0x52d   :  { %6384 = vmatmul.mubr.f32.gmra.mxu0 %v15587_v56  ;;  %10107 = vmatprep.subr.mxu1 %v7234_v13  ;;  %v7223_v2 = vld [vmem:[#allocation3 + $0x408] sm:$0xff] }
 0x52e   :  { %6388 = vmatprep.mubr.f32.mxu0 %v5868_v17  ;;  %10108 = vmatpush3.msra.mxu1 %v7234_v13  ;;  %v15599_v17 = vld [vmem:[#allocation2 + $0x48] sm:$0xff]  ;;  %v7225_v13 = vld [vmem:[#allocation3 + $0x418] sm:$0xff] }
 0x52f   :  { %6719 = vmatmul.mubr.f32.gmra.mxu1 %v15190_v21  ;;  %10109 = vmatprep.subr.mxu1 %v7233_v19  ;;  %v15602_v21 = vld [vmem:[#allocation2 + $0x1cf] sm:$0xff] }
 0x530   :  { %6723 = vmatprep.mubr.f32.mxu1 %v5941_v50  ;;  %10110 = vmatpush3.msra.mxu1 %v7233_v19  ;;  %v6081_v19 = vld [vmem:[#allocation2 + $0x20f] sm:$0xff] }
 0x531   :  { %6389 = vmatmul.mubr.f32.gmra.mxu0 %v15593_v24  ;;  %10111 = vmatprep.subr.mxu1 %v7232_v4  ;;  %v7204_v50 = vld [vmem:[#allocation3 + $0x370] sm:$0xff] }
 0x532   :  { %6393 = vmatprep.mubr.f32.mxu0 %v16348_v10  ;;  %10112 = vmatpush3.msra.mxu1 %v7232_v4  ;;  %v5971_v4 = vld [vmem:[#allocation2 + $0x11] sm:$0xff]  ;;  %v7203_v10 = vld [vmem:[#allocation3 + $0x368] sm:$0xff] }
 0x533   :  { %6724 = vmatmul.mubr.f32.gmra.mxu1 %v15210_v16  ;;  %10113 = vmatprep.subr.mxu1 %v7231_v51  ;;  %v15608_v16 = vld [vmem:[#allocation2 + $0x50] sm:$0xff] }
 0x534   :  { %6728 = vmatprep.mubr.f32.mxu1 %v15599_v17  ;;  %10114 = vmatpush3.msra.mxu1 %v7231_v51  ;;  %v15640_v51 = vld [vmem:[#allocation2 + $0xa8] sm:$0xff] }
 0x535   :  { %6394 = vmatmul.mubr.f32.gmra.mxu0 %v15602_v21  ;;  %10115 = vmatprep.subr.mxu1 %v7230_v3 }
 0x536   :  { %6398 = vmatprep.mubr.f32.mxu0 %v5870_v41  ;;  %10116 = vmatpush3.msra.mxu1 %v7230_v3  ;;  %v15620_v41 = vld [vmem:[#allocation2 + $0x1ef] sm:$0xff] }
 0x537   :  { %6729 = vmatmul.mubr.f32.gmra.mxu1 %v15232_v14  ;;  %10117 = vmatprep.subr.mxu1 %v7229_v39  ;;  %v15617_v14 = vld [vmem:[#allocation2 + $0x68] sm:$0xff] }
 0x538   :  { %6733 = vmatprep.mubr.f32.mxu1 %v15608_v16  ;;  %10118 = vmatpush3.msra.mxu1 %v7229_v39  ;;  %v15645_v3 = vld [vmem:[#allocation2 + $0x49] sm:$0xff]  ;;  %v7202_v39 = vld [vmem:[#allocation3 + $0x360] sm:$0xff] }
 0x539   :  { %6399 = vmatmul.mubr.f32.gmra.mxu0 %v15611_v48  ;;  %10119 = vmatprep.subr.mxu1 %v7228_v58 }
 0x53a   :  { %6403 = vmatprep.mubr.f32.mxu0 %v5871_v35  ;;  %10120 = vmatpush3.msra.mxu1 %v7228_v58  ;;  %v6080_v35 = vld [vmem:[#allocation2 + $0x207] sm:$0xff]  ;;  %v7201_v58 = vld [vmem:[#allocation3 + $0x358] sm:$0xff] }
 0x53b   :  { %6734 = vmatmul.mubr.f32.gmra.mxu1 %v15254_v46  ;;  %10121 = vmatprep.subr.mxu1 %v7227_v1  ;;  %v15626_v46 = vld [vmem:[#allocation2 + $0x70] sm:$0xff] }
 0x53c   :  { %6738 = vmatprep.mubr.f32.mxu1 %v15617_v14  ;;  %10122 = vmatpush3.msra.mxu1 %v7227_v1  ;;  %v15653_v1 = vld [vmem:[#allocation2 + $0x51] sm:$0xff] }
 0x53d   :  { %6404 = vmatmul.mubr.f32.gmra.mxu0 %v15620_v41  ;;  %10123 = vmatprep.subr.mxu1 %v7226_v60 }
 0x53e   :  { %6408 = vmatprep.mubr.f32.mxu0 %v5872_v32  ;;  %10124 = vmatpush3.msra.mxu1 %v7226_v60  ;;  %v15632_v32 = vld [vmem:[#allocation2 + $0x88] sm:$0xff] }
 0x53f   :  { %6739 = vmatmul.mubr.f32.gmra.mxu1 %v15273_v25  ;;  %10125 = vmatprep.subr.mxu1 %v7225_v13  ;;  %v5970_v25 = vld [vmem:[#allocation2 + $0x9] sm:$0xff] }
 0x540   :  { %6743 = vmatprep.mubr.f32.mxu1 %v15626_v46  ;;  %10126 = vmatpush3.msra.mxu1 %v7225_v13  ;;  %v15657_v60 = vld [vmem:[#allocation2 + $0x69] sm:$0xff] }
 0x541   :  { %6409 = vmatmul.mubr.f32.gmra.mxu0 %v6080_v35  ;;  %10127 = vmatprep.subr.mxu1 %v7224_v20  ;;  %v7200_v13 = vld [vmem:[#allocation3 + $0x350] sm:$0xff] }
 0x542   :  { %6413 = vmatprep.mubr.f32.mxu0 %v5873_v23  ;;  %10128 = vmatpush3.msra.mxu1 %v7224_v20  ;;  %v7205_v23 = vld [vmem:[#allocation3 + $0x378] sm:$0xff]  ;;  %v7199_v20 = vld [vmem:[#allocation3 + $0x348] sm:$0xff] }
 0x543   :  { %6744 = vmatmul.mubr.f32.gmra.mxu1 %v15291_v8  ;;  %10129 = vmatprep.subr.mxu1 %v7223_v2  ;;  %v5972_v8 = vld [vmem:[#allocation2 + $0x29] sm:$0xff]  ;;  %v15665_v35 = vld [vmem:[#allocation2 + $0x71] sm:$0xff] }
 0x544   :  { %6748 = vmatprep.mubr.f32.mxu1 %v15632_v32  ;;  %10130 = vmatpush3.msra.mxu1 %v7223_v2  ;;  %v15669_v2 = vld [vmem:[#allocation2 + $0x89] sm:$0xff] }
 0x545   :  { %6414 = vmatmul.mubr.f32.gmra.mxu0 %v6081_v19  ;;  %10131 = vmatprep.subr.mxu1 %v7222_v11  ;;  %v15677_v19 = vld [vmem:[#allocation2 + $0x91] sm:$0xff] }
 0x546   :  { %10053 = vmatprep.mubr.f32.mxu0 %v5970_v25  ;;  %10132 = vmatpush3.msra.mxu1 %v7222_v11  ;;  %v7198_v11 = vld [vmem:[#allocation3 + $0x340] sm:$0xff]  ;;  %v7197_v25 = vld [vmem:[#allocation3 + $0x338] sm:$0xff] }
 0x547   :  { %6749 = vmatmul.mubr.f32.gmra.mxu1 %v15309_v15  ;;  %v5973_v15 = vld [vmem:[#allocation2 + $0x31] sm:$0xff] }
 0x548   :  { %6753 = vmatprep.mubr.f32.mxu1 %v15636_v55 }
 0x549   :  { %10054 = vmatmul.mubr.f32.vlgmr.msra.gmra.mxu0 %v5971_v4  ;;  %v15681_v4 = vld [vmem:[#allocation2 + $0xa9] sm:$0xff] }
 0x54a   :  { %10056 = vmatprep.mubr.f32.mxu0 %v5972_v8  ;;  %7239 = vmatpush1.msra.mxu0 %v7205_v23  ;;  %v7196_v23 = vld [vmem:[#allocation3 + $0x330] sm:$0xff]  ;;  %v7195_v8 = vld [vmem:[#allocation3 + $0x328] sm:$0xff] }
 0x54b   :  { %6754 = vmatmul.mubr.f32.gmra.mxu1 %v15326_v40  ;;  %7240 = vmatprep.subr.mxu0 %v15408_v61  ;;  %v15649_v40 = vld [vmem:[#allocation2 + $0xb0] sm:$0xff] }
 0x54c   :  { %6758 = vmatprep.mubr.f32.mxu1 %v15640_v51  ;;  %7241 = vmatpush1.msra.mxu0 %v7204_v50  ;;  %v15689_v50 = vld [vmem:[#allocation2 + $0xb1] sm:$0xff] }
 0x54d   :  { %10057 = vmatmul.mubr.f32.gmra.mxu0 %v5973_v15  ;;  %7242 = vmatprep.subr.mxu0 %v15408_v61  ;;  %v7194_v15 = vld [vmem:[#allocation3 + $0x320] sm:$0xff] }
 0x54e   :  { %10059 = vmatprep.mubr.f32.mxu0 %v15645_v3  ;;  %7243 = vmatpush1.msra.mxu0 %v7203_v10  ;;  %v15693_v10 = vld [vmem:[#allocation2 + $0xc9] sm:$0xff] }
 0x54f   :  { %6759 = vmatmul.mubr.f32.gmra.mxu1 %v15341_v49  ;;  %7244 = vmatprep.subr.mxu0 %v15408_v61  ;;  %v15661_v49 = vld [vmem:[#allocation2 + $0xc8] sm:$0xff] }
 0x550   :  { %6763 = vmatprep.mubr.f32.mxu1 %v15649_v40  ;;  %7245 = vmatpush1.msra.mxu0 %v7202_v39  ;;  %v7193_v39 = vld [vmem:[#allocation3 + $0x318] sm:$0xff] }
 0x551   :  { %10060 = vmatmul.mubr.f32.gmra.mxu0 %v15653_v1  ;;  %7246 = vmatprep.subr.mxu0 %v15408_v61 }
 0x552   :  { %10062 = vmatprep.mubr.f32.mxu0 %v15657_v60  ;;  %7247 = vmatpush1.msra.mxu0 %v7201_v58  ;;  %v15701_v58 = vld [vmem:[#allocation2 + $0xd1] sm:$0xff] }
 0x553   :  { %6764 = vmatmul.mubr.f32.gmra.mxu1 %v15361_v59  ;;  %7248 = vmatprep.subr.mxu0 %v15408_v61  ;;  %v15673_v59 = vld [vmem:[#allocation2 + $0xd0] sm:$0xff] }
 0x554   :  { %6768 = vmatprep.mubr.f32.mxu1 %v15661_v49  ;;  %7249 = vmatpush1.msra.mxu0 %v7200_v13  ;;  %v15705_v13 = vld [vmem:[#allocation2 + $0xe9] sm:$0xff] }
 0x555   :  { %10063 = vmatmul.mubr.f32.gmra.mxu0 %v15665_v35  ;;  %7250 = vmatprep.subr.mxu0 %v15408_v61 }
 0x556   :  { %10065 = vmatprep.mubr.f32.mxu0 %v15669_v2  ;;  %7251 = vmatpush1.msra.mxu0 %v7199_v20  ;;  %v7192_v20 = vld [vmem:[#allocation3 + $0x310] sm:$0xff] }
 0x557   :  { %6769 = vmatmul.mubr.f32.gmra.mxu1 %v15376_v33  ;;  %7252 = vmatprep.subr.mxu0 %v15408_v61  ;;  %v15685_v33 = vld [vmem:[#allocation2 + $0xe8] sm:$0xff] }
 0x558   :  { %6773 = vmatprep.mubr.f32.mxu1 %v15673_v59  ;;  %7253 = vmatpush1.msra.mxu0 %v7198_v11  ;;  %v7191_v11 = vld [vmem:[#allocation3 + $0x308] sm:$0xff] }
 0x559   :  { %10066 = vmatmul.mubr.f32.gmra.mxu0 %v15677_v19  ;;  %7254 = vmatprep.subr.mxu0 %v15408_v61 }
 0x55a   :  { %10068 = vmatprep.mubr.f32.mxu0 %v15681_v4  ;;  %7255 = vmatpush1.msra.mxu0 %v7197_v25  ;;  %v15713_v25 = vld [vmem:[#allocation2 + $0xf1] sm:$0xff] }
 0x55b   :  { %6774 = vmatmul.mubr.f32.gmra.mxu1 %v15395_v54  ;;  %7256 = vmatprep.subr.mxu0 %v15408_v61  ;;  %v15697_v54 = vld [vmem:[#allocation2 + $0xf0] sm:$0xff] }
 0x55c   :  { %6778 = vmatprep.mubr.f32.mxu1 %v15685_v33  ;;  %7257 = vmatpush1.msra.mxu0 %v7196_v23  ;;  %v7190_v23 = vld [vmem:[#allocation3 + $0x300] sm:$0xff] }
 0x55d   :  { %10069 = vmatmul.mubr.f32.gmra.mxu0 %v15689_v50  ;;  %7258 = vmatprep.subr.mxu0 %v15408_v61 }
 0x55e   :  { %10071 = vmatprep.mubr.f32.mxu0 %v15693_v10  ;;  %7259 = vmatpush1.msra.mxu0 %v7195_v8  ;;  %v7221_v8 = vld [vmem:[#allocation3 + $0x3f8] sm:$0xff] }
 0x55f   :  { %6779 = vmatmul.mubr.f32.gmra.mxu1 %v15412_v31  ;;  %7260 = vmatprep.subr.mxu0 %v15408_v61  ;;  %v15709_v31 = vld [vmem:[#allocation2 + $0x108] sm:$0xff] }
 0x560   :  { %6783 = vmatprep.mubr.f32.mxu1 %v15697_v54  ;;  %7261 = vmatpush1.msra.mxu0 %v7194_v15  ;;  %v15723_v15 = vld [vmem:[#allocation2 + $0x111] sm:$0xff] }
 0x561   :  { %10072 = vmatmul.mubr.f32.gmra.mxu0 %v15701_v58  ;;  %7262 = vmatprep.subr.mxu0 %v15408_v61 }
 0x562   :  { %10074 = vmatprep.mubr.f32.mxu0 %v15705_v13  ;;  %7263 = vmatpush1.msra.mxu0 %v7193_v39  ;;  %v7220_v39 = vld [vmem:[#allocation3 + $0x3f0] sm:$0xff] }
 0x563   :  { %6784 = vmatmul.mubr.f32.gmra.mxu1 %v15431_v44  ;;  %7264 = vmatprep.subr.mxu0 %v15408_v61  ;;  %v15719_v44 = vld [vmem:[#allocation2 + $0x110] sm:$0xff] }
 0x564   :  { %6788 = vmatprep.mubr.f32.mxu1 %v15709_v31  ;;  %7265 = vmatpush1.msra.mxu0 %v7192_v20  ;;  %v7218_v20 = vld [vmem:[#allocation3 + $0x3e0] sm:$0xff] }
 0x565   :  { %10075 = vmatmul.mubr.f32.gmra.mxu0 %v15713_v25  ;;  %7266 = vmatprep.subr.mxu0 %v15408_v61 }
 0x566   :  { %10077 = vmatprep.mubr.f32.mxu0 %v15324_v22  ;;  %7267 = vmatpush1.msra.mxu0 %v7191_v11  ;;  %v15729_v22 = vld [vmem:[#allocation2 + $0x128] sm:$0xff] }
 0x567   :  { %6789 = vmatmul.mubr.f32.gmra.mxu1 %v15446_v36  ;;  %7268 = vmatprep.subr.mxu0 %v15408_v61  ;;  %v7219_v36 = vld [vmem:[#allocation3 + $0x3e8] sm:$0xff] }
 0x568   :  { %6793 = vmatprep.mubr.f32.mxu1 %v15719_v44  ;;  %7269 = vmatpush1.msra.mxu0 %v7190_v23 }
 0x569   :  { %10078 = vmatmul.mubr.f32.gmra.mxu0 %v15723_v15  ;;  %7270 = vmatprep.subr.mxu0 %v15408_v61 }
 0x56a   :  { %10080 = vmatprep.mubr.f32.mxu0 %v15345_v57  ;;  %7271 = vmatpush2.msra.mxu0 %v7221_v8  ;;  %v15737_v57 = vld [vmem:[#allocation2 + $0x130] sm:$0xff]  ;;  %v15791_v8 = vld [vmem:[#allocation2 + $0x1a8] sm:$0xff] }
 0x56b   :  { %6794 = vmatmul.mubr.f32.gmra.mxu1 %v15465_v26  ;;  %7272 = vmatprep.subr.mxu0 %v15408_v61  ;;  %v7217_v26 = vld [vmem:[#allocation3 + $0x3d8] sm:$0xff] }
 0x56c   :  { %6798 = vmatprep.mubr.f32.mxu1 %v15729_v22  ;;  %7273 = vmatpush2.msra.mxu0 %v7220_v39 }
 0x56d   :  { %10081 = vmatmul.mubr.f32.gmra.mxu0 %v15347_v34  ;;  %7274 = vmatprep.subr.mxu0 %v15408_v61  ;;  %v7216_v34 = vld [vmem:[#allocation3 + $0x3d0] sm:$0xff] }
 0x56e   :  { %10083 = vmatprep.mubr.f32.mxu0 %v15379_v62  ;;  %7275 = vmatpush2.msra.mxu0 %v7219_v36  ;;  %v15745_v62 = vld [vmem:[#allocation2 + $0x148] sm:$0xff] }
 0x56f   :  { %6799 = vmatmul.mubr.f32.gmra.mxu1 %v15480_v37  ;;  %7276 = vmatprep.subr.mxu0 %v15408_v61  ;;  %v7215_v37 = vld [vmem:[#allocation3 + $0x3c8] sm:$0xff] }
 0x570   :  { %6803 = vmatprep.mubr.f32.mxu1 %v15737_v57  ;;  %7277 = vmatpush2.msra.mxu0 %v7218_v20 }
 0x571   :  { %10084 = vmatmul.mubr.f32.gmra.mxu0 %v15381_v27  ;;  %7278 = vmatprep.subr.mxu0 %v15408_v61  ;;  %v7214_v27 = vld [vmem:[#allocation3 + $0x3c0] sm:$0xff] }
 0x572   :  { %10086 = vmatprep.mubr.f32.mxu0 %v15415_v47  ;;  %7279 = vmatpush2.msra.mxu0 %v7217_v26  ;;  %v15753_v47 = vld [vmem:[#allocation2 + $0x150] sm:$0xff] }
 0x573   :  { %6804 = vmatmul.mubr.f32.gmra.mxu1 %v15500_v18  ;;  %7280 = vmatprep.subr.mxu0 %v15408_v61  ;;  %v7213_v18 = vld [vmem:[#allocation3 + $0x3b8] sm:$0xff] }
 0x574   :  { %6808 = vmatprep.mubr.f32.mxu1 %v15745_v62  ;;  %7281 = vmatpush2.msra.mxu0 %v7216_v34  ;;  %v7096_v34 = vld [vmem:[#allocation2 + $0x67] sm:$0xff] }
 0x575   :  { %10087 = vmatmul.mubr.f32.gmra.mxu0 %v15417_v0  ;;  %7282 = vmatprep.subr.mxu0 %v15408_v61  ;;  %v7212_v0 = vld [vmem:[#allocation3 + $0x3b0] sm:$0xff] }
 0x576   :  { %10089 = vmatprep.mubr.f32.mxu0 %v15449_v9  ;;  %7283 = vmatpush2.msra.mxu0 %v7215_v37  ;;  %v15761_v9 = vld [vmem:[#allocation2 + $0x168] sm:$0xff] }
 0x577   :  { %6809 = vmatmul.mubr.f32.gmra.mxu1 %v15515_v52  ;;  %7284 = vmatprep.subr.mxu0 %v15408_v61  ;;  %v7211_v52 = vld [vmem:[#allocation3 + $0x3a8] sm:$0xff] }
 0x578   :  { %6813 = vmatprep.mubr.f32.mxu1 %v15753_v47  ;;  %7285 = vmatpush2.msra.mxu0 %v7214_v27 }
 0x579   :  { %10090 = vmatmul.mubr.f32.gmra.mxu0 %v15451_v7  ;;  %7286 = vmatprep.subr.mxu0 %v15408_v61  ;;  %v7210_v7 = vld [vmem:[#allocation3 + $0x3a0] sm:$0xff] }
 0x57a   :  { %10092 = vmatprep.mubr.f32.mxu0 %v15483_v12  ;;  %7287 = vmatpush2.msra.mxu0 %v7213_v18  ;;  %v15769_v12 = vld [vmem:[#allocation2 + $0x170] sm:$0xff] }
 0x57b   :  { %6814 = vmatmul.mubr.f32.gmra.mxu1 %v15534_v29  ;;  %7288 = vmatprep.subr.mxu0 %v15408_v61  ;;  %v7209_v29 = vld [vmem:[#allocation3 + $0x398] sm:$0xff] }
 0x57c   :  { %6818 = vmatprep.mubr.f32.mxu1 %v15761_v9  ;;  %7289 = vmatpush2.msra.mxu0 %v7212_v0 }
 0x57d   :  { %10093 = vmatmul.mubr.f32.gmra.mxu0 %v15485_v38  ;;  %7290 = vmatprep.subr.mxu0 %v15408_v61  ;;  %v7208_v38 = vld [vmem:[#allocation3 + $0x390] sm:$0xff] }
 0x57e   :  { %10095 = vmatprep.mubr.f32.mxu0 %v15518_v30  ;;  %7291 = vmatpush2.msra.mxu0 %v7211_v52  ;;  %v15777_v30 = vld [vmem:[#allocation2 + $0x188] sm:$0xff] }
 0x57f   :  { %6819 = vmatmul.mubr.f32.gmra.mxu1 %v15547_v5  ;;  %7292 = vmatprep.subr.mxu0 %v15408_v61  ;;  %v7207_v5 = vld [vmem:[#allocation3 + $0x388] sm:$0xff] }
 0x580   :  { %6823 = vmatprep.mubr.f32.mxu1 %v15769_v12  ;;  %7293 = vmatpush2.msra.mxu0 %v7210_v7  ;;  %v7097_v52 = vld [vmem:[#allocation2 + $0x6f] sm:$0xff] }
 0x581   :  { %10096 = vmatmul.mubr.f32.gmra.mxu0 %v15520_v45  ;;  %7294 = vmatprep.subr.mxu0 %v15408_v61  ;;  %v7206_v45 = vld [vmem:[#allocation3 + $0x380] sm:$0xff] }
 0x582   :  { %10098 = vmatprep.mubr.f32.mxu0 %v15550_v63  ;;  %7295 = vmatpush2.msra.mxu0 %v7209_v29  ;;  %v15785_v63 = vld [vmem:[#allocation2 + $0x190] sm:$0xff] }
 0x583   :  { %6824 = vmatmul.mubr.f32.gmra.mxu1 %v15561_v42  ;;  %7296 = vmatprep.subr.mxu0 %v15408_v61  ;;  %v7094_v42 = vld [vmem:[#allocation2 + $0x47] sm:$0xff] }
 0x584   :  { %6828 = vmatprep.mubr.f32.mxu1 %v15777_v30  ;;  %7297 = vmatpush2.msra.mxu0 %v7208_v38 }
 0x585   :  { %10099 = vmatmul.mubr.f32.gmra.mxu0 %v15552_v6  ;;  %7298 = vmatprep.subr.mxu0 %v15408_v61 }
 0x586   :  { %7299 = vmatpush2.msra.mxu0 %v7207_v5  ;;  %7302 = vmatprep.mubr.f32.mxu0 %v15599_v17 }
 0x587   :  { %6829 = vmatmul.mubr.f32.gmra.mxu1 %v15568_v43  ;;  %7300 = vmatprep.subr.mxu0 %v15408_v61  ;;  %v7095_v43 = vld [vmem:[#allocation2 + $0x4f] sm:$0xff] }
 0x588   :  { %6833 = vmatprep.mubr.f32.mxu1 %v15785_v63  ;;  %7301 = vmatpush2.msra.mxu0 %v7206_v45  ;;  %v6260_v11 = vpop.f32.mrf.mxu0  ;;  %v9975_v23 = vpop.f32.mrf.mxu1  ;;  %v7098_v45 = vld [vmem:[#allocation2 + $0x87] sm:$0xff] }
 0x589   :  { %7303 = vmatmul.mubr.f32.vlgmr.msra.gmra.mxu0 %v7094_v42 }
 0x58a   :  { %7307 = vmatprep.mubr.f32.mxu0 %v15608_v16  ;;  %v6262_v6 = vpop.f32.mrf.mxu0  ;;  %v6485_v17 = vpop.f32.mrf.mxu1 }
 0x58b   :  { %6834 = vmatmul.mubr.f32.gmra.mxu1 %v15574_v53  ;;  %v15794_v39 = vadd.f32 %v6485_v17, %v6260_v11  ;;  %v15800_v53 = vld [vmem:[#allocation2 + $0x1b0] sm:$0xff] }
 0x58c   :  { %6838 = vmatprep.mubr.f32.mxu1 %v15791_v8  ;;  %v6265_v61 = vpop.f32.mrf.mxu0 }
 0x58d   :  { %7308 = vmatmul.mubr.f32.gmra.mxu0 %v7095_v43  ;;  %v15796_v36 = vadd.f32 %v9975_v23, %v6265_v61  ;;  %v9978_v20 = vpop.f32.mrf.mxu1 }
 0x58e   :  { %7312 = vmatprep.mubr.f32.mxu0 %v15617_v14  ;;  %v6267_v16 = vpop.f32.mrf.mxu0  ;;  %v15807_v14 = vld [vmem:[#allocation2 + $0x1c8] sm:$0xff] }
 0x58f   :  { %6839 = vmatmul.mubr.f32.gmra.mxu1 %v15581_v28  ;;  %v6495_v26 = vpop.f32.mrf.mxu1 }
 0x590   :  { %6843 = vmatprep.mubr.f32.mxu1 %v15800_v53  ;;  %v6270_v37 = vpop.f32.mrf.mxu0 }
 0x591   :  { %7313 = vmatmul.mubr.f32.gmra.mxu0 %v7096_v34  ;;  %v15803_v27 = vadd.f32 %v6495_v26, %v6270_v37  ;;  %v9981_v18 = vpop.f32.mrf.mxu1 }
 0x592   :  { %7317 = vmatprep.mubr.f32.mxu0 %v15626_v46  ;;  %v6272_v0 = vpop.f32.mrf.mxu0  ;;  %v15814_v46 = vld [vmem:[#allocation2 + $0x1d0] sm:$0xff] }
 0x593   :  { %6844 = vmatmul.mubr.f32.gmra.mxu1 %v15587_v56  ;;  %v6505_v28 = vpop.f32.mrf.mxu1 }
 0x594   :  { %6848 = vmatprep.mubr.f32.mxu1 %v15807_v14  ;;  %v6275_v7 = vpop.f32.mrf.mxu0 }
 0x595   :  { %7318 = vmatmul.mubr.f32.gmra.mxu0 %v7097_v52  ;;  %v15810_v29 = vadd.f32 %v9978_v20, %v6275_v7  ;;  %v9984_v38 = vpop.f32.mrf.mxu1 }
 0x596   :  { %7322 = vmatprep.mubr.f32.mxu0 %v15632_v32  ;;  %v6277_v5 = vpop.f32.mrf.mxu0  ;;  %v15821_v32 = vld [vmem:[#allocation2 + $0x1e8] sm:$0xff] }
 0x597   :  { %6849 = vmatmul.mubr.f32.gmra.mxu1 %v15593_v24  ;;  %v6515_v56 = vpop.f32.mrf.mxu1  ;;  %v7099_v24 = vld [vmem:[#allocation2 + $0x8f] sm:$0xff] }
 0x598   :  { %6853 = vmatprep.mubr.f32.mxu1 %v15814_v46  ;;  %v6280_v42 = vpop.f32.mrf.mxu0 }
 0x599   :  { %7323 = vmatmul.mubr.f32.gmra.mxu0 %v7098_v45  ;;  %v15817_v11 = vadd.f32 %v6505_v28, %v6280_v42  ;;  %v9987_v23 = vpop.f32.mrf.mxu1 }
 0x59a   :  { %7327 = vmatprep.mubr.f32.mxu0 %v15636_v55  ;;  %v6282_v6 = vpop.f32.mrf.mxu0  ;;  %v15828_v55 = vld [vmem:[#allocation2 + $0x1f0] sm:$0xff] }
 0x59b   :  { %6854 = vmatmul.mubr.f32.gmra.mxu1 %v15602_v21  ;;  %v6525_v61 = vpop.f32.mrf.mxu1  ;;  %v7100_v21 = vld [vmem:[#allocation2 + $0xa7] sm:$0xff] }
 0x59c   :  { %6858 = vmatprep.mubr.f32.mxu1 %v15821_v32  ;;  %v6285_v17 = vpop.f32.mrf.mxu0 }
 0x59d   :  { %7328 = vmatmul.mubr.f32.gmra.mxu0 %v7099_v24  ;;  %v15824_v43 = vadd.f32 %v9981_v18, %v6285_v17  ;;  %v9990_v34 = vpop.f32.mrf.mxu1  ;;  %v7170_v17 = vld [vmem:[#allocation2 + $0x109] sm:$0xff] }
 0x59e   :  { %7332 = vmatprep.mubr.f32.mxu0 %v15640_v51  ;;  %v6287_v20 = vpop.f32.mrf.mxu0  ;;  %v7101_v51 = vld [vmem:[#allocation2 + $0xaf] sm:$0xff] }
 0x59f   :  { %6859 = vmatmul.mubr.f32.gmra.mxu1 %v15611_v48  ;;  %v6535_v0 = vpop.f32.mrf.mxu1 }
 0x5a0   :  { %6863 = vmatprep.mubr.f32.mxu1 %v15828_v55  ;;  %v6290_v16 = vpop.f32.mrf.mxu0 }
 0x5a1   :  { %7333 = vmatmul.mubr.f32.gmra.mxu0 %v7100_v21  ;;  %v15831_v26 = vadd.f32 %v6515_v56, %v6290_v16  ;;  %v7172_v16 = vld [vmem:[#allocation2 + $0x129] sm:$0xff] }
 0x5a2   :  { %7337 = vmatprep.mubr.f32.mxu0 %v15649_v40  ;;  %v6292_v37 = vpop.f32.mrf.mxu0  ;;  %v7102_v40 = vld [vmem:[#allocation2 + $0xc7] sm:$0xff] }
 0x5a3   :  { %6864 = vmatmul.mubr.f32.gmra.mxu1 %v15620_v41  ;;  %v7173_v37 = vld [vmem:[#allocation2 + $0x131] sm:$0xff] }
 0x5a4   :  { %10133 = vmatprep.mubr.f32.mxu1 %v15645_v3  ;;  %v6295_v48 = vpop.f32.mrf.mxu0  ;;  %v9993_v3 = vpop.f32.mrf.mxu1 }
 0x5a5   :  { %7338 = vmatmul.mubr.f32.gmra.mxu0 %v7101_v51  ;;  %v15836_v18 = vadd.f32 %v9984_v38, %v6295_v48 }
 0x5a6   :  { %7342 = vmatprep.mubr.f32.mxu0 %v15661_v49  ;;  %v6297_v28 = vpop.f32.mrf.mxu0  ;;  %v7103_v49 = vld [vmem:[#allocation2 + $0xcf] sm:$0xff] }
 0x5a7   :  { %10134 = vmatmul.mubr.f32.vlgmr.msra.gmra.mxu1 %v15653_v1 }
 0x5a8   :  { %10136 = vmatprep.mubr.f32.mxu1 %v15657_v60  ;;  %v6300_v52 = vpop.f32.mrf.mxu0  ;;  %v6545_v60 = vpop.f32.mrf.mxu1 }
 0x5a9   :  { %7343 = vmatmul.mubr.f32.gmra.mxu0 %v7102_v40  ;;  %v15841_v41 = vadd.f32 %v6525_v61, %v6300_v52  ;;  %v7175_v52 = vld [vmem:[#allocation2 + $0x151] sm:$0xff] }
 0x5aa   :  { %7347 = vmatprep.mubr.f32.mxu0 %v15673_v59  ;;  %v6302_v7 = vpop.f32.mrf.mxu0  ;;  %v7104_v59 = vld [vmem:[#allocation2 + $0xe7] sm:$0xff] }
 0x5ab   :  { %10137 = vmatmul.mubr.f32.gmra.mxu1 %v15665_v35  ;;  %v7176_v7 = vld [vmem:[#allocation2 + $0x169] sm:$0xff] }
 0x5ac   :  { %10139 = vmatprep.mubr.f32.mxu1 %v15669_v2  ;;  %v6305_v38 = vpop.f32.mrf.mxu0  ;;  %v9996_v2 = vpop.f32.mrf.mxu1 }
 0x5ad   :  { %7348 = vmatmul.mubr.f32.gmra.mxu0 %v7103_v49  ;;  %v15846_v1 = vadd.f32 %v9987_v23, %v6305_v38 }
 0x5ae   :  { %7352 = vmatprep.mubr.f32.mxu0 %v15685_v33  ;;  %v6307_v5 = vpop.f32.mrf.mxu0  ;;  %v7105_v33 = vld [vmem:[#allocation2 + $0xef] sm:$0xff] }
 0x5af   :  { %10140 = vmatmul.mubr.f32.gmra.mxu1 %v15677_v19  ;;  %v7177_v5 = vld [vmem:[#allocation2 + $0x171] sm:$0xff] }
 0x5b0   :  { %10142 = vmatprep.mubr.f32.mxu1 %v15681_v4  ;;  %v6310_v56 = vpop.f32.mrf.mxu0  ;;  %v6555_v4 = vpop.f32.mrf.mxu1 }
 0x5b1   :  { %7353 = vmatmul.mubr.f32.gmra.mxu0 %v7104_v59  ;;  %v15851_v35 = vadd.f32 %v6535_v0, %v6310_v56  ;;  %v7174_v0 = vld [vmem:[#allocation2 + $0x149] sm:$0xff] }
 0x5b2   :  { %7357 = vmatprep.mubr.f32.mxu0 %v15697_v54  ;;  %v6312_v45 = vpop.f32.mrf.mxu0  ;;  %v7106_v54 = vld [vmem:[#allocation2 + $0x107] sm:$0xff]  ;;  %v9999_v6 = vpop.f32.mrf.mxu1 }
 0x5b3   :  { %10143 = vmatmul.mubr.f32.gmra.mxu1 %v15689_v50 }
 0x5b4   :  { %10145 = vmatprep.mubr.f32.mxu1 %v15693_v10  ;;  %v6315_v42 = vpop.f32.mrf.mxu0  ;;  %v6565_v61 = vpop.f32.mrf.mxu1 }
 0x5b5   :  { %7358 = vmatmul.mubr.f32.gmra.mxu0 %v7105_v33  ;;  %v15856_v19 = vadd.f32 %v9990_v34, %v6315_v42  ;;  %v7179_v42 = vld [vmem:[#allocation2 + $0x191] sm:$0xff] }
 0x5b6   :  { %7362 = vmatprep.mubr.f32.mxu0 %v15709_v31  ;;  %v6317_v23 = vpop.f32.mrf.mxu0  ;;  %v7107_v31 = vld [vmem:[#allocation2 + $0x10f] sm:$0xff] }
 0x5b7   :  { %10146 = vmatmul.mubr.f32.gmra.mxu1 %v15701_v58 }
 0x5b8   :  { %10148 = vmatprep.mubr.f32.mxu1 %v15705_v13  ;;  %v6320_v24 = vpop.f32.mrf.mxu0  ;;  %v15868_v13 = vpop.f32.mrf.mxu1 }
 0x5b9   :  { %7363 = vmatmul.mubr.f32.gmra.mxu0 %v7106_v54  ;;  %v15861_v50 = vadd.f32 %v6545_v60, %v6320_v24  ;;  %v7180_v54 = vld [vmem:[#allocation2 + $0x1a9] sm:$0xff] }
 0x5ba   :  { %7367 = vmatprep.mubr.f32.mxu0 %v15719_v44  ;;  %v6322_v10 = vpop.f32.mrf.mxu0  ;;  %v7108_v44 = vld [vmem:[#allocation2 + $0x127] sm:$0xff]  ;;  %v6575_v51 = vpop.f32.mrf.mxu1 }
 0x5bb   :  { %10149 = vmatmul.mubr.f32.gmra.mxu1 %v15713_v25 }
 0x5bc   :  { %10151 = vmatprep.mubr.f32.mxu1 %v7170_v17  ;;  %v6325_v20 = vpop.f32.mrf.mxu0  ;;  %v15874_v28 = vpop.f32.mrf.mxu1 }
 0x5bd   :  { %7368 = vmatmul.mubr.f32.gmra.mxu0 %v7107_v31  ;;  %v15865_v58 = vadd.f32 %v9993_v3, %v6325_v20  ;;  %v7181_v31 = vld [vmem:[#allocation2 + $0x1b1] sm:$0xff] }
 0x5be   :  { %7372 = vmatprep.mubr.f32.mxu0 %v15729_v22  ;;  %v6327_v21 = vpop.f32.mrf.mxu0  ;;  %v7109_v22 = vld [vmem:[#allocation2 + $0x12f] sm:$0xff]  ;;  %v6585_v49 = vpop.f32.mrf.mxu1 }
 0x5bf   :  { %10152 = vmatmul.mubr.f32.gmra.mxu1 %v15723_v15 }
 0x5c0   :  { %10154 = vmatprep.mubr.f32.mxu1 %v7172_v16  ;;  %v6330_v25 = vpop.f32.mrf.mxu0 }
 0x5c1   :  { %7373 = vmatmul.mubr.f32.gmra.mxu0 %v7108_v44  ;;  %v15871_v34 = vadd.f32 %v6555_v4, %v6330_v25  ;;  %v7183_v44 = vld [vmem:[#allocation2 + $0x1d1] sm:$0xff] }
 0x5c2   :  { %7377 = vmatprep.mubr.f32.mxu0 %v15737_v57  ;;  %v6332_v48 = vpop.f32.mrf.mxu0  ;;  %v7110_v57 = vld [vmem:[#allocation2 + $0x147] sm:$0xff] }
 0x5c3   :  { %10155 = vmatmul.mubr.f32.gmra.mxu1 %v7173_v37  ;;  %v15882_v59 = vpop.f32.mrf.mxu1 }
 0x5c4   :  { %10157 = vmatprep.mubr.f32.mxu1 %v7174_v0  ;;  %v6335_v15 = vpop.f32.mrf.mxu0 }
 0x5c5   :  { %7378 = vmatmul.mubr.f32.gmra.mxu0 %v7109_v22  ;;  %v15876_v40 = vadd.f32 %v9996_v2, %v6335_v15  ;;  %v7178_v2 = vld [vmem:[#allocation2 + $0x189] sm:$0xff]  ;;  %v6595_v4 = vpop.f32.mrf.mxu1  ;;  %v7185_v22 = vld [vmem:[#allocation2 + $0x1f1] sm:$0xff] }
 0x5c6   :  { %7382 = vmatprep.mubr.f32.mxu0 %v15745_v62  ;;  %v6337_v3 = vpop.f32.mrf.mxu0  ;;  %v7111_v62 = vld [vmem:[#allocation2 + $0x14f] sm:$0xff] }
 0x5c7   :  { %10158 = vmatmul.mubr.f32.gmra.mxu1 %v7175_v52  ;;  %v7186_v52 = vld [vmem:[#allocation2 + $0x209] sm:$0xff] }
 0x5c8   :  { %10160 = vmatprep.mubr.f32.mxu1 %v7176_v7  ;;  %v6340_v38 = vpop.f32.mrf.mxu0 }
 0x5c9   :  { %7383 = vmatmul.mubr.f32.gmra.mxu0 %v7110_v57  ;;  %v15879_v60 = vadd.f32 %v6565_v61, %v6340_v38  ;;  %v7182_v61 = vld [vmem:[#allocation2 + $0x1c9] sm:$0xff] }
 0x5ca   :  { %7387 = vmatprep.mubr.f32.mxu0 %v15753_v47  ;;  %v6342_v56 = vpop.f32.mrf.mxu0  ;;  %v7112_v47 = vld [vmem:[#allocation2 + $0x167] sm:$0xff] }
 0x5cb   :  { %10161 = vmatmul.mubr.f32.gmra.mxu1 %v7177_v5  ;;  %v15887_v24 = vpop.f32.mrf.mxu1  ;;  %v7188_v57 = vld [vmem:[#allocation2 + $0x229] sm:$0xff]  ;;  %v7189_v56 = vld [vmem:[#allocation2 + $0x231] sm:$0xff] }
 0x5cc   :  { %10163 = vmatprep.mubr.f32.mxu1 %v7178_v2  ;;  %v6345_v45 = vpop.f32.mrf.mxu0  ;;  %v7116_v5 = vld [vmem:[#allocation2 + $0x1a7] sm:$0xff] }
 0x5cd   :  { %7388 = vmatmul.mubr.f32.gmra.mxu0 %v7111_v62  ;;  %v15884_v33 = vadd.f32 %v9999_v6, %v6345_v45  ;;  %v6605_v20 = vpop.f32.mrf.mxu1 }
 0x5ce   :  { %7392 = vmatprep.mubr.f32.mxu0 %v15761_v9  ;;  %v6347_v23 = vpop.f32.mrf.mxu0  ;;  %v7113_v9 = vld [vmem:[#allocation2 + $0x16f] sm:$0xff] }
 0x5cf   :  { %10164 = vmatmul.mubr.f32.gmra.mxu1 %v7179_v42 }
 0x5d0   :  { %10166 = vmatprep.mubr.f32.mxu1 %v7180_v54  ;;  %v6350_v10 = vpop.f32.mrf.mxu0 }
 0x5d1   :  { %7393 = vmatmul.mubr.f32.gmra.mxu0 %v7112_v47  ;;  %v15889_v17 = vadd.f32 %v6575_v51, %v6350_v10  ;;  %v7114_v51 = vld [vmem:[#allocation2 + $0x187] sm:$0xff] }
 0x5d2   :  { %7397 = vmatprep.mubr.f32.mxu0 %v15769_v12  ;;  %v6352_v6 = vpop.f32.mrf.mxu0  ;;  %v7184_v12 = vld [vmem:[#allocation2 + $0x1e9] sm:$0xff] }
 0x5d3   :  { %10167 = vmatmul.mubr.f32.gmra.mxu1 %v7181_v31  ;;  %v15896_v25 = vpop.f32.mrf.mxu1 }
 0x5d4   :  { %10169 = vmatprep.mubr.f32.mxu1 %v7182_v61  ;;  %v6355_v21 = vpop.f32.mrf.mxu0 }
 0x5d5   :  { %7398 = vmatmul.mubr.f32.gmra.mxu0 %v7113_v9  ;;  %v15893_v16 = vadd.f32 %v15868_v13, %v6355_v21  ;;  %v6615_v15 = vpop.f32.mrf.mxu1 }
 0x5d6   :  { %7402 = vmatprep.mubr.f32.mxu0 %v15777_v30  ;;  %v6357_v37 = vpop.f32.mrf.mxu0  ;;  %v7115_v30 = vld [vmem:[#allocation2 + $0x18f] sm:$0xff] }
 0x5d7   :  { %10170 = vmatmul.mubr.f32.gmra.mxu1 %v7183_v44  ;;  %v7119_v37 = vld [vmem:[#allocation2 + $0x1cf] sm:$0xff] }
 0x5d8   :  { %10172 = vmatprep.mubr.f32.mxu1 %v7184_v12  ;;  %v6360_v48 = vpop.f32.mrf.mxu0 }
 0x5d9   :  { %7403 = vmatmul.mubr.f32.gmra.mxu0 %v7114_v51  ;;  %v15898_v0 = vadd.f32 %v6585_v49, %v6360_v48  ;;  %v7187_v49 = vld [vmem:[#allocation2 + $0x211] sm:$0xff] }
 0x5da   :  { %7407 = vmatprep.mubr.f32.mxu0 %v15785_v63  ;;  %v6362_v13 = vpop.f32.mrf.mxu0 }
 0x5db   :  { %10173 = vmatmul.mubr.f32.gmra.mxu1 %v7185_v22  ;;  %v15901_v3 = vpop.f32.mrf.mxu1 }
 0x5dc   :  { %10175 = vmatprep.mubr.f32.mxu1 %v7186_v52  ;;  %v6365_v7 = vpop.f32.mrf.mxu0 }
 0x5dd   :  { %7408 = vmatmul.mubr.f32.gmra.mxu0 %v7115_v30  ;;  %v15904_v38 = vadd.f32 %v15874_v28, %v6365_v7  ;;  %v6625_v2 = vpop.f32.mrf.mxu1  ;;  %v7117_v28 = vld [vmem:[#allocation2 + $0x1af] sm:$0xff] }
 0x5de   :  { %7412 = vmatprep.mubr.f32.mxu0 %v15791_v8  ;;  %v6367_v63 = vpop.f32.mrf.mxu0  ;;  %v7121_v7 = vld [vmem:[#allocation2 + $0x1ef] sm:$0xff] }
 0x5df   :  { %10176 = vmatmul.mubr.f32.gmra.mxu1 %v7187_v49  ;;  %v7154_v49 = vld [vmem:[#allocation2 + $0x208] sm:$0xff] }
 0x5e0   :  { %10178 = vmatprep.mubr.f32.mxu1 %v7188_v57  ;;  %v6370_v62 = vpop.f32.mrf.mxu0 }
 0x5e1   :  { %7413 = vmatmul.mubr.f32.gmra.mxu0 %v7116_v5  ;;  %v15907_v45 = vadd.f32 %v6595_v4, %v6370_v62 }
 0x5e2   :  { %7417 = vmatprep.mubr.f32.mxu0 %v15800_v53  ;;  %v6372_v23 = vpop.f32.mrf.mxu0  ;;  %v7118_v53 = vld [vmem:[#allocation2 + $0x1c7] sm:$0xff] }
 0x5e3   :  { %v15910_v42 = vpop.f32.mrf.mxu1  ;;  %10179 = vmatmul.mubr.f32.gmra.mxu1 %v7189_v56  ;;  %v7122_v56 = vld [vmem:[#allocation2 + $0x207] sm:$0xff]  ;;  %v7155_v23 = vld [vmem:[#allocation2 + $0x210] sm:$0xff] }
 0x5e4   :  { %v6375_v8 = vpop.f32.mrf.mxu0 }
 0x5e5   :  { %v15912_v54 = vpop.f32.mrf.mxu1  ;;  %7418 = vmatmul.mubr.f32.gmra.mxu0 %v7117_v28  ;;  %v15915_v47 = vadd.f32 %v15882_v59, %v6375_v8 }
 0x5e6   :  { %7422 = vmatprep.mubr.f32.mxu0 %v15807_v14  ;;  %v6377_v31 = vpop.f32.mrf.mxu0 }
 0x5e7   :  { %v6710_v10 = vpop.f32.mrf.mxu1  ;;  %v7123_v31 = vld [vmem:[#allocation2 + $0x20f] sm:$0xff] }
 0x5e8   :  { %v15919_v4 = vadd.f32 %v6710_v10, %v15794_v39 }
 0x5e9   :  { %v6712_v6 = vpop.f32.mrf.mxu1  ;;  %v6380_v61 = vpop.f32.mrf.mxu0  ;;  %7423 = vmatmul.mubr.f32.gmra.mxu0 %v7118_v53 }
 0x5ea   :  { %v15921_v9 = vadd.f32 %v6605_v20, %v6380_v61  ;;  %7427 = vmatprep.mubr.f32.mxu0 %v15814_v46  ;;  %v7120_v46 = vld [vmem:[#allocation2 + $0x1e7] sm:$0xff] }
 0x5eb   :  { %v6715_v21 = vpop.f32.mrf.mxu1  ;;  %v6382_v44 = vpop.f32.mrf.mxu0  ;;  %v7124_v61 = vld [vmem:[#allocation2 + $0x227] sm:$0xff] }
 0x5ec   :  { %v15925_v59 = vadd.f32 %v6715_v21, %v15796_v36 }
 0x5ed   :  { %v6717_v14 = vpop.f32.mrf.mxu1  ;;  %v6385_v12 = vpop.f32.mrf.mxu0  ;;  %7428 = vmatmul.mubr.f32.gmra.mxu0 %v7119_v37 }
 0x5ee   :  { %v15928_v39 = vadd.f32 %v15887_v24, %v6385_v12  ;;  %7432 = vmatprep.mubr.f32.mxu0 %v15821_v32 }
 0x5ef   :  { %v6720_v51 = vpop.f32.mrf.mxu1  ;;  %v6387_v48 = vpop.f32.mrf.mxu0 }
 0x5f0   :  { %v15932_v20 = vadd.f32 %v6720_v51, %v15803_v27 }
 0x5f1   :  { %v6722_v22 = vpop.f32.mrf.mxu1  ;;  %v6390_v13 = vpop.f32.mrf.mxu0  ;;  %7433 = vmatmul.mubr.f32.gmra.mxu0 %v7120_v46 }
 0x5f2   :  { %v15934_v36 = vadd.f32 %v6615_v15, %v6390_v13  ;;  %7437 = vmatprep.mubr.f32.mxu0 %v15828_v55 }
 0x5f3   :  { %v6725_v52 = vpop.f32.mrf.mxu1  ;;  %v6392_v30 = vpop.f32.mrf.mxu0 }
 0x5f4   :  { %v6726_v24 = vadd.f32 %v6725_v52, %v15810_v29 }
 0x5f5   :  { %v6727_v57 = vpop.f32.mrf.mxu1  ;;  %v6395_v32 = vpop.f32.mrf.mxu0  ;;  %7438 = vmatmul.mubr.f32.gmra.mxu0 %v7121_v7 }
 0x5f6   :  { %v15939_v27 = vadd.f32 %v15896_v25, %v6395_v32  ;;  %7442 = vmatprep.mubr.f32.mxu0 %v7154_v49 }
 0x5f7   :  { %v6730_v63 = vpop.f32.mrf.mxu1  ;;  %v6397_v5 = vpop.f32.mrf.mxu0 }
 0x5f8   :  { %v6731_v15 = vadd.f32 %v6730_v63, %v15817_v11  ;;  %v10197_v11 = vld [vmem:[#allocation2 + $0x8] sm:$0xff] }
 0x5f9   :  { %v6732_v62 = vpop.f32.mrf.mxu1  ;;  %v6400_v55 = vpop.f32.mrf.mxu0  ;;  %7443 = vmatmul.mubr.f32.gmra.mxu0 %v7122_v56 }
 0x5fa   :  { %v15942_v28 = vadd.f32 %v6625_v2, %v6400_v55  ;;  %7447 = vmatprep.mubr.f32.mxu0 %v7155_v23 }
 0x5fb   :  { %v6735_v29 = vpop.f32.mrf.mxu1  ;;  %v6402_v8 = vpop.f32.mrf.mxu0 }
 0x5fc   :  { %v6736_v10 = vadd.f32 %v6735_v29, %v15824_v43  ;;  %v7125_v43 = vld [vmem:[#allocation2 + $0x22f] sm:$0xff] }
 0x5fd   :  { %v6737_v25 = vpop.f32.mrf.mxu1  ;;  %v6405_v53 = vpop.f32.mrf.mxu0  ;;  %7448 = vmatmul.mubr.f32.gmra.mxu0 %v7123_v31 }
 0x5fe   :  { %v15946_v6 = vadd.f32 %v15901_v3, %v6405_v53  ;;  %7452 = vmatprep.mubr.f32.mxu0 %v10197_v11 }
 0x5ff   :  { %v6740_v21 = vpop.f32.mrf.mxu1  ;;  %v6407_v44 = vpop.f32.mrf.mxu0 }
 0x600   :  { %v6741_v2 = vadd.f32 %v6740_v21, %v15831_v26 }
 0x601   :  { %v6742_v37 = vpop.f32.mrf.mxu1  ;;  %v6410_v14 = vpop.f32.mrf.mxu0  ;;  %7453 = vmatmul.mubr.f32.gmra.mxu0 %v7124_v61 }
 0x602   :  { %v15950_v12 = vadd.f32 %v15912_v54, %v6410_v14  ;;  %7457 = vmatprep.mubr.f32.mxu0 %v10197_v11 }
 0x603   :  { %v6745_v51 = vpop.f32.mrf.mxu1  ;;  %v6412_v48 = vpop.f32.mrf.mxu0 }
 0x604   :  { %v6746_v3 = vadd.f32 %v6745_v51, %v15836_v18 }
 0x605   :  { %v6747_v46 = vpop.f32.mrf.mxu1  ;;  %v6415_v22 = vpop.f32.mrf.mxu0  ;;  %7458 = vmatmul.mubr.f32.gmra.mxu0 %v7125_v43 }
 0x606   :  { %v15954_v13 = vadd.f32 %v15910_v42, %v6415_v22 }
 0x607   :  { %v6750_v52 = vpop.f32.mrf.mxu1  ;;  %v6417_v26 = vpop.f32.mrf.mxu0 }
 0x608   :  { %v6751_v30 = vadd.f32 %v6750_v52, %v15841_v41 }
 0x609   :  { %v6752_v7 = vpop.f32.mrf.mxu1  ;;  %v10055_v57 = vpop.f32.mrf.mxu0 }
 0x60a   :  { %v15958_v54 = vadd.f32 %v10055_v57, %v15925_v59 }
 0x60b   :  { %v6755_v32 = vpop.f32.mrf.mxu1  ;;  %v6935_v49 = vpop.f32.mrf.mxu0 }
 0x60c   :  { %v6756_v63 = vadd.f32 %v6755_v32, %v15846_v1  ;;  %v15962_v18 = vadd.f32 %v6935_v49, %v15919_v4 }
 0x60d   :  { %v6757_v5 = vpop.f32.mrf.mxu1  ;;  %v10058_v56 = vpop.f32.mrf.mxu0 }
 0x60e   :  { %v15964_v42 = vadd.f32 %v10058_v56, %v6726_v24 }
 0x60f   :  { %v6760_v62 = vpop.f32.mrf.mxu1  ;;  %v6945_v55 = vpop.f32.mrf.mxu0 }
 0x610   :  { %v6761_v41 = vadd.f32 %v6760_v62, %v15851_v35  ;;  %v15968_v23 = vadd.f32 %v6945_v55, %v15932_v20 }
 0x611   :  { %v6762_v59 = vpop.f32.mrf.mxu1  ;;  %v10061_v29 = vpop.f32.mrf.mxu0 }
 0x612   :  { %v15970_v8 = vadd.f32 %v10061_v29, %v6736_v10 }
 0x613   :  { %v6765_v31 = vpop.f32.mrf.mxu1  ;;  %v6955_v1 = vpop.f32.mrf.mxu0 }
 0x614   :  { %v6766_v4 = vadd.f32 %v6765_v31, %v15856_v19  ;;  %v15973_v25 = vadd.f32 %v6955_v1, %v6731_v15 }
 0x615   :  { %v6767_v53 = vpop.f32.mrf.mxu1  ;;  %v10064_v24 = vpop.f32.mrf.mxu0 }
 0x616   :  { %v15975_v11 = vadd.f32 %v10064_v24, %v6746_v3 }
 0x617   :  { %v6770_v61 = vpop.f32.mrf.mxu1  ;;  %v6965_v21 = vpop.f32.mrf.mxu0 }
 0x618   :  { %v6771_v35 = vadd.f32 %v6770_v61, %v15861_v50  ;;  %v15978_v20 = vadd.f32 %v6965_v21, %v6741_v2 }
 0x619   :  { %v6772_v44 = vpop.f32.mrf.mxu1  ;;  %v10067_v37 = vpop.f32.mrf.mxu0 }
 0x61a   :  { %v15980_v10 = vadd.f32 %v10067_v37, %v6756_v63 }
 0x61b   :  { %v6775_v14 = vpop.f32.mrf.mxu1  ;;  %v6975_v43 = vpop.f32.mrf.mxu0 }
 0x61c   :  { %v6776_v19 = vadd.f32 %v6775_v14, %v15865_v58  ;;  %v15983_v15 = vadd.f32 %v6975_v43, %v6751_v30 }
 0x61d   :  { %v6777_v51 = vpop.f32.mrf.mxu1  ;;  %v10070_v48 = vpop.f32.mrf.mxu0 }
 0x61e   :  { %v15985_v3 = vadd.f32 %v10070_v48, %v6766_v4 }
 0x61f   :  { %v6780_v46 = vpop.f32.mrf.mxu1  ;;  %v6985_v22 = vpop.f32.mrf.mxu0 }
 0x620   :  { %v6781_v50 = vadd.f32 %v6780_v46, %v15871_v34  ;;  %v15988_v2 = vadd.f32 %v6985_v22, %v6761_v41 }
 0x621   :  { %v6782_v52 = vpop.f32.mrf.mxu1  ;;  %v10073_v26 = vpop.f32.mrf.mxu0 }
 0x622   :  { %v15990_v7 = vadd.f32 %v10073_v26, %v6776_v19 }
 0x623   :  { %v6785_v57 = vpop.f32.mrf.mxu1  ;;  %v6995_v32 = vpop.f32.mrf.mxu0 }
 0x624   :  { %v6786_v58 = vadd.f32 %v6785_v57, %v15876_v40  ;;  %v15993_v30 = vadd.f32 %v6995_v32, %v6771_v35 }
 0x625   :  { %v6787_v49 = vpop.f32.mrf.mxu1  ;;  %v10076_v63 = vpop.f32.mrf.mxu0 }
 0x626   :  { %v15995_v5 = vadd.f32 %v10076_v63, %v6786_v58 }
 0x627   :  { %v6790_v56 = vpop.f32.mrf.mxu1  ;;  %v7005_v62 = vpop.f32.mrf.mxu0 }
 0x628   :  { %v6791_v34 = vadd.f32 %v6790_v56, %v15879_v60  ;;  %v15998_v55 = vadd.f32 %v7005_v62, %v6781_v50 }
 0x629   :  { %v6792_v41 = vpop.f32.mrf.mxu1  ;;  %v10079_v59 = vpop.f32.mrf.mxu0 }
 0x62b   :  { %v6795_v29 = vpop.f32.mrf.mxu1  ;;  %v7015_v31 = vpop.f32.mrf.mxu0 }
 0x62c   :  { %v6796_v1 = vadd.f32 %v6795_v29, %v15884_v33  ;;  %v16001_v4 = vadd.f32 %v7015_v31, %v6791_v34 }
 0x62d   :  { %v6797_v40 = vpop.f32.mrf.mxu1  ;;  %v10082_v53 = vpop.f32.mrf.mxu0 }
 0x62e   :  { %v16003_v24 = vadd.f32 %v10079_v59, %v6796_v1 }
 0x62f   :  { %v6800_v61 = vpop.f32.mrf.mxu1  ;;  %v7025_v21 = vpop.f32.mrf.mxu0 }
 0x630   :  { %v6801_v35 = vadd.f32 %v6800_v61, %v15889_v17 }
 0x631   :  { %v6802_v44 = vpop.f32.mrf.mxu1  ;;  %v10085_v60 = vpop.f32.mrf.mxu0 }
 0x632   :  { %v16006_v37 = vadd.f32 %v7025_v21, %v6801_v35 }
 0x633   :  { %v6805_v14 = vpop.f32.mrf.mxu1  ;;  %v7035_v43 = vpop.f32.mrf.mxu0 }
 0x634   :  { %v6806_v19 = vadd.f32 %v6805_v14, %v15893_v16 }
 0x635   :  { %v6807_v51 = vpop.f32.mrf.mxu1  ;;  %v10088_v33 = vpop.f32.mrf.mxu0 }
 0x636   :  { %v16009_v48 = vadd.f32 %v10082_v53, %v6806_v19 }
 0x637   :  { %v6810_v46 = vpop.f32.mrf.mxu1  ;;  %v7045_v22 = vpop.f32.mrf.mxu0 }
 0x638   :  { %v6811_v50 = vadd.f32 %v6810_v46, %v15898_v0 }
 0x639   :  { %v6812_v52 = vpop.f32.mrf.mxu1  ;;  %v10091_v26 = vpop.f32.mrf.mxu0 }
 0x63a   :  { %v16012_v57 = vadd.f32 %v7035_v43, %v6811_v50 }
 0x63b   :  { %v6815_v17 = vpop.f32.mrf.mxu1  ;;  %v7055_v32 = vpop.f32.mrf.mxu0 }
 0x63c   :  { %v6816_v58 = vadd.f32 %v6815_v17, %v15904_v38 }
 0x63d   :  { %v6817_v49 = vpop.f32.mrf.mxu1  ;;  %v10094_v63 = vpop.f32.mrf.mxu0 }
 0x63e   :  { %v16015_v56 = vadd.f32 %v10085_v60, %v6816_v58 }
 0x63f   :  { %v6820_v16 = vpop.f32.mrf.mxu1  ;;  %v7065_v62 = vpop.f32.mrf.mxu0 }
 0x640   :  { %v6821_v34 = vadd.f32 %v6820_v16, %v15907_v45 }
 0x641   :  { %v6822_v41 = vpop.f32.mrf.mxu1  ;;  %v10097_v59 = vpop.f32.mrf.mxu0 }
 0x642   :  { %v16018_v29 = vadd.f32 %v7045_v22, %v6821_v34 }
 0x643   :  { %v6825_v0 = vpop.f32.mrf.mxu1  ;;  %v7075_v31 = vpop.f32.mrf.mxu0 }
 0x644   :  { %v6826_v1 = vadd.f32 %v6825_v0, %v15915_v47 }
 0x645   :  { %v6827_v40 = vpop.f32.mrf.mxu1  ;;  %v10100_v53 = vpop.f32.mrf.mxu0 }
 0x646   :  { %v16021_v61 = vadd.f32 %v10088_v33, %v6826_v1 }
 0x647   :  { %v6830_v38 = vpop.f32.mrf.mxu1  ;;  %v7085_v21 = vpop.f32.mrf.mxu0 }
 0x648   :  { %v6831_v35 = vadd.f32 %v6830_v38, %v15921_v9 }
 0x649   :  { %v6832_v44 = vpop.f32.mrf.mxu1  ;;  %v7304_v60 = vpop.f32.mrf.mxu0 }
 0x64a   :  { %v16024_v14 = vadd.f32 %v7055_v32, %v6831_v35 }
 0x64b   :  { %v6835_v45 = vpop.f32.mrf.mxu1  ;;  %v7306_v43 = vpop.f32.mrf.mxu0 }
 0x64c   :  { %v6836_v19 = vadd.f32 %v6835_v45, %v15928_v39 }
 0x64d   :  { %v6837_v51 = vpop.f32.mrf.mxu1  ;;  %v7309_v46 = vpop.f32.mrf.mxu0 }
 0x64e   :  { %v16027_v22 = vadd.f32 %v10091_v26, %v6836_v19 }
 0x64f   :  { %v6840_v47 = vpop.f32.mrf.mxu1  ;;  %v7311_v50 = vpop.f32.mrf.mxu0 }
 0x650   :  { %v6841_v33 = vadd.f32 %v6840_v47, %v15934_v36 }
 0x651   :  { %v6842_v52 = vpop.f32.mrf.mxu1  ;;  %v7314_v17 = vpop.f32.mrf.mxu0 }
 0x652   :  { %v16030_v58 = vadd.f32 %v7065_v62, %v6841_v33 }
 0x653   :  { %v6845_v9 = vpop.f32.mrf.mxu1  ;;  %v7316_v49 = vpop.f32.mrf.mxu0 }
 0x654   :  { %v6846_v32 = vadd.f32 %v6845_v9, %v15939_v27 }
 0x655   :  { %v6847_v16 = vpop.f32.mrf.mxu1  ;;  %v7319_v34 = vpop.f32.mrf.mxu0 }
 0x656   :  { %v16033_v41 = vadd.f32 %v10094_v63, %v6846_v32  ;;  %v16050_v16 = vld [vmem:[%s16225_s4] ss:$0 sm:$0xff] }
 0x657   :  { %v6850_v39 = vpop.f32.mrf.mxu1  ;;  %v7321_v0 = vpop.f32.mrf.mxu0 }
 0x658   :  { %v6851_v26 = vadd.f32 %v6850_v39, %v15942_v28 }
 0x659   :  { %v6852_v1 = vpop.f32.mrf.mxu1  ;;  %v7324_v40 = vpop.f32.mrf.mxu0 }
 0x65a   :  { %v16036_v38 = vadd.f32 %v7075_v31, %v6851_v26 }
 0x65b   :  { %v6855_v36 = vpop.f32.mrf.mxu1  ;;  %v7326_v35 = vpop.f32.mrf.mxu0 }
 0x65c   :  { %v6856_v62 = vadd.f32 %v6855_v36, %v15946_v6  ;;  %v8613_v35 = vld [vmem:[%s16221_s0 + $0x1c9] sm:$0xff] }
 0x65d   :  { %v6857_v44 = vpop.f32.mrf.mxu1  ;;  %v7329_v45 = vpop.f32.mrf.mxu0 }
 0x65e   :  { %v16039_v43 = vadd.f32 %v10097_v59, %v6856_v62 }
 0x65f   :  { %v6860_v27 = vpop.f32.mrf.mxu1  ;;  %v7331_v19 = vpop.f32.mrf.mxu0 }
 0x660   :  { %v6861_v63 = vadd.f32 %v6860_v27, %v15950_v12 }
 0x661   :  { %v6862_v51 = vpop.f32.mrf.mxu1  ;;  %v7334_v47 = vpop.f32.mrf.mxu0 }
 0x662   :  { %v16042_v50 = vadd.f32 %v7085_v21, %v6861_v63  ;;  %v8616_v63 = vld [vmem:[%s16221_s0 + $0x1e9] sm:$0xff] }
 0x663   :  { %v6865_v28 = vpop.f32.mrf.mxu1  ;;  %v7336_v33 = vpop.f32.mrf.mxu0 }
 0x664   :  { %v6866_v31 = vadd.f32 %v6865_v28, %v15954_v13  ;;  %v8614_v13 = vld [vmem:[%s16221_s0 + $0x1d1] sm:$0xff] }
 0x665   :  { %v6867_v52 = vpop.f32.mrf.mxu1  ;;  %v7339_v9 = vpop.f32.mrf.mxu0 }
 0x666   :  { %v16045_v49 = vadd.f32 %v10100_v53, %v6866_v31  ;;  %v8615_v52 = vld [vmem:[%s16221_s0 + $0x1e1] sm:$0xff] }
 0x667   :  { %v10135_v6 = vpop.f32.mrf.mxu1  ;;  %v7341_v32 = vpop.f32.mrf.mxu0 }
 0x668   :  { %v7535_v59 = vadd.f32 %v10135_v6, %v7309_v46 }
 0x669   :  { %v7529_v12 = vpop.f32.mrf.mxu1  ;;  %v16052_v39 = vpop.f32.mrf.mxu0 }
 0x66a   :  { %v7689_v21 = vadd.f32 %v7535_v59, %v15958_v54  ;;  %v7530_v0 = vadd.f32 %v7529_v12, %v7304_v60 }
 0x66b   :  { %v10138_v53 = vpop.f32.mrf.mxu1  ;;  %v7346_v26 = vpop.f32.mrf.mxu0 }
 0x66c   :  { %v7728_v1 = vadd.f32 %v16050_v16, %v7689_v21  ;;  %v7688_v46 = vadd.f32 %v7530_v0, %v15962_v18  ;;  %v7545_v36 = vadd.f32 %v10138_v53, %v7319_v34 }
 0x66d   :  { %v7539_v62 = vpop.f32.mrf.mxu1  ;;  %v7349_v44 = vpop.f32.mrf.mxu0 }
 0x66e   :  { %v7792_v27 = vadd.f32 %v8614_v13, %v7728_v1  ;;  %v7727_v54 = vadd.f32 %v16050_v16, %v7688_v46  ;;  %v7691_v60 = vadd.f32 %v7545_v36, %v15964_v42  ;;  %v7540_v19 = vadd.f32 %v7539_v62, %v7314_v17  ;;  %v8618_v1 = vld [vmem:[%s16221_s0 + $0x201] sm:$0xff] }
 0x66f   :  { %v10141_v51 = vpop.f32.mrf.mxu1  ;;  %v7351_v28 = vpop.f32.mrf.mxu0 }
 0x670   :  { %v7824_v18 = vmax.f32 %v7792_v27, 0.0  ;;  %v7791_v34 = vadd.f32 %v8613_v35, %v7727_v54  ;;  %v7730_v33 = vadd.f32 %v16050_v16, %v7691_v60  ;;  %v7690_v31 = vadd.f32 %v7540_v19, %v15968_v23 }
 0x671   :  { %v7555_v6 = vadd.f32 %v10141_v51, %v7329_v45  ;;  %v7549_v32 = vpop.f32.mrf.mxu1  ;;  %v7354_v42 = vpop.f32.mrf.mxu0 }
 0x672   :  { %7857 = vst [vmem:[#allocation6 + $0x108] sm:$0xff] %v7824_v18  ;;  %v7823_v17 = vmax.f32 %v7791_v34, 0.0  ;;  %v7794_v59 = vadd.f32 %v8616_v63, %v7730_v33  ;;  %v7729_v12 = vadd.f32 %v16050_v16, %v7690_v31  ;;  %v7550_v21 = vadd.f32 %v7549_v32, %v7324_v40  ;;  %v8617_v40 = vld [vmem:[%s16221_s0 + $0x1f9] sm:$0xff] }
 0x673   :  { %v7693_v0 = vadd.f32 %v7555_v6, %v15970_v8  ;;  %v10144_v13 = vpop.f32.mrf.mxu1  ;;  %v7356_v53 = vpop.f32.mrf.mxu0 }
 0x674   :  { %7856 = vst [vmem:[#allocation6 + $0x100] sm:$0xff] %v7823_v17  ;;  %v7826_v26 = vmax.f32 %v7794_v59, 0.0  ;;  %v7793_v23 = vadd.f32 %v8615_v52, %v7729_v12  ;;  %v7692_v45 = vadd.f32 %v7550_v21, %v15973_v25  ;;  %v7565_v46 = vadd.f32 %v10144_v13, %v7339_v9  ;;  %v8620_v25 = vld [vmem:[%s16221_s0 + $0x219] sm:$0xff]  ;;  %v8622_v59 = vld [vmem:[%s16221_s0 + $0x231] sm:$0xff] }
 0x675   :  { %v7732_v36 = vadd.f32 %v16050_v16, %v7693_v0  ;;  %v7559_v35 = vpop.f32.mrf.mxu1  ;;  %v7359_v8 = vpop.f32.mrf.mxu0 }
 0x676   :  { %7859 = vst [vmem:[#allocation6 + $0x118] sm:$0xff] %v7826_v26  ;;  %v7825_v62 = vmax.f32 %v7793_v23, 0.0  ;;  %v7731_v27 = vadd.f32 %v16050_v16, %v7692_v45  ;;  %v7695_v54 = vadd.f32 %v7565_v46, %v15975_v11  ;;  %v7560_v60 = vadd.f32 %v7559_v35, %v7334_v47  ;;  %v8619_v11 = vld [vmem:[%s16221_s0 + $0x211] sm:$0xff]  ;;  %v8621_v46 = vld [vmem:[%s16221_s0 + $0x229] sm:$0xff] }
 0x677   :  { %v7796_v19 = vadd.f32 %v8618_v1, %v7732_v36  ;;  %v10147_v9 = vpop.f32.mrf.mxu1  ;;  %v7361_v63 = vpop.f32.mrf.mxu0  ;;  %v8624_v35 = vld [vmem:[%s16221_s0 + $0x249] sm:$0xff] }
 0x678   :  { %7858 = vst [vmem:[#allocation6 + $0x110] sm:$0xff] %v7825_v62  ;;  %v7795_v51 = vadd.f32 %v8617_v40, %v7731_v27  ;;  %v7734_v28 = vadd.f32 %v16050_v16, %v7695_v54  ;;  %v7694_v18 = vadd.f32 %v7560_v60, %v15978_v20  ;;  %v7575_v34 = vadd.f32 %v10147_v9, %v7349_v44 }
 0x679   :  { %v7828_v33 = vmax.f32 %v7796_v19, 0.0  ;;  %v7569_v47 = vpop.f32.mrf.mxu1  ;;  %v7364_v31 = vpop.f32.mrf.mxu0 }
 0x67a   :  { %v7827_v52 = vmax.f32 %v7795_v51, 0.0  ;;  %v7798_v6 = vadd.f32 %v8620_v25, %v7734_v28  ;;  %v7733_v32 = vadd.f32 %v16050_v16, %v7694_v18  ;;  %v7697_v17 = vadd.f32 %v7575_v34, %v15980_v10 }
 0x67b   :  { %7861 = vst [vmem:[#allocation6 + $0x128] sm:$0xff] %v7828_v33  ;;  %v7570_v20 = vadd.f32 %v7569_v47, %v16052_v39  ;;  %v10150_v44 = vpop.f32.mrf.mxu1  ;;  %v7366_v12 = vpop.f32.mrf.mxu0 }
 0x67c   :  { %7860 = vst [vmem:[#allocation6 + $0x120] sm:$0xff] %v7827_v52  ;;  %v7830_v21 = vmax.f32 %v7798_v6, 0.0  ;;  %v7797_v0 = vadd.f32 %v8619_v11, %v7733_v32  ;;  %v7736_v13 = vadd.f32 %v16050_v16, %v7697_v17  ;;  %v7585_v53 = vadd.f32 %v10150_v44, %v7359_v8  ;;  %v8625_v32 = vld [vmem:[%s16221_s0 + $0x259] sm:$0xff] }
 0x67d   :  { %v7696_v26 = vadd.f32 %v7570_v20, %v15983_v15  ;;  %v7579_v23 = vpop.f32.mrf.mxu1  ;;  %v7369_v1 = vpop.f32.mrf.mxu0 }
 0x67e   :  { %7863 = vst [vmem:[#allocation6 + $0x138] sm:$0xff] %v7830_v21  ;;  %v7829_v10 = vmax.f32 %v7797_v0, 0.0  ;;  %v7800_v45 = vadd.f32 %v8622_v59, %v7736_v13  ;;  %v7699_v39 = vadd.f32 %v7585_v53, %v15985_v3  ;;  %v7580_v36 = vadd.f32 %v7579_v23, %v7354_v42  ;;  %v8623_v3 = vld [vmem:[%s16221_s0 + $0x241] sm:$0xff] }
 0x67f   :  { %v7735_v40 = vadd.f32 %v16050_v16, %v7696_v26  ;;  %v10153_v8 = vpop.f32.mrf.mxu1  ;;  %v7371_v15 = vpop.f32.mrf.mxu0  ;;  %v8627_v26 = vld [vmem:[%s16221_s0 + $0x271] sm:$0xff] }
 0x680   :  { %7862 = vst [vmem:[#allocation6 + $0x130] sm:$0xff] %v7829_v10  ;;  %v7832_v62 = vmax.f32 %v7800_v45, 0.0  ;;  %v7738_v27 = vadd.f32 %v16050_v16, %v7699_v39  ;;  %v7698_v54 = vadd.f32 %v7580_v36, %v15988_v2  ;;  %v7595_v60 = vadd.f32 %v10153_v8, %v7369_v1  ;;  %v8626_v2 = vld [vmem:[%s16221_s0 + $0x261] sm:$0xff]  ;;  %v8628_v39 = vld [vmem:[%s16221_s0 + $0x279] sm:$0xff] }
 0x681   :  { %v7799_v19 = vadd.f32 %v8621_v46, %v7735_v40  ;;  %v7589_v42 = vpop.f32.mrf.mxu1  ;;  %v7374_v25 = vpop.f32.mrf.mxu0 }
 0x682   :  { %7865 = vst [vmem:[#allocation6 + $0x148] sm:$0xff] %v7832_v62  ;;  %v7802_v9 = vadd.f32 %v8624_v35, %v7738_v27  ;;  %v7737_v63 = vadd.f32 %v16050_v16, %v7698_v54  ;;  %v7701_v51 = vadd.f32 %v7595_v60, %v15990_v7  ;;  %v7590_v28 = vadd.f32 %v7589_v42, %v7364_v31 }
 0x683   :  { %v7831_v18 = vmax.f32 %v7799_v19, 0.0  ;;  %v10156_v34 = vpop.f32.mrf.mxu1  ;;  %v7376_v33 = vpop.f32.mrf.mxu0 }
 0x684   :  { %v7834_v11 = vmax.f32 %v7802_v9, 0.0  ;;  %v7801_v47 = vadd.f32 %v8623_v3, %v7737_v63  ;;  %v7740_v52 = vadd.f32 %v16050_v16, %v7701_v51  ;;  %v7700_v6 = vadd.f32 %v7590_v28, %v15993_v30 }
 0x685   :  { %7864 = vst [vmem:[#allocation6 + $0x140] sm:$0xff] %v7831_v18  ;;  %v7599_v7 = vpop.f32.mrf.mxu1  ;;  %v7379_v31 = vpop.f32.mrf.mxu0 }
 0x686   :  { %7867 = vst [vmem:[#allocation6 + $0x158] sm:$0xff] %v7834_v11  ;;  %v7833_v17 = vmax.f32 %v7801_v47, 0.0  ;;  %v7804_v59 = vadd.f32 %v8626_v2, %v7740_v52  ;;  %v7739_v20 = vadd.f32 %v16050_v16, %v7700_v6  ;;  %v7600_v44 = vadd.f32 %v7599_v7, %v7374_v25 }
 0x687   :  { %v7605_v12 = vadd.f32 %v10156_v34, %v7379_v31  ;;  %v10159_v21 = vpop.f32.mrf.mxu1  ;;  %v7381_v0 = vpop.f32.mrf.mxu0 }
 0x688   :  { %7866 = vst [vmem:[#allocation6 + $0x150] sm:$0xff] %v7833_v17  ;;  %v7836_v13 = vmax.f32 %v7804_v59, 0.0  ;;  %v7803_v53 = vadd.f32 %v8625_v32, %v7739_v20  ;;  %v7702_v30 = vadd.f32 %v7600_v44, %v15998_v55 }
 0x689   :  { %v7703_v23 = vadd.f32 %v7605_v12, %v15995_v5  ;;  %v7609_v1 = vpop.f32.mrf.mxu1  ;;  %v7384_v10 = vpop.f32.mrf.mxu0  ;;  %v8629_v5 = vld [vmem:[%s16221_s0 + $0x289] sm:$0xff] }
 0x68a   :  { %7869 = vst [vmem:[#allocation6 + $0x168] sm:$0xff] %v7836_v13  ;;  %v7835_v45 = vmax.f32 %v7803_v53, 0.0  ;;  %v7741_v46 = vadd.f32 %v16050_v16, %v7702_v30  ;;  %v7610_v36 = vadd.f32 %v7609_v1, %v7384_v10 }
 0x68b   :  { %v7742_v40 = vadd.f32 %v16050_v16, %v7703_v23  ;;  %v7386_v55 = vpop.f32.mrf.mxu0  ;;  %v10162_v62 = vpop.f32.mrf.mxu1 }
 0x68c   :  { %7868 = vst [vmem:[#allocation6 + $0x160] sm:$0xff] %v7835_v45  ;;  %v7805_v35 = vadd.f32 %v8627_v26, %v7741_v46  ;;  %v7704_v8 = vadd.f32 %v7610_v36, %v16001_v4  ;;  %v8630_v4 = vld [vmem:[%s16221_s0 + $0x291] sm:$0xff] }
 0x68d   :  { %v7806_v15 = vadd.f32 %v8628_v39, %v7742_v40  ;;  %v7389_v27 = vpop.f32.mrf.mxu0  ;;  %v7619_v63 = vpop.f32.mrf.mxu1 }
 0x68e   :  { %v7837_v54 = vmax.f32 %v7805_v35, 0.0  ;;  %v7743_v60 = vadd.f32 %v16050_v16, %v7704_v8  ;;  %v7615_v19 = vadd.f32 %v10159_v21, %v7389_v27 }
 0x68f   :  { %v7838_v3 = vmax.f32 %v7806_v15, 0.0  ;;  %v7391_v42 = vpop.f32.mrf.mxu0  ;;  %v10165_v47 = vpop.f32.mrf.mxu1 }
 0x690   :  { %7870 = vst [vmem:[#allocation6 + $0x170] sm:$0xff] %v7837_v54  ;;  %v7807_v25 = vadd.f32 %v8629_v5, %v7743_v60  ;;  %v7705_v9 = vadd.f32 %v7615_v19, %v16003_v24  ;;  %v8631_v24 = vld [vmem:[%s16221_s0 + $0x2a1] sm:$0xff] }
 0x691   :  { %7871 = vst [vmem:[#allocation6 + $0x178] sm:$0xff] %v7838_v3  ;;  %v7394_v51 = vpop.f32.mrf.mxu0  ;;  %v7629_v20 = vpop.f32.mrf.mxu1 }
 0x692   :  { %v7839_v28 = vmax.f32 %v7807_v25, 0.0  ;;  %v7744_v18 = vadd.f32 %v16050_v16, %v7705_v9  ;;  %v7620_v2 = vadd.f32 %v7619_v63, %v7394_v51 }
 0x693   :  { %v7396_v34 = vpop.f32.mrf.mxu0  ;;  %v10168_v26 = vpop.f32.mrf.mxu1 }
 0x694   :  { %7872 = vst [vmem:[#allocation6 + $0x180] sm:$0xff] %v7839_v28  ;;  %v7808_v33 = vadd.f32 %v8630_v4, %v7744_v18  ;;  %v7706_v11 = vadd.f32 %v7620_v2, %v16006_v37  ;;  %v8632_v37 = vld [vmem:[%s16221_s0 + $0x2a9] sm:$0xff] }
 0x695   :  { %v7399_v52 = vpop.f32.mrf.mxu0  ;;  %v7639_v40 = vpop.f32.mrf.mxu1 }
 0x696   :  { %v7840_v6 = vmax.f32 %v7808_v33, 0.0  ;;  %v7745_v32 = vadd.f32 %v16050_v16, %v7706_v11  ;;  %v7625_v7 = vadd.f32 %v10162_v62, %v7399_v52 }
 0x697   :  { %v7401_v31 = vpop.f32.mrf.mxu0  ;;  %v10171_v54 = vpop.f32.mrf.mxu1 }
 0x698   :  { %7873 = vst [vmem:[#allocation6 + $0x188] sm:$0xff] %v7840_v6  ;;  %v7809_v17 = vadd.f32 %v8631_v24, %v7745_v32  ;;  %v7707_v59 = vadd.f32 %v7625_v7, %v16009_v48  ;;  %v8633_v48 = vld [vmem:[%s16221_s0 + $0x2b9] sm:$0xff] }
 0x699   :  { %v7404_v44 = vpop.f32.mrf.mxu0  ;;  %v7649_v4 = vpop.f32.mrf.mxu1 }
 0x69a   :  { %v7841_v12 = vmax.f32 %v7809_v17, 0.0  ;;  %v7746_v21 = vadd.f32 %v16050_v16, %v7707_v59  ;;  %v7630_v0 = vadd.f32 %v7629_v20, %v7404_v44 }
 0x69b   :  { %v7406_v13 = vpop.f32.mrf.mxu0 }
 0x69c   :  { %7874 = vst [vmem:[#allocation6 + $0x190] sm:$0xff] %v7841_v12  ;;  %v7810_v53 = vadd.f32 %v8632_v37, %v7746_v21  ;;  %v7708_v30 = vadd.f32 %v7630_v0, %v16012_v57  ;;  %v8634_v57 = vld [vmem:[%s16221_s0 + $0x2c1] sm:$0xff] }
 0x69d   :  { %v7409_v23 = vpop.f32.mrf.mxu0 }
 0x69e   :  { %v7842_v1 = vmax.f32 %v7810_v53, 0.0  ;;  %v7747_v10 = vadd.f32 %v16050_v16, %v7708_v30  ;;  %v7635_v45 = vadd.f32 %v10165_v47, %v7409_v23  ;;  %v10174_v47 = vpop.f32.mrf.mxu1 }
 0x69f   :  { %v7411_v46 = vpop.f32.mrf.mxu0 }
 0x6a0   :  { %7875 = vst [vmem:[#allocation6 + $0x198] sm:$0xff] %v7842_v1  ;;  %v7811_v39 = vadd.f32 %v8633_v48, %v7747_v10  ;;  %v7709_v36 = vadd.f32 %v7635_v45, %v16015_v56  ;;  %v8635_v56 = vld [vmem:[%s16221_s0 + $0x2d1] sm:$0xff]  ;;  %v7659_v59 = vpop.f32.mrf.mxu1 }
 0x6a1   :  { %v7414_v55 = vpop.f32.mrf.mxu0 }
 0x6a2   :  { %v7843_v35 = vmax.f32 %v7811_v39, 0.0  ;;  %v7748_v8 = vadd.f32 %v16050_v16, %v7709_v36  ;;  %v7640_v15 = vadd.f32 %v7639_v40, %v7414_v55  ;;  %v10177_v53 = vpop.f32.mrf.mxu1 }
 0x6a3   :  { %v7416_v5 = vpop.f32.mrf.mxu0 }
 0x6a4   :  { %7876 = vst [vmem:[#allocation6 + $0x1a0] sm:$0xff] %v7843_v35  ;;  %v7812_v62 = vadd.f32 %v8634_v57, %v7748_v8  ;;  %v7710_v27 = vadd.f32 %v7640_v15, %v16018_v29  ;;  %v8636_v29 = vld [vmem:[%s16221_s0 + $0x2d9] sm:$0xff]  ;;  %v7669_v46 = vpop.f32.mrf.mxu1 }
 0x6a5   :  { %v7419_v60 = vpop.f32.mrf.mxu0 }
 0x6a6   :  { %v7844_v19 = vmax.f32 %v7812_v62, 0.0  ;;  %v7749_v3 = vadd.f32 %v16050_v16, %v7710_v27  ;;  %v7645_v42 = vadd.f32 %v10168_v26, %v7419_v60  ;;  %v10180_v35 = vpop.f32.mrf.mxu1 }
 0x6a7   :  { %v7421_v25 = vpop.f32.mrf.mxu0 }
 0x6a8   :  { %7877 = vst [vmem:[#allocation6 + $0x1a8] sm:$0xff] %v7844_v19  ;;  %v7813_v9 = vadd.f32 %v8635_v56, %v7749_v3  ;;  %v7711_v63 = vadd.f32 %v7645_v42, %v16021_v61  ;;  %v8637_v61 = vld [vmem:[%s16221_s0 + $0x2e9] sm:$0xff]  ;;  %v7679_v60 = vpop.f32.mrf.mxu1  ;;  %v8642_v42 = vld [vmem:[%s16221_s0 + $0x321] sm:$0xff] }
 0x6a9   :  { %v7424_v51 = vpop.f32.mrf.mxu0 }
 0x6aa   :  { %v7845_v28 = vmax.f32 %v7813_v9, 0.0  ;;  %v7750_v18 = vadd.f32 %v16050_v16, %v7711_v63  ;;  %v7650_v2 = vadd.f32 %v7649_v4, %v7424_v51 }
 0x6ab   :  { %v7426_v34 = vpop.f32.mrf.mxu0 }
 0x6ac   :  { %7878 = vst [vmem:[#allocation6 + $0x1b0] sm:$0xff] %v7845_v28  ;;  %v7814_v33 = vadd.f32 %v8636_v29, %v7750_v18  ;;  %v7712_v11 = vadd.f32 %v7650_v2, %v16024_v14  ;;  %v8638_v14 = vld [vmem:[%s16221_s0 + $0x2f1] sm:$0xff] }
 0x6ad   :  { %v7429_v24 = vpop.f32.mrf.mxu0  ;;  %v8643_v28 = vld [vmem:[%s16221_s0 + $0x331] sm:$0xff] }
 0x6ae   :  { %v7846_v52 = vmax.f32 %v7814_v33, 0.0  ;;  %v7751_v6 = vadd.f32 %v16050_v16, %v7712_v11  ;;  %v7655_v32 = vadd.f32 %v10171_v54, %v7429_v24 }
 0x6af   :  { %v7431_v7 = vpop.f32.mrf.mxu0 }
 0x6b0   :  { %7879 = vst [vmem:[#allocation6 + $0x1b8] sm:$0xff] %v7846_v52  ;;  %v7815_v31 = vadd.f32 %v8637_v61, %v7751_v6  ;;  %v7713_v17 = vadd.f32 %v7655_v32, %v16027_v22  ;;  %v8639_v22 = vld [vmem:[%s16221_s0 + $0x301] sm:$0xff]  ;;  %v8644_v61 = vld [vmem:[%s16221_s0 + $0x339] sm:$0xff] }
 0x6b1   :  { %v7434_v20 = vpop.f32.mrf.mxu0 }
 0x6b2   :  { %v7847_v37 = vmax.f32 %v7815_v31, 0.0  ;;  %v7752_v44 = vadd.f32 %v16050_v16, %v7713_v17  ;;  %v7660_v12 = vadd.f32 %v7659_v59, %v7434_v20 }
 0x6b3   :  { %v7436_v21 = vpop.f32.mrf.mxu0 }
 0x6b4   :  { %7880 = vst [vmem:[#allocation6 + $0x1c0] sm:$0xff] %v7847_v37  ;;  %v7816_v0 = vadd.f32 %v8638_v14, %v7752_v44  ;;  %v7714_v13 = vadd.f32 %v7660_v12, %v16030_v58  ;;  %v8640_v58 = vld [vmem:[%s16221_s0 + $0x309] sm:$0xff] }
 0x6b5   :  { %v7439_v30 = vpop.f32.mrf.mxu0 }
 0x6b6   :  { %v7848_v26 = vmax.f32 %v7816_v0, 0.0  ;;  %v7753_v48 = vadd.f32 %v16050_v16, %v7714_v13  ;;  %v7665_v23 = vadd.f32 %v10174_v47, %v7439_v30 }
 0x6b7   :  { %v7441_v1 = vpop.f32.mrf.mxu0 }
 0x6b8   :  { %7881 = vst [vmem:[#allocation6 + $0x1c8] sm:$0xff] %v7848_v26  ;;  %v7817_v10 = vadd.f32 %v8639_v22, %v7753_v48  ;;  %v7715_v45 = vadd.f32 %v7665_v23, %v16033_v41  ;;  %v8641_v41 = vld [vmem:[%s16221_s0 + $0x319] sm:$0xff] }
 0x6b9   :  { %v7444_v39 = vpop.f32.mrf.mxu0 }
 0x6ba   :  { %v7849_v36 = vmax.f32 %v7817_v10, 0.0  ;;  %v7754_v40 = vadd.f32 %v16050_v16, %v7715_v45  ;;  %v7670_v57 = vadd.f32 %v7669_v46, %v7444_v39 }
 0x6bb   :  { %v7446_v55 = vpop.f32.mrf.mxu0 }
 0x6bc   :  { %7882 = vst [vmem:[#allocation6 + $0x1d0] sm:$0xff] %v7849_v36  ;;  %v7818_v8 = vadd.f32 %v8640_v58, %v7754_v40  ;;  %v7716_v15 = vadd.f32 %v7670_v57, %v16036_v38 }
 0x6bd   :  { %v7449_v5 = vpop.f32.mrf.mxu0 }
 0x6be   :  { %v7850_v62 = vmax.f32 %v7818_v8, 0.0  ;;  %v7755_v27 = vadd.f32 %v16050_v16, %v7716_v15  ;;  %v7675_v54 = vadd.f32 %v10177_v53, %v7449_v5 }
 0x6bf   :  { %v7451_v56 = vpop.f32.mrf.mxu0 }
 0x6c0   :  { %7883 = vst [vmem:[#allocation6 + $0x1d8] sm:$0xff] %v7850_v62  ;;  %v7819_v19 = vadd.f32 %v8641_v41, %v7755_v27  ;;  %v7717_v3 = vadd.f32 %v7675_v54, %v16039_v43 }
 0x6c1   :  { %v7454_v38 = vpop.f32.mrf.mxu0 }
 0x6c2   :  { %v7851_v25 = vmax.f32 %v7819_v19, 0.0  ;;  %v7756_v9 = vadd.f32 %v16050_v16, %v7717_v3  ;;  %v7680_v63 = vadd.f32 %v7679_v60, %v7454_v38 }
 0x6c3   :  { %v7456_v4 = vpop.f32.mrf.mxu0 }
 0x6c4   :  { %7884 = vst [vmem:[#allocation6 + $0x1e0] sm:$0xff] %v7851_v25  ;;  %v7820_v29 = vadd.f32 %v8642_v42, %v7756_v9  ;;  %v7718_v51 = vadd.f32 %v7680_v63, %v16042_v50 }
 0x6c5   :  { %v7459_v18 = vpop.f32.mrf.mxu0 }
 0x6c6   :  { %v7852_v43 = vmax.f32 %v7820_v29, 0.0  ;;  %v7757_v2 = vadd.f32 %v16050_v16, %v7718_v51  ;;  %v7685_v34 = vadd.f32 %v10180_v35, %v7459_v18 }
 0x6c7   :  { %v7461_v33 = vpop.f32.mrf.mxu0 }
 0x6c8   :  { %7885 = vst [vmem:[#allocation6 + $0x1e8] sm:$0xff] %v7852_v43  ;;  %v7821_v11 = vadd.f32 %v8643_v28, %v7757_v2  ;;  %v7719_v47 = vadd.f32 %v7685_v34, %v16045_v49 }
 0x6ca   :  { %v7853_v24 = vmax.f32 %v7821_v11, 0.0  ;;  %v7758_v50 = vadd.f32 %v16050_v16, %v7719_v47 }
 0x6cc   :  { %7886 = vst [vmem:[#allocation6 + $0x1f0] sm:$0xff] %v7853_v24  ;;  %v7822_v52 = vadd.f32 %v8644_v61, %v7758_v50 }
 0x6ce   :  { %v7854_v6 = vmax.f32 %v7822_v52, 0.0 }
 0x6d0   :  { %7887 = vst [vmem:[#allocation6 + $0x1f8] sm:$0xff] %v7854_v6 }
 0x6d1   :  { %10229 = shalt.err (!%p10226_p9)
}
 0x6d2   :  { %7899 = dma.vmem_to_hbm [thread:$0]  %s7894_s26, 8192, %s16226_s5, [#allocation5], %s10243_s21, %s10243_s21, %s10244_s22  }
 0x6d3   :  { %10240 = dma.done.wait [#allocation5], 8192  }
 0x6d4   :  { %10241 = vsyncadd [#allocation5], 4294959104 }
 0x6d5   :  { %7903 = vsyncpa [#allocation4], 1 }
 0x6d6   :  { %7904 = vsyncpa [#allocation5], 1 }

</bundles_post_ra>
